<compile_context>
chip_gen: v7x
topology: tpu7x:2x2x1
jax: 0.10.0
libtpu: 0.0.40
codegen_flags: <defaults>
</compile_context>

<pallas_src>
import functools
import math

import jax
import jax.numpy as jnp
from jax.experimental import pallas as pl
from jax.experimental.pallas import tpu as pltpu


def _mha_kernel(xq_ref, xk_ref, xv_ref,
                wq_ref, bq_ref, wk_ref, bk_ref, wv_ref, bv_ref,
                wo_ref, bo_ref, o_ref, *, h, q_dim, v_dim, seq_len, tb):
    d_model = xq_ref.shape[-1]
    m = tb * seq_len

    # Fold the batch tile into the matmul M dimension (TB*K rows).
    xq = xq_ref[...].reshape(m, d_model)
    xk = xk_ref[...].reshape(m, d_model)
    xv = xv_ref[...].reshape(m, d_model)

    # Reference scales scores by 1/sqrt(seq_len) (not 1/sqrt(head_dim)).
    scale = 1.0 / math.sqrt(seq_len)

    # f32 output accumulator; output-projection bias folded in up front.
    acc = jnp.zeros((m, d_model), jnp.float32) + bo_ref[...]

    # Heads are separated at the weight level (wrapper pre-splits weights to a
    # leading h axis), so there is no sub-vreg lane slicing of activations and
    # no lane-axis concatenate: each head is accumulated straight into the
    # output projection.  h is small and static -> trace-time unroll.
    # TODO(synk): for large h / seq_len, move heads onto a grid axis (or
    # lax.fori_loop) and tile the KV axis (online softmax) to bound VMEM,
    # especially for v7x's 64 MiB VMEM.
    for i in range(h):
        q_i = (jnp.dot(xq, wq_ref[i], preferred_element_type=jnp.float32)
               + bq_ref[i]) * scale                                    # (m, q)
        k_i = jnp.dot(xk, wk_ref[i],
                      preferred_element_type=jnp.float32) + bk_ref[i]  # (m, q)
        v_i = jnp.dot(xv, wv_ref[i],
                      preferred_element_type=jnp.float32) + bv_ref[i]  # (m, v)

        # Per-batch-element attention (batch dim leading = canonical form).
        q3 = q_i.reshape(tb, seq_len, q_dim)
        k3 = k_i.reshape(tb, seq_len, q_dim)
        v3 = v_i.reshape(tb, seq_len, v_dim)

        s = jnp.einsum("bkq,blq->bkl", q3, k3,
                       preferred_element_type=jnp.float32)        # (tb, K, K)

        # Numerically stable softmax; reciprocal on the EUP (free slot).
        mx = jnp.max(s, axis=-1, keepdims=True)
        e = jnp.exp(s - mx)
        p = e * pl.reciprocal(jnp.sum(e, axis=-1, keepdims=True), approx=True)

        o3 = jnp.einsum("bkl,blv->bkv", p, v3,
                        preferred_element_type=jnp.float32)       # (tb, K, v)

        # Output projection accumulated per head: no concat, no re-layout.
        acc = acc + jnp.dot(o3.reshape(m, v_dim), wo_ref[i],
                            preferred_element_type=jnp.float32)

    # NOTE: d_model=32 < 128 lanes -> masked partial stores on writeback; only
    # worth a lane-dense repack if profiling shows the store slot saturated.
    o_ref[...] = acc.reshape(tb, seq_len, d_model).astype(o_ref.dtype)


def _pick_batch_tile(batch, seq_len):
    """Largest divisor of `batch` giving M = TB*K >= ~256, while keeping at
    least 2 grid steps (dual-TensorCore sharding on v7x) when possible."""
    target = max(1, -(-256 // seq_len))          # ceil(256 / K)
    tb = min(batch, target)
    while batch % tb:
        tb -= 1
    if batch // tb < 2 and batch >= 2:
        tb = max(1, batch // 2)
        while batch % tb:
            tb -= 1
    return tb


def multi_head_attention(query, key, value, params, *, q_dim, v_dim, h):
    """query/key/value: (B, K, d_model) float32. Returns (B, K, d_model)."""
    B, K, d_model = query.shape
    f32 = jnp.float32

    # nn.Linear: y = x @ W.T + b.  torch.chunk(h, dim=-1) -> head i owns output
    # columns [i*dim, (i+1)*dim).  Pre-split every weight/bias per head in the
    # wrapper so the kernel never slices narrow lane columns of activations.
    wq = params["Wq"].reshape(h, q_dim, d_model).transpose(0, 2, 1).astype(f32)  # (h,d,q)
    wk = params["Wk"].reshape(h, q_dim, d_model).transpose(0, 2, 1).astype(f32)  # (h,d,q)
    wv = params["Wv"].reshape(h, v_dim, d_model).transpose(0, 2, 1).astype(f32)  # (h,d,v)
    wo = params["Wo"].T.reshape(h, v_dim, d_model).astype(f32)                   # (h,v,d)
    bq = params["bq"].reshape(h, 1, q_dim).astype(f32)
    bk = params["bk"].reshape(h, 1, q_dim).astype(f32)
    bv = params["bv"].reshape(h, 1, v_dim).astype(f32)
    bo = params["bo"].reshape(1, d_model).astype(f32)

    tb = _pick_batch_tile(B, K)
    grid = (B // tb,)

    kernel = functools.partial(_mha_kernel, h=h, q_dim=q_dim, v_dim=v_dim,
                               seq_len=K, tb=tb)

    act_spec = pl.BlockSpec((tb, K, d_model), lambda b: (b, 0, 0))
    # Weights/biases: constant index_map -> resident in VMEM across the grid.
    resident = lambda shape: pl.BlockSpec(shape, lambda b: (0,) * len(shape))

    out = pl.pallas_call(
        kernel,
        out_shape=jax.ShapeDtypeStruct((B, K, d_model), query.dtype),
        grid_spec=pl.GridSpec(
            grid=grid,
            in_specs=[
                act_spec, act_spec, act_spec,
                resident((h, d_model, q_dim)), resident((h, 1, q_dim)),
                resident((h, d_model, q_dim)), resident((h, 1, q_dim)),
                resident((h, d_model, v_dim)), resident((h, 1, v_dim)),
                resident((h, v_dim, d_model)), resident((1, d_model)),
            ],
            out_specs=pl.BlockSpec((tb, K, d_model), lambda b: (b, 0, 0)),
        ),
        compiler_params=pltpu.CompilerParams(
            dimension_semantics=("parallel",)),
    )(query, key, value, wq, bq, wk, bk, wv, bv, wo, bo)
    return out


def reference_mha(query, key, value, params, *, q_dim, v_dim, h):
    """Pure-JAX (f32) replica of the PyTorch forward (for validation)."""
    B, K, d_model = query.shape
    lin = lambda x, W, b: x @ W.T + b
    qs = lin(query, params["Wq"], params["bq"])   # (B, K, q*h)
    ks = lin(key,   params["Wk"], params["bk"])
    vs = lin(value, params["Wv"], params["bv"])
    # torch.cat(chunk(h, dim=-1), dim=0) -> (h*B, K, head_dim)
    split = lambda t: jnp.concatenate(jnp.split(t, h, axis=-1), axis=0)
    qs, ks, vs = split(qs), split(ks), split(vs)
    scores = jnp.einsum("bkd,bld->bkl", qs, ks) / jnp.sqrt(jnp.float32(K))
    scores = jax.nn.softmax(scores, axis=-1)
    att = jnp.einsum("bkl,bld->bkd", scores, vs)               # (h*B, K, v)
    att = jnp.concatenate(jnp.split(att, h, axis=0), axis=-1)  # (B, K, h*v)
    return lin(att, params["Wo"], params["bo"])


if __name__ == "__main__":
    # Small shapes consistent with the module; B large enough that batch
    # blocking (TB=32 -> M=256, 2 grid steps) is actually exercised.
    B, K, d_model = 64, 8, 32
    q_dim, v_dim, h = 16, 16, 4

    key0 = jax.random.PRNGKey(0)
    keys = jax.random.split(key0, 12)
    scale = 0.1

    params = {
        "Wq": scale * jax.random.normal(keys[0], (q_dim * h, d_model), jnp.float32),
        "bq": scale * jax.random.normal(keys[1], (q_dim * h,), jnp.float32),
        "Wk": scale * jax.random.normal(keys[2], (q_dim * h, d_model), jnp.float32),
        "bk": scale * jax.random.normal(keys[3], (q_dim * h,), jnp.float32),
        "Wv": scale * jax.random.normal(keys[4], (v_dim * h, d_model), jnp.float32),
        "bv": scale * jax.random.normal(keys[5], (v_dim * h,), jnp.float32),
        "Wo": scale * jax.random.normal(keys[6], (d_model, h * v_dim), jnp.float32),
        "bo": scale * jax.random.normal(keys[7], (d_model,), jnp.float32),
    }

    query = jax.random.normal(keys[8], (B, K, d_model), jnp.float32)
    key_in = jax.random.normal(keys[9], (B, K, d_model), jnp.float32)
    value = jax.random.normal(keys[10], (B, K, d_model), jnp.float32)

    out = multi_head_attention(query, key_in, value, params,
                               q_dim=q_dim, v_dim=v_dim, h=h)
    out = jax.block_until_ready(out)

    ref = reference_mha(query, key_in, value, params,
                        q_dim=q_dim, v_dim=v_dim, h=h)
    assert out.shape == (B, K, d_model)
    # f32 MXU operands everywhere; only error source is the EUP approx
    # reciprocal in the softmax denominator (~1e-3 relative).
    assert jnp.allclose(out, ref, atol=1e-2, rtol=1e-2), (
        float(jnp.max(jnp.abs(out - ref))))
    print("KERNEL_OK")
</pallas_src>

<mosaic_0001>
module attributes {stable_mosaic.version = 11 : i64} {
  func.func @_mha_kernel(%arg0: i32, %arg1: memref<32x8x32xf32, #tpu.memory_space<vmem>>, %arg2: memref<32x8x32xf32, #tpu.memory_space<vmem>>, %arg3: memref<32x8x32xf32, #tpu.memory_space<vmem>>, %arg4: memref<4x32x16xf32, #tpu.memory_space<vmem>>, %arg5: memref<4x1x16xf32, #tpu.memory_space<vmem>>, %arg6: memref<4x32x16xf32, #tpu.memory_space<vmem>>, %arg7: memref<4x1x16xf32, #tpu.memory_space<vmem>>, %arg8: memref<4x32x16xf32, #tpu.memory_space<vmem>>, %arg9: memref<4x1x16xf32, #tpu.memory_space<vmem>>, %arg10: memref<4x16x32xf32, #tpu.memory_space<vmem>>, %arg11: memref<1x32xf32, #tpu.memory_space<vmem>>, %arg12: memref<32x8x32xf32, #tpu.memory_space<vmem>>) attributes {dimension_semantics = [#tpu.dimension_semantics<parallel>], iteration_bounds = array<i64: 2>, scalar_prefetch = 0 : i64, scratch_operands = 0 : i64, tpu.core_type = #tpu.core_type<tc>, window_params = [{transform_indices = @transform_0, window_bounds = array<i64: 32, 8, 32>}, {transform_indices = @transform_1, window_bounds = array<i64: 32, 8, 32>}, {transform_indices = @transform_2, window_bounds = array<i64: 32, 8, 32>}, {pipeline_mode = #tpu.pipeline_mode<synchronous>, transform_indices = @transform_3, window_bounds = array<i64: 4, 32, 16>}, {pipeline_mode = #tpu.pipeline_mode<synchronous>, transform_indices = @transform_4, window_bounds = array<i64: 4, 1, 16>}, {pipeline_mode = #tpu.pipeline_mode<synchronous>, transform_indices = @transform_5, window_bounds = array<i64: 4, 32, 16>}, {pipeline_mode = #tpu.pipeline_mode<synchronous>, transform_indices = @transform_6, window_bounds = array<i64: 4, 1, 16>}, {pipeline_mode = #tpu.pipeline_mode<synchronous>, transform_indices = @transform_7, window_bounds = array<i64: 4, 32, 16>}, {pipeline_mode = #tpu.pipeline_mode<synchronous>, transform_indices = @transform_8, window_bounds = array<i64: 4, 1, 16>}, {pipeline_mode = #tpu.pipeline_mode<synchronous>, transform_indices = @transform_9, window_bounds = array<i64: 4, 16, 32>}, {pipeline_mode = #tpu.pipeline_mode<synchronous>, transform_indices = @transform_10, window_bounds = array<i64: 1, 32>}, {transform_indices = @transform_11, window_bounds = array<i64: 32, 8, 32>}]} {
    %c0 = arith.constant 0 : index
    %c0_0 = arith.constant 0 : index
    %c0_1 = arith.constant 0 : index
    %0 = vector.load %arg1[%c0, %c0_0, %c0_1] : memref<32x8x32xf32, #tpu.memory_space<vmem>>, vector<32x8x32xf32>
    %1 = vector.shape_cast %0 : vector<32x8x32xf32> to vector<256x32xf32>
    %c0_2 = arith.constant 0 : index
    %c0_3 = arith.constant 0 : index
    %c0_4 = arith.constant 0 : index
    %2 = vector.load %arg2[%c0_2, %c0_3, %c0_4] : memref<32x8x32xf32, #tpu.memory_space<vmem>>, vector<32x8x32xf32>
    %3 = vector.shape_cast %2 : vector<32x8x32xf32> to vector<256x32xf32>
    %c0_5 = arith.constant 0 : index
    %c0_6 = arith.constant 0 : index
    %c0_7 = arith.constant 0 : index
    %4 = vector.load %arg3[%c0_5, %c0_6, %c0_7] : memref<32x8x32xf32, #tpu.memory_space<vmem>>, vector<32x8x32xf32>
    %5 = vector.shape_cast %4 : vector<32x8x32xf32> to vector<256x32xf32>
    %cst = arith.constant 0.000000e+00 : f32
    %6 = vector.broadcast %cst : f32 to vector<256x32xf32>
    %c0_8 = arith.constant 0 : index
    %c0_9 = arith.constant 0 : index
    %7 = vector.load %arg11[%c0_8, %c0_9] : memref<1x32xf32, #tpu.memory_space<vmem>>, vector<1x32xf32>
    %8 = vector.broadcast %7 : vector<1x32xf32> to vector<256x32xf32>
    %9 = arith.addf %6, %8 : vector<256x32xf32>
    %c0_10 = arith.constant 0 : index
    %c0_11 = arith.constant 0 : index
    %c0_12 = arith.constant 0 : index
    %10 = vector.load %arg4[%c0_10, %c0_11, %c0_12] : memref<4x32x16xf32, #tpu.memory_space<vmem>>, vector<1x32x16xf32>
    %11 = vector.shape_cast %10 : vector<1x32x16xf32> to vector<32x16xf32>
    %cst_13 = arith.constant dense<0.000000e+00> : vector<256x16xf32>
    %12 = tpu.matmul %1, %11, %cst_13 {dimension_numbers = #tpu.dot_dimension_numbers<[1], [0], [0], [1], [0, 0, 1, 1], [], []>} : vector<256x32xf32>, vector<32x16xf32>, vector<256x16xf32> -> vector<256x16xf32>
    %c0_14 = arith.constant 0 : index
    %c0_15 = arith.constant 0 : index
    %c0_16 = arith.constant 0 : index
    %13 = vector.load %arg5[%c0_14, %c0_15, %c0_16] : memref<4x1x16xf32, #tpu.memory_space<vmem>>, vector<1x1x16xf32>
    %14 = vector.shape_cast %13 : vector<1x1x16xf32> to vector<1x16xf32>
    %15 = vector.broadcast %14 : vector<1x16xf32> to vector<256x16xf32>
    %16 = arith.addf %12, %15 : vector<256x16xf32>
    %cst_17 = arith.constant 0.353553385 : f32
    %17 = vector.broadcast %cst_17 : f32 to vector<256x16xf32>
    %18 = arith.mulf %16, %17 : vector<256x16xf32>
    %c0_18 = arith.constant 0 : index
    %c0_19 = arith.constant 0 : index
    %c0_20 = arith.constant 0 : index
    %19 = vector.load %arg6[%c0_18, %c0_19, %c0_20] : memref<4x32x16xf32, #tpu.memory_space<vmem>>, vector<1x32x16xf32>
    %20 = vector.shape_cast %19 : vector<1x32x16xf32> to vector<32x16xf32>
    %cst_21 = arith.constant dense<0.000000e+00> : vector<256x16xf32>
    %21 = tpu.matmul %3, %20, %cst_21 {dimension_numbers = #tpu.dot_dimension_numbers<[1], [0], [0], [1], [0, 0, 1, 1], [], []>} : vector<256x32xf32>, vector<32x16xf32>, vector<256x16xf32> -> vector<256x16xf32>
    %c0_22 = arith.constant 0 : index
    %c0_23 = arith.constant 0 : index
    %c0_24 = arith.constant 0 : index
    %22 = vector.load %arg7[%c0_22, %c0_23, %c0_24] : memref<4x1x16xf32, #tpu.memory_space<vmem>>, vector<1x1x16xf32>
    %23 = vector.shape_cast %22 : vector<1x1x16xf32> to vector<1x16xf32>
    %24 = vector.broadcast %23 : vector<1x16xf32> to vector<256x16xf32>
    %25 = arith.addf %21, %24 : vector<256x16xf32>
    %c0_25 = arith.constant 0 : index
    %c0_26 = arith.constant 0 : index
    %c0_27 = arith.constant 0 : index
    %26 = vector.load %arg8[%c0_25, %c0_26, %c0_27] : memref<4x32x16xf32, #tpu.memory_space<vmem>>, vector<1x32x16xf32>
    %27 = vector.shape_cast %26 : vector<1x32x16xf32> to vector<32x16xf32>
    %cst_28 = arith.constant dense<0.000000e+00> : vector<256x16xf32>
    %28 = tpu.matmul %5, %27, %cst_28 {dimension_numbers = #tpu.dot_dimension_numbers<[1], [0], [0], [1], [0, 0, 1, 1], [], []>} : vector<256x32xf32>, vector<32x16xf32>, vector<256x16xf32> -> vector<256x16xf32>
    %c0_29 = arith.constant 0 : index
    %c0_30 = arith.constant 0 : index
    %c0_31 = arith.constant 0 : index
    %29 = vector.load %arg9[%c0_29, %c0_30, %c0_31] : memref<4x1x16xf32, #tpu.memory_space<vmem>>, vector<1x1x16xf32>
    %30 = vector.shape_cast %29 : vector<1x1x16xf32> to vector<1x16xf32>
    %31 = vector.broadcast %30 : vector<1x16xf32> to vector<256x16xf32>
    %32 = arith.addf %28, %31 : vector<256x16xf32>
    %33 = vector.shape_cast %18 : vector<256x16xf32> to vector<32x8x16xf32>
    %34 = vector.shape_cast %25 : vector<256x16xf32> to vector<32x8x16xf32>
    %35 = vector.shape_cast %32 : vector<256x16xf32> to vector<32x8x16xf32>
    "tpu.trace_start"() <{level = 10 : i32, message = "bkq,blq->bkl"}> : () -> ()
    %cst_32 = arith.constant dense<0.000000e+00> : vector<32x8x8xf32>
    %36 = tpu.matmul %33, %34, %cst_32 {dimension_numbers = #tpu.dot_dimension_numbers<[2], [2], [1], [1], [0, 0, 0, 1, 1, 1], [0], [0]>} : vector<32x8x16xf32>, vector<32x8x16xf32>, vector<32x8x8xf32> -> vector<32x8x8xf32>
    "tpu.trace_stop"() : () -> ()
    %cst_33 = arith.constant dense<0xFF800000> : vector<32x8xf32>
    %37 = vector.multi_reduction <maximumf>, %36, %cst_33 [2] : vector<32x8x8xf32> to vector<32x8xf32>
    %38 = vector.shape_cast %37 : vector<32x8xf32> to vector<32x8x1xf32>
    %39 = vector.broadcast %38 : vector<32x8x1xf32> to vector<32x8x8xf32>
    %40 = arith.subf %36, %39 : vector<32x8x8xf32>
    %41 = math.exp %40 : vector<32x8x8xf32>
    %cst_34 = arith.constant dense<0.000000e+00> : vector<32x8xf32>
    %42 = vector.multi_reduction <add>, %41, %cst_34 [2] : vector<32x8x8xf32> to vector<32x8xf32>
    %43 = vector.shape_cast %42 : vector<32x8xf32> to vector<32x8x1xf32>
    %44 = tpu.reciprocal %43 {approx = true} : vector<32x8x1xf32> -> vector<32x8x1xf32>
    %45 = vector.broadcast %44 : vector<32x8x1xf32> to vector<32x8x8xf32>
    %46 = arith.mulf %41, %45 : vector<32x8x8xf32>
    "tpu.trace_start"() <{level = 10 : i32, message = "bkl,blv->bkv"}> : () -> ()
    %cst_35 = arith.constant dense<0.000000e+00> : vector<32x8x16xf32>
    %47 = tpu.matmul %46, %35, %cst_35 {dimension_numbers = #tpu.dot_dimension_numbers<[2], [1], [1], [2], [0, 0, 0, 1, 1, 2], [0], [0]>} : vector<32x8x8xf32>, vector<32x8x16xf32>, vector<32x8x16xf32> -> vector<32x8x16xf32>
    "tpu.trace_stop"() : () -> ()
    %48 = vector.shape_cast %47 : vector<32x8x16xf32> to vector<256x16xf32>
    %c0_36 = arith.constant 0 : index
    %c0_37 = arith.constant 0 : index
    %c0_38 = arith.constant 0 : index
    %49 = vector.load %arg10[%c0_36, %c0_37, %c0_38] : memref<4x16x32xf32, #tpu.memory_space<vmem>>, vector<1x16x32xf32>
    %50 = vector.shape_cast %49 : vector<1x16x32xf32> to vector<16x32xf32>
    %cst_39 = arith.constant dense<0.000000e+00> : vector<256x32xf32>
    %51 = tpu.matmul %48, %50, %cst_39 {dimension_numbers = #tpu.dot_dimension_numbers<[1], [0], [0], [1], [0, 0, 1, 1], [], []>} : vector<256x16xf32>, vector<16x32xf32>, vector<256x32xf32> -> vector<256x32xf32>
    %52 = arith.addf %9, %51 : vector<256x32xf32>
    %c1 = arith.constant 1 : index
    %c0_40 = arith.constant 0 : index
    %c0_41 = arith.constant 0 : index
    %53 = vector.load %arg4[%c1, %c0_40, %c0_41] : memref<4x32x16xf32, #tpu.memory_space<vmem>>, vector<1x32x16xf32>
    %54 = vector.shape_cast %53 : vector<1x32x16xf32> to vector<32x16xf32>
    %cst_42 = arith.constant dense<0.000000e+00> : vector<256x16xf32>
    %55 = tpu.matmul %1, %54, %cst_42 {dimension_numbers = #tpu.dot_dimension_numbers<[1], [0], [0], [1], [0, 0, 1, 1], [], []>} : vector<256x32xf32>, vector<32x16xf32>, vector<256x16xf32> -> vector<256x16xf32>
    %c1_43 = arith.constant 1 : index
    %c0_44 = arith.constant 0 : index
    %c0_45 = arith.constant 0 : index
    %56 = vector.load %arg5[%c1_43, %c0_44, %c0_45] : memref<4x1x16xf32, #tpu.memory_space<vmem>>, vector<1x1x16xf32>
    %57 = vector.shape_cast %56 : vector<1x1x16xf32> to vector<1x16xf32>
    %58 = vector.broadcast %57 : vector<1x16xf32> to vector<256x16xf32>
    %59 = arith.addf %55, %58 : vector<256x16xf32>
    %cst_46 = arith.constant 0.353553385 : f32
    %60 = vector.broadcast %cst_46 : f32 to vector<256x16xf32>
    %61 = arith.mulf %59, %60 : vector<256x16xf32>
    %c1_47 = arith.constant 1 : index
    %c0_48 = arith.constant 0 : index
    %c0_49 = arith.constant 0 : index
    %62 = vector.load %arg6[%c1_47, %c0_48, %c0_49] : memref<4x32x16xf32, #tpu.memory_space<vmem>>, vector<1x32x16xf32>
    %63 = vector.shape_cast %62 : vector<1x32x16xf32> to vector<32x16xf32>
    %cst_50 = arith.constant dense<0.000000e+00> : vector<256x16xf32>
    %64 = tpu.matmul %3, %63, %cst_50 {dimension_numbers = #tpu.dot_dimension_numbers<[1], [0], [0], [1], [0, 0, 1, 1], [], []>} : vector<256x32xf32>, vector<32x16xf32>, vector<256x16xf32> -> vector<256x16xf32>
    %c1_51 = arith.constant 1 : index
    %c0_52 = arith.constant 0 : index
    %c0_53 = arith.constant 0 : index
    %65 = vector.load %arg7[%c1_51, %c0_52, %c0_53] : memref<4x1x16xf32, #tpu.memory_space<vmem>>, vector<1x1x16xf32>
    %66 = vector.shape_cast %65 : vector<1x1x16xf32> to vector<1x16xf32>
    %67 = vector.broadcast %66 : vector<1x16xf32> to vector<256x16xf32>
    %68 = arith.addf %64, %67 : vector<256x16xf32>
    %c1_54 = arith.constant 1 : index
    %c0_55 = arith.constant 0 : index
    %c0_56 = arith.constant 0 : index
    %69 = vector.load %arg8[%c1_54, %c0_55, %c0_56] : memref<4x32x16xf32, #tpu.memory_space<vmem>>, vector<1x32x16xf32>
    %70 = vector.shape_cast %69 : vector<1x32x16xf32> to vector<32x16xf32>
    %cst_57 = arith.constant dense<0.000000e+00> : vector<256x16xf32>
    %71 = tpu.matmul %5, %70, %cst_57 {dimension_numbers = #tpu.dot_dimension_numbers<[1], [0], [0], [1], [0, 0, 1, 1], [], []>} : vector<256x32xf32>, vector<32x16xf32>, vector<256x16xf32> -> vector<256x16xf32>
    %c1_58 = arith.constant 1 : index
    %c0_59 = arith.constant 0 : index
    %c0_60 = arith.constant 0 : index
    %72 = vector.load %arg9[%c1_58, %c0_59, %c0_60] : memref<4x1x16xf32, #tpu.memory_space<vmem>>, vector<1x1x16xf32>
    %73 = vector.shape_cast %72 : vector<1x1x16xf32> to vector<1x16xf32>
    %74 = vector.broadcast %73 : vector<1x16xf32> to vector<256x16xf32>
    %75 = arith.addf %71, %74 : vector<256x16xf32>
    %76 = vector.shape_cast %61 : vector<256x16xf32> to vector<32x8x16xf32>
    %77 = vector.shape_cast %68 : vector<256x16xf32> to vector<32x8x16xf32>
    %78 = vector.shape_cast %75 : vector<256x16xf32> to vector<32x8x16xf32>
    "tpu.trace_start"() <{level = 10 : i32, message = "bkq,blq->bkl"}> : () -> ()
    %cst_61 = arith.constant dense<0.000000e+00> : vector<32x8x8xf32>
    %79 = tpu.matmul %76, %77, %cst_61 {dimension_numbers = #tpu.dot_dimension_numbers<[2], [2], [1], [1], [0, 0, 0, 1, 1, 1], [0], [0]>} : vector<32x8x16xf32>, vector<32x8x16xf32>, vector<32x8x8xf32> -> vector<32x8x8xf32>
    "tpu.trace_stop"() : () -> ()
    %cst_62 = arith.constant dense<0xFF800000> : vector<32x8xf32>
    %80 = vector.multi_reduction <maximumf>, %79, %cst_62 [2] : vector<32x8x8xf32> to vector<32x8xf32>
    %81 = vector.shape_cast %80 : vector<32x8xf32> to vector<32x8x1xf32>
    %82 = vector.broadcast %81 : vector<32x8x1xf32> to vector<32x8x8xf32>
    %83 = arith.subf %79, %82 : vector<32x8x8xf32>
    %84 = math.exp %83 : vector<32x8x8xf32>
    %cst_63 = arith.constant dense<0.000000e+00> : vector<32x8xf32>
    %85 = vector.multi_reduction <add>, %84, %cst_63 [2] : vector<32x8x8xf32> to vector<32x8xf32>
    %86 = vector.shape_cast %85 : vector<32x8xf32> to vector<32x8x1xf32>
    %87 = tpu.reciprocal %86 {approx = true} : vector<32x8x1xf32> -> vector<32x8x1xf32>
    %88 = vector.broadcast %87 : vector<32x8x1xf32> to vector<32x8x8xf32>
    %89 = arith.mulf %84, %88 : vector<32x8x8xf32>
    "tpu.trace_start"() <{level = 10 : i32, message = "bkl,blv->bkv"}> : () -> ()
    %cst_64 = arith.constant dense<0.000000e+00> : vector<32x8x16xf32>
    %90 = tpu.matmul %89, %78, %cst_64 {dimension_numbers = #tpu.dot_dimension_numbers<[2], [1], [1], [2], [0, 0, 0, 1, 1, 2], [0], [0]>} : vector<32x8x8xf32>, vector<32x8x16xf32>, vector<32x8x16xf32> -> vector<32x8x16xf32>
    "tpu.trace_stop"() : () -> ()
    %91 = vector.shape_cast %90 : vector<32x8x16xf32> to vector<256x16xf32>
    %c1_65 = arith.constant 1 : index
    %c0_66 = arith.constant 0 : index
    %c0_67 = arith.constant 0 : index
    %92 = vector.load %arg10[%c1_65, %c0_66, %c0_67] : memref<4x16x32xf32, #tpu.memory_space<vmem>>, vector<1x16x32xf32>
    %93 = vector.shape_cast %92 : vector<1x16x32xf32> to vector<16x32xf32>
    %cst_68 = arith.constant dense<0.000000e+00> : vector<256x32xf32>
    %94 = tpu.matmul %91, %93, %cst_68 {dimension_numbers = #tpu.dot_dimension_numbers<[1], [0], [0], [1], [0, 0, 1, 1], [], []>} : vector<256x16xf32>, vector<16x32xf32>, vector<256x32xf32> -> vector<256x32xf32>
    %95 = arith.addf %52, %94 : vector<256x32xf32>
    %c2 = arith.constant 2 : index
    %c0_69 = arith.constant 0 : index
    %c0_70 = arith.constant 0 : index
    %96 = vector.load %arg4[%c2, %c0_69, %c0_70] : memref<4x32x16xf32, #tpu.memory_space<vmem>>, vector<1x32x16xf32>
    %97 = vector.shape_cast %96 : vector<1x32x16xf32> to vector<32x16xf32>
    %cst_71 = arith.constant dense<0.000000e+00> : vector<256x16xf32>
    %98 = tpu.matmul %1, %97, %cst_71 {dimension_numbers = #tpu.dot_dimension_numbers<[1], [0], [0], [1], [0, 0, 1, 1], [], []>} : vector<256x32xf32>, vector<32x16xf32>, vector<256x16xf32> -> vector<256x16xf32>
    %c2_72 = arith.constant 2 : index
    %c0_73 = arith.constant 0 : index
    %c0_74 = arith.constant 0 : index
    %99 = vector.load %arg5[%c2_72, %c0_73, %c0_74] : memref<4x1x16xf32, #tpu.memory_space<vmem>>, vector<1x1x16xf32>
    %100 = vector.shape_cast %99 : vector<1x1x16xf32> to vector<1x16xf32>
    %101 = vector.broadcast %100 : vector<1x16xf32> to vector<256x16xf32>
    %102 = arith.addf %98, %101 : vector<256x16xf32>
    %cst_75 = arith.constant 0.353553385 : f32
    %103 = vector.broadcast %cst_75 : f32 to vector<256x16xf32>
    %104 = arith.mulf %102, %103 : vector<256x16xf32>
    %c2_76 = arith.constant 2 : index
    %c0_77 = arith.constant 0 : index
    %c0_78 = arith.constant 0 : index
    %105 = vector.load %arg6[%c2_76, %c0_77, %c0_78] : memref<4x32x16xf32, #tpu.memory_space<vmem>>, vector<1x32x16xf32>
    %106 = vector.shape_cast %105 : vector<1x32x16xf32> to vector<32x16xf32>
    %cst_79 = arith.constant dense<0.000000e+00> : vector<256x16xf32>
    %107 = tpu.matmul %3, %106, %cst_79 {dimension_numbers = #tpu.dot_dimension_numbers<[1], [0], [0], [1], [0, 0, 1, 1], [], []>} : vector<256x32xf32>, vector<32x16xf32>, vector<256x16xf32> -> vector<256x16xf32>
    %c2_80 = arith.constant 2 : index
    %c0_81 = arith.constant 0 : index
    %c0_82 = arith.constant 0 : index
    %108 = vector.load %arg7[%c2_80, %c0_81, %c0_82] : memref<4x1x16xf32, #tpu.memory_space<vmem>>, vector<1x1x16xf32>
    %109 = vector.shape_cast %108 : vector<1x1x16xf32> to vector<1x16xf32>
    %110 = vector.broadcast %109 : vector<1x16xf32> to vector<256x16xf32>
    %111 = arith.addf %107, %110 : vector<256x16xf32>
    %c2_83 = arith.constant 2 : index
    %c0_84 = arith.constant 0 : index
    %c0_85 = arith.constant 0 : index
    %112 = vector.load %arg8[%c2_83, %c0_84, %c0_85] : memref<4x32x16xf32, #tpu.memory_space<vmem>>, vector<1x32x16xf32>
    %113 = vector.shape_cast %112 : vector<1x32x16xf32> to vector<32x16xf32>
    %cst_86 = arith.constant dense<0.000000e+00> : vector<256x16xf32>
    %114 = tpu.matmul %5, %113, %cst_86 {dimension_numbers = #tpu.dot_dimension_numbers<[1], [0], [0], [1], [0, 0, 1, 1], [], []>} : vector<256x32xf32>, vector<32x16xf32>, vector<256x16xf32> -> vector<256x16xf32>
    %c2_87 = arith.constant 2 : index
    %c0_88 = arith.constant 0 : index
    %c0_89 = arith.constant 0 : index
    %115 = vector.load %arg9[%c2_87, %c0_88, %c0_89] : memref<4x1x16xf32, #tpu.memory_space<vmem>>, vector<1x1x16xf32>
    %116 = vector.shape_cast %115 : vector<1x1x16xf32> to vector<1x16xf32>
    %117 = vector.broadcast %116 : vector<1x16xf32> to vector<256x16xf32>
    %118 = arith.addf %114, %117 : vector<256x16xf32>
    %119 = vector.shape_cast %104 : vector<256x16xf32> to vector<32x8x16xf32>
    %120 = vector.shape_cast %111 : vector<256x16xf32> to vector<32x8x16xf32>
    %121 = vector.shape_cast %118 : vector<256x16xf32> to vector<32x8x16xf32>
    "tpu.trace_start"() <{level = 10 : i32, message = "bkq,blq->bkl"}> : () -> ()
    %cst_90 = arith.constant dense<0.000000e+00> : vector<32x8x8xf32>
    %122 = tpu.matmul %119, %120, %cst_90 {dimension_numbers = #tpu.dot_dimension_numbers<[2], [2], [1], [1], [0, 0, 0, 1, 1, 1], [0], [0]>} : vector<32x8x16xf32>, vector<32x8x16xf32>, vector<32x8x8xf32> -> vector<32x8x8xf32>
    "tpu.trace_stop"() : () -> ()
    %cst_91 = arith.constant dense<0xFF800000> : vector<32x8xf32>
    %123 = vector.multi_reduction <maximumf>, %122, %cst_91 [2] : vector<32x8x8xf32> to vector<32x8xf32>
    %124 = vector.shape_cast %123 : vector<32x8xf32> to vector<32x8x1xf32>
    %125 = vector.broadcast %124 : vector<32x8x1xf32> to vector<32x8x8xf32>
    %126 = arith.subf %122, %125 : vector<32x8x8xf32>
    %127 = math.exp %126 : vector<32x8x8xf32>
    %cst_92 = arith.constant dense<0.000000e+00> : vector<32x8xf32>
    %128 = vector.multi_reduction <add>, %127, %cst_92 [2] : vector<32x8x8xf32> to vector<32x8xf32>
    %129 = vector.shape_cast %128 : vector<32x8xf32> to vector<32x8x1xf32>
    %130 = tpu.reciprocal %129 {approx = true} : vector<32x8x1xf32> -> vector<32x8x1xf32>
    %131 = vector.broadcast %130 : vector<32x8x1xf32> to vector<32x8x8xf32>
    %132 = arith.mulf %127, %131 : vector<32x8x8xf32>
    "tpu.trace_start"() <{level = 10 : i32, message = "bkl,blv->bkv"}> : () -> ()
    %cst_93 = arith.constant dense<0.000000e+00> : vector<32x8x16xf32>
    %133 = tpu.matmul %132, %121, %cst_93 {dimension_numbers = #tpu.dot_dimension_numbers<[2], [1], [1], [2], [0, 0, 0, 1, 1, 2], [0], [0]>} : vector<32x8x8xf32>, vector<32x8x16xf32>, vector<32x8x16xf32> -> vector<32x8x16xf32>
    "tpu.trace_stop"() : () -> ()
    %134 = vector.shape_cast %133 : vector<32x8x16xf32> to vector<256x16xf32>
    %c2_94 = arith.constant 2 : index
    %c0_95 = arith.constant 0 : index
    %c0_96 = arith.constant 0 : index
    %135 = vector.load %arg10[%c2_94, %c0_95, %c0_96] : memref<4x16x32xf32, #tpu.memory_space<vmem>>, vector<1x16x32xf32>
    %136 = vector.shape_cast %135 : vector<1x16x32xf32> to vector<16x32xf32>
    %cst_97 = arith.constant dense<0.000000e+00> : vector<256x32xf32>
    %137 = tpu.matmul %134, %136, %cst_97 {dimension_numbers = #tpu.dot_dimension_numbers<[1], [0], [0], [1], [0, 0, 1, 1], [], []>} : vector<256x16xf32>, vector<16x32xf32>, vector<256x32xf32> -> vector<256x32xf32>
    %138 = arith.addf %95, %137 : vector<256x32xf32>
    %c3 = arith.constant 3 : index
    %c0_98 = arith.constant 0 : index
    %c0_99 = arith.constant 0 : index
    %139 = vector.load %arg4[%c3, %c0_98, %c0_99] : memref<4x32x16xf32, #tpu.memory_space<vmem>>, vector<1x32x16xf32>
    %140 = vector.shape_cast %139 : vector<1x32x16xf32> to vector<32x16xf32>
    %cst_100 = arith.constant dense<0.000000e+00> : vector<256x16xf32>
    %141 = tpu.matmul %1, %140, %cst_100 {dimension_numbers = #tpu.dot_dimension_numbers<[1], [0], [0], [1], [0, 0, 1, 1], [], []>} : vector<256x32xf32>, vector<32x16xf32>, vector<256x16xf32> -> vector<256x16xf32>
    %c3_101 = arith.constant 3 : index
    %c0_102 = arith.constant 0 : index
    %c0_103 = arith.constant 0 : index
    %142 = vector.load %arg5[%c3_101, %c0_102, %c0_103] : memref<4x1x16xf32, #tpu.memory_space<vmem>>, vector<1x1x16xf32>
    %143 = vector.shape_cast %142 : vector<1x1x16xf32> to vector<1x16xf32>
    %144 = vector.broadcast %143 : vector<1x16xf32> to vector<256x16xf32>
    %145 = arith.addf %141, %144 : vector<256x16xf32>
    %cst_104 = arith.constant 0.353553385 : f32
    %146 = vector.broadcast %cst_104 : f32 to vector<256x16xf32>
    %147 = arith.mulf %145, %146 : vector<256x16xf32>
    %c3_105 = arith.constant 3 : index
    %c0_106 = arith.constant 0 : index
    %c0_107 = arith.constant 0 : index
    %148 = vector.load %arg6[%c3_105, %c0_106, %c0_107] : memref<4x32x16xf32, #tpu.memory_space<vmem>>, vector<1x32x16xf32>
    %149 = vector.shape_cast %148 : vector<1x32x16xf32> to vector<32x16xf32>
    %cst_108 = arith.constant dense<0.000000e+00> : vector<256x16xf32>
    %150 = tpu.matmul %3, %149, %cst_108 {dimension_numbers = #tpu.dot_dimension_numbers<[1], [0], [0], [1], [0, 0, 1, 1], [], []>} : vector<256x32xf32>, vector<32x16xf32>, vector<256x16xf32> -> vector<256x16xf32>
    %c3_109 = arith.constant 3 : index
    %c0_110 = arith.constant 0 : index
    %c0_111 = arith.constant 0 : index
    %151 = vector.load %arg7[%c3_109, %c0_110, %c0_111] : memref<4x1x16xf32, #tpu.memory_space<vmem>>, vector<1x1x16xf32>
    %152 = vector.shape_cast %151 : vector<1x1x16xf32> to vector<1x16xf32>
    %153 = vector.broadcast %152 : vector<1x16xf32> to vector<256x16xf32>
    %154 = arith.addf %150, %153 : vector<256x16xf32>
    %c3_112 = arith.constant 3 : index
    %c0_113 = arith.constant 0 : index
    %c0_114 = arith.constant 0 : index
    %155 = vector.load %arg8[%c3_112, %c0_113, %c0_114] : memref<4x32x16xf32, #tpu.memory_space<vmem>>, vector<1x32x16xf32>
    %156 = vector.shape_cast %155 : vector<1x32x16xf32> to vector<32x16xf32>
    %cst_115 = arith.constant dense<0.000000e+00> : vector<256x16xf32>
    %157 = tpu.matmul %5, %156, %cst_115 {dimension_numbers = #tpu.dot_dimension_numbers<[1], [0], [0], [1], [0, 0, 1, 1], [], []>} : vector<256x32xf32>, vector<32x16xf32>, vector<256x16xf32> -> vector<256x16xf32>
    %c3_116 = arith.constant 3 : index
    %c0_117 = arith.constant 0 : index
    %c0_118 = arith.constant 0 : index
    %158 = vector.load %arg9[%c3_116, %c0_117, %c0_118] : memref<4x1x16xf32, #tpu.memory_space<vmem>>, vector<1x1x16xf32>
    %159 = vector.shape_cast %158 : vector<1x1x16xf32> to vector<1x16xf32>
    %160 = vector.broadcast %159 : vector<1x16xf32> to vector<256x16xf32>
    %161 = arith.addf %157, %160 : vector<256x16xf32>
    %162 = vector.shape_cast %147 : vector<256x16xf32> to vector<32x8x16xf32>
    %163 = vector.shape_cast %154 : vector<256x16xf32> to vector<32x8x16xf32>
    %164 = vector.shape_cast %161 : vector<256x16xf32> to vector<32x8x16xf32>
    "tpu.trace_start"() <{level = 10 : i32, message = "bkq,blq->bkl"}> : () -> ()
    %cst_119 = arith.constant dense<0.000000e+00> : vector<32x8x8xf32>
    %165 = tpu.matmul %162, %163, %cst_119 {dimension_numbers = #tpu.dot_dimension_numbers<[2], [2], [1], [1], [0, 0, 0, 1, 1, 1], [0], [0]>} : vector<32x8x16xf32>, vector<32x8x16xf32>, vector<32x8x8xf32> -> vector<32x8x8xf32>
    "tpu.trace_stop"() : () -> ()
    %cst_120 = arith.constant dense<0xFF800000> : vector<32x8xf32>
    %166 = vector.multi_reduction <maximumf>, %165, %cst_120 [2] : vector<32x8x8xf32> to vector<32x8xf32>
    %167 = vector.shape_cast %166 : vector<32x8xf32> to vector<32x8x1xf32>
    %168 = vector.broadcast %167 : vector<32x8x1xf32> to vector<32x8x8xf32>
    %169 = arith.subf %165, %168 : vector<32x8x8xf32>
    %170 = math.exp %169 : vector<32x8x8xf32>
    %cst_121 = arith.constant dense<0.000000e+00> : vector<32x8xf32>
    %171 = vector.multi_reduction <add>, %170, %cst_121 [2] : vector<32x8x8xf32> to vector<32x8xf32>
    %172 = vector.shape_cast %171 : vector<32x8xf32> to vector<32x8x1xf32>
    %173 = tpu.reciprocal %172 {approx = true} : vector<32x8x1xf32> -> vector<32x8x1xf32>
    %174 = vector.broadcast %173 : vector<32x8x1xf32> to vector<32x8x8xf32>
    %175 = arith.mulf %170, %174 : vector<32x8x8xf32>
    "tpu.trace_start"() <{level = 10 : i32, message = "bkl,blv->bkv"}> : () -> ()
    %cst_122 = arith.constant dense<0.000000e+00> : vector<32x8x16xf32>
    %176 = tpu.matmul %175, %164, %cst_122 {dimension_numbers = #tpu.dot_dimension_numbers<[2], [1], [1], [2], [0, 0, 0, 1, 1, 2], [0], [0]>} : vector<32x8x8xf32>, vector<32x8x16xf32>, vector<32x8x16xf32> -> vector<32x8x16xf32>
    "tpu.trace_stop"() : () -> ()
    %177 = vector.shape_cast %176 : vector<32x8x16xf32> to vector<256x16xf32>
    %c3_123 = arith.constant 3 : index
    %c0_124 = arith.constant 0 : index
    %c0_125 = arith.constant 0 : index
    %178 = vector.load %arg10[%c3_123, %c0_124, %c0_125] : memref<4x16x32xf32, #tpu.memory_space<vmem>>, vector<1x16x32xf32>
    %179 = vector.shape_cast %178 : vector<1x16x32xf32> to vector<16x32xf32>
    %cst_126 = arith.constant dense<0.000000e+00> : vector<256x32xf32>
    %180 = tpu.matmul %177, %179, %cst_126 {dimension_numbers = #tpu.dot_dimension_numbers<[1], [0], [0], [1], [0, 0, 1, 1], [], []>} : vector<256x16xf32>, vector<16x32xf32>, vector<256x32xf32> -> vector<256x32xf32>
    %181 = arith.addf %138, %180 : vector<256x32xf32>
    %182 = vector.shape_cast %181 : vector<256x32xf32> to vector<32x8x32xf32>
    %c0_127 = arith.constant 0 : index
    %c0_128 = arith.constant 0 : index
    %c0_129 = arith.constant 0 : index
    %183 = vector.load %arg12[%c0_127, %c0_128, %c0_129] : memref<32x8x32xf32, #tpu.memory_space<vmem>>, vector<32x8x32xf32>
    tpu.vector_store %arg12[%c0_127, %c0_128, %c0_129], %182 {strides = array<i32>} : memref<32x8x32xf32, #tpu.memory_space<vmem>>, vector<32x8x32xf32>,
    return
  }
  func.func @transform_0(%arg0: i32) -> (i32, i32, i32) {
    %c0_i32 = arith.constant 0 : i32
    %c0_i32_0 = arith.constant 0 : i32
    %c0_i32_1 = arith.constant 0 : i32
    return %arg0, %c0_i32, %c0_i32_0 : i32, i32, i32
  }
  func.func @transform_1(%arg0: i32) -> (i32, i32, i32) {
    %c0_i32 = arith.constant 0 : i32
    %c0_i32_0 = arith.constant 0 : i32
    %c0_i32_1 = arith.constant 0 : i32
    return %arg0, %c0_i32, %c0_i32_0 : i32, i32, i32
  }
  func.func @transform_2(%arg0: i32) -> (i32, i32, i32) {
    %c0_i32 = arith.constant 0 : i32
    %c0_i32_0 = arith.constant 0 : i32
    %c0_i32_1 = arith.constant 0 : i32
    return %arg0, %c0_i32, %c0_i32_0 : i32, i32, i32
  }
  func.func @transform_3(%arg0: i32) -> (i32, i32, i32) {
    %c0_i32 = arith.constant 0 : i32
    %c0_i32_0 = arith.constant 0 : i32
    %c0_i32_1 = arith.constant 0 : i32
    %c0_i32_2 = arith.constant 0 : i32
    return %c0_i32, %c0_i32_0, %c0_i32_1 : i32, i32, i32
  }
  func.func @transform_4(%arg0: i32) -> (i32, i32, i32) {
    %c0_i32 = arith.constant 0 : i32
    %c0_i32_0 = arith.constant 0 : i32
    %c0_i32_1 = arith.constant 0 : i32
    %c0_i32_2 = arith.constant 0 : i32
    return %c0_i32, %c0_i32_0, %c0_i32_1 : i32, i32, i32
  }
  func.func @transform_5(%arg0: i32) -> (i32, i32, i32) {
    %c0_i32 = arith.constant 0 : i32
    %c0_i32_0 = arith.constant 0 : i32
    %c0_i32_1 = arith.constant 0 : i32
    %c0_i32_2 = arith.constant 0 : i32
    return %c0_i32, %c0_i32_0, %c0_i32_1 : i32, i32, i32
  }
  func.func @transform_6(%arg0: i32) -> (i32, i32, i32) {
    %c0_i32 = arith.constant 0 : i32
    %c0_i32_0 = arith.constant 0 : i32
    %c0_i32_1 = arith.constant 0 : i32
    %c0_i32_2 = arith.constant 0 : i32
    return %c0_i32, %c0_i32_0, %c0_i32_1 : i32, i32, i32
  }
  func.func @transform_7(%arg0: i32) -> (i32, i32, i32) {
    %c0_i32 = arith.constant 0 : i32
    %c0_i32_0 = arith.constant 0 : i32
    %c0_i32_1 = arith.constant 0 : i32
    %c0_i32_2 = arith.constant 0 : i32
    return %c0_i32, %c0_i32_0, %c0_i32_1 : i32, i32, i32
  }
  func.func @transform_8(%arg0: i32) -> (i32, i32, i32) {
    %c0_i32 = arith.constant 0 : i32
    %c0_i32_0 = arith.constant 0 : i32
    %c0_i32_1 = arith.constant 0 : i32
    %c0_i32_2 = arith.constant 0 : i32
    return %c0_i32, %c0_i32_0, %c0_i32_1 : i32, i32, i32
  }
  func.func @transform_9(%arg0: i32) -> (i32, i32, i32) {
    %c0_i32 = arith.constant 0 : i32
    %c0_i32_0 = arith.constant 0 : i32
    %c0_i32_1 = arith.constant 0 : i32
    %c0_i32_2 = arith.constant 0 : i32
    return %c0_i32, %c0_i32_0, %c0_i32_1 : i32, i32, i32
  }
  func.func @transform_10(%arg0: i32) -> (i32, i32) {
    %c0_i32 = arith.constant 0 : i32
    %c0_i32_0 = arith.constant 0 : i32
    %c0_i32_1 = arith.constant 0 : i32
    return %c0_i32, %c0_i32_0 : i32, i32
  }
  func.func @transform_11(%arg0: i32) -> (i32, i32, i32) {
    %c0_i32 = arith.constant 0 : i32
    %c0_i32_0 = arith.constant 0 : i32
    %c0_i32_1 = arith.constant 0 : i32
    return %arg0, %c0_i32, %c0_i32_0 : i32, i32, i32
  }
}

</mosaic_0001>

<bundles_post_ra>
// kernel: tpu_custom_call.1
= control target key start
LH: loop header
LB: loop body
LE: loop exit
PB: predicated region body
PF: predicated region fallthrough
CT: control target
= control target key end

     0   :  { %s31160_s17 = smov 0   ;;  %s36045_s0 = inlined_call_operand.vmem [shape: f32[64,8,32], index: 0, kind: input, shape index: {}]   ;;  %s36046_s1 = inlined_call_operand.vmem [shape: f32[64,8,32], index: 1, kind: input, shape index: {}]   ;;  %s36047_s2 = inlined_call_operand.vmem [shape: f32[64,8,32], index: 2, kind: input, shape index: {}]   ;;  %s36048_s3 = inlined_call_operand.vmem [shape: f32[4,32,16], index: 3, kind: input, shape index: {}]   ;;  %s36049_s4 = inlined_call_operand.vmem [shape: f32[4,1,16], index: 4, kind: input, shape index: {}]   ;;  %s36050_s5 = inlined_call_operand.vmem [shape: f32[4,32,16], index: 5, kind: input, shape index: {}]   ;;  %s36051_s6 = inlined_call_operand.vmem [shape: f32[4,1,16], index: 6, kind: input, shape index: {}]   ;;  %s36052_s7 = inlined_call_operand.vmem [shape: f32[4,32,16], index: 7, kind: input, shape index: {}]   ;;  %s36053_s8 = inlined_call_operand.vmem [shape: f32[4,1,16], index: 8, kind: input, shape index: {}]   ;;  %s36054_s9 = inlined_call_operand.vmem [shape: f32[4,16,32], index: 9, kind: input, shape index: {}]   ;;  %s36055_s10 = inlined_call_operand.vmem [shape: f32[1,32], index: 10, kind: input, shape index: {}]   ;;  %s36056_s11 = inlined_call_operand.vmem [shape: f32[64,8,32], index: 11, kind: output, shape index: {}]  }
   0x1 LB: > { %s25822_s18 = sadd.s32 4294967295, %s31096_s17   ;;  %p25826_p0 = scmp.ge.s32.totalorder %s31096_s17, 1  ;;  %s31096_s17 = sphi %s31160_s17, %s21_s17  }
   0x2   : > { %p360_p1 = scmp.lt.s32.totalorder %s31096_s17, 3 }
   0x4   : > { %p361_p2 = pnand %p25826_p0, %p360_p1 }
   0x6   : > { %364 = sbr.rel (%p361_p2) target bundleno = 4360 (0x1108), region = 64 }
   0xd   : > { %v538_v0 = vld [vmem:[%s36048_s3] sm:$0xff]  ;;  %v539_v1 = vld [vmem:[%s36048_s3 + $0x8] sm:$0xff]  ;;  %s25827_s25 = sshll.u32 %s25822_s18, 5  ;;  %v540_v5 = vld [vmem:[%s36048_s3 + $0x10] sm:$0xff]  ;;  %vm549_vm0 = vcmask 261120   ;;  %vm31099_vm1 = vmmov 0  }
   0xe   : > { %v903_v2 = vld [vmem:[%s36050_s5] sm:$0xff]  ;;  %v30037_v3 = vpack.c.bf16 %v539_v1, %v538_v0  ;;  %v904_v4 = vld [vmem:[%s36050_s5 + $0x8] sm:$0xff]  ;;  %v541_v6 = vld [vmem:[%s36048_s3 + $0x18] sm:$0xff]  ;;  %p411_p3 = scmp.lt.s32.totalorder %s25827_s25, 63  ;;  %vm1567_vm2 = vcmask 130048   ;;  %vm4000_vm3 = vcmask 64512  }
   0xf   : > { %v30045_v7 = vpack.c.bf16 %v904_v4, %v903_v2  ;;  %v30041_v8 = vpack.c.bf16 %v541_v6, %v540_v5  ;;  %v905_v9 = vld [vmem:[%s36050_s5 + $0x10] sm:$0xff]  ;;  %v906_v10 = vld [vmem:[%s36050_s5 + $0x18] sm:$0xff]  ;;  %v1235_v12 = vld [vmem:[%s36052_s7] sm:$0xff] }
  0x10   : > { %30038 = vmatprep.subr.bf16.mxu0 %v30037_v3  ;;  %v30049_v11 = vpack.c.bf16 %v906_v10, %v905_v9  ;;  %s36201_s25 = smov (!%p411_p3, %s25827_s25), 63  ;;  %v1236_v13 = vld [vmem:[%s36052_s7 + $0x8] sm:$0xff]  ;;  %v1237_v15 = vld [vmem:[%s36052_s7 + $0x10] sm:$0xff]  ;;  %v1238_v18 = vld [vmem:[%s36052_s7 + $0x18] sm:$0xff] }
  0x11   : > { %30046 = vmatprep.subr.bf16.mxu1 %v30045_v7  ;;  %30040 = vmatpush3.bf16.msra.mxu0 %v30037_v3  ;;  %s31198_s22 = sshll.u32 %s36201_s25, 3  ;;  %v30053_v14 = vpack.c.bf16 %v1236_v13, %v1235_v12  ;;  %v30057_v23 = vpack.c.bf16 %v1238_v18, %v1237_v15 }
  0x12   : > { %30048 = vmatpush3.bf16.msra.mxu1 %v30045_v7  ;;  %30042 = vmatprep.subr.bf16.mxu0 %v30041_v8  ;;  %s31204_s26 = scalar_lea.vmem %s36045_s0, %s31198_s22  ;;  %s31210_s29 = scalar_lea.vmem %s36046_s1, %s31198_s22 }
  0x13   : > { %30050 = vmatprep.subr.bf16.mxu1 %v30049_v11  ;;  %v434_v16 = vld [vmem:[%s31204_s26] sm:$0xff]  ;;  %v435_v19 = vld [vmem:[%s31204_s26 + $0x8] sm:$0xff]  ;;  %v436_v21 = vld [vmem:[%s31204_s26 + $0x10] sm:$0xff]  ;;  %s31350_s16 = scalar_lea.vmem %s36047_s2, %s31198_s22  ;;  %s35926_s21 = scalar_lea.vmem %s36056_s11, %s31198_s22 }
  0x14   : > { %v466_v17 = vld [vmem:[%s31210_s29] sm:$0xff]  ;;  %27885 = vmatprep.mubr.msk.f32.mxu0 %vm549_vm0, %v434_v16  ;;  %v467_v20 = vld [vmem:[%s31210_s29 + $0x8] sm:$0xff]  ;;  %v468_v22 = vld [vmem:[%s31210_s29 + $0x10] sm:$0xff] }
  0x15   : > { %30044 = vmatpush3.bf16.msra.mxu0 %v30041_v8  ;;  %27941 = vmatprep.mubr.msk.f32.mxu1 %vm549_vm0, %v466_v17  ;;  %v437_v24 = vld [vmem:[%s31204_s26 + $0x18] sm:$0xff]  ;;  %v438_v26 = vld [vmem:[%s31204_s26 + $0x20] sm:$0xff]  ;;  %v439_v28 = vld [vmem:[%s31204_s26 + $0x28] sm:$0xff] }
  0x16   : > { %30052 = vmatpush3.bf16.msra.mxu1 %v30049_v11  ;;  %30054 = vmatprep.subr.bf16.mxu0 %v30053_v14  ;;  %v469_v25 = vld [vmem:[%s31210_s29 + $0x18] sm:$0xff]  ;;  %v470_v27 = vld [vmem:[%s31210_s29 + $0x20] sm:$0xff]  ;;  %v471_v29 = vld [vmem:[%s31210_s29 + $0x28] sm:$0xff] }
  0x17   : > { %v440_v30 = vld [vmem:[%s31204_s26 + $0x30] sm:$0xff]  ;;  %v441_v32 = vld [vmem:[%s31204_s26 + $0x38] sm:$0xff]  ;;  %v442_v34 = vld [vmem:[%s31204_s26 + $0x40] sm:$0xff] }
  0x18   : > { %27886 = vmatmul.mubr.msk.f32.vlgmr.msra.gmra.mrb[0].mxu0 %vm549_vm0, %v435_v19  ;;  %v472_v31 = vld [vmem:[%s31210_s29 + $0x30] sm:$0xff]  ;;  %v473_v33 = vld [vmem:[%s31210_s29 + $0x38] sm:$0xff]  ;;  %v474_v35 = vld [vmem:[%s31210_s29 + $0x40] sm:$0xff] }
  0x19   : > { %27942 = vmatmul.mubr.msk.f32.vlgmr.msra.gmra.mrb[0].mxu1 %vm549_vm0, %v467_v20  ;;  %27888 = vmatprep.mubr.msk.f32.mxu0 %vm549_vm0, %v436_v21  ;;  %v443_v36 = vld [vmem:[%s31204_s26 + $0x48] sm:$0xff]  ;;  %v444_v38 = vld [vmem:[%s31204_s26 + $0x50] sm:$0xff]  ;;  %v445_v40 = vld [vmem:[%s31204_s26 + $0x58] sm:$0xff]  ;;  %v36057_v20 = vmov 0.0  }
  0x1a   : > { %27944 = vmatprep.mubr.msk.f32.mxu1 %vm549_vm0, %v468_v22  ;;  %30056 = vmatpush3.bf16.msra.mxu0 %v30053_v14  ;;  %v475_v37 = vld [vmem:[%s31210_s29 + $0x48] sm:$0xff]  ;;  %v476_v39 = vld [vmem:[%s31210_s29 + $0x50] sm:$0xff]  ;;  %v477_v41 = vld [vmem:[%s31210_s29 + $0x58] sm:$0xff] }
  0x1b   : > { %30058 = vmatprep.subr.bf16.mxu0 %v30057_v23  ;;  %v446_v42 = vld [vmem:[%s31204_s26 + $0x60] sm:$0xff]  ;;  %v447_v44 = vld [vmem:[%s31204_s26 + $0x68] sm:$0xff]  ;;  %v448_v46 = vld [vmem:[%s31204_s26 + $0x70] sm:$0xff]  ;;  %28045 = vmatprep.subr.mxu1 %v36057_v20 }
  0x1c   : > { %27889 = vmatmul.mubr.msk.f32.gmra.mrb[2].mxu0 %vm549_vm0, %v437_v24  ;;  %v478_v43 = vld [vmem:[%s31210_s29 + $0x60] sm:$0xff]  ;;  %v479_v45 = vld [vmem:[%s31210_s29 + $0x68] sm:$0xff]  ;;  %v480_v47 = vld [vmem:[%s31210_s29 + $0x70] sm:$0xff] }
  0x1d   : > { %27945 = vmatmul.mubr.msk.f32.gmra.mrb[2].mxu1 %vm549_vm0, %v469_v25  ;;  %27891 = vmatprep.mubr.msk.f32.mxu0 %vm549_vm0, %v438_v26  ;;  %v449_v48 = vld [vmem:[%s31204_s26 + $0x78] sm:$0xff]  ;;  %v450_v50 = vld [vmem:[%s31204_s26 + $0x80] sm:$0xff]  ;;  %v451_v52 = vld [vmem:[%s31204_s26 + $0x88] sm:$0xff] }
  0x1e   : > { %27947 = vmatprep.mubr.msk.f32.mxu1 %vm549_vm0, %v470_v27  ;;  %30060 = vmatpush3.bf16.msra.mxu0 %v30057_v23  ;;  %v481_v49 = vld [vmem:[%s31210_s29 + $0x78] sm:$0xff]  ;;  %v482_v51 = vld [vmem:[%s31210_s29 + $0x80] sm:$0xff]  ;;  %v483_v53 = vld [vmem:[%s31210_s29 + $0x88] sm:$0xff] }
  0x1f   : > { %v452_v54 = vld [vmem:[%s31204_s26 + $0x90] sm:$0xff]  ;;  %v453_v56 = vld [vmem:[%s31204_s26 + $0x98] sm:$0xff]  ;;  %v454_v58 = vld [vmem:[%s31204_s26 + $0xa0] sm:$0xff]  ;;  %28125 = vmatprep.subr.mxu0 %v36057_v20 }
  0x20   : > { %27892 = vmatmul.mubr.msk.f32.gmra.mrb[4].mxu0 %vm549_vm0, %v439_v28  ;;  %v484_v55 = vld [vmem:[%s31210_s29 + $0x90] sm:$0xff]  ;;  %v485_v57 = vld [vmem:[%s31210_s29 + $0x98] sm:$0xff]  ;;  %v486_v59 = vld [vmem:[%s31210_s29 + $0xa0] sm:$0xff] }
  0x21   : > { %27948 = vmatmul.mubr.msk.f32.gmra.mrb[4].mxu1 %vm549_vm0, %v471_v29  ;;  %27894 = vmatprep.mubr.msk.f32.mxu0 %vm549_vm0, %v440_v30  ;;  %v455_v60 = vld [vmem:[%s31204_s26 + $0xa8] sm:$0xff]  ;;  %v456_v62 = vld [vmem:[%s31204_s26 + $0xb0] sm:$0xff]  ;;  %v457_v0 = vld [vmem:[%s31204_s26 + $0xb8] sm:$0xff] }
  0x22   : > { %27950 = vmatprep.mubr.msk.f32.mxu1 %vm549_vm0, %v472_v31  ;;  %v487_v61 = vld [vmem:[%s31210_s29 + $0xa8] sm:$0xff]  ;;  %v488_v63 = vld [vmem:[%s31210_s29 + $0xb0] sm:$0xff]  ;;  %v489_v1 = vld [vmem:[%s31210_s29 + $0xb8] sm:$0xff] }
  0x23   : > { %v458_v2 = vld [vmem:[%s31204_s26 + $0xc0] sm:$0xff]  ;;  %v459_v4 = vld [vmem:[%s31204_s26 + $0xc8] sm:$0xff]  ;;  %v460_v6 = vld [vmem:[%s31204_s26 + $0xd0] sm:$0xff] }
  0x24   : > { %27895 = vmatmul.mubr.msk.f32.gmra.mrb[6].mxu0 %vm549_vm0, %v441_v32  ;;  %v490_v3 = vld [vmem:[%s31210_s29 + $0xc0] sm:$0xff]  ;;  %v491_v5 = vld [vmem:[%s31210_s29 + $0xc8] sm:$0xff]  ;;  %v492_v7 = vld [vmem:[%s31210_s29 + $0xd0] sm:$0xff] }
  0x25   : > { %27951 = vmatmul.mubr.msk.f32.gmra.mrb[6].mxu1 %vm549_vm0, %v473_v33  ;;  %27897 = vmatprep.mubr.msk.f32.mxu0 %vm549_vm0, %v442_v34  ;;  %v461_v8 = vld [vmem:[%s31204_s26 + $0xd8] sm:$0xff]  ;;  %v462_v10 = vld [vmem:[%s31204_s26 + $0xe0] sm:$0xff]  ;;  %v463_v12 = vld [vmem:[%s31204_s26 + $0xe8] sm:$0xff] }
  0x26   : > { %27953 = vmatprep.mubr.msk.f32.mxu1 %vm549_vm0, %v474_v35  ;;  %v493_v9 = vld [vmem:[%s31210_s29 + $0xd8] sm:$0xff]  ;;  %v494_v11 = vld [vmem:[%s31210_s29 + $0xe0] sm:$0xff]  ;;  %v495_v13 = vld [vmem:[%s31210_s29 + $0xe8] sm:$0xff] }
  0x27   : > { %v464_v14 = vld [vmem:[%s31204_s26 + $0xf0] sm:$0xff]  ;;  %v465_v16 = vld [vmem:[%s31204_s26 + $0xf8] sm:$0xff]  ;;  %v498_v18 = vld [vmem:[%s31350_s16] sm:$0xff] }
  0x28   : > { %27898 = vmatmul.mubr.msk.f32.gmra.mrb[8].mxu0 %vm549_vm0, %v443_v36  ;;  %v496_v15 = vld [vmem:[%s31210_s29 + $0xf0] sm:$0xff]  ;;  %v497_v17 = vld [vmem:[%s31210_s29 + $0xf8] sm:$0xff]  ;;  %v499_v19 = vld [vmem:[%s31350_s16 + $0x8] sm:$0xff] }
  0x29   : > { %27954 = vmatmul.mubr.msk.f32.gmra.mrb[8].mxu1 %vm549_vm0, %v475_v37  ;;  %27900 = vmatprep.mubr.msk.f32.mxu0 %vm549_vm0, %v444_v38  ;;  %v500_v21 = vld [vmem:[%s31350_s16 + $0x10] sm:$0xff]  ;;  %v501_v22 = vld [vmem:[%s31350_s16 + $0x18] sm:$0xff]  ;;  %v502_v23 = vld [vmem:[%s31350_s16 + $0x20] sm:$0xff] }
  0x2a   : > { %27956 = vmatprep.mubr.msk.f32.mxu1 %vm549_vm0, %v476_v39  ;;  %v503_v24 = vld [vmem:[%s31350_s16 + $0x28] sm:$0xff]  ;;  %v504_v25 = vld [vmem:[%s31350_s16 + $0x30] sm:$0xff]  ;;  %v505_v26 = vld [vmem:[%s31350_s16 + $0x38] sm:$0xff] }
  0x2b   : > { %v506_v27 = vld [vmem:[%s31350_s16 + $0x40] sm:$0xff]  ;;  %v507_v28 = vld [vmem:[%s31350_s16 + $0x48] sm:$0xff]  ;;  %v508_v29 = vld [vmem:[%s31350_s16 + $0x50] sm:$0xff] }
  0x2c   : > { %27901 = vmatmul.mubr.msk.f32.gmra.mrb[10].mxu0 %vm549_vm0, %v445_v40  ;;  %v509_v30 = vld [vmem:[%s31350_s16 + $0x58] sm:$0xff]  ;;  %v510_v31 = vld [vmem:[%s31350_s16 + $0x60] sm:$0xff]  ;;  %v511_v32 = vld [vmem:[%s31350_s16 + $0x68] sm:$0xff] }
  0x2d   : > { %27957 = vmatmul.mubr.msk.f32.gmra.mrb[10].mxu1 %vm549_vm0, %v477_v41  ;;  %27903 = vmatprep.mubr.msk.f32.mxu0 %vm549_vm0, %v446_v42  ;;  %v512_v33 = vld [vmem:[%s31350_s16 + $0x70] sm:$0xff]  ;;  %v513_v34 = vld [vmem:[%s31350_s16 + $0x78] sm:$0xff]  ;;  %v514_v35 = vld [vmem:[%s31350_s16 + $0x80] sm:$0xff] }
  0x2e   : > { %27959 = vmatprep.mubr.msk.f32.mxu1 %vm549_vm0, %v478_v43  ;;  %v515_v36 = vld [vmem:[%s31350_s16 + $0x88] sm:$0xff]  ;;  %v516_v37 = vld [vmem:[%s31350_s16 + $0x90] sm:$0xff]  ;;  %v517_v38 = vld [vmem:[%s31350_s16 + $0x98] sm:$0xff] }
  0x2f   : > { %v518_v39 = vld [vmem:[%s31350_s16 + $0xa0] sm:$0xff]  ;;  %v519_v40 = vld [vmem:[%s31350_s16 + $0xa8] sm:$0xff]  ;;  %v520_v41 = vld [vmem:[%s31350_s16 + $0xb0] sm:$0xff] }
  0x30   : > { %27904 = vmatmul.mubr.msk.f32.gmra.mrb[12].mxu0 %vm549_vm0, %v447_v44  ;;  %v521_v42 = vld [vmem:[%s31350_s16 + $0xb8] sm:$0xff]  ;;  %v522_v43 = vld [vmem:[%s31350_s16 + $0xc0] sm:$0xff]  ;;  %v523_v44 = vld [vmem:[%s31350_s16 + $0xc8] sm:$0xff] }
  0x31   : > { %27960 = vmatmul.mubr.msk.f32.gmra.mrb[12].mxu1 %vm549_vm0, %v479_v45  ;;  %27906 = vmatprep.mubr.msk.f32.mxu0 %vm549_vm0, %v448_v46  ;;  %v524_v45 = vld [vmem:[%s31350_s16 + $0xd0] sm:$0xff]  ;;  %v525_v46 = vld [vmem:[%s31350_s16 + $0xd8] sm:$0xff] }
  0x32   : > { %27962 = vmatprep.mubr.msk.f32.mxu1 %vm549_vm0, %v480_v47  ;;  %v526_v47 = vld [vmem:[%s31350_s16 + $0xe0] sm:$0xff] }
  0x34   : > { %27907 = vmatmul.mubr.msk.f32.gmra.mrb[14].mxu0 %vm549_vm0, %v449_v48  ;;  %v527_v48 = vld [vmem:[%s31350_s16 + $0xe8] sm:$0xff] }
  0x35   : > { %27963 = vmatmul.mubr.msk.f32.gmra.mrb[14].mxu1 %vm549_vm0, %v481_v49  ;;  %27909 = vmatprep.mubr.msk.f32.mxu0 %vm549_vm0, %v450_v50  ;;  %v528_v49 = vld [vmem:[%s31350_s16 + $0xf0] sm:$0xff]  ;;  %v529_v50 = vld [vmem:[%s31350_s16 + $0xf8] sm:$0xff] }
  0x36   : > { %27965 = vmatprep.mubr.msk.f32.mxu1 %vm549_vm0, %v482_v51  ;;  %v31425_v51 = vld [vmem:[%s36049_s4] ss:$0 sm:$0xff] }
  0x38   : > { %27910 = vmatmul.mubr.msk.f32.gmra.mrb[16].mxu0 %vm549_vm0, %v451_v52 }
  0x39   : > { %27966 = vmatmul.mubr.msk.f32.gmra.mrb[16].mxu1 %vm549_vm0, %v483_v53  ;;  %27912 = vmatprep.mubr.msk.f32.mxu0 %vm549_vm0, %v452_v54  ;;  %v31430_v53 = vld [vmem:[%s36051_s6] ss:$0 sm:$0xff] }
  0x3a   : > { %27968 = vmatprep.mubr.msk.f32.mxu1 %vm549_vm0, %v484_v55 }
  0x3c   : > { %27913 = vmatmul.mubr.msk.f32.gmra.mrb[18].mxu0 %vm549_vm0, %v453_v56 }
  0x3d   : > { %27969 = vmatmul.mubr.msk.f32.gmra.mrb[18].mxu1 %vm549_vm0, %v485_v57  ;;  %27915 = vmatprep.mubr.msk.f32.mxu0 %vm549_vm0, %v454_v58 }
  0x3e   : > { %27971 = vmatprep.mubr.msk.f32.mxu1 %vm549_vm0, %v486_v59 }
  0x40   : > { %27916 = vmatmul.mubr.msk.f32.gmra.mrb[20].mxu0 %vm549_vm0, %v455_v60 }
  0x41   : > { %27972 = vmatmul.mubr.msk.f32.gmra.mrb[20].mxu1 %vm549_vm0, %v487_v61  ;;  %27918 = vmatprep.mubr.msk.f32.mxu0 %vm549_vm0, %v456_v62 }
  0x42   : > { %27974 = vmatprep.mubr.msk.f32.mxu1 %vm549_vm0, %v488_v63 }
  0x44   : > { %27919 = vmatmul.mubr.msk.f32.gmra.mrb[22].mxu0 %vm549_vm0, %v457_v0 }
  0x45   : > { %27975 = vmatmul.mubr.msk.f32.gmra.mrb[22].mxu1 %vm549_vm0, %v489_v1  ;;  %27921 = vmatprep.mubr.msk.f32.mxu0 %vm549_vm0, %v458_v2 }
  0x46   : > { %27977 = vmatprep.mubr.msk.f32.mxu1 %vm549_vm0, %v490_v3 }
  0x48   : > { %27922 = vmatmul.mubr.msk.f32.gmra.mrb[24].mxu0 %vm549_vm0, %v459_v4 }
  0x49   : > { %27978 = vmatmul.mubr.msk.f32.gmra.mrb[24].mxu1 %vm549_vm0, %v491_v5  ;;  %27924 = vmatprep.mubr.msk.f32.mxu0 %vm549_vm0, %v460_v6 }
  0x4a   : > { %27980 = vmatprep.mubr.msk.f32.mxu1 %vm549_vm0, %v492_v7 }
  0x4c   : > { %27925 = vmatmul.mubr.msk.f32.gmra.mrb[26].mxu0 %vm549_vm0, %v461_v8 }
  0x4d   : > { %27981 = vmatmul.mubr.msk.f32.gmra.mrb[26].mxu1 %vm549_vm0, %v493_v9  ;;  %27927 = vmatprep.mubr.msk.f32.mxu0 %vm549_vm0, %v462_v10 }
  0x4e   : > { %27983 = vmatprep.mubr.msk.f32.mxu1 %vm549_vm0, %v494_v11 }
  0x50   : > { %27928 = vmatmul.mubr.msk.f32.gmra.mrb[28].mxu0 %vm549_vm0, %v463_v12 }
  0x51   : > { %27984 = vmatmul.mubr.msk.f32.gmra.mrb[28].mxu1 %vm549_vm0, %v495_v13  ;;  %27930 = vmatprep.mubr.msk.f32.mxu0 %vm549_vm0, %v464_v14 }
  0x52   : > { %27986 = vmatprep.mubr.msk.f32.mxu1 %vm549_vm0, %v496_v15 }
  0x54   : > { %27931 = vmatmul.mubr.msk.f32.gmra.mrb[30].mxu0 %vm549_vm0, %v465_v16 }
  0x55   : > { %27987 = vmatmul.mubr.msk.f32.gmra.mrb[30].mxu1 %vm549_vm0, %v497_v17  ;;  %27997 = vmatprep.mubr.msk.f32.mxu0 %vm549_vm0, %v498_v18 }
  0x56   : > { %28047 = vmatprep.mubr.msk.f32.mxu1 %vm31099_vm1, %v36057_v20 }
  0x58   : > { %27998 = vmatmul.mubr.msk.f32.vlgmr.msra.gmra.mrb[32].mxu0 %vm549_vm0, %v499_v19 }
  0x59   : > { %28000 = vmatprep.mubr.msk.f32.mxu0 %vm549_vm0, %v500_v21 }
  0x5c   : > { %28001 = vmatmul.mubr.msk.f32.gmra.mrb[34].mxu0 %vm549_vm0, %v501_v22 }
  0x5d   : > { %28003 = vmatprep.mubr.msk.f32.mxu0 %vm549_vm0, %v502_v23 }
  0x60   : > { %28004 = vmatmul.mubr.msk.f32.gmra.mrb[36].mxu0 %vm549_vm0, %v503_v24 }
  0x61   : > { %28006 = vmatprep.mubr.msk.f32.mxu0 %vm549_vm0, %v504_v25 }
  0x64   : > { %28007 = vmatmul.mubr.msk.f32.gmra.mrb[38].mxu0 %vm549_vm0, %v505_v26 }
  0x65   : > { %28009 = vmatprep.mubr.msk.f32.mxu0 %vm549_vm0, %v506_v27 }
  0x68   : > { %28010 = vmatmul.mubr.msk.f32.gmra.mrb[40].mxu0 %vm549_vm0, %v507_v28 }
  0x69   : > { %28012 = vmatprep.mubr.msk.f32.mxu0 %vm549_vm0, %v508_v29 }
  0x6c   : > { %28013 = vmatmul.mubr.msk.f32.gmra.mrb[42].mxu0 %vm549_vm0, %v509_v30 }
  0x6d   : > { %28015 = vmatprep.mubr.msk.f32.mxu0 %vm549_vm0, %v510_v31 }
  0x70   : > { %28016 = vmatmul.mubr.msk.f32.gmra.mrb[44].mxu0 %vm549_vm0, %v511_v32 }
  0x71   : > { %28018 = vmatprep.mubr.msk.f32.mxu0 %vm549_vm0, %v512_v33 }
  0x74   : > { %28019 = vmatmul.mubr.msk.f32.gmra.mrb[46].mxu0 %vm549_vm0, %v513_v34 }
  0x75   : > { %28021 = vmatprep.mubr.msk.f32.mxu0 %vm549_vm0, %v514_v35 }
  0x78   : > { %28022 = vmatmul.mubr.msk.f32.gmra.mrb[48].mxu0 %vm549_vm0, %v515_v36 }
  0x79   : > { %28024 = vmatprep.mubr.msk.f32.mxu0 %vm549_vm0, %v516_v37 }
  0x7c   : > { %28025 = vmatmul.mubr.msk.f32.gmra.mrb[50].mxu0 %vm549_vm0, %v517_v38 }
  0x7d   : > { %28027 = vmatprep.mubr.msk.f32.mxu0 %vm549_vm0, %v518_v39 }
  0x80   : > { %28028 = vmatmul.mubr.msk.f32.gmra.mrb[52].mxu0 %vm549_vm0, %v519_v40 }
  0x81   : > { %28030 = vmatprep.mubr.msk.f32.mxu0 %vm549_vm0, %v520_v41 }
  0x84   : > { %28031 = vmatmul.mubr.msk.f32.gmra.mrb[54].mxu0 %vm549_vm0, %v521_v42 }
  0x85   : > { %28033 = vmatprep.mubr.msk.f32.mxu0 %vm549_vm0, %v522_v43 }
  0x88   : > { %28034 = vmatmul.mubr.msk.f32.gmra.mrb[56].mxu0 %vm549_vm0, %v523_v44 }
  0x89   : > { %28036 = vmatprep.mubr.msk.f32.mxu0 %vm549_vm0, %v524_v45 }
  0x8c   : > { %28037 = vmatmul.mubr.msk.f32.gmra.mrb[58].mxu0 %vm549_vm0, %v525_v46 }
  0x8d   : > { %28039 = vmatprep.mubr.msk.f32.mxu0 %vm549_vm0, %v526_v47 }
  0x90   : > { %28040 = vmatmul.mubr.msk.f32.gmra.mrb[60].mxu0 %vm549_vm0, %v527_v48 }
  0x91   : > { %28042 = vmatprep.mubr.msk.f32.mxu0 %vm549_vm0, %v528_v49 }
  0x94   : > { %28043 = vmatmul.mubr.msk.f32.gmra.mrb[62].mxu0 %vm549_vm0, %v529_v50 }
  0x95   : > { %28127 = vmatprep.mubr.msk.f32.mxu0 %vm31099_vm1, %v36057_v20 }
  0xeb   : > { %v27887_v52 = vpop.f32.mrb[0].mxu0 }
  0xec   : > { %v27943_v54 = vpop.f32.mrb[0].mxu1  ;;  %v712_v55 = vpop.f32.mrb[1].mxu0  ;;  %v718_v63 = vadd.f32 %v27887_v52, %v31425_v51 }
  0xed   : > { %v713_v56 = vadd.f32 %v31425_v51, %v712_v55  ;;  %v1076_v57 = vpop.f32.mrb[1].mxu1  ;;  %v1082_v1 = vadd.f32 %v27943_v54, %v31430_v53 }
  0xee   : > { %v1077_v58 = vadd.f32 %v31430_v53, %v1076_v57  ;;  %v872_v7 = vmul.f32 0.35355338, %v718_v63 }
  0xef   : > { %v871_v59 = vmul.f32 0.35355338, %v713_v56  ;;  %v27890_v60 = vpop.f32.mrb[2].mxu0 }
  0xf0   : > { %28046 = vmatpush3.xpose.msk.msra.mxu1 %vm1567_vm2, %v1077_v58  ;;  %v27946_v61 = vpop.f32.mrb[2].mxu1  ;;  %v722_v62 = vpop.f32.mrb[3].mxu0  ;;  %v728_v13 = vadd.f32 %v27890_v60, %v31425_v51 }
  0xf1   : > { %28050 = vmatprep.subr.mxu1 %v36057_v20  ;;  %v1086_v0 = vpop.f32.mrb[3].mxu1  ;;  %v723_v2 = vadd.f32 %v31425_v51, %v722_v62  ;;  %v1092_v15 = vadd.f32 %v27946_v61, %v31430_v53 }
  0xf2   : > { %v1087_v4 = vadd.f32 %v31430_v53, %v1086_v0  ;;  %v874_v22 = vmul.f32 0.35355338, %v728_v13 }
  0xf3   : > { %28048 = vmatmul.mubr.msk.f32.vlgmr.msra.gmra.mrb[32].mxu1 %vm1567_vm2, %v871_v59  ;;  %v27893_v3 = vpop.f32.mrb[4].mxu0  ;;  %v873_v9 = vmul.f32 0.35355338, %v723_v2 }
  0xf4   : > { %28051 = vmatpush3.xpose.msk.msra.mxu1 %vm1567_vm2, %v1082_v1  ;;  %28052 = vmatprep.mubr.msk.f32.mxu1 %vm31099_vm1, %v36057_v20  ;;  %v27949_v5 = vpop.f32.mrb[4].mxu1  ;;  %v732_v6 = vpop.f32.mrb[5].mxu0  ;;  %v738_v28 = vadd.f32 %v27893_v3, %v31425_v51 }
  0xf5   : > { %28055 = vmatprep.subr.mxu1 %v36057_v20  ;;  %v1096_v8 = vpop.f32.mrb[5].mxu1  ;;  %v733_v16 = vadd.f32 %v31425_v51, %v732_v6  ;;  %v1102_v30 = vadd.f32 %v27949_v5, %v31430_v53 }
  0xf6   : > { %v1097_v18 = vadd.f32 %v31430_v53, %v1096_v8  ;;  %v876_v36 = vmul.f32 0.35355338, %v738_v28 }
  0xf7   : > { %28053 = vmatmul.mubr.msk.f32.vlgmr.msra.gmra.mrb[34].mxu1 %vm1567_vm2, %v872_v7  ;;  %v27896_v10 = vpop.f32.mrb[6].mxu0  ;;  %v875_v24 = vmul.f32 0.35355338, %v733_v16 }
  0xf8   : > { %28056 = vmatpush3.xpose.msk.msra.mxu1 %vm1567_vm2, %v1087_v4  ;;  %28057 = vmatprep.mubr.msk.f32.mxu1 %vm31099_vm1, %v36057_v20  ;;  %v27952_v11 = vpop.f32.mrb[6].mxu1  ;;  %v742_v12 = vpop.f32.mrb[7].mxu0  ;;  %v748_v42 = vadd.f32 %v27896_v10, %v31425_v51 }
  0xf9   : > { %28060 = vmatprep.subr.mxu1 %v36057_v20  ;;  %v1106_v14 = vpop.f32.mrb[7].mxu1  ;;  %v743_v31 = vadd.f32 %v31425_v51, %v742_v12  ;;  %v1112_v44 = vadd.f32 %v27952_v11, %v31430_v53 }
  0xfa   : > { %v1107_v33 = vadd.f32 %v31430_v53, %v1106_v14  ;;  %v878_v52 = vmul.f32 0.35355338, %v748_v42 }
  0xfb   : > { %28058 = vmatmul.mubr.msk.f32.vlgmr.msra.gmra.mrb[36].mxu1 %vm1567_vm2, %v873_v9  ;;  %v31454_v17 = vpop.f32.mrb[8].mxu0  ;;  %v877_v38 = vmul.f32 0.35355338, %v743_v31 }
  0xfc   : > { %28061 = vmatpush3.xpose.msk.msra.mxu1 %vm1567_vm2, %v1092_v15  ;;  %28062 = vmatprep.mubr.msk.f32.mxu1 %vm31099_vm1, %v36057_v20  ;;  %v31460_v19 = vpop.f32.mrb[8].mxu1  ;;  %v752_v21 = vpop.f32.mrb[9].mxu0  ;;  %v758_v63 = vadd.f32 %v31454_v17, %v31425_v51 }
  0xfd   : > { %28065 = vmatprep.subr.mxu1 %v36057_v20  ;;  %v1116_v23 = vpop.f32.mrb[9].mxu1  ;;  %v753_v45 = vadd.f32 %v31425_v51, %v752_v21  ;;  %v1122_v4 = vadd.f32 %v31460_v19, %v31430_v53 }
  0xfe   : > { %v1117_v47 = vadd.f32 %v31430_v53, %v1116_v23  ;;  %v880_v12 = vmul.f32 0.35355338, %v758_v63 }
  0xff   : > { %28063 = vmatmul.mubr.msk.f32.vlgmr.msra.gmra.mrb[38].mxu1 %vm1567_vm2, %v874_v22  ;;  %v31464_v25 = vpop.f32.mrb[10].mxu0  ;;  %v879_v58 = vmul.f32 0.35355338, %v753_v45 }
 0x100   : > { %28066 = vmatpush3.xpose.msk.msra.mxu1 %vm1567_vm2, %v1097_v18  ;;  %28067 = vmatprep.mubr.msk.f32.mxu1 %vm31099_vm1, %v36057_v20  ;;  %v31469_v26 = vpop.f32.mrb[10].mxu1  ;;  %v762_v27 = vpop.f32.mrb[11].mxu0 }
 0x101   : > { %28070 = vmatprep.subr.mxu1 %v36057_v20  ;;  %v1126_v29 = vpop.f32.mrb[11].mxu1  ;;  %v763_v6 = vadd.f32 %v31425_v51, %v762_v27  ;;  %v1132_v31 = vadd.f32 %v31469_v26, %v31430_v53 }
 0x102   : > { %v1127_v8 = vadd.f32 %v31430_v53, %v1126_v29 }
 0x103   : > { %28068 = vmatmul.mubr.msk.f32.vlgmr.msra.gmra.mrb[40].mxu1 %vm1567_vm2, %v875_v24  ;;  %v31476_v32 = vpop.f32.mrb[12].mxu0  ;;  %v881_v18 = vmul.f32 0.35355338, %v763_v6  ;;  %v768_v24 = vadd.f32 %v31464_v25, %v31425_v51 }
 0x104   : > { %28071 = vmatpush3.xpose.msk.msra.mxu1 %vm1567_vm2, %v1102_v30  ;;  %28072 = vmatprep.mubr.msk.f32.mxu1 %vm31099_vm1, %v36057_v20  ;;  %v31482_v34 = vpop.f32.mrb[12].mxu1  ;;  %v31484_v35 = vpop.f32.mrb[13].mxu0 }
 0x105   : > { %28075 = vmatprep.subr.mxu1 %v36057_v20  ;;  %v31487_v37 = vpop.f32.mrb[13].mxu1  ;;  %v773_v25 = vadd.f32 %v31425_v51, %v31484_v35  ;;  %v882_v45 = vmul.f32 0.35355338, %v768_v24 }
 0x107   : > { %28073 = vmatmul.mubr.msk.f32.vlgmr.msra.gmra.mrb[42].mxu1 %vm1567_vm2, %v876_v36  ;;  %v31490_v39 = vpop.f32.mrb[14].mxu0 }
 0x108   : > { %28076 = vmatpush3.xpose.msk.msra.mxu1 %vm1567_vm2, %v1107_v33  ;;  %28077 = vmatprep.mubr.msk.f32.mxu1 %vm31099_vm1, %v36057_v20  ;;  %v31495_v40 = vpop.f32.mrb[14].mxu1  ;;  %v31497_v41 = vpop.f32.mrb[15].mxu0 }
 0x109   : > { %28080 = vmatprep.subr.mxu1 %v36057_v20  ;;  %v31501_v43 = vpop.f32.mrb[15].mxu1 }
 0x10b   : > { %28078 = vmatmul.mubr.msk.f32.vlgmr.msra.gmra.mrb[44].mxu1 %vm1567_vm2, %v877_v38  ;;  %v27911_v46 = vpop.f32.mrb[16].mxu0  ;;  %v1137_v38 = vadd.f32 %v31430_v53, %v31487_v37 }
 0x10c   : > { %28081 = vmatpush3.xpose.msk.msra.mxu1 %vm1567_vm2, %v1112_v44  ;;  %28082 = vmatprep.mubr.msk.f32.mxu1 %vm31099_vm1, %v36057_v20  ;;  %v27967_v48 = vpop.f32.mrb[16].mxu1  ;;  %v31511_v49 = vadd.f32 %v27911_v46, %v31425_v51  ;;  %v792_v50 = vpop.f32.mrb[17].mxu0 }
 0x10d   : > { %28085 = vmatprep.subr.mxu1 %v36057_v20  ;;  %v31515_v54 = vadd.f32 %v27967_v48, %v31430_v53  ;;  %v1156_v55 = vpop.f32.mrb[17].mxu1  ;;  %v793_v56 = vadd.f32 %v31425_v51, %v792_v50  ;;  %v883_v50 = vmul.f32 0.35355338, %v773_v25 }
 0x10e   : > { %v1157_v57 = vadd.f32 %v31430_v53, %v1156_v55 }
 0x10f   : > { %28083 = vmatmul.mubr.msk.f32.vlgmr.msra.gmra.mrb[46].mxu1 %vm1567_vm2, %v878_v52  ;;  %v27914_v59 = vpop.f32.mrb[18].mxu0  ;;  %v887_v0 = vmul.f32 0.35355338, %v793_v56 }
 0x110   : > { %28086 = vmatpush3.xpose.msk.msra.mxu1 %vm1567_vm2, %v1117_v47  ;;  %28087 = vmatprep.mubr.msk.f32.mxu1 %vm31099_vm1, %v36057_v20  ;;  %v27970_v60 = vpop.f32.mrb[18].mxu1  ;;  %v31524_v61 = vadd.f32 %v27914_v59, %v31425_v51  ;;  %v802_v62 = vpop.f32.mrb[19].mxu0 }
 0x111   : > { %28090 = vmatprep.subr.mxu1 %v36057_v20  ;;  %v31530_v1 = vadd.f32 %v27970_v60, %v31430_v53  ;;  %28126 = vmatpush3.xpose.msk.msra.mxu0 %vm1567_vm2, %v1157_v57  ;;  %v1166_v2 = vpop.f32.mrb[19].mxu1  ;;  %v803_v3 = vadd.f32 %v31425_v51, %v802_v62 }
 0x112   : > { %v1167_v5 = vadd.f32 %v31430_v53, %v1166_v2  ;;  %28135 = vmatprep.subr.mxu0 %v36057_v20 }
 0x113   : > { %28088 = vmatmul.mubr.msk.f32.vlgmr.msra.gmra.mrb[48].mxu1 %vm1567_vm2, %v879_v58  ;;  %v27917_v7 = vpop.f32.mrb[20].mxu0  ;;  %v889_v13 = vmul.f32 0.35355338, %v803_v3  ;;  %v778_v58 = vadd.f32 %v31476_v32, %v31425_v51  ;;  %v783_v32 = vadd.f32 %v31425_v51, %v31497_v41 }
 0x114   : > { %28091 = vmatpush3.xpose.msk.msra.mxu1 %vm1567_vm2, %v1122_v4  ;;  %28092 = vmatprep.mubr.msk.f32.mxu1 %vm31099_vm1, %v36057_v20  ;;  %v27973_v9 = vpop.f32.mrb[20].mxu1  ;;  %v31545_v10 = vadd.f32 %v27917_v7, %v31425_v51  ;;  %v812_v11 = vpop.f32.mrb[21].mxu0  ;;  %v1147_v4 = vadd.f32 %v31430_v53, %v31501_v43 }
 0x115   : > { %28095 = vmatprep.subr.mxu1 %v36057_v20  ;;  %28128 = vmatmul.mubr.msk.f32.vlgmr.msra.gmra.mrb[64].mxu0 %vm1567_vm2, %v887_v0  ;;  %v31550_v14 = vadd.f32 %v27973_v9, %v31430_v53  ;;  %v1176_v15 = vpop.f32.mrb[21].mxu1  ;;  %v813_v16 = vadd.f32 %v31425_v51, %v812_v11  ;;  %v1142_v0 = vadd.f32 %v31482_v34, %v31430_v53  ;;  %v884_v7 = vmul.f32 0.35355338, %v778_v58 }
 0x116   : > { %28136 = vmatpush3.xpose.msk.msra.mxu0 %vm1567_vm2, %v1167_v5  ;;  %v1177_v17 = vadd.f32 %v31430_v53, %v1176_v15  ;;  %28137 = vmatprep.mubr.msk.f32.mxu0 %vm31099_vm1, %v36057_v20 }
 0x117   : > { %28093 = vmatmul.mubr.msk.f32.vlgmr.msra.gmra.mrb[50].mxu1 %vm1567_vm2, %v880_v12  ;;  %28145 = vmatprep.subr.mxu0 %v36057_v20  ;;  %v27920_v19 = vpop.f32.mrb[22].mxu0  ;;  %v891_v27 = vmul.f32 0.35355338, %v813_v16  ;;  %v885_v12 = vmul.f32 0.35355338, %v783_v32 }
 0x118   : > { %28096 = vmatpush3.xpose.msk.msra.mxu1 %vm1567_vm2, %v1127_v8  ;;  %28097 = vmatprep.mubr.msk.f32.mxu1 %vm31099_vm1, %v36057_v20  ;;  %v27976_v21 = vpop.f32.mrb[22].mxu1  ;;  %v31563_v22 = vadd.f32 %v27920_v19, %v31425_v51  ;;  %v822_v23 = vpop.f32.mrb[23].mxu0 }
 0x119   : > { %28100 = vmatprep.subr.mxu1 %v36057_v20  ;;  %28138 = vmatmul.mubr.msk.f32.vlgmr.msra.gmra.mrb[66].mxu0 %vm1567_vm2, %v889_v13  ;;  %v31570_v28 = vadd.f32 %v27976_v21, %v31430_v53  ;;  %v1186_v29 = vpop.f32.mrb[23].mxu1  ;;  %v823_v30 = vadd.f32 %v31425_v51, %v822_v23 }
 0x11a   : > { %28146 = vmatpush3.xpose.msk.msra.mxu0 %vm1567_vm2, %v1177_v17  ;;  %v1187_v33 = vadd.f32 %v31430_v53, %v1186_v29  ;;  %28147 = vmatprep.mubr.msk.f32.mxu0 %vm31099_vm1, %v36057_v20 }
 0x11b   : > { %28098 = vmatmul.mubr.msk.f32.vlgmr.msra.gmra.mrb[52].mxu1 %vm1567_vm2, %v881_v18  ;;  %28155 = vmatprep.subr.mxu0 %v36057_v20  ;;  %v27923_v36 = vpop.f32.mrb[24].mxu0  ;;  %v893_v35 = vmul.f32 0.35355338, %v823_v30  ;;  %v788_v18 = vadd.f32 %v31490_v39, %v31425_v51 }
 0x11c   : > { %28101 = vmatpush3.xpose.msk.msra.mxu1 %vm1567_vm2, %v1132_v31  ;;  %28102 = vmatprep.mubr.msk.f32.mxu1 %vm31099_vm1, %v36057_v20  ;;  %v27979_v26 = vpop.f32.mrb[24].mxu1  ;;  %v31589_v42 = vadd.f32 %v27923_v36, %v31425_v51  ;;  %v832_v44 = vpop.f32.mrb[25].mxu0 }
 0x11d   : > { %28105 = vmatprep.subr.mxu1 %v36057_v20  ;;  %28148 = vmatmul.mubr.msk.f32.vlgmr.msra.gmra.mrb[68].mxu0 %vm1567_vm2, %v891_v27  ;;  %v31594_v46 = vadd.f32 %v27979_v26, %v31430_v53  ;;  %v1196_v37 = vpop.f32.mrb[25].mxu1  ;;  %v833_v47 = vadd.f32 %v31425_v51, %v832_v44  ;;  %v1152_v27 = vadd.f32 %v31495_v40, %v31430_v53  ;;  %v890_v40 = vmul.f32 0.35355338, %v31524_v61 }
 0x11e   : > { %28156 = vmatpush3.xpose.msk.msra.mxu0 %vm1567_vm2, %v1187_v33  ;;  %v1197_v48 = vadd.f32 %v31430_v53, %v1196_v37  ;;  %28157 = vmatprep.mubr.msk.f32.mxu0 %vm31099_vm1, %v36057_v20  ;;  %v896_v61 = vmul.f32 0.35355338, %v31589_v42 }
 0x11f   : > { %28103 = vmatmul.mubr.msk.f32.vlgmr.msra.gmra.mrb[54].mxu1 %vm1567_vm2, %v882_v45  ;;  %28165 = vmatprep.subr.mxu0 %v36057_v20  ;;  %v27926_v52 = vpop.f32.mrb[26].mxu0  ;;  %v895_v59 = vmul.f32 0.35355338, %v833_v47 }
 0x120   : > { %28106 = vmatpush3.xpose.msk.msra.mxu1 %vm1567_vm2, %v1137_v38  ;;  %28107 = vmatprep.mubr.msk.f32.mxu1 %vm31099_vm1, %v36057_v20  ;;  %v27982_v55 = vpop.f32.mrb[26].mxu1  ;;  %v31607_v56 = vadd.f32 %v27926_v52, %v31425_v51  ;;  %v842_v57 = vpop.f32.mrb[27].mxu0 }
 0x121   : > { %28110 = vmatprep.subr.mxu1 %v36057_v20  ;;  %28158 = vmatmul.mubr.msk.f32.vlgmr.msra.gmra.mrb[70].mxu0 %vm1567_vm2, %v893_v35  ;;  %v31614_v60 = vadd.f32 %v27982_v55, %v31430_v53  ;;  %v1206_v62 = vpop.f32.mrb[27].mxu1  ;;  %v843_v63 = vadd.f32 %v31425_v51, %v842_v57 }
 0x122   : > { %28166 = vmatpush3.xpose.msk.msra.mxu0 %vm1567_vm2, %v1197_v48  ;;  %v1207_v2 = vadd.f32 %v31430_v53, %v1206_v62  ;;  %28167 = vmatprep.mubr.msk.f32.mxu0 %vm31099_vm1, %v36057_v20 }
 0x123   : > { %28108 = vmatmul.mubr.msk.f32.vlgmr.msra.gmra.mrb[56].mxu1 %vm1567_vm2, %v883_v50  ;;  %28175 = vmatprep.subr.mxu0 %v36057_v20  ;;  %v27929_v3 = vpop.f32.mrb[28].mxu0  ;;  %v897_v41 = vmul.f32 0.35355338, %v843_v63 }
 0x124   : > { %28111 = vmatpush3.xpose.msk.msra.mxu1 %vm1567_vm2, %v1142_v0  ;;  %28112 = vmatprep.mubr.msk.f32.mxu1 %vm31099_vm1, %v36057_v20  ;;  %v27985_v34 = vpop.f32.mrb[28].mxu1  ;;  %v31633_v5 = vadd.f32 %v27929_v3, %v31425_v51  ;;  %v852_v6 = vpop.f32.mrb[29].mxu0 }
 0x125   : > { %28115 = vmatprep.subr.mxu1 %v36057_v20  ;;  %28168 = vmatmul.mubr.msk.f32.vlgmr.msra.gmra.mrb[72].mxu0 %vm1567_vm2, %v895_v59  ;;  %v31638_v8 = vadd.f32 %v27985_v34, %v31430_v53  ;;  %v1216_v43 = vpop.f32.mrb[29].mxu1  ;;  %v853_v9 = vadd.f32 %v31425_v51, %v852_v6 }
 0x126   : > { %28176 = vmatpush3.xpose.msk.msra.mxu0 %vm1567_vm2, %v1207_v2  ;;  %v1217_v11 = vadd.f32 %v31430_v53, %v1216_v43  ;;  %28177 = vmatprep.mubr.msk.f32.mxu0 %vm31099_vm1, %v36057_v20  ;;  %v900_v25 = vmul.f32 0.35355338, %v31633_v5 }
 0x127   : > { %28113 = vmatmul.mubr.msk.f32.vlgmr.msra.gmra.mrb[58].mxu1 %vm1567_vm2, %v884_v7  ;;  %28185 = vmatprep.subr.mxu0 %v36057_v20  ;;  %v27932_v13 = vpop.f32.mrb[30].mxu0  ;;  %v899_v19 = vmul.f32 0.35355338, %v853_v9 }
 0x128   : > { %28116 = vmatpush3.xpose.msk.msra.mxu1 %vm1567_vm2, %v1147_v4  ;;  %28117 = vmatprep.mubr.msk.f32.mxu1 %vm31099_vm1, %v36057_v20  ;;  %v27988_v15 = vpop.f32.mrb[30].mxu1  ;;  %v31651_v16 = vadd.f32 %v27932_v13, %v31425_v51  ;;  %v862_v17 = vpop.f32.mrb[31].mxu0 }
 0x129   : > { %28120 = vmatprep.subr.mxu1 %v36057_v20  ;;  %28178 = vmatmul.mubr.msk.f32.vlgmr.msra.gmra.mrb[74].mxu0 %vm1567_vm2, %v897_v41  ;;  %v31658_v21 = vadd.f32 %v27988_v15, %v31430_v53  ;;  %v1226_v23 = vpop.f32.mrb[31].mxu1  ;;  %v863_v24 = vadd.f32 %v31425_v51, %v862_v17  ;;  %v886_v51 = vmul.f32 0.35355338, %v788_v18 }
 0x12a   : > { %28186 = vmatpush3.xpose.msk.msra.mxu0 %vm1567_vm2, %v1217_v11  ;;  %v1227_v29 = vadd.f32 %v31430_v53, %v1226_v23  ;;  %28187 = vmatprep.mubr.msk.f32.mxu0 %vm31099_vm1, %v36057_v20  ;;  %v888_v53 = vmul.f32 0.35355338, %v31511_v49  ;;  %v892_v49 = vmul.f32 0.35355338, %v31545_v10  ;;  %v902_v45 = vmul.f32 0.35355338, %v31651_v16 }
 0x12b   : > { %28118 = vmatmul.mubr.msk.f32.vlgmr.msra.gmra.mrb[60].mxu1 %vm1567_vm2, %v885_v12  ;;  %28195 = vmatprep.subr.mxu0 %v36057_v20  ;;  %v901_v39 = vmul.f32 0.35355338, %v863_v24  ;;  %v27999_v10 = vpop.f32.mrb[32].mxu0 }
 0x12c   : > { %28121 = vmatpush3.xpose.msk.msra.mxu1 %vm1567_vm2, %v1152_v27  ;;  %28122 = vmatprep.mubr.msk.f32.mxu1 %vm31099_vm1, %v36057_v20 }
 0x12d   : > { %28130 = vmatprep.subr.mxu1 %v36057_v20  ;;  %28188 = vmatmul.mubr.msk.f32.vlgmr.msra.gmra.mrb[76].mxu0 %vm1567_vm2, %v899_v19 }
 0x12e   : > { %28196 = vmatpush3.xpose.msk.msra.mxu0 %vm1567_vm2, %v1227_v29  ;;  %28197 = vmatprep.mubr.msk.f32.mxu0 %vm31099_vm1, %v36057_v20 }
 0x12f   : > { %28123 = vmatmul.mubr.msk.f32.vlgmr.msra.gmra.mrb[62].mxu1 %vm1567_vm2, %v886_v51  ;;  %28205 = vmatprep.subr.mxu0 %v36057_v20 }
 0x130   : > { %28131 = vmatpush3.xpose.msk.msra.mxu1 %vm1567_vm2, %v31515_v54  ;;  %28132 = vmatprep.mubr.msk.f32.mxu1 %vm31099_vm1, %v36057_v20  ;;  %v894_v54 = vmul.f32 0.35355338, %v31563_v22 }
 0x131   : > { %28140 = vmatprep.subr.mxu1 %v36057_v20  ;;  %28198 = vmatmul.mubr.msk.f32.vlgmr.msra.gmra.mrb[78].mxu0 %vm1567_vm2, %v901_v39 }
 0x132   : > { %28207 = vmatprep.mubr.msk.f32.mxu0 %vm31099_vm1, %v36057_v20 }
 0x133   : > { %28133 = vmatmul.mubr.msk.f32.vlgmr.msra.gmra.mrb[64].mxu1 %vm1567_vm2, %v888_v53 }
 0x134   : > { %28141 = vmatpush3.xpose.msk.msra.mxu1 %vm1567_vm2, %v31530_v1  ;;  %28142 = vmatprep.mubr.msk.f32.mxu1 %vm31099_vm1, %v36057_v20  ;;  %v31719_v1 = vld [vmem:[%s36053_s8] ss:$0 sm:$0xff] }
 0x135   : > { %28150 = vmatprep.subr.mxu1 %v36057_v20  ;;  %v1414_v26 = vadd.f32 %v27999_v10, %v31719_v1 }
 0x137   : > { %28143 = vmatmul.mubr.msk.f32.vlgmr.msra.gmra.mrb[66].mxu1 %vm1567_vm2, %v890_v40 }
 0x138   : > { %28151 = vmatpush3.xpose.msk.msra.mxu1 %vm1567_vm2, %v31550_v14  ;;  %28152 = vmatprep.mubr.msk.f32.mxu1 %vm31099_vm1, %v36057_v20  ;;  %v1408_v14 = vpop.f32.mrb[33].mxu0 }
 0x139   : > { %28160 = vmatprep.subr.mxu1 %v36057_v20  ;;  %v1409_v22 = vadd.f32 %v31719_v1, %v1408_v14  ;;  %v28002_v30 = vpop.f32.mrb[34].mxu0 }
 0x13a   : > { %v31736_v31 = vadd.f32 %v28002_v30, %v31719_v1  ;;  %v1418_v33 = vpop.f32.mrb[35].mxu0 }
 0x13b   : > { %28153 = vmatmul.mubr.msk.f32.vlgmr.msra.gmra.mrb[68].mxu1 %vm1567_vm2, %v892_v49  ;;  %28206 = vmatpush3.msra.mxu0 %v1409_v22  ;;  %v31741_v36 = vadd.f32 %v31719_v1, %v1418_v33  ;;  %v28005_v38 = vpop.f32.mrb[36].mxu0 }
 0x13c   : > { %28161 = vmatpush3.xpose.msk.msra.mxu1 %vm1567_vm2, %v31570_v28  ;;  %28162 = vmatprep.mubr.msk.f32.mxu1 %vm31099_vm1, %v36057_v20  ;;  %v898_v28 = vmul.f32 0.35355338, %v31607_v56  ;;  %v31750_v42 = vadd.f32 %v28005_v38, %v31719_v1  ;;  %v1428_v44 = vpop.f32.mrb[37].mxu0 }
 0x13d   : > { %28170 = vmatprep.subr.mxu1 %v36057_v20  ;;  %28215 = vmatprep.subr.mxu0 %v36057_v20  ;;  %v31755_v35 = vadd.f32 %v31719_v1, %v1428_v44 }
 0x13f   : > { %28163 = vmatmul.mubr.msk.f32.vlgmr.msra.gmra.mrb[70].mxu1 %vm1567_vm2, %v894_v54 }
 0x140   : > { %28171 = vmatpush3.xpose.msk.msra.mxu1 %vm1567_vm2, %v31594_v46  ;;  %28172 = vmatprep.mubr.msk.f32.mxu1 %vm31099_vm1, %v36057_v20  ;;  %v28008_v46 = vpop.f32.mrb[38].mxu0 }
 0x141   : > { %28180 = vmatprep.subr.mxu1 %v36057_v20  ;;  %v31759_v37 = vadd.f32 %v28008_v46, %v31719_v1  ;;  %v1438_v47 = vpop.f32.mrb[39].mxu0 }
 0x142   : > { %v31764_v48 = vadd.f32 %v31719_v1, %v1438_v47  ;;  %v28011_v50 = vpop.f32.mrb[40].mxu0 }
 0x143   : > { %28173 = vmatmul.mubr.msk.f32.vlgmr.msra.gmra.mrb[72].mxu1 %vm1567_vm2, %v896_v61  ;;  %v31768_v52 = vadd.f32 %v28011_v50, %v31719_v1  ;;  %v1448_v55 = vpop.f32.mrb[41].mxu0 }
 0x144   : > { %28181 = vmatpush3.xpose.msk.msra.mxu1 %vm1567_vm2, %v31614_v60  ;;  %28182 = vmatprep.mubr.msk.f32.mxu1 %vm31099_vm1, %v36057_v20  ;;  %v31771_v56 = vadd.f32 %v31719_v1, %v1448_v55  ;;  %v28014_v57 = vpop.f32.mrb[42].mxu0 }
 0x145   : > { %28190 = vmatprep.subr.mxu1 %v36057_v20  ;;  %v31774_v58 = vadd.f32 %v28014_v57, %v31719_v1  ;;  %v1458_v59 = vpop.f32.mrb[43].mxu0 }
 0x146   : > { %v31777_v60 = vadd.f32 %v31719_v1, %v1458_v59  ;;  %v28017_v62 = vpop.f32.mrb[44].mxu0 }
 0x147   : > { %28183 = vmatmul.mubr.msk.f32.vlgmr.msra.gmra.mrb[74].mxu1 %vm1567_vm2, %v898_v28  ;;  %v31780_v63 = vadd.f32 %v28017_v62, %v31719_v1  ;;  %v1468_v0 = vpop.f32.mrb[45].mxu0 }
 0x148   : > { %28191 = vmatpush3.xpose.msk.msra.mxu1 %vm1567_vm2, %v31638_v8  ;;  %28192 = vmatprep.mubr.msk.f32.mxu1 %vm31099_vm1, %v36057_v20  ;;  %v31783_v2 = vadd.f32 %v31719_v1, %v1468_v0  ;;  %v28020_v32 = vpop.f32.mrb[46].mxu0 }
 0x149   : > { %28200 = vmatprep.subr.mxu1 %v36057_v20  ;;  %v31786_v3 = vadd.f32 %v28020_v32, %v31719_v1  ;;  %v1478_v4 = vpop.f32.mrb[47].mxu0 }
 0x14a   : > { %v31789_v34 = vadd.f32 %v31719_v1, %v1478_v4 }
 0x14b   : > { %28193 = vmatmul.mubr.msk.f32.vlgmr.msra.gmra.mrb[76].mxu1 %vm1567_vm2, %v900_v25  ;;  %v28023_v5 = vpop.f32.mrb[48].mxu0 }
 0x14c   : > { %28201 = vmatpush3.xpose.msk.msra.mxu1 %vm1567_vm2, %v31658_v21  ;;  %28202 = vmatprep.mubr.msk.f32.mxu1 %vm31099_vm1, %v36057_v20  ;;  %v31792_v6 = vadd.f32 %v28023_v5, %v31719_v1  ;;  %v1488_v7 = vpop.f32.mrb[49].mxu0 }
 0x14d   : > { %28210 = vmatprep.subr.mxu1 %v36057_v20  ;;  %v31795_v41 = vadd.f32 %v31719_v1, %v1488_v7 }
 0x14f   : > { %28203 = vmatmul.mubr.msk.f32.vlgmr.msra.gmra.mrb[78].mxu1 %vm1567_vm2, %v902_v45  ;;  %v28026_v8 = vpop.f32.mrb[50].mxu0 }
 0x150   : > { %28211 = vmatpush3.msra.mxu1 %v1414_v26  ;;  %28212 = vmatprep.mubr.msk.f32.mxu1 %vm31099_vm1, %v36057_v20  ;;  %v31798_v43 = vadd.f32 %v28026_v8, %v31719_v1  ;;  %v1498_v9 = vpop.f32.mrb[51].mxu0 }
 0x151   : > { %28220 = vmatprep.subr.mxu1 %v36057_v20  ;;  %v31801_v11 = vadd.f32 %v31719_v1, %v1498_v9 }
 0x152   : > { %36059 = vst [vmem:[#allocation2_spill] sm:$0xff] %v31798_v43 }
 0x153   : > { %v28029_v12 = vpop.f32.mrb[52].mxu0 }
 0x154   : > { %v31804_v13 = vadd.f32 %v28029_v12, %v31719_v1  ;;  %v1508_v15 = vpop.f32.mrb[53].mxu0 }
 0x155   : > { %v31807_v16 = vadd.f32 %v31719_v1, %v1508_v15 }
 0x156   : > { %36060 = vst [vmem:[#allocation3_spill] sm:$0xff] %v31804_v13 }
 0x157   : > { %v28032_v17 = vpop.f32.mrb[54].mxu0 }
 0x158   : > { %v31810_v18 = vadd.f32 %v28032_v17, %v31719_v1  ;;  %v1518_v19 = vpop.f32.mrb[55].mxu0 }
 0x159   : > { %v31813_v21 = vadd.f32 %v31719_v1, %v1518_v19 }
 0x15a   : > { %36061 = vst [vmem:[#allocation4_spill] sm:$0xff] %v31810_v18 }
 0x15b   : > { %36062 = vst [vmem:[#allocation5_spill] sm:$0xff] %v31813_v21  ;;  %v28035_v23 = vpop.f32.mrb[56].mxu0 }
 0x15c   : > { %v31816_v24 = vadd.f32 %v28035_v23, %v31719_v1  ;;  %v1528_v27 = vpop.f32.mrb[57].mxu0 }
 0x15d   : > { %v31819_v29 = vadd.f32 %v31719_v1, %v1528_v27 }
 0x15e   : > { %36063 = vst [vmem:[#allocation6_spill] sm:$0xff] %v31816_v24 }
 0x15f   : > { %36064 = vst [vmem:[#allocation7_spill] sm:$0xff] %v31819_v29  ;;  %v28038_v51 = vpop.f32.mrb[58].mxu0 }
 0x160   : > { %v31822_v39 = vadd.f32 %v28038_v51, %v31719_v1  ;;  %v1538_v53 = vpop.f32.mrb[59].mxu0 }
 0x161   : > { %v31825_v40 = vadd.f32 %v31719_v1, %v1538_v53 }
 0x162   : > { %36065 = vst [vmem:[#allocation8_spill] sm:$0xff] %v31822_v39 }
 0x163   : > { %36066 = vst [vmem:[#allocation9_spill] sm:$0xff] %v31825_v40  ;;  %v28041_v49 = vpop.f32.mrb[60].mxu0 }
 0x164   : > { %v31828_v54 = vadd.f32 %v28041_v49, %v31719_v1  ;;  %v1548_v61 = vpop.f32.mrb[61].mxu0 }
 0x165   : > { %v31831_v10 = vadd.f32 %v31719_v1, %v1548_v61 }
 0x166   : > { %36067 = vst [vmem:[#allocation10_spill] sm:$0xff] %v31828_v54 }
 0x167   : > { %36068 = vst [vmem:[#allocation11_spill] sm:$0xff] %v31831_v10  ;;  %v28044_v14 = vpop.f32.mrb[62].mxu0 }
 0x168   : > { %v31834_v22 = vadd.f32 %v28044_v14, %v31719_v1  ;;  %v1558_v28 = vpop.f32.mrb[63].mxu0 }
 0x169   : > { %v31837_v30 = vadd.f32 %v31719_v1, %v1558_v28 }
 0x16a   : > { %36069 = vst [vmem:[#allocation12_spill] sm:$0xff] %v31834_v22 }
 0x16b   : > { %36070 = vst [vmem:[#allocation13_spill] sm:$0xff] %v31837_v30 }
 0x1c6   : > { %v31839_v33 = vpop.f32.mrb[32].mxu1 }
 0x1c7   : > { %v28049_v25 = vpop.f32.mrb[33].mxu1  ;;  %v4001_v38 = vsel %vm4000_vm3, %v31839_v33, -inf }
 0x1c8   : > { %4002 = vmax.xlane.f32.xlu0 %v4001_v38 }
 0x1ca   : > { %v31843_v26 = vpop.f32.mrb[34].mxu1 }
 0x1cb   : > { %v28054_v44 = vpop.f32.mrb[35].mxu1  ;;  %v4004_v45 = vsel %vm4000_vm3, %v31843_v26, -inf }
 0x1cc   : > { %4005 = vmax.xlane.f32.xlu0 %v4004_v45 }
 0x1ce   : > { %v31847_v46 = vpop.f32.mrb[36].mxu1 }
 0x1cf   : > { %v28059_v47 = vpop.f32.mrb[37].mxu1  ;;  %v4007_v1 = vsel %vm4000_vm3, %v31847_v46, -inf }
 0x1d0   : > { %4008 = vmax.xlane.f32.xlu1 %v4007_v1 }
 0x1d2   : > { %v31851_v50 = vpop.f32.mrb[38].mxu1 }
 0x1d3   : > { %v28064_v55 = vpop.f32.mrb[39].mxu1  ;;  %v4010_v57 = vsel %vm4000_vm3, %v31851_v50, -inf }
 0x1d4   : > { %4011 = vmax.xlane.f32.xlu1 %v4010_v57 }
 0x1d6   : > { %v31855_v59 = vpop.f32.mrb[40].mxu1 }
 0x1d7   : > { %v28069_v62 = vpop.f32.mrb[41].mxu1  ;;  %v4013_v0 = vsel %vm4000_vm3, %v31855_v59, -inf }
 0x1d8   : > { %4014 = vmax.xlane.f32.xlu0 %v4013_v0 }
 0x1da   : > { %v31859_v32 = vpop.f32.mrb[42].mxu1 }
 0x1db   : > { %v28074_v4 = vpop.f32.mrb[43].mxu1  ;;  %v4016_v5 = vsel %vm4000_vm3, %v31859_v32, -inf }
 0x1dc   : > { %4017 = vmax.xlane.f32.xlu1 %v4016_v5 }
 0x1de   : > { %v31863_v7 = vpop.f32.mrb[44].mxu1 }
 0x1df   : > { %v28079_v8 = vpop.f32.mrb[45].mxu1  ;;  %v4019_v9 = vsel %vm4000_vm3, %v31863_v7, -inf }
 0x1e0   : > { %4020 = vmax.xlane.f32.xlu0 %v4019_v9 }
 0x1e2   : > { %v31867_v12 = vpop.f32.mrb[46].mxu1 }
 0x1e3   : > { %v28084_v15 = vpop.f32.mrb[47].mxu1  ;;  %v4022_v17 = vsel %vm4000_vm3, %v31867_v12, -inf }
 0x1e4   : > { %4023 = vmax.xlane.f32.xlu1 %v4022_v17 }
 0x1e6   : > { %v31871_v19 = vpop.f32.mrb[48].mxu1 }
 0x1e7   : > { %v28089_v23 = vpop.f32.mrb[49].mxu1  ;;  %v4025_v27 = vsel %vm4000_vm3, %v31871_v19, -inf }
 0x1e8   : > { %4026 = vmax.xlane.f32.xlu0 %v4025_v27  ;;  %v31875_v51 = vpop.f32.mrb[64].mxu0 }
 0x1e9   : > { %v28129_v53 = vpop.f32.mrb[65].mxu0 }
 0x1ea   : > { %v31877_v49 = vpop.f32.mrb[50].mxu1 }
 0x1eb   : > { %v28094_v61 = vpop.f32.mrb[51].mxu1  ;;  %v4028_v14 = vsel %vm4000_vm3, %v31877_v49, -inf }
 0x1ec   : > { %4029 = vmax.xlane.f32.xlu1 %v4028_v14  ;;  %v31881_v28 = vpop.f32.mrb[66].mxu0 }
 0x1ed   : > { %v28139_v25 = vpop.f32.mrb[67].mxu0 }
 0x1ee   : > { %v31883_v38 = vpop.f32.mrb[52].mxu1 }
 0x1ef   : > { %v28099_v44 = vpop.f32.mrb[53].mxu1  ;;  %v4031_v45 = vsel %vm4000_vm3, %v31883_v38, -inf }
 0x1f0   : > { %4032 = vmax.xlane.f32.xlu0 %v4031_v45  ;;  %v31887_v47 = vpop.f32.mrb[68].mxu0 }
 0x1f1   : > { %v28149_v1 = vpop.f32.mrb[69].mxu0 }
 0x1f2   : > { %v31889_v55 = vpop.f32.mrb[54].mxu1 }
 0x1f3   : > { %v28104_v57 = vpop.f32.mrb[55].mxu1  ;;  %v4034_v62 = vsel %vm4000_vm3, %v31889_v55, -inf }
 0x1f4   : > { %4035 = vmax.xlane.f32.xlu1 %v4034_v62  ;;  %v31893_v0 = vpop.f32.mrb[70].mxu0  ;;  %v4049_v57 = vsel %vm4000_vm3, %v31875_v51, -inf }
 0x1f5   : > { %v28159_v4 = vpop.f32.mrb[71].mxu0 }
 0x1f6   : > { %v31895_v5 = vpop.f32.mrb[56].mxu1 }
 0x1f7   : > { %v28109_v8 = vpop.f32.mrb[57].mxu1  ;;  %v4037_v9 = vsel %vm4000_vm3, %v31895_v5, -inf }
 0x1f8   : > { %4038 = vmax.xlane.f32.xlu0 %v4037_v9  ;;  %v31899_v15 = vpop.f32.mrb[72].mxu0 }
 0x1f9   : > { %v28169_v17 = vpop.f32.mrb[73].mxu0 }
 0x1fa   : > { %v31901_v23 = vpop.f32.mrb[58].mxu1 }
 0x1fb   : > { %v28114_v27 = vpop.f32.mrb[59].mxu1  ;;  %v4040_v53 = vsel %vm4000_vm3, %v31901_v23, -inf }
 0x1fc   : > { %4041 = vmax.xlane.f32.xlu1 %v4040_v53  ;;  %v31905_v61 = vpop.f32.mrb[74].mxu0  ;;  %v4055_v27 = vsel %vm4000_vm3, %v31881_v28, -inf }
 0x1fd   : > { %v28179_v14 = vpop.f32.mrb[75].mxu0 }
 0x1fe   : > { %v31907_v25 = vpop.f32.mrb[60].mxu1 }
 0x1ff   : > { %v28119_v44 = vpop.f32.mrb[61].mxu1  ;;  %v4043_v45 = vsel %vm4000_vm3, %v31907_v25, -inf }
 0x200   : > { %4044 = vmax.xlane.f32.xlu0 %v4043_v45  ;;  %v31911_v1 = vpop.f32.mrb[76].mxu0 }
 0x201   : > { %v28189_v62 = vpop.f32.mrb[77].mxu0 }
 0x202   : > { %v31915_v4 = vpop.f32.mrb[62].mxu1  ;;  %v4061_v62 = vsel %vm4000_vm3, %v31887_v47, -inf }
 0x203   : > { %v28124_v8 = vpop.f32.mrb[63].mxu1  ;;  %v4046_v9 = vsel %vm4000_vm3, %v31915_v4, -inf }
 0x204   : > { %4050 = vmax.xlane.f32.xlu0 %v4049_v57  ;;  %4047 = vmax.xlane.f32.xlu1 %v4046_v9  ;;  %v31919_v17 = vpop.f32.mrb[78].mxu0 }
 0x205   : > { %v28199_v53 = vpop.f32.mrb[79].mxu0 }
 0x206   : > { %v31923_v14 = vpop.f32.mrb[64].mxu1  ;;  %v4067_v53 = vsel %vm4000_vm3, %v31893_v0, -inf }
 0x207   : > { %v28134_v44 = vpop.f32.mrb[65].mxu1  ;;  %v4052_v45 = vsel %vm4000_vm3, %v31923_v14, -inf }
 0x208   : > { %4056 = vmax.xlane.f32.xlu0 %v4055_v27  ;;  %4053 = vmax.xlane.f32.xlu1 %v4052_v45  ;;  %v4073_v45 = vsel %vm4000_vm3, %v31899_v15, -inf }
 0x20a   : > { %v31929_v8 = vpop.f32.mrb[66].mxu1 }
 0x20b   : > { %v28144_v57 = vpop.f32.mrb[67].mxu1  ;;  %v4058_v9 = vsel %vm4000_vm3, %v31929_v8, -inf }
 0x20c   : > { %4062 = vmax.xlane.f32.xlu0 %v4061_v62  ;;  %4059 = vmax.xlane.f32.xlu1 %v4058_v9  ;;  %v4079_v9 = vsel %vm4000_vm3, %v31905_v61, -inf }
 0x20e   : > { %v31935_v44 = vpop.f32.mrb[68].mxu1 }
 0x20f   : > { %v28154_v20 = vpop.f32.mrb[69].mxu1  ;;  %v4064_v27 = vsel %vm4000_vm3, %v31935_v44, -inf }
 0x210   : > { %4068 = vmax.xlane.f32.xlu0 %v4067_v53  ;;  %4065 = vmax.xlane.f32.xlu1 %v4064_v27  ;;  %v4085_v27 = vsel %vm4000_vm3, %v31911_v1, -inf }
 0x212   : > { %v31941_v57 = vpop.f32.mrb[70].mxu1 }
 0x213   : > { %v28164_v22 = vpop.f32.mrb[71].mxu1  ;;  %v4070_v62 = vsel %vm4000_vm3, %v31941_v57, -inf }
 0x214   : > { %4074 = vmax.xlane.f32.xlu0 %v4073_v45  ;;  %4071 = vmax.xlane.f32.xlu1 %v4070_v62  ;;  %v4091_v62 = vsel %vm4000_vm3, %v31919_v17, -inf }
 0x216   : > { %v31947_v20 = vpop.f32.mrb[72].mxu1 }
 0x217   : > { %v28174_v54 = vpop.f32.mrb[73].mxu1  ;;  %v4076_v53 = vsel %vm4000_vm3, %v31947_v20, -inf }
 0x218   : > { %4080 = vmax.xlane.f32.xlu0 %v4079_v9  ;;  %4077 = vmax.xlane.f32.xlu1 %v4076_v53 }
 0x21a   : > { %v31953_v22 = vpop.f32.mrb[74].mxu1 }
 0x21b   : > { %v28184_v30 = vpop.f32.mrb[75].mxu1  ;;  %v4082_v45 = vsel %vm4000_vm3, %v31953_v22, -inf }
 0x21c   : > { %4086 = vmax.xlane.f32.xlu0 %v4085_v27  ;;  %4083 = vmax.xlane.f32.xlu1 %v4082_v45 }
 0x21e   : > { %v31959_v54 = vpop.f32.mrb[76].mxu1 }
 0x21f   : > { %v28194_v39 = vpop.f32.mrb[77].mxu1  ;;  %v4088_v9 = vsel %vm4000_vm3, %v31959_v54, -inf }
 0x220   : > { %4092 = vmax.xlane.f32.xlu0 %v4091_v62  ;;  %4089 = vmax.xlane.f32.xlu1 %v4088_v9 }
 0x222   : > { %v31963_v53 = vpop.f32.mrb[78].mxu1 }
 0x223   : > { %v28204_v10 = vpop.f32.mrb[79].mxu1  ;;  %v4094_v30 = vsel %vm4000_vm3, %v31963_v53, -inf }
 0x224   : > { %4095 = vmax.xlane.f32.xlu1 %v4094_v30 }
 0x255   : > { %v4003_v27 = vpop.xlane.xlu0 %4002 }
 0x256   : > { %v4097_v45 = vsub.f32 %v31839_v33, %v4003_v27 }
 0x258   : > { %v4129_v24 = vmul.f32 1.442695, %v4097_v45 }
 0x259   : > { %v4006_v40 = vpop.xlane.xlu0 %4005 }
 0x25a   : > { %30289 = vpow2.f32 %v4129_v24  ;;  %v4098_v39 = vsub.f32 %v31843_v26, %v4006_v40 }
 0x25c   : > { %v4131_v18 = vmul.f32 1.442695, %v4098_v39 }
 0x25d   : > { %v4009_v29 = vpop.xlane.xlu1 %4008 }
 0x25e   : > { %30291 = vpow2.f32 %v4131_v18  ;;  %v4099_v62 = vsub.f32 %v31847_v46, %v4009_v29 }
 0x260   : > { %v4133_v9 = vmul.f32 1.442695, %v4099_v62 }
 0x261   : > { %v4012_v13 = vpop.xlane.xlu1 %4011 }
 0x262   : > { %30293 = vpow2.f32 %v4133_v9  ;;  %v4100_v10 = vsub.f32 %v31851_v50, %v4012_v13 }
 0x264   : > { %v31971_v21 = vpop.eup %30289  ;;  %v4135_v30 = vmul.f32 1.442695, %v4100_v10 }
 0x265   : > { %v4015_v43 = vpop.xlane.xlu0 %4014  ;;  %v4193_v33 = vsel %vm4000_vm3, %v31971_v21, 0.0 }
 0x266   : > { %30295 = vpow2.f32 %v4135_v30  ;;  %v4101_v24 = vsub.f32 %v31855_v59, %v4015_v43  ;;  %4194 = vadd.xlane.f32.xlu0 %v4193_v33 }
 0x268   : > { %v31976_v40 = vpop.eup %30291  ;;  %v4137_v18 = vmul.f32 1.442695, %v4101_v24 }
 0x269   : > { %v4018_v29 = vpop.xlane.xlu1 %4017  ;;  %v4196_v26 = vsel %vm4000_vm3, %v31976_v40, 0.0 }
 0x26a   : > { %30297 = vpow2.f32 %v4137_v18  ;;  %v4102_v13 = vsub.f32 %v31859_v32, %v4018_v29  ;;  %4197 = vadd.xlane.f32.xlu1 %v4196_v26 }
 0x26c   : > { %v31981_v46 = vpop.eup %30293  ;;  %v4139_v50 = vmul.f32 1.442695, %v4102_v13 }
 0x26d   : > { %v4021_v27 = vpop.xlane.xlu0 %4020  ;;  %v4199_v45 = vsel %vm4000_vm3, %v31981_v46, 0.0 }
 0x26e   : > { %30299 = vpow2.f32 %v4139_v50  ;;  %v4103_v43 = vsub.f32 %v31863_v7, %v4021_v27  ;;  %4200 = vadd.xlane.f32.xlu0 %v4199_v45 }
 0x270   : > { %v31986_v59 = vpop.eup %30295  ;;  %v4141_v39 = vmul.f32 1.442695, %v4103_v43 }
 0x271   : > { %v4024_v62 = vpop.xlane.xlu1 %4023  ;;  %v4202_v9 = vsel %vm4000_vm3, %v31986_v59, 0.0 }
 0x272   : > { %30301 = vpow2.f32 %v4141_v39  ;;  %v4104_v32 = vsub.f32 %v31867_v12, %v4024_v62  ;;  %4203 = vadd.xlane.f32.xlu1 %v4202_v9 }
 0x274   : > { %v31991_v10 = vpop.eup %30297  ;;  %v4143_v30 = vmul.f32 1.442695, %v4104_v32 }
 0x275   : > { %v4027_v33 = vpop.xlane.xlu0 %4026  ;;  %v4205_v24 = vsel %vm4000_vm3, %v31991_v10, 0.0 }
 0x276   : > { %30303 = vpow2.f32 %v4143_v30  ;;  %v4105_v7 = vsub.f32 %v31871_v19, %v4027_v33  ;;  %4206 = vadd.xlane.f32.xlu0 %v4205_v24 }
 0x278   : > { %v31996_v18 = vpop.eup %30299  ;;  %v4145_v29 = vmul.f32 1.442695, %v4105_v7 }
 0x279   : > { %v4030_v26 = vpop.xlane.xlu1 %4029  ;;  %v4208_v13 = vsel %vm4000_vm3, %v31996_v18, 0.0 }
 0x27a   : > { %30305 = vpow2.f32 %v4145_v29  ;;  %v4106_v12 = vsub.f32 %v31877_v49, %v4030_v26  ;;  %4209 = vadd.xlane.f32.xlu1 %v4208_v13 }
 0x27c   : > { %v32001_v50 = vpop.eup %30301  ;;  %v4147_v27 = vmul.f32 1.442695, %v4106_v12 }
 0x27d   : > { %v4033_v45 = vpop.xlane.xlu0 %4032  ;;  %v4211_v43 = vsel %vm4000_vm3, %v32001_v50, 0.0 }
 0x27e   : > { %30307 = vpow2.f32 %v4147_v27  ;;  %v4107_v19 = vsub.f32 %v31883_v38, %v4033_v45  ;;  %4212 = vadd.xlane.f32.xlu0 %v4211_v43 }
 0x280   : > { %v32006_v39 = vpop.eup %30303  ;;  %v4149_v62 = vmul.f32 1.442695, %v4107_v19 }
 0x281   : > { %v4036_v9 = vpop.xlane.xlu1 %4035  ;;  %v4214_v32 = vsel %vm4000_vm3, %v32006_v39, 0.0 }
 0x282   : > { %30309 = vpow2.f32 %v4149_v62  ;;  %v4108_v49 = vsub.f32 %v31889_v55, %v4036_v9  ;;  %4215 = vadd.xlane.f32.xlu1 %v4214_v32 }
 0x284   : > { %v32011_v30 = vpop.eup %30305  ;;  %v4151_v33 = vmul.f32 1.442695, %v4108_v49 }
 0x285   : > { %v4039_v24 = vpop.xlane.xlu0 %4038  ;;  %v4217_v7 = vsel %vm4000_vm3, %v32011_v30, 0.0 }
 0x286   : > { %30311 = vpow2.f32 %v4151_v33  ;;  %v4109_v38 = vsub.f32 %v31895_v5, %v4039_v24  ;;  %4218 = vadd.xlane.f32.xlu0 %v4217_v7 }
 0x288   : > { %v32016_v29 = vpop.eup %30307  ;;  %v4153_v26 = vmul.f32 1.442695, %v4109_v38 }
 0x289   : > { %v4042_v13 = vpop.xlane.xlu1 %4041  ;;  %v4220_v12 = vsel %vm4000_vm3, %v32016_v29, 0.0 }
 0x28a   : > { %30313 = vpow2.f32 %v4153_v26  ;;  %v4110_v55 = vsub.f32 %v31901_v23, %v4042_v13  ;;  %4221 = vadd.xlane.f32.xlu1 %v4220_v12 }
 0x28c   : > { %v32021_v27 = vpop.eup %30309  ;;  %v4155_v45 = vmul.f32 1.442695, %v4110_v55 }
 0x28d   : > { %v4045_v43 = vpop.xlane.xlu0 %4044  ;;  %v4223_v19 = vsel %vm4000_vm3, %v32021_v27, 0.0 }
 0x28e   : > { %30315 = vpow2.f32 %v4155_v45  ;;  %v4111_v5 = vsub.f32 %v31907_v25, %v4045_v43  ;;  %4224 = vadd.xlane.f32.xlu0 %v4223_v19 }
 0x290   : > { %v32026_v62 = vpop.eup %30311  ;;  %v4157_v9 = vmul.f32 1.442695, %v4111_v5 }
 0x291   : > { %v4051_v32 = vpop.xlane.xlu0 %4050  ;;  %v4048_v49 = vpop.xlane.xlu1 %4047  ;;  %v4226_v23 = vsel %vm4000_vm3, %v32026_v62, 0.0 }
 0x292   : > { %30317 = vpow2.f32 %v4157_v9  ;;  %v4113_v33 = vsub.f32 %v31875_v51, %v4051_v32  ;;  %v4112_v24 = vsub.f32 %v31915_v4, %v4048_v49  ;;  %4227 = vadd.xlane.f32.xlu1 %v4226_v23 }
 0x294   : > { %v32032_v7 = vpop.eup %30313  ;;  %v4161_v38 = vmul.f32 1.442695, %v4113_v33  ;;  %v4159_v26 = vmul.f32 1.442695, %v4112_v24 }
 0x295   : > { %v4057_v25 = vpop.xlane.xlu0 %4056  ;;  %v4054_v13 = vpop.xlane.xlu1 %4053  ;;  %v4229_v12 = vsel %vm4000_vm3, %v32032_v7, 0.0 }
 0x296   : > { %30319 = vpow2.f32 %v4161_v38  ;;  %v4115_v55 = vsub.f32 %v31881_v28, %v4057_v25  ;;  %v4114_v45 = vsub.f32 %v31923_v14, %v4054_v13  ;;  %4230 = vadd.xlane.f32.xlu0 %v4229_v12 }
 0x297   : > { %30321 = vpow2.f32 %v4159_v26 }
 0x298   : > { %v32038_v51 = vpop.eup %30315  ;;  %v4165_v4 = vmul.f32 1.442695, %v4115_v55  ;;  %v4163_v43 = vmul.f32 1.442695, %v4114_v45 }
 0x299   : > { %v4063_v19 = vpop.xlane.xlu0 %4062  ;;  %v4060_v5 = vpop.xlane.xlu1 %4059  ;;  %v4232_v9 = vsel %vm4000_vm3, %v32038_v51, 0.0 }
 0x29a   : > { %30323 = vpow2.f32 %v4165_v4  ;;  %v4117_v32 = vsub.f32 %v31887_v47, %v4063_v19  ;;  %v4116_v49 = vsub.f32 %v31929_v8, %v4060_v5  ;;  %4233 = vadd.xlane.f32.xlu1 %v4232_v9 }
 0x29b   : > { %30325 = vpow2.f32 %v4163_v43 }
 0x29c   : > { %v32044_v28 = vpop.eup %30317  ;;  %v4169_v14 = vmul.f32 1.442695, %v4117_v32  ;;  %v4167_v23 = vmul.f32 1.442695, %v4116_v49 }
 0x29d   : > { %v4069_v33 = vpop.xlane.xlu0 %4068  ;;  %v4066_v24 = vpop.xlane.xlu1 %4065  ;;  %v4235_v38 = vsel %vm4000_vm3, %v32044_v28, 0.0 }
 0x29e   : > { %30327 = vpow2.f32 %v4169_v14  ;;  %v4119_v26 = vsub.f32 %v31893_v0, %v4069_v33  ;;  %v4118_v25 = vsub.f32 %v31935_v44, %v4066_v24  ;;  %4236 = vadd.xlane.f32.xlu0 %v4235_v38 }
 0x29f   : > { %30329 = vpow2.f32 %v4167_v23 }
 0x2a0   : > { %v32050_v47 = vpop.eup %30319  ;;  %v4173_v8 = vmul.f32 1.442695, %v4119_v26  ;;  %v4171_v13 = vmul.f32 1.442695, %v4118_v25 }
 0x2a1   : > { %v32052_v12 = vpop.eup %30321  ;;  %v4075_v55 = vpop.xlane.xlu0 %4074  ;;  %v4241_v4 = vsel %vm4000_vm3, %v32050_v47, 0.0 }
 0x2a2   : > { %v4072_v45 = vpop.xlane.xlu1 %4071  ;;  %30331 = vpow2.f32 %v4173_v8  ;;  %v4121_v43 = vsub.f32 %v31899_v15, %v4075_v55  ;;  %4242 = vadd.xlane.f32.xlu0 %v4241_v4  ;;  %v4238_v44 = vsel %vm4000_vm3, %v32052_v12, 0.0 }
 0x2a3   : > { %v4120_v0 = vsub.f32 %v31941_v57, %v4072_v45  ;;  %30333 = vpow2.f32 %v4171_v13  ;;  %4239 = vadd.xlane.f32.xlu1 %v4238_v44 }
 0x2a4   : > { %v32060_v19 = vpop.eup %30323  ;;  %v4177_v5 = vmul.f32 1.442695, %v4121_v43 }
 0x2a5   : > { %v4175_v9 = vmul.f32 1.442695, %v4120_v0  ;;  %v32062_v32 = vpop.eup %30325  ;;  %v4081_v49 = vpop.xlane.xlu0 %4080  ;;  %v4247_v23 = vsel %vm4000_vm3, %v32060_v19, 0.0 }
 0x2a6   : > { %v4078_v14 = vpop.xlane.xlu1 %4077  ;;  %30335 = vpow2.f32 %v4177_v5  ;;  %v4123_v15 = vsub.f32 %v31905_v61, %v4081_v49  ;;  %4248 = vadd.xlane.f32.xlu0 %v4247_v23  ;;  %v4244_v33 = vsel %vm4000_vm3, %v32062_v32, 0.0 }
 0x2a7   : > { %v4122_v57 = vsub.f32 %v31947_v20, %v4078_v14  ;;  %30337 = vpow2.f32 %v4175_v9  ;;  %4245 = vadd.xlane.f32.xlu1 %v4244_v33 }
 0x2a8   : > { %v32070_v24 = vpop.eup %30327  ;;  %v4181_v38 = vmul.f32 1.442695, %v4123_v15 }
 0x2a9   : > { %v4179_v26 = vmul.f32 1.442695, %v4122_v57  ;;  %v32072_v25 = vpop.eup %30329  ;;  %v4087_v8 = vpop.xlane.xlu0 %4086  ;;  %v4253_v55 = vsel %vm4000_vm3, %v32070_v24, 0.0 }
 0x2aa   : > { %v4084_v13 = vpop.xlane.xlu1 %4083  ;;  %30339 = vpow2.f32 %v4181_v38  ;;  %v4125_v61 = vsub.f32 %v31911_v1, %v4087_v8  ;;  %4254 = vadd.xlane.f32.xlu0 %v4253_v55  ;;  %v4250_v45 = vsel %vm4000_vm3, %v32072_v25, 0.0 }
 0x2ab   : > { %v4124_v20 = vsub.f32 %v31953_v22, %v4084_v13  ;;  %30341 = vpow2.f32 %v4179_v26  ;;  %4251 = vadd.xlane.f32.xlu1 %v4250_v45 }
 0x2ac   : > { %v32080_v4 = vpop.eup %30331  ;;  %v4185_v43 = vmul.f32 1.442695, %v4125_v61 }
 0x2ad   : > { %v4183_v0 = vmul.f32 1.442695, %v4124_v20  ;;  %v32082_v44 = vpop.eup %30333  ;;  %v4093_v5 = vpop.xlane.xlu0 %4092  ;;  %v4259_v49 = vsel %vm4000_vm3, %v32080_v4, 0.0 }
 0x2ae   : > { %v4090_v9 = vpop.xlane.xlu1 %4089  ;;  %30343 = vpow2.f32 %v4185_v43  ;;  %v4127_v1 = vsub.f32 %v31919_v17, %v4093_v5  ;;  %4260 = vadd.xlane.f32.xlu0 %v4259_v49  ;;  %v4256_v14 = vsel %vm4000_vm3, %v32082_v44, 0.0 }
 0x2af   : > { %v4126_v22 = vsub.f32 %v31959_v54, %v4090_v9  ;;  %30345 = vpow2.f32 %v4183_v0  ;;  %4257 = vadd.xlane.f32.xlu1 %v4256_v14 }
 0x2b0   : > { %v32090_v23 = vpop.eup %30335  ;;  %v4189_v15 = vmul.f32 1.442695, %v4127_v1 }
 0x2b1   : > { %v4187_v57 = vmul.f32 1.442695, %v4126_v22  ;;  %v32092_v33 = vpop.eup %30337  ;;  %v4265_v26 = vsel %vm4000_vm3, %v32090_v23, 0.0 }
 0x2b2   : > { %v4096_v38 = vpop.xlane.xlu1 %4095  ;;  %30347 = vpow2.f32 %v4189_v15  ;;  %4266 = vadd.xlane.f32.xlu0 %v4265_v26  ;;  %v4262_v54 = vsel %vm4000_vm3, %v32092_v33, 0.0 }
 0x2b3   : > { %v4128_v17 = vsub.f32 %v31963_v53, %v4096_v38  ;;  %30349 = vpow2.f32 %v4187_v57  ;;  %4263 = vadd.xlane.f32.xlu1 %v4262_v54 }
 0x2b4   : > { %v32099_v8 = vpop.eup %30339 }
 0x2b5   : > { %v4191_v13 = vmul.f32 1.442695, %v4128_v17  ;;  %v32101_v55 = vpop.eup %30341  ;;  %v4271_v61 = vsel %vm4000_vm3, %v32099_v8, 0.0 }
 0x2b6   : > { %4272 = vadd.xlane.f32.xlu0 %v4271_v61  ;;  %v4268_v20 = vsel %vm4000_vm3, %v32101_v55, 0.0  ;;  %v36071_v61 = vmov 0.0  }
 0x2b7   : > { %30351 = vpow2.f32 %v4191_v13  ;;  %4269 = vadd.xlane.f32.xlu1 %v4268_v20 }
 0x2b8   : > { %v32107_v53 = vpop.eup %30343 }
 0x2b9   : > { %v32109_v45 = vpop.eup %30345  ;;  %v4277_v43 = vsel %vm4000_vm3, %v32107_v53, 0.0 }
 0x2ba   : > { %4278 = vadd.xlane.f32.xlu0 %v4277_v43  ;;  %v4274_v0 = vsel %vm4000_vm3, %v32109_v45, 0.0 }
 0x2bb   : > { %4275 = vadd.xlane.f32.xlu1 %v4274_v0 }
 0x2bc   : > { %v32115_v5 = vpop.eup %30347 }
 0x2bd   : > { %v32117_v9 = vpop.eup %30349  ;;  %v4283_v49 = vsel %vm4000_vm3, %v32115_v5, 0.0 }
 0x2be   : > { %4284 = vadd.xlane.f32.xlu0 %v4283_v49  ;;  %v4280_v1 = vsel %vm4000_vm3, %v32117_v9, 0.0 }
 0x2bf   : > { %4281 = vadd.xlane.f32.xlu1 %v4280_v1 }
 0x2c1   : > { %v32123_v22 = vpop.eup %30351 }
 0x2c2   : > { %v4286_v14 = vsel %vm4000_vm3, %v32123_v22, 0.0 }
 0x2c3   : > { %4287 = vadd.xlane.f32.xlu1 %v4286_v14 }
 0x2f3   : > { %v4195_v15 = vpop.xlane.xlu0 %4194 }
 0x2f4   : > { %30353 = vrcp.f32 %v4195_v15 }
 0x2f7   : > { %v4198_v57 = vpop.xlane.xlu1 %4197 }
 0x2f8   : > { %30355 = vrcp.f32 %v4198_v57 }
 0x2fb   : > { %v4201_v38 = vpop.xlane.xlu0 %4200 }
 0x2fc   : > { %30357 = vrcp.f32 %v4201_v38 }
 0x2fe   : > { %v30354_v26 = vpop.eup %30353 }
 0x2ff   : > { %v4204_v17 = vpop.xlane.xlu1 %4203  ;;  %v4321_v54 = vmul.f32 %v30354_v26, %v31971_v21 }
 0x300   : > { %30359 = vrcp.f32 %v4204_v17 }
 0x301   : > { %28208 = vmatmul.mubr.msk.f32.vlgmr.msra.gmra.mrb[80].mxu0 %vm4000_vm3, %v4321_v54 }
 0x302   : > { %v30356_v13 = vpop.eup %30355  ;;  %28216 = vmatpush3.msra.mxu0 %v31741_v36  ;;  %28217 = vmatprep.mubr.msk.f32.mxu0 %vm31099_vm1, %v36071_v61 }
 0x303   : > { %v4207_v20 = vpop.xlane.xlu0 %4206  ;;  %v4322_v43 = vmul.f32 %v30356_v13, %v31976_v40  ;;  %28225 = vmatprep.subr.mxu0 %v36071_v61 }
 0x304   : > { %30361 = vrcp.f32 %v4207_v20 }
 0x305   : > { %28213 = vmatmul.mubr.msk.f32.vlgmr.msra.gmra.mrb[80].mxu1 %vm4000_vm3, %v4322_v43 }
 0x306   : > { %v30358_v0 = vpop.eup %30357  ;;  %28221 = vmatpush3.msra.mxu1 %v31736_v31  ;;  %28222 = vmatprep.mubr.msk.f32.mxu1 %vm31099_vm1, %v36071_v61 }
 0x307   : > { %v4210_v21 = vpop.xlane.xlu1 %4209  ;;  %v4323_v36 = vmul.f32 %v30358_v0, %v31981_v46  ;;  %28230 = vmatprep.subr.mxu1 %v36071_v61 }
 0x308   : > { %30363 = vrcp.f32 %v4210_v21 }
 0x309   : > { %28218 = vmatmul.mubr.msk.f32.vlgmr.msra.gmra.mrb[82].mxu0 %vm4000_vm3, %v4323_v36 }
 0x30a   : > { %v30360_v40 = vpop.eup %30359  ;;  %28226 = vmatpush3.msra.mxu0 %v31755_v35  ;;  %28227 = vmatprep.mubr.msk.f32.mxu0 %vm31099_vm1, %v36071_v61 }
 0x30b   : > { %v4213_v49 = vpop.xlane.xlu0 %4212  ;;  %v4324_v31 = vmul.f32 %v30360_v40, %v31986_v59  ;;  %28235 = vmatprep.subr.mxu0 %v36071_v61 }
 0x30c   : > { %30365 = vrcp.f32 %v4213_v49 }
 0x30d   : > { %28223 = vmatmul.mubr.msk.f32.vlgmr.msra.gmra.mrb[82].mxu1 %vm4000_vm3, %v4324_v31 }
 0x30e   : > { %v30362_v46 = vpop.eup %30361  ;;  %28231 = vmatpush3.msra.mxu1 %v31750_v42  ;;  %28232 = vmatprep.mubr.msk.f32.mxu1 %vm31099_vm1, %v36071_v61 }
 0x30f   : > { %v4216_v1 = vpop.xlane.xlu1 %4215  ;;  %v4325_v35 = vmul.f32 %v30362_v46, %v31991_v10  ;;  %28240 = vmatprep.subr.mxu1 %v36071_v61 }
 0x310   : > { %30367 = vrcp.f32 %v4216_v1 }
 0x311   : > { %28228 = vmatmul.mubr.msk.f32.vlgmr.msra.gmra.mrb[84].mxu0 %vm4000_vm3, %v4325_v35 }
 0x312   : > { %v30364_v59 = vpop.eup %30363  ;;  %28236 = vmatpush3.msra.mxu0 %v31764_v48  ;;  %28237 = vmatprep.mubr.msk.f32.mxu0 %vm31099_vm1, %v36071_v61 }
 0x313   : > { %v4219_v14 = vpop.xlane.xlu0 %4218  ;;  %v4326_v42 = vmul.f32 %v30364_v59, %v31996_v18  ;;  %28245 = vmatprep.subr.mxu0 %v36071_v61 }
 0x314   : > { %30369 = vrcp.f32 %v4219_v14 }
 0x315   : > { %28233 = vmatmul.mubr.msk.f32.vlgmr.msra.gmra.mrb[84].mxu1 %vm4000_vm3, %v4326_v42 }
 0x316   : > { %v30366_v10 = vpop.eup %30365  ;;  %28241 = vmatpush3.msra.mxu1 %v31759_v37  ;;  %28242 = vmatprep.mubr.msk.f32.mxu1 %vm31099_vm1, %v36071_v61 }
 0x317   : > { %v4222_v15 = vpop.xlane.xlu1 %4221  ;;  %v4327_v48 = vmul.f32 %v30366_v10, %v32001_v50  ;;  %28250 = vmatprep.subr.mxu1 %v36071_v61  ;;  %v36073_v10 = vld [vmem:[#allocation5_spill] sm:$0xff] }
 0x318   : > { %30371 = vrcp.f32 %v4222_v15  ;;  %v36074_v15 = vld [vmem:[#allocation3_spill] sm:$0xff] }
 0x319   : > { %28238 = vmatmul.mubr.msk.f32.vlgmr.msra.gmra.mrb[86].mxu0 %vm4000_vm3, %v4327_v48 }
 0x31a   : > { %v30368_v18 = vpop.eup %30367  ;;  %28246 = vmatpush3.msra.mxu0 %v31771_v56  ;;  %28247 = vmatprep.mubr.msk.f32.mxu0 %vm31099_vm1, %v36071_v61 }
 0x31b   : > { %v4225_v57 = vpop.xlane.xlu0 %4224  ;;  %v4328_v37 = vmul.f32 %v30368_v18, %v32006_v39  ;;  %28255 = vmatprep.subr.mxu0 %v36071_v61 }
 0x31c   : > { %30373 = vrcp.f32 %v4225_v57 }
 0x31d   : > { %28243 = vmatmul.mubr.msk.f32.vlgmr.msra.gmra.mrb[86].mxu1 %vm4000_vm3, %v4328_v37 }
 0x31e   : > { %v30370_v50 = vpop.eup %30369  ;;  %28251 = vmatpush3.msra.mxu1 %v31768_v52  ;;  %28252 = vmatprep.mubr.msk.f32.mxu1 %vm31099_vm1, %v36071_v61 }
 0x31f   : > { %v4228_v38 = vpop.xlane.xlu1 %4227  ;;  %v4329_v56 = vmul.f32 %v30370_v50, %v32011_v30  ;;  %28260 = vmatprep.subr.mxu1 %v36071_v61  ;;  %v36075_v50 = vld [vmem:[#allocation7_spill] sm:$0xff] }
 0x320   : > { %30375 = vrcp.f32 %v4228_v38  ;;  %v36076_v38 = vld [vmem:[#allocation4_spill] sm:$0xff] }
 0x321   : > { %28248 = vmatmul.mubr.msk.f32.vlgmr.msra.gmra.mrb[88].mxu0 %vm4000_vm3, %v4329_v56 }
 0x322   : > { %v30372_v39 = vpop.eup %30371  ;;  %28256 = vmatpush3.msra.mxu0 %v31777_v60  ;;  %28257 = vmatprep.mubr.msk.f32.mxu0 %vm31099_vm1, %v36071_v61 }
 0x323   : > { %v4231_v26 = vpop.xlane.xlu0 %4230  ;;  %v4330_v52 = vmul.f32 %v30372_v39, %v32016_v29  ;;  %28265 = vmatprep.subr.mxu0 %v36071_v61 }
 0x324   : > { %30377 = vrcp.f32 %v4231_v26 }
 0x325   : > { %28253 = vmatmul.mubr.msk.f32.vlgmr.msra.gmra.mrb[88].mxu1 %vm4000_vm3, %v4330_v52 }
 0x326   : > { %v30374_v30 = vpop.eup %30373  ;;  %28261 = vmatpush3.msra.mxu1 %v31774_v58  ;;  %28262 = vmatprep.mubr.msk.f32.mxu1 %vm31099_vm1, %v36071_v61 }
 0x327   : > { %v4234_v17 = vpop.xlane.xlu1 %4233  ;;  %v4331_v60 = vmul.f32 %v30374_v30, %v32021_v27  ;;  %28270 = vmatprep.subr.mxu1 %v36071_v61  ;;  %v36077_v30 = vld [vmem:[#allocation9_spill] sm:$0xff] }
 0x328   : > { %30379 = vrcp.f32 %v4234_v17  ;;  %v36078_v17 = vld [vmem:[#allocation6_spill] sm:$0xff] }
 0x329   : > { %28258 = vmatmul.mubr.msk.f32.vlgmr.msra.gmra.mrb[90].mxu0 %vm4000_vm3, %v4331_v60 }
 0x32a   : > { %v30376_v29 = vpop.eup %30375  ;;  %28266 = vmatpush3.msra.mxu0 %v31783_v2  ;;  %28267 = vmatprep.mubr.msk.f32.mxu0 %vm31099_vm1, %v36071_v61 }
 0x32b   : > { %v4237_v54 = vpop.xlane.xlu0 %4236  ;;  %v4332_v58 = vmul.f32 %v30376_v29, %v32026_v62  ;;  %28275 = vmatprep.subr.mxu0 %v36071_v61 }
 0x32c   : > { %30381 = vrcp.f32 %v4237_v54 }
 0x32d   : > { %28263 = vmatmul.mubr.msk.f32.vlgmr.msra.gmra.mrb[90].mxu1 %vm4000_vm3, %v4332_v58  ;;  %v36079_v58 = vld [vmem:[#allocation11_spill] sm:$0xff] }
 0x32e   : > { %v30378_v27 = vpop.eup %30377  ;;  %28271 = vmatpush3.msra.mxu1 %v31780_v63  ;;  %28272 = vmatprep.mubr.msk.f32.mxu1 %vm31099_vm1, %v36071_v61 }
 0x32f   : > { %v4243_v13 = vpop.xlane.xlu0 %4242  ;;  %v4333_v2 = vmul.f32 %v30378_v27, %v32032_v7  ;;  %28280 = vmatprep.subr.mxu1 %v36071_v61 }
 0x330   : > { %30383 = vrcp.f32 %v4243_v13  ;;  %v4240_v20 = vpop.xlane.xlu1 %4239 }
 0x331   : > { %30385 = vrcp.f32 %v4240_v20  ;;  %28268 = vmatmul.mubr.msk.f32.vlgmr.msra.gmra.mrb[92].mxu0 %vm4000_vm3, %v4333_v2  ;;  %v6689_v2 = vld [vmem:[%s36054_s9] sm:$0xff]  ;;  %v6690_v20 = vld [vmem:[%s36054_s9 + $0x8] sm:$0xff] }
 0x332   : > { %v30380_v62 = vpop.eup %30379  ;;  %28276 = vmatpush3.msra.mxu0 %v31789_v34  ;;  %28277 = vmatprep.mubr.msk.f32.mxu0 %vm31099_vm1, %v36071_v61 }
 0x333   : > { %v4249_v63 = vpop.xlane.xlu0 %4248  ;;  %v4334_v43 = vmul.f32 %v30380_v62, %v32038_v51  ;;  %28285 = vmatprep.subr.mxu0 %v36071_v61 }
 0x334   : > { %30387 = vrcp.f32 %v4249_v63  ;;  %v4246_v7 = vpop.xlane.xlu1 %4245  ;;  %v36081_v63 = vld [vmem:[#allocation13_spill] sm:$0xff] }
 0x335   : > { %30389 = vrcp.f32 %v4246_v7  ;;  %28273 = vmatmul.mubr.msk.f32.vlgmr.msra.gmra.mrb[92].mxu1 %vm4000_vm3, %v4334_v43 }
 0x336   : > { %v30382_v0 = vpop.eup %30381  ;;  %28281 = vmatpush3.msra.mxu1 %v31786_v3  ;;  %28282 = vmatprep.mubr.msk.f32.mxu1 %vm31099_vm1, %v36071_v61 }
 0x337   : > { %v4255_v34 = vpop.xlane.xlu0 %4254  ;;  %v4335_v21 = vmul.f32 %v30382_v0, %v32044_v28  ;;  %28290 = vmatprep.subr.mxu1 %v36071_v61 }
 0x338   : > { %30391 = vrcp.f32 %v4255_v34  ;;  %v4252_v51 = vpop.xlane.xlu1 %4251 }
 0x339   : > { %30393 = vrcp.f32 %v4252_v51  ;;  %28278 = vmatmul.mubr.msk.f32.vlgmr.msra.gmra.mrb[94].mxu0 %vm4000_vm3, %v4335_v21  ;;  %v36083_v21 = vld [vmem:[#allocation12_spill] sm:$0xff]  ;;  %v26102_v51 = vld [vmem:[%s36050_s5 + $0x28] sm:$0xff] }
 0x33a   : > { %v30384_v36 = vpop.eup %30383  ;;  %28286 = vmatpush3.msra.mxu0 %v31795_v41  ;;  %28287 = vmatprep.mubr.msk.f32.mxu0 %vm31099_vm1, %v36071_v61 }
 0x33b   : > { %v30386_v3 = vpop.eup %30385  ;;  %v4261_v40 = vpop.xlane.xlu0 %4260  ;;  %28295 = vmatprep.subr.mxu0 %v36071_v61  ;;  %v4337_v49 = vmul.f32 %v30384_v36, %v32050_v47 }
 0x33c   : > { %30395 = vrcp.f32 %v4261_v40  ;;  %v4258_v28 = vpop.xlane.xlu1 %4257  ;;  %v4336_v31 = vmul.f32 %v30386_v3, %v32052_v12  ;;  %v26063_v3 = vld [vmem:[%s36048_s3 + $0x20] sm:$0xff] }
 0x33d   : > { %30397 = vrcp.f32 %v4258_v28  ;;  %28288 = vmatmul.mubr.msk.f32.vlgmr.msra.gmra.mrb[96].mxu0 %vm4000_vm3, %v4337_v49  ;;  %v26103_v28 = vld [vmem:[%s36050_s5 + $0x30] sm:$0xff] }
 0x33e   : > { %v30388_v46 = vpop.eup %30387  ;;  %28283 = vmatmul.mubr.msk.f32.vlgmr.msra.gmra.mrb[94].mxu1 %vm4000_vm3, %v4336_v31  ;;  %28296 = vmatpush3.msra.mxu0 %v31801_v11  ;;  %v26104_v31 = vld [vmem:[%s36050_s5 + $0x38] sm:$0xff] }
 0x33f   : > { %v30390_v41 = vpop.eup %30389  ;;  %28291 = vmatpush3.msra.mxu1 %v31792_v6  ;;  %v4267_v1 = vpop.xlane.xlu0 %4266  ;;  %28292 = vmatprep.mubr.msk.f32.mxu1 %vm31099_vm1, %v36071_v61  ;;  %v4339_v47 = vmul.f32 %v30388_v46, %v32060_v19  ;;  %v36072_v19 = vld [vmem:[#allocation2_spill] sm:$0xff] }
 0x340   : > { %30399 = vrcp.f32 %v4267_v1  ;;  %v4264_v35 = vpop.xlane.xlu1 %4263  ;;  %28297 = vmatprep.mubr.msk.f32.mxu0 %vm31099_vm1, %v36071_v61  ;;  %28300 = vmatprep.subr.mxu1 %v36071_v61  ;;  %v4338_v12 = vmul.f32 %v30390_v41, %v32062_v32  ;;  %v30077_v41 = vpack.c.bf16 %v26104_v31, %v26103_v28  ;;  %v30811_v31 = vld [vmem:[%s31210_s29 + $0x50] sm:$0xff] }
 0x341   : > { %30401 = vrcp.f32 %v4264_v35  ;;  %28305 = vmatprep.subr.mxu0 %v36071_v61  ;;  %28298 = vmatmul.mubr.msk.f32.vlgmr.msra.gmra.mrb[98].mxu0 %vm4000_vm3, %v4339_v47 }
 0x342   : > { %v30392_v6 = vpop.eup %30391  ;;  %28293 = vmatmul.mubr.msk.f32.vlgmr.msra.gmra.mrb[96].mxu1 %vm4000_vm3, %v4338_v12  ;;  %28306 = vmatpush3.msra.mxu0 %v31807_v16 }
 0x343   : > { %v30394_v11 = vpop.eup %30393  ;;  %28301 = vmatpush3.msra.mxu1 %v36072_v19  ;;  %v4273_v59 = vpop.xlane.xlu0 %4272  ;;  %28302 = vmatprep.mubr.msk.f32.mxu1 %vm31099_vm1, %v36071_v61  ;;  %v4341_v14 = vmul.f32 %v30392_v6, %v32070_v24 }
 0x344   : > { %30403 = vrcp.f32 %v4273_v59  ;;  %v4270_v32 = vpop.xlane.xlu1 %4269  ;;  %28307 = vmatprep.mubr.msk.f32.mxu0 %vm31099_vm1, %v36071_v61  ;;  %28310 = vmatprep.subr.mxu1 %v36071_v61  ;;  %v4340_v42 = vmul.f32 %v30394_v11, %v32072_v25 }
 0x345   : > { %30405 = vrcp.f32 %v4270_v32  ;;  %28315 = vmatprep.subr.mxu0 %v36071_v61  ;;  %28308 = vmatmul.mubr.msk.f32.vlgmr.msra.gmra.mrb[100].mxu0 %vm4000_vm3, %v4341_v14 }
 0x346   : > { %v30396_v16 = vpop.eup %30395  ;;  %28303 = vmatmul.mubr.msk.f32.vlgmr.msra.gmra.mrb[98].mxu1 %vm4000_vm3, %v4340_v42  ;;  %28316 = vmatpush3.msra.mxu0 %v36073_v10 }
 0x347   : > { %v30398_v24 = vpop.eup %30397  ;;  %28311 = vmatpush3.msra.mxu1 %v36074_v15  ;;  %v4279_v48 = vpop.xlane.xlu0 %4278  ;;  %28312 = vmatprep.mubr.msk.f32.mxu1 %vm31099_vm1, %v36071_v61  ;;  %v4343_v18 = vmul.f32 %v30396_v16, %v32080_v4 }
 0x348   : > { %30407 = vrcp.f32 %v4279_v48  ;;  %v4276_v25 = vpop.xlane.xlu1 %4275  ;;  %28317 = vmatprep.mubr.msk.f32.mxu0 %vm31099_vm1, %v36071_v61  ;;  %28320 = vmatprep.subr.mxu1 %v36071_v61  ;;  %v4342_v57 = vmul.f32 %v30398_v24, %v32082_v44 }
 0x349   : > { %30409 = vrcp.f32 %v4276_v25  ;;  %28325 = vmatprep.subr.mxu0 %v36071_v61  ;;  %28318 = vmatmul.mubr.msk.f32.vlgmr.msra.gmra.mrb[102].mxu0 %vm4000_vm3, %v4343_v18 }
 0x34a   : > { %v30400_v37 = vpop.eup %30399  ;;  %28313 = vmatmul.mubr.msk.f32.vlgmr.msra.gmra.mrb[100].mxu1 %vm4000_vm3, %v4342_v57  ;;  %28326 = vmatpush3.msra.mxu0 %v36075_v50 }
 0x34b   : > { %v30402_v4 = vpop.eup %30401  ;;  %28321 = vmatpush3.msra.mxu1 %v36076_v38  ;;  %v4285_v56 = vpop.xlane.xlu0 %4284  ;;  %28322 = vmatprep.mubr.msk.f32.mxu1 %vm31099_vm1, %v36071_v61  ;;  %v4345_v39 = vmul.f32 %v30400_v37, %v32090_v23 }
 0x34c   : > { %30411 = vrcp.f32 %v4285_v56  ;;  %v4282_v44 = vpop.xlane.xlu1 %4281  ;;  %28327 = vmatprep.mubr.msk.f32.mxu0 %vm31099_vm1, %v36071_v61  ;;  %28330 = vmatprep.subr.mxu1 %v36071_v61  ;;  %v4344_v26 = vmul.f32 %v30402_v4, %v32092_v33 }
 0x34d   : > { %30413 = vrcp.f32 %v4282_v44  ;;  %28335 = vmatprep.subr.mxu0 %v36071_v61  ;;  %28328 = vmatmul.mubr.msk.f32.vlgmr.msra.gmra.mrb[104].mxu0 %vm4000_vm3, %v4345_v39 }
 0x34e   : > { %v30404_v52 = vpop.eup %30403  ;;  %28323 = vmatmul.mubr.msk.f32.vlgmr.msra.gmra.mrb[102].mxu1 %vm4000_vm3, %v4344_v26  ;;  %28336 = vmatpush3.msra.mxu0 %v36077_v30  ;;  %v30801_v26 = vld [vmem:[%s31210_s29] sm:$0xff] }
 0x34f   : > { %v30406_v23 = vpop.eup %30405  ;;  %28331 = vmatpush3.msra.mxu1 %v36078_v17  ;;  %28332 = vmatprep.mubr.msk.f32.mxu1 %vm31099_vm1, %v36071_v61  ;;  %v4347_v60 = vmul.f32 %v30404_v52, %v32099_v8  ;;  %v36080_v8 = vld [vmem:[#allocation8_spill] sm:$0xff]  ;;  %v26066_v17 = vld [vmem:[%s36048_s3 + $0x38] sm:$0xff] }
 0x350   : > { %v4288_v29 = vpop.xlane.xlu1 %4287  ;;  %28337 = vmatprep.mubr.msk.f32.mxu0 %vm31099_vm1, %v36071_v61  ;;  %28340 = vmatprep.subr.mxu1 %v36071_v61  ;;  %v4346_v33 = vmul.f32 %v30406_v23, %v32101_v55  ;;  %v26065_v23 = vld [vmem:[%s36048_s3 + $0x30] sm:$0xff] }
 0x351   : > { %30415 = vrcp.f32 %v4288_v29  ;;  %28345 = vmatprep.subr.mxu0 %v36071_v61  ;;  %28338 = vmatmul.mubr.msk.f32.vlgmr.msra.gmra.mrb[106].mxu0 %vm4000_vm3, %v4347_v60  ;;  %v30802_v60 = vld [vmem:[%s31210_s29 + $0x8] sm:$0xff]  ;;  %v30803_v29 = vld [vmem:[%s31210_s29 + $0x10] sm:$0xff] }
 0x352   : > { %v30408_v54 = vpop.eup %30407  ;;  %28333 = vmatmul.mubr.msk.f32.vlgmr.msra.gmra.mrb[104].mxu1 %vm4000_vm3, %v4346_v33  ;;  %28346 = vmatpush3.msra.mxu0 %v36079_v58 }
 0x353   : > { %v30410_v27 = vpop.eup %30409  ;;  %28341 = vmatpush3.msra.mxu1 %v36080_v8  ;;  %28342 = vmatprep.mubr.msk.f32.mxu1 %vm31099_vm1, %v36071_v61  ;;  %v4349_v13 = vmul.f32 %v30408_v54, %v32107_v53  ;;  %v30061_v53 = vpack.c.bf16 %v6690_v20, %v6689_v2  ;;  %v30069_v54 = vpack.c.bf16 %v26066_v17, %v26065_v23  ;;  %v30804_v8 = vld [vmem:[%s31210_s29 + $0x18] sm:$0xff]  ;;  %v30805_v20 = vld [vmem:[%s31210_s29 + $0x20] sm:$0xff]  ;;  %v30823_v17 = vld [vmem:[%s31210_s29 + $0xa8] sm:$0xff] }
 0x354   : > { %28347 = vmatprep.mubr.msk.f32.mxu0 %vm31099_vm1, %v36071_v61  ;;  %28350 = vmatprep.subr.mxu1 %v36071_v61  ;;  %v4348_v55 = vmul.f32 %v30410_v27, %v32109_v45  ;;  %v36082_v45 = vld [vmem:[#allocation10_spill] sm:$0xff] }
 0x355   : > { %28355 = vmatprep.subr.mxu0 %v36071_v61  ;;  %28348 = vmatmul.mubr.msk.f32.vlgmr.msra.gmra.mrb[108].mxu0 %vm4000_vm3, %v4349_v13  ;;  %v26139_v13 = vld [vmem:[%s36052_s7 + $0x20] sm:$0xff] }
 0x356   : > { %v30412_v62 = vpop.eup %30411  ;;  %28343 = vmatmul.mubr.msk.f32.vlgmr.msra.gmra.mrb[106].mxu1 %vm4000_vm3, %v4348_v55  ;;  %28356 = vmatpush3.msra.mxu0 %v36081_v63  ;;  %v26140_v55 = vld [vmem:[%s36052_s7 + $0x28] sm:$0xff] }
 0x357   : > { %v30414_v43 = vpop.eup %30413  ;;  %28351 = vmatpush3.msra.mxu1 %v36082_v45  ;;  %28352 = vmatprep.mubr.msk.f32.mxu1 %vm31099_vm1, %v36071_v61  ;;  %v4351_v7 = vmul.f32 %v30412_v62, %v32115_v5  ;;  %v32377_v62 = vpack.c.bf16 %v26140_v55, %v26139_v13  ;;  %v30806_v45 = vld [vmem:[%s31210_s29 + $0x28] sm:$0xff] }
 0x358   : > { %28357 = vmatprep.mubr.msk.f32.mxu0 %vm31099_vm1, %v36071_v61  ;;  %28360 = vmatprep.subr.mxu1 %v36071_v61  ;;  %v4350_v0 = vmul.f32 %v30414_v43, %v32117_v9  ;;  %v26101_v9 = vld [vmem:[%s36050_s5 + $0x20] sm:$0xff]  ;;  %v30831_v13 = vld [vmem:[%s31210_s29 + $0xc8] sm:$0xff] }
 0x359   : > { %28358 = vmatmul.mubr.msk.f32.vlgmr.msra.gmra.mrb[110].mxu0 %vm4000_vm3, %v4351_v7  ;;  %30062 = vmatprep.subr.bf16.mxu0 %v30061_v53  ;;  %v30073_v36 = vpack.c.bf16 %v26102_v51, %v26101_v9  ;;  %v30808_v9 = vld [vmem:[%s31210_s29 + $0x38] sm:$0xff]  ;;  %v30832_v55 = vld [vmem:[%s31204_s26 + $0x28] sm:$0xff] }
 0x35a   : > { %28353 = vmatmul.mubr.msk.f32.vlgmr.msra.gmra.mrb[108].mxu1 %vm4000_vm3, %v4350_v0  ;;  %30064 = vmatpush3.bf16.msra.mxu0 %v30061_v53  ;;  %v30807_v0 = vld [vmem:[%s31210_s29 + $0x30] sm:$0xff] }
 0x35b   : > { %v30416_v34 = vpop.eup %30415  ;;  %28361 = vmatpush3.msra.mxu1 %v36083_v21  ;;  %28362 = vmatprep.mubr.msk.f32.mxu1 %vm31099_vm1, %v36071_v61 }
 0x35c   : > { %v4352_v5 = vmul.f32 %v30416_v34, %v32123_v22  ;;  %30149 = vmatprep.subr.bf16.mxu1 %v30061_v53  ;;  %v26064_v22 = vld [vmem:[%s36048_s3 + $0x28] sm:$0xff]  ;;  %30074 = vmatprep.subr.bf16.mxu0 %v30073_v36 }
 0x35d   : > { %v32327_v40 = vpack.c.bf16 %v26064_v22, %v26063_v3 }
 0x35e   : > { %28363 = vmatmul.mubr.msk.f32.vlgmr.msra.gmra.mrb[110].mxu1 %vm4000_vm3, %v4352_v5 }
 0x35f   : > { %30150 = vmatpush3.bf16.msra.mxu1 %v30061_v53 }
 0x360   : > { %30066 = vmatprep.subr.bf16.mxu1 %v32327_v40 }
 0x3d4   : > { %v4422_v49 = vpop.f32.mrb[80].mxu0 }
 0x3d5   : > { %v28209_v46 = vpop.f32.mrb[81].mxu0  ;;  %28369 = vmatprep.mubr.msk.f32.mxu0 %vm1567_vm2, %v4422_v49  ;;  %v30810_v49 = vld [vmem:[%s31210_s29 + $0x48] sm:$0xff] }
 0x3d8   : > { %v4495_v1 = vpop.f32.mrb[80].mxu1 }
 0x3d9   : > { %v28214_v47 = vpop.f32.mrb[81].mxu1  ;;  %28370 = vmatmul.mubr.msk.f32.vlgmr.msra.gmra.mrb[112].mxu0 %vm1567_vm2, %v4495_v1 }
 0x3da   : > { %30076 = vmatpush3.bf16.msra.mxu0 %v30073_v36  ;;  %v30809_v36 = vld [vmem:[%s31210_s29 + $0x40] sm:$0xff]  ;;  %v30812_v47 = vld [vmem:[%s31210_s29 + $0x58] sm:$0xff] }
 0x3db   : > { %30078 = vmatprep.subr.bf16.mxu0 %v30077_v41 }
 0x3dc   : > { %v4568_v35 = vpop.f32.mrb[82].mxu0 }
 0x3dd   : > { %v28219_v12 = vpop.f32.mrb[83].mxu0  ;;  %28372 = vmatprep.mubr.msk.f32.mxu0 %vm1567_vm2, %v4568_v35 }
 0x3de   : > { %30080 = vmatpush3.bf16.msra.mxu0 %v30077_v41  ;;  %v30813_v12 = vld [vmem:[%s31210_s29 + $0x60] sm:$0xff] }
 0x3df   : > { %28585 = vmatprep.subr.mxu0 %v36071_v61 }
 0x3e0   : > { %v4641_v6 = vpop.f32.mrb[82].mxu1 }
 0x3e1   : > { %v28224_v11 = vpop.f32.mrb[83].mxu1  ;;  %28373 = vmatmul.mubr.msk.f32.gmra.mrb[114].mxu0 %vm1567_vm2, %v4641_v6 }
 0x3e4   : > { %v4714_v19 = vpop.f32.mrb[84].mxu0 }
 0x3e5   : > { %v28229_v59 = vpop.f32.mrb[85].mxu0  ;;  %28375 = vmatprep.mubr.msk.f32.mxu0 %vm1567_vm2, %v4714_v19 }
 0x3e6   : > { %v30814_v59 = vld [vmem:[%s31210_s29 + $0x68] sm:$0xff] }
 0x3e8   : > { %v4787_v14 = vpop.f32.mrb[84].mxu1 }
 0x3e9   : > { %v28234_v32 = vpop.f32.mrb[85].mxu1  ;;  %28376 = vmatmul.mubr.msk.f32.gmra.mrb[116].mxu0 %vm1567_vm2, %v4787_v14 }
 0x3ea   : > { %v30815_v32 = vld [vmem:[%s31210_s29 + $0x70] sm:$0xff] }
 0x3ec   : > { %v4860_v42 = vpop.f32.mrb[86].mxu0 }
 0x3ed   : > { %v28239_v16 = vpop.f32.mrb[87].mxu0  ;;  %28378 = vmatprep.mubr.msk.f32.mxu0 %vm1567_vm2, %v4860_v42 }
 0x3f0   : > { %v4933_v10 = vpop.f32.mrb[86].mxu1 }
 0x3f1   : > { %v28244_v24 = vpop.f32.mrb[87].mxu1  ;;  %28379 = vmatmul.mubr.msk.f32.gmra.mrb[118].mxu0 %vm1567_vm2, %v4933_v10 }
 0x3f2   : > { %v30816_v24 = vld [vmem:[%s31210_s29 + $0x78] sm:$0xff] }
 0x3f4   : > { %v5006_v15 = vpop.f32.mrb[88].mxu0 }
 0x3f5   : > { %v28249_v48 = vpop.f32.mrb[89].mxu0  ;;  %28381 = vmatprep.mubr.msk.f32.mxu0 %vm1567_vm2, %v5006_v15 }
 0x3f6   : > { %v30817_v48 = vld [vmem:[%s31210_s29 + $0x80] sm:$0xff] }
 0x3f8   : > { %v5079_v18 = vpop.f32.mrb[88].mxu1 }
 0x3f9   : > { %v28254_v25 = vpop.f32.mrb[89].mxu1  ;;  %28382 = vmatmul.mubr.msk.f32.gmra.mrb[120].mxu0 %vm1567_vm2, %v5079_v18 }
 0x3fc   : > { %v5152_v57 = vpop.f32.mrb[90].mxu0 }
 0x3fd   : > { %v28259_v37 = vpop.f32.mrb[91].mxu0  ;;  %28384 = vmatprep.mubr.msk.f32.mxu0 %vm1567_vm2, %v5152_v57 }
 0x3fe   : > { %v30818_v37 = vld [vmem:[%s31210_s29 + $0x88] sm:$0xff] }
 0x400   : > { %v5225_v50 = vpop.f32.mrb[90].mxu1 }
 0x401   : > { %v28264_v4 = vpop.f32.mrb[91].mxu1  ;;  %28385 = vmatmul.mubr.msk.f32.gmra.mrb[122].mxu0 %vm1567_vm2, %v5225_v50 }
 0x402   : > { %v30819_v4 = vld [vmem:[%s31210_s29 + $0x90] sm:$0xff] }
 0x404   : > { %v5298_v38 = vpop.f32.mrb[92].mxu0 }
 0x405   : > { %v28269_v56 = vpop.f32.mrb[93].mxu0  ;;  %28387 = vmatprep.mubr.msk.f32.mxu0 %vm1567_vm2, %v5298_v38 }
 0x406   : > { %v30820_v56 = vld [vmem:[%s31210_s29 + $0x98] sm:$0xff] }
 0x408   : > { %v5371_v39 = vpop.f32.mrb[92].mxu1 }
 0x409   : > { %v28274_v44 = vpop.f32.mrb[93].mxu1  ;;  %28388 = vmatmul.mubr.msk.f32.gmra.mrb[124].mxu0 %vm1567_vm2, %v5371_v39  ;;  %v26141_v39 = vld [vmem:[%s36052_s7 + $0x30] sm:$0xff] }
 0x40a   : > { %28481 = vmatprep.mubr.msk.f32.mxu0 %vm549_vm0, %v30801_v26  ;;  %v26142_v44 = vld [vmem:[%s36052_s7 + $0x38] sm:$0xff] }
 0x40b   : > { %v30085_v23 = vpack.c.bf16 %v26142_v44, %v26141_v39  ;;  %v30880_v39 = vld [vmem:[%s31350_s16 + $0x78] sm:$0xff]  ;;  %v30881_v44 = vld [vmem:[%s31350_s16 + $0x80] sm:$0xff] }
 0x40c   : > { %v5444_v52 = vpop.f32.mrb[94].mxu0 }
 0x40d   : > { %v28279_v30 = vpop.f32.mrb[95].mxu0  ;;  %28390 = vmatprep.mubr.msk.f32.mxu1 %vm1567_vm2, %v5444_v52  ;;  %28482 = vmatmul.mubr.msk.f32.vlgmr.msra.gmra.mrb[126].mxu0 %vm549_vm0, %v30802_v60  ;;  %v30821_v52 = vld [vmem:[%s31210_s29 + $0xa0] sm:$0xff]  ;;  %v30824_v60 = vld [vmem:[%s31204_s26 + $0x8] sm:$0xff] }
 0x40e   : > { %28484 = vmatprep.mubr.msk.f32.mxu0 %vm549_vm0, %v30803_v29  ;;  %v30822_v30 = vld [vmem:[%s31204_s26] sm:$0xff]  ;;  %v30825_v29 = vld [vmem:[%s31210_s29 + $0xb0] sm:$0xff] }
 0x410   : > { %v5590_v33 = vpop.f32.mrb[96].mxu0 }
 0x411   : > { %v5517_v58 = vpop.f32.mrb[94].mxu1  ;;  %v28289_v27 = vpop.f32.mrb[97].mxu0  ;;  %28485 = vmatmul.mubr.msk.f32.gmra.mrb[128].mxu0 %vm549_vm0, %v30804_v8  ;;  %v30830_v8 = vld [vmem:[%s31204_s26 + $0x20] sm:$0xff] }
 0x412   : > { %v28284_v2 = vpop.f32.mrb[95].mxu1  ;;  %28391 = vmatmul.mubr.msk.f32.vlgmr.msra.gmra.mrb[112].mxu1 %vm1567_vm2, %v5517_v58  ;;  %28487 = vmatprep.mubr.msk.f32.mxu0 %vm549_vm0, %v30805_v20  ;;  %v30828_v58 = vld [vmem:[%s31204_s26 + $0x18] sm:$0xff]  ;;  %v30829_v27 = vld [vmem:[%s31210_s29 + $0xc0] sm:$0xff]  ;;  %v30834_v20 = vld [vmem:[%s31204_s26 + $0x30] sm:$0xff] }
 0x413   : > { %28393 = vmatprep.mubr.msk.f32.mxu1 %vm1567_vm2, %v5590_v33  ;;  %30068 = vmatpush3.bf16.msra.mxu1 %v32327_v40  ;;  %v30826_v33 = vld [vmem:[%s31204_s26 + $0x10] sm:$0xff] }
 0x414   : > { %v5736_v53 = vpop.f32.mrb[98].mxu0  ;;  %30070 = vmatprep.subr.bf16.mxu1 %v30069_v54  ;;  %v30833_v2 = vld [vmem:[%s31210_s29 + $0xd0] sm:$0xff] }
 0x415   : > { %v5663_v63 = vpop.f32.mrb[96].mxu1  ;;  %v28299_v43 = vpop.f32.mrb[99].mxu0  ;;  %28488 = vmatmul.mubr.msk.f32.gmra.mrb[130].mxu0 %vm549_vm0, %v30806_v45  ;;  %v30839_v45 = vld [vmem:[%s31210_s29 + $0xe8] sm:$0xff] }
 0x416   : > { %v28294_v7 = vpop.f32.mrb[97].mxu1  ;;  %28394 = vmatmul.mubr.msk.f32.gmra.mrb[114].mxu1 %vm1567_vm2, %v5663_v63  ;;  %28490 = vmatprep.mubr.msk.f32.mxu0 %vm549_vm0, %v30807_v0  ;;  %v30837_v63 = vld [vmem:[%s31210_s29 + $0xe0] sm:$0xff]  ;;  %v30841_v0 = vld [vmem:[%s31210_s29 + $0xf0] sm:$0xff] }
 0x417   : > { %28396 = vmatprep.mubr.msk.f32.mxu1 %vm1567_vm2, %v5736_v53  ;;  %30072 = vmatpush3.bf16.msra.mxu1 %v30069_v54  ;;  %v30827_v54 = vld [vmem:[%s31210_s29 + $0xb8] sm:$0xff]  ;;  %v30838_v43 = vld [vmem:[%s31204_s26 + $0x40] sm:$0xff]  ;;  %v30840_v7 = vld [vmem:[%s31204_s26 + $0x48] sm:$0xff] }
 0x418   : > { %v5882_v34 = vpop.f32.mrb[100].mxu0  ;;  %30082 = vmatprep.subr.bf16.mxu1 %v32377_v62  ;;  %v30835_v53 = vld [vmem:[%s31210_s29 + $0xd8] sm:$0xff] }
 0x419   : > { %v5809_v21 = vpop.f32.mrb[98].mxu1  ;;  %v28309_v5 = vpop.f32.mrb[101].mxu0  ;;  %28491 = vmatmul.mubr.msk.f32.gmra.mrb[132].mxu0 %vm549_vm0, %v30808_v9  ;;  %v30845_v9 = vld [vmem:[%s31204_s26 + $0x60] sm:$0xff] }
 0x41a   : > { %v28304_v51 = vpop.f32.mrb[99].mxu1  ;;  %28397 = vmatmul.mubr.msk.f32.gmra.mrb[116].mxu1 %vm1567_vm2, %v5809_v21  ;;  %28493 = vmatprep.mubr.msk.f32.mxu0 %vm549_vm0, %v30809_v36  ;;  %v30843_v21 = vld [vmem:[%s31210_s29 + $0xf8] sm:$0xff]  ;;  %v30847_v36 = vld [vmem:[%s31204_s26 + $0x70] sm:$0xff] }
 0x41b   : > { %28399 = vmatprep.mubr.msk.f32.mxu1 %vm1567_vm2, %v5882_v34  ;;  %v30842_v34 = vld [vmem:[%s31204_s26 + $0x50] sm:$0xff]  ;;  %v30844_v5 = vld [vmem:[%s31204_s26 + $0x58] sm:$0xff]  ;;  %v30846_v51 = vld [vmem:[%s31204_s26 + $0x68] sm:$0xff] }
 0x41c   : > { %v6028_v3 = vpop.f32.mrb[102].mxu0 }
 0x41d   : > { %v5955_v22 = vpop.f32.mrb[100].mxu1  ;;  %v28319_v40 = vpop.f32.mrb[103].mxu0  ;;  %28494 = vmatmul.mubr.msk.f32.gmra.mrb[134].mxu0 %vm549_vm0, %v30810_v49  ;;  %v30851_v49 = vld [vmem:[%s31204_s26 + $0x90] sm:$0xff] }
 0x41e   : > { %v28314_v28 = vpop.f32.mrb[101].mxu1  ;;  %28400 = vmatmul.mubr.msk.f32.gmra.mrb[118].mxu1 %vm1567_vm2, %v5955_v22  ;;  %28496 = vmatprep.mubr.msk.f32.mxu0 %vm549_vm0, %v30811_v31  ;;  %v30849_v22 = vld [vmem:[%s31204_s26 + $0x80] sm:$0xff]  ;;  %v30850_v40 = vld [vmem:[%s31204_s26 + $0x88] sm:$0xff] }
 0x41f   : > { %28402 = vmatprep.mubr.msk.f32.mxu1 %vm1567_vm2, %v6028_v3  ;;  %v30848_v3 = vld [vmem:[%s31204_s26 + $0x78] sm:$0xff]  ;;  %v30853_v31 = vld [vmem:[%s31204_s26 + $0xa0] sm:$0xff] }
 0x420   : > { %v6174_v46 = vpop.f32.mrb[104].mxu0  ;;  %v30852_v28 = vld [vmem:[%s31204_s26 + $0x98] sm:$0xff] }
 0x421   : > { %v6101_v41 = vpop.f32.mrb[102].mxu1  ;;  %v28329_v1 = vpop.f32.mrb[105].mxu0  ;;  %28497 = vmatmul.mubr.msk.f32.gmra.mrb[136].mxu0 %vm549_vm0, %v30812_v47  ;;  %v30857_v47 = vld [vmem:[%s31204_s26 + $0xc0] sm:$0xff] }
 0x422   : > { %v28324_v35 = vpop.f32.mrb[103].mxu1  ;;  %28403 = vmatmul.mubr.msk.f32.gmra.mrb[120].mxu1 %vm1567_vm2, %v6101_v41  ;;  %28499 = vmatprep.mubr.msk.f32.mxu0 %vm549_vm0, %v30813_v12  ;;  %v30855_v41 = vld [vmem:[%s31204_s26 + $0xb0] sm:$0xff]  ;;  %v30856_v1 = vld [vmem:[%s31204_s26 + $0xb8] sm:$0xff] }
 0x423   : > { %28405 = vmatprep.mubr.msk.f32.mxu1 %vm1567_vm2, %v6174_v46  ;;  %v30854_v46 = vld [vmem:[%s31204_s26 + $0xa8] sm:$0xff]  ;;  %v30859_v12 = vld [vmem:[%s31204_s26 + $0xd0] sm:$0xff] }
 0x424   : > { %v6320_v6 = vpop.f32.mrb[106].mxu0  ;;  %v30858_v35 = vld [vmem:[%s31204_s26 + $0xc8] sm:$0xff] }
 0x425   : > { %v6247_v11 = vpop.f32.mrb[104].mxu1  ;;  %v28339_v19 = vpop.f32.mrb[107].mxu0  ;;  %28500 = vmatmul.mubr.msk.f32.gmra.mrb[138].mxu0 %vm549_vm0, %v30814_v59  ;;  %v30863_v59 = vld [vmem:[%s31204_s26 + $0xf0] sm:$0xff] }
 0x426   : > { %v28334_v14 = vpop.f32.mrb[105].mxu1  ;;  %28406 = vmatmul.mubr.msk.f32.gmra.mrb[122].mxu1 %vm1567_vm2, %v6247_v11  ;;  %28502 = vmatprep.mubr.msk.f32.mxu0 %vm549_vm0, %v30815_v32  ;;  %v30861_v11 = vld [vmem:[%s31204_s26 + $0xe0] sm:$0xff]  ;;  %v30862_v19 = vld [vmem:[%s31204_s26 + $0xe8] sm:$0xff] }
 0x427   : > { %28408 = vmatprep.mubr.msk.f32.mxu1 %vm1567_vm2, %v6320_v6  ;;  %v30860_v6 = vld [vmem:[%s31204_s26 + $0xd8] sm:$0xff]  ;;  %v30865_v32 = vld [vmem:[%s31350_s16] sm:$0xff] }
 0x428   : > { %v6466_v42 = vpop.f32.mrb[108].mxu0  ;;  %v30864_v14 = vld [vmem:[%s31204_s26 + $0xf8] sm:$0xff] }
 0x429   : > { %v6393_v16 = vpop.f32.mrb[106].mxu1  ;;  %v28349_v10 = vpop.f32.mrb[109].mxu0  ;;  %28503 = vmatmul.mubr.msk.f32.gmra.mrb[140].mxu0 %vm549_vm0, %v30816_v24  ;;  %v30869_v24 = vld [vmem:[%s31350_s16 + $0x20] sm:$0xff] }
 0x42a   : > { %v28344_v15 = vpop.f32.mrb[107].mxu1  ;;  %28409 = vmatmul.mubr.msk.f32.gmra.mrb[124].mxu1 %vm1567_vm2, %v6393_v16  ;;  %28505 = vmatprep.mubr.msk.f32.mxu0 %vm549_vm0, %v30817_v48  ;;  %v30867_v16 = vld [vmem:[%s31350_s16 + $0x10] sm:$0xff]  ;;  %v30868_v10 = vld [vmem:[%s31350_s16 + $0x18] sm:$0xff] }
 0x42b   : > { %28411 = vmatprep.mubr.msk.f32.mxu1 %vm1567_vm2, %v6466_v42  ;;  %v30866_v42 = vld [vmem:[%s31350_s16 + $0x8] sm:$0xff]  ;;  %v30871_v48 = vld [vmem:[%s31350_s16 + $0x30] sm:$0xff] }
 0x42c   : > { %v6612_v18 = vpop.f32.mrb[110].mxu0  ;;  %v30870_v15 = vld [vmem:[%s31350_s16 + $0x28] sm:$0xff] }
 0x42d   : > { %v6539_v25 = vpop.f32.mrb[108].mxu1  ;;  %v28359_v57 = vpop.f32.mrb[111].mxu0  ;;  %28506 = vmatmul.mubr.msk.f32.gmra.mrb[142].mxu0 %vm549_vm0, %v30818_v37  ;;  %v30875_v37 = vld [vmem:[%s31350_s16 + $0x50] sm:$0xff] }
 0x42e   : > { %v28354_v50 = vpop.f32.mrb[109].mxu1  ;;  %28412 = vmatmul.mubr.msk.f32.gmra.mrb[126].mxu1 %vm1567_vm2, %v6539_v25  ;;  %28508 = vmatprep.mubr.msk.f32.mxu0 %vm549_vm0, %v30819_v4  ;;  %v30873_v25 = vld [vmem:[%s31350_s16 + $0x40] sm:$0xff]  ;;  %v30874_v57 = vld [vmem:[%s31350_s16 + $0x48] sm:$0xff] }
 0x42f   : > { %28414 = vmatprep.mubr.msk.f32.mxu1 %vm1567_vm2, %v6612_v18  ;;  %v30872_v18 = vld [vmem:[%s31350_s16 + $0x38] sm:$0xff]  ;;  %v30877_v4 = vld [vmem:[%s31350_s16 + $0x60] sm:$0xff] }
 0x430   : > { %v30876_v50 = vld [vmem:[%s31350_s16 + $0x58] sm:$0xff] }
 0x431   : > { %v6685_v38 = vpop.f32.mrb[110].mxu1  ;;  %28509 = vmatmul.mubr.msk.f32.gmra.mrb[144].mxu0 %vm549_vm0, %v30820_v56  ;;  %v30879_v56 = vld [vmem:[%s31350_s16 + $0x70] sm:$0xff] }
 0x432   : > { %v28364_v26 = vpop.f32.mrb[111].mxu1  ;;  %28415 = vmatmul.mubr.msk.f32.gmra.mrb[128].mxu1 %vm1567_vm2, %v6685_v38  ;;  %28511 = vmatprep.mubr.msk.f32.mxu0 %vm549_vm0, %v30821_v52  ;;  %v30878_v38 = vld [vmem:[%s31350_s16 + $0x68] sm:$0xff]  ;;  %v30883_v52 = vld [vmem:[%s31350_s16 + $0x90] sm:$0xff] }
 0x433   : > { %28425 = vmatprep.mubr.msk.f32.mxu1 %vm549_vm0, %v30822_v30  ;;  %v30882_v26 = vld [vmem:[%s31350_s16 + $0x88] sm:$0xff]  ;;  %v30884_v30 = vld [vmem:[%s31350_s16 + $0x98] sm:$0xff] }
 0x435   : > { %28512 = vmatmul.mubr.msk.f32.gmra.mrb[146].mxu0 %vm549_vm0, %v30823_v17  ;;  %v30886_v17 = vld [vmem:[%s31350_s16 + $0xa8] sm:$0xff] }
 0x436   : > { %28426 = vmatmul.mubr.msk.f32.vlgmr.msra.gmra.mrb[130].mxu1 %vm549_vm0, %v30824_v60  ;;  %28514 = vmatprep.mubr.msk.f32.mxu0 %vm549_vm0, %v30825_v29  ;;  %v30887_v60 = vld [vmem:[%s31350_s16 + $0xb0] sm:$0xff]  ;;  %v30888_v29 = vld [vmem:[%s31350_s16 + $0xb8] sm:$0xff] }
 0x437   : > { %28428 = vmatprep.mubr.msk.f32.mxu1 %vm549_vm0, %v30826_v33  ;;  %30084 = vmatpush3.bf16.msra.mxu1 %v32377_v62  ;;  %v30836_v62 = vld [vmem:[%s31204_s26 + $0x38] sm:$0xff]  ;;  %v30889_v33 = vld [vmem:[%s31350_s16 + $0xc0] sm:$0xff] }
 0x438   : > { %30086 = vmatprep.subr.bf16.mxu1 %v30085_v23 }
 0x439   : > { %28515 = vmatmul.mubr.msk.f32.gmra.mrb[148].mxu0 %vm549_vm0, %v30827_v54  ;;  %v30890_v54 = vld [vmem:[%s31350_s16 + $0xc8] sm:$0xff] }
 0x43a   : > { %28429 = vmatmul.mubr.msk.f32.gmra.mrb[132].mxu1 %vm549_vm0, %v30828_v58  ;;  %28517 = vmatprep.mubr.msk.f32.mxu0 %vm549_vm0, %v30829_v27  ;;  %v30891_v58 = vld [vmem:[%s31350_s16 + $0xd0] sm:$0xff]  ;;  %v30892_v27 = vld [vmem:[%s31350_s16 + $0xd8] sm:$0xff] }
 0x43b   : > { %28431 = vmatprep.mubr.msk.f32.mxu1 %vm549_vm0, %v30830_v8  ;;  %30088 = vmatpush3.bf16.msra.mxu1 %v30085_v23  ;;  %v30885_v23 = vld [vmem:[%s31350_s16 + $0xa0] sm:$0xff] }
 0x43c   : > { %28595 = vmatprep.subr.mxu1 %v36071_v61  ;;  %v30893_v8 = vld [vmem:[%s31350_s16 + $0xe0] sm:$0xff] }
 0x43d   : > { %28518 = vmatmul.mubr.msk.f32.gmra.mrb[150].mxu0 %vm549_vm0, %v30831_v13  ;;  %v30894_v13 = vld [vmem:[%s31350_s16 + $0xe8] sm:$0xff] }
 0x43e   : > { %28432 = vmatmul.mubr.msk.f32.gmra.mrb[134].mxu1 %vm549_vm0, %v30832_v55  ;;  %28520 = vmatprep.mubr.msk.f32.mxu0 %vm549_vm0, %v30833_v2  ;;  %v30895_v55 = vld [vmem:[%s31350_s16 + $0xf0] sm:$0xff]  ;;  %v30896_v2 = vld [vmem:[%s31350_s16 + $0xf8] sm:$0xff] }
 0x43f   : > { %28434 = vmatprep.mubr.msk.f32.mxu1 %vm549_vm0, %v30834_v20  ;;  %v32592_v20 = vld [vmem:[%s36051_s6 + $0x1] ss:$0 sm:$0xff] }
 0x441   : > { %28521 = vmatmul.mubr.msk.f32.gmra.mrb[152].mxu0 %vm549_vm0, %v30835_v53 }
 0x442   : > { %28435 = vmatmul.mubr.msk.f32.gmra.mrb[136].mxu1 %vm549_vm0, %v30836_v62  ;;  %28523 = vmatprep.mubr.msk.f32.mxu0 %vm549_vm0, %v30837_v63 }
 0x443   : > { %28437 = vmatprep.mubr.msk.f32.mxu1 %vm549_vm0, %v30838_v43 }
 0x445   : > { %28524 = vmatmul.mubr.msk.f32.gmra.mrb[154].mxu0 %vm549_vm0, %v30839_v45 }
 0x446   : > { %28438 = vmatmul.mubr.msk.f32.gmra.mrb[138].mxu1 %vm549_vm0, %v30840_v7  ;;  %28526 = vmatprep.mubr.msk.f32.mxu0 %vm549_vm0, %v30841_v0 }
 0x447   : > { %28440 = vmatprep.mubr.msk.f32.mxu1 %vm549_vm0, %v30842_v34 }
 0x449   : > { %28527 = vmatmul.mubr.msk.f32.gmra.mrb[156].mxu0 %vm549_vm0, %v30843_v21 }
 0x44a   : > { %28441 = vmatmul.mubr.msk.f32.gmra.mrb[140].mxu1 %vm549_vm0, %v30844_v5  ;;  %28587 = vmatprep.mubr.msk.f32.mxu0 %vm31099_vm1, %v36071_v61 }
 0x44b   : > { %28443 = vmatprep.mubr.msk.f32.mxu1 %vm549_vm0, %v30845_v9 }
 0x44e   : > { %28444 = vmatmul.mubr.msk.f32.gmra.mrb[142].mxu1 %vm549_vm0, %v30846_v51 }
 0x44f   : > { %28446 = vmatprep.mubr.msk.f32.mxu1 %vm549_vm0, %v30847_v36 }
 0x452   : > { %28447 = vmatmul.mubr.msk.f32.gmra.mrb[144].mxu1 %vm549_vm0, %v30848_v3 }
 0x453   : > { %28449 = vmatprep.mubr.msk.f32.mxu1 %vm549_vm0, %v30849_v22 }
 0x456   : > { %28450 = vmatmul.mubr.msk.f32.gmra.mrb[146].mxu1 %vm549_vm0, %v30850_v40 }
 0x457   : > { %28452 = vmatprep.mubr.msk.f32.mxu1 %vm549_vm0, %v30851_v49 }
 0x45a   : > { %28453 = vmatmul.mubr.msk.f32.gmra.mrb[148].mxu1 %vm549_vm0, %v30852_v28 }
 0x45b   : > { %28455 = vmatprep.mubr.msk.f32.mxu1 %vm549_vm0, %v30853_v31 }
 0x45e   : > { %28456 = vmatmul.mubr.msk.f32.gmra.mrb[150].mxu1 %vm549_vm0, %v30854_v46 }
 0x45f   : > { %28458 = vmatprep.mubr.msk.f32.mxu1 %vm549_vm0, %v30855_v41 }
 0x462   : > { %28459 = vmatmul.mubr.msk.f32.gmra.mrb[152].mxu1 %vm549_vm0, %v30856_v1 }
 0x463   : > { %28461 = vmatprep.mubr.msk.f32.mxu1 %vm549_vm0, %v30857_v47 }
 0x466   : > { %28462 = vmatmul.mubr.msk.f32.gmra.mrb[154].mxu1 %vm549_vm0, %v30858_v35 }
 0x467   : > { %28464 = vmatprep.mubr.msk.f32.mxu1 %vm549_vm0, %v30859_v12 }
 0x46a   : > { %28465 = vmatmul.mubr.msk.f32.gmra.mrb[156].mxu1 %vm549_vm0, %v30860_v6 }
 0x46b   : > { %28467 = vmatprep.mubr.msk.f32.mxu1 %vm549_vm0, %v30861_v11 }
 0x46e   : > { %28468 = vmatmul.mubr.msk.f32.gmra.mrb[158].mxu1 %vm549_vm0, %v30862_v19 }
 0x46f   : > { %28470 = vmatprep.mubr.msk.f32.mxu1 %vm549_vm0, %v30863_v59 }
 0x472   : > { %28471 = vmatmul.mubr.msk.f32.gmra.mrb[160].mxu1 %vm549_vm0, %v30864_v14 }
 0x473   : > { %28537 = vmatprep.mubr.msk.f32.mxu1 %vm549_vm0, %v30865_v32 }
 0x476   : > { %28538 = vmatmul.mubr.msk.f32.vlgmr.msra.gmra.mrb[162].mxu1 %vm549_vm0, %v30866_v42 }
 0x477   : > { %28540 = vmatprep.mubr.msk.f32.mxu1 %vm549_vm0, %v30867_v16 }
 0x47a   : > { %28541 = vmatmul.mubr.msk.f32.gmra.mrb[164].mxu1 %vm549_vm0, %v30868_v10 }
 0x47b   : > { %28543 = vmatprep.mubr.msk.f32.mxu1 %vm549_vm0, %v30869_v24 }
 0x47e   : > { %28544 = vmatmul.mubr.msk.f32.gmra.mrb[166].mxu1 %vm549_vm0, %v30870_v15 }
 0x47f   : > { %28546 = vmatprep.mubr.msk.f32.mxu1 %vm549_vm0, %v30871_v48 }
 0x482   : > { %28547 = vmatmul.mubr.msk.f32.gmra.mrb[168].mxu1 %vm549_vm0, %v30872_v18 }
 0x483   : > { %28549 = vmatprep.mubr.msk.f32.mxu1 %vm549_vm0, %v30873_v25 }
 0x486   : > { %28550 = vmatmul.mubr.msk.f32.gmra.mrb[170].mxu1 %vm549_vm0, %v30874_v57 }
 0x487   : > { %28552 = vmatprep.mubr.msk.f32.mxu1 %vm549_vm0, %v30875_v37 }
 0x48a   : > { %28553 = vmatmul.mubr.msk.f32.gmra.mrb[172].mxu1 %vm549_vm0, %v30876_v50 }
 0x48b   : > { %28555 = vmatprep.mubr.msk.f32.mxu1 %vm549_vm0, %v30877_v4 }
 0x48e   : > { %28556 = vmatmul.mubr.msk.f32.gmra.mrb[174].mxu1 %vm549_vm0, %v30878_v38 }
 0x48f   : > { %28558 = vmatprep.mubr.msk.f32.mxu1 %vm549_vm0, %v30879_v56 }
 0x492   : > { %28559 = vmatmul.mubr.msk.f32.gmra.mrb[176].mxu1 %vm549_vm0, %v30880_v39 }
 0x493   : > { %28561 = vmatprep.mubr.msk.f32.mxu1 %vm549_vm0, %v30881_v44 }
 0x496   : > { %28562 = vmatmul.mubr.msk.f32.gmra.mrb[178].mxu1 %vm549_vm0, %v30882_v26 }
 0x497   : > { %28564 = vmatprep.mubr.msk.f32.mxu1 %vm549_vm0, %v30883_v52 }
 0x49a   : > { %28565 = vmatmul.mubr.msk.f32.gmra.mrb[180].mxu1 %vm549_vm0, %v30884_v30  ;;  %v32682_v30 = vld [vmem:[%s36049_s4 + $0x1] ss:$0 sm:$0xff] }
 0x49b   : > { %28567 = vmatprep.mubr.msk.f32.mxu1 %vm549_vm0, %v30885_v23 }
 0x49e   : > { %28568 = vmatmul.mubr.msk.f32.gmra.mrb[182].mxu1 %vm549_vm0, %v30886_v17 }
 0x49f   : > { %28570 = vmatprep.mubr.msk.f32.mxu1 %vm549_vm0, %v30887_v60 }
 0x4a2   : > { %28571 = vmatmul.mubr.msk.f32.gmra.mrb[184].mxu1 %vm549_vm0, %v30888_v29 }
 0x4a3   : > { %28573 = vmatprep.mubr.msk.f32.mxu1 %vm549_vm0, %v30889_v33 }
 0x4a6   : > { %28574 = vmatmul.mubr.msk.f32.gmra.mrb[186].mxu1 %vm549_vm0, %v30890_v54 }
 0x4a7   : > { %28576 = vmatprep.mubr.msk.f32.mxu1 %vm549_vm0, %v30891_v58 }
 0x4aa   : > { %28577 = vmatmul.mubr.msk.f32.gmra.mrb[188].mxu1 %vm549_vm0, %v30892_v27 }
 0x4ab   : > { %28579 = vmatprep.mubr.msk.f32.mxu1 %vm549_vm0, %v30893_v8 }
 0x4ae   : > { %28580 = vmatmul.mubr.msk.f32.gmra.mrb[190].mxu1 %vm549_vm0, %v30894_v13 }
 0x4af   : > { %28582 = vmatprep.mubr.msk.f32.mxu1 %vm549_vm0, %v30895_v55 }
 0x4b2   : > { %28583 = vmatmul.mubr.msk.f32.gmra.mrb[192].mxu1 %vm549_vm0, %v30896_v2 }
 0x4b3   : > { %28597 = vmatprep.mubr.msk.f32.mxu1 %vm31099_vm1, %v36071_v61 }
 0x4e0   : > { %v32594_v53 = vpop.f32.mrb[126].mxu0 }
 0x4e1   : > { %v7393_v62 = vpop.f32.mrb[127].mxu0 }
 0x4e2   : > { %v7394_v63 = vadd.f32 %v32592_v20, %v7393_v62 }
 0x4e4   : > { %28586 = vmatpush3.xpose.msk.msra.mxu0 %vm1567_vm2, %v7394_v63  ;;  %v32598_v43 = vpop.f32.mrb[128].mxu0  ;;  %v7399_v63 = vadd.f32 %v32594_v53, %v32592_v20 }
 0x4e5   : > { %v32600_v45 = vpop.f32.mrb[112].mxu1  ;;  %v7403_v7 = vpop.f32.mrb[129].mxu0  ;;  %28590 = vmatprep.subr.mxu0 %v36071_v61 }
 0x4e6   : > { %36084 = vst [vmem:[#allocation2_spill] sm:$0xff] %v32600_v45  ;;  %v32603_v0 = vpop.f32.mrb[113].mxu1  ;;  %v7404_v34 = vadd.f32 %v32592_v20, %v7403_v7 }
 0x4e7   : > { %36085 = vst [vmem:[#allocation5_spill] sm:$0xff] %v32603_v0 }
 0x4e8   : > { %v32606_v21 = vpop.f32.mrb[130].mxu0  ;;  %28596 = vmatpush3.xpose.msk.msra.mxu1 %vm1567_vm2, %v7404_v34 }
 0x4e9   : > { %v32609_v5 = vpop.f32.mrb[114].mxu1  ;;  %v7413_v9 = vpop.f32.mrb[131].mxu0  ;;  %28605 = vmatprep.subr.mxu1 %v36071_v61 }
 0x4ea   : > { %36086 = vst [vmem:[#allocation3_spill] sm:$0xff] %v32609_v5  ;;  %v32612_v51 = vpop.f32.mrb[115].mxu1 }
 0x4eb   : > { %36087 = vst [vmem:[#allocation7_spill] sm:$0xff] %v32612_v51 }
 0x4ec   : > { %v32614_v36 = vpop.f32.mrb[132].mxu0 }
 0x4ed   : > { %v32616_v3 = vpop.f32.mrb[116].mxu1  ;;  %v32618_v22 = vpop.f32.mrb[133].mxu0 }
 0x4ee   : > { %36088 = vst [vmem:[#allocation4_spill] sm:$0xff] %v32616_v3  ;;  %v32620_v40 = vpop.f32.mrb[117].mxu1 }
 0x4ef   : > { %36089 = vst [vmem:[#allocation9_spill] sm:$0xff] %v32620_v40 }
 0x4f0   : > { %v32622_v49 = vpop.f32.mrb[134].mxu0 }
 0x4f1   : > { %v32624_v28 = vpop.f32.mrb[118].mxu1  ;;  %v32626_v31 = vpop.f32.mrb[135].mxu0 }
 0x4f2   : > { %36090 = vst [vmem:[#allocation6_spill] sm:$0xff] %v32624_v28  ;;  %v32628_v46 = vpop.f32.mrb[119].mxu1 }
 0x4f3   : > { %36091 = vst [vmem:[#allocation11_spill] sm:$0xff] %v32628_v46 }
 0x4f4   : > { %v28498_v41 = vpop.f32.mrb[136].mxu0 }
 0x4f5   : > { %v32630_v1 = vpop.f32.mrb[120].mxu1  ;;  %v32633_v47 = vadd.f32 %v28498_v41, %v32592_v20  ;;  %v32635_v35 = vpop.f32.mrb[137].mxu0 }
 0x4f6   : > { %36092 = vst [vmem:[#allocation8_spill] sm:$0xff] %v32630_v1  ;;  %v32637_v12 = vpop.f32.mrb[121].mxu1 }
 0x4f7   : > { %36093 = vst [vmem:[#allocation13_spill] sm:$0xff] %v32637_v12 }
 0x4f8   : > { %v28501_v6 = vpop.f32.mrb[138].mxu0 }
 0x4f9   : > { %v32639_v11 = vpop.f32.mrb[122].mxu1  ;;  %v32642_v19 = vadd.f32 %v28501_v6, %v32592_v20  ;;  %v7453_v59 = vpop.f32.mrb[139].mxu0  ;;  %v7409_v6 = vadd.f32 %v32598_v43, %v32592_v20 }
 0x4fa   : > { %36094 = vst [vmem:[#allocation10_spill] sm:$0xff] %v32639_v11  ;;  %v32644_v14 = vpop.f32.mrb[123].mxu1  ;;  %v32647_v32 = vadd.f32 %v32592_v20, %v7453_v59  ;;  %v7414_v59 = vadd.f32 %v32592_v20, %v7413_v9 }
 0x4fb   : > { %36095 = vst [vmem:[#allocation12_spill] sm:$0xff] %v32644_v14 }
 0x4fc   : > { %v28504_v42 = vpop.f32.mrb[140].mxu0 }
 0x4fd   : > { %v32649_v16 = vpop.f32.mrb[124].mxu1  ;;  %v32652_v10 = vadd.f32 %v28504_v42, %v32592_v20  ;;  %v7463_v24 = vpop.f32.mrb[141].mxu0 }
 0x4fe   : > { %36096 = vst [vmem:[#allocation14_spill] sm:$0xff] %v32649_v16  ;;  %v32654_v15 = vpop.f32.mrb[125].mxu1  ;;  %v32657_v48 = vadd.f32 %v32592_v20, %v7463_v24 }
 0x4ff   : > { %36097 = vst [vmem:[#allocation15_spill] sm:$0xff] %v32654_v15 }
 0x500   : > { %v28507_v18 = vpop.f32.mrb[142].mxu0 }
 0x501   : > { %v32659_v25 = vpop.f32.mrb[126].mxu1  ;;  %v32662_v57 = vadd.f32 %v28507_v18, %v32592_v20  ;;  %v7473_v37 = vpop.f32.mrb[143].mxu0 }
 0x502   : > { %36098 = vst [vmem:[#allocation16_spill] sm:$0xff] %v32659_v25  ;;  %v32664_v50 = vpop.f32.mrb[127].mxu1  ;;  %v32667_v4 = vadd.f32 %v32592_v20, %v7473_v37 }
 0x503   : > { %36099 = vst [vmem:[#allocation17_spill] sm:$0xff] %v32664_v50 }
 0x504   : > { %v28510_v38 = vpop.f32.mrb[144].mxu0 }
 0x505   : > { %v32669_v56 = vpop.f32.mrb[128].mxu1  ;;  %v32672_v39 = vadd.f32 %v28510_v38, %v32592_v20  ;;  %v7483_v44 = vpop.f32.mrb[145].mxu0 }
 0x506   : > { %36100 = vst [vmem:[#allocation18_spill] sm:$0xff] %v32669_v56  ;;  %v32674_v26 = vpop.f32.mrb[129].mxu1  ;;  %v32677_v52 = vadd.f32 %v32592_v20, %v7483_v44 }
 0x507   : > { %36101 = vst [vmem:[#allocation19_spill] sm:$0xff] %v32674_v26 }
 0x508   : > { %v28513_v23 = vpop.f32.mrb[146].mxu0 }
 0x509   : > { %v28427_v17 = vpop.f32.mrb[130].mxu1  ;;  %v32685_v60 = vadd.f32 %v28513_v23, %v32592_v20  ;;  %v7493_v29 = vpop.f32.mrb[147].mxu0 }
 0x50a   : > { %v7123_v33 = vpop.f32.mrb[131].mxu1  ;;  %v32688_v54 = vadd.f32 %v32592_v20, %v7493_v29  ;;  %v7129_v8 = vadd.f32 %v28427_v17, %v32682_v30  ;;  %v7419_v17 = vadd.f32 %v32606_v21, %v32592_v20  ;;  %v7424_v29 = vadd.f32 %v32592_v20, %v32618_v22 }
 0x50b   : > { %v7124_v58 = vadd.f32 %v32682_v30, %v7123_v33 }
 0x50c   : > { %v28516_v27 = vpop.f32.mrb[148].mxu0  ;;  %v7283_v53 = vmul.f32 0.35355338, %v7129_v8 }
 0x50d   : > { %v7282_v13 = vmul.f32 0.35355338, %v7124_v58  ;;  %v28430_v55 = vpop.f32.mrb[132].mxu1  ;;  %v32693_v2 = vadd.f32 %v28516_v27, %v32592_v20  ;;  %v7503_v62 = vpop.f32.mrb[149].mxu0 }
 0x50e   : > { %v7133_v7 = vpop.f32.mrb[133].mxu1  ;;  %v32698_v34 = vadd.f32 %v32592_v20, %v7503_v62  ;;  %v7139_v24 = vadd.f32 %v28430_v55, %v32682_v30 }
 0x50f   : > { %v7134_v41 = vadd.f32 %v32682_v30, %v7133_v7  ;;  %28588 = vmatmul.mubr.msk.f32.vlgmr.msra.gmra.mrb[158].mxu0 %vm1567_vm2, %v7282_v13  ;;  %v7429_v7 = vadd.f32 %v32614_v36, %v32592_v20 }
 0x510   : > { %28591 = vmatpush3.xpose.msk.msra.mxu0 %vm1567_vm2, %v7399_v63  ;;  %28592 = vmatprep.mubr.msk.f32.mxu0 %vm31099_vm1, %v36071_v61  ;;  %v28519_v42 = vpop.f32.mrb[150].mxu0  ;;  %v7285_v58 = vmul.f32 0.35355338, %v7139_v24 }
 0x511   : > { %v7284_v18 = vmul.f32 0.35355338, %v7134_v41  ;;  %v28433_v37 = vpop.f32.mrb[134].mxu1  ;;  %28600 = vmatprep.subr.mxu0 %v36071_v61  ;;  %v32711_v38 = vadd.f32 %v28519_v42, %v32592_v20  ;;  %v7513_v44 = vpop.f32.mrb[151].mxu0  ;;  %v7434_v41 = vadd.f32 %v32592_v20, %v32626_v31 }
 0x512   : > { %v7143_v43 = vpop.f32.mrb[135].mxu1  ;;  %v32714_v23 = vadd.f32 %v32592_v20, %v7513_v44  ;;  %v7149_v27 = vadd.f32 %v28433_v37, %v32682_v30 }
 0x513   : > { %v7144_v9 = vadd.f32 %v32682_v30, %v7143_v43  ;;  %28593 = vmatmul.mubr.msk.f32.vlgmr.msra.gmra.mrb[160].mxu0 %vm1567_vm2, %v7283_v53  ;;  %28598 = vmatmul.mubr.msk.f32.vlgmr.msra.gmra.mrb[194].mxu1 %vm1567_vm2, %v7284_v18  ;;  %v7439_v43 = vadd.f32 %v32622_v49, %v32592_v20 }
 0x514   : > { %28601 = vmatpush3.xpose.msk.msra.mxu0 %vm1567_vm2, %v7409_v6  ;;  %28606 = vmatpush3.xpose.msk.msra.mxu1 %vm1567_vm2, %v7414_v59  ;;  %v28522_v33 = vpop.f32.mrb[152].mxu0  ;;  %v7287_v59 = vmul.f32 0.35355338, %v7149_v27 }
 0x515   : > { %v7286_v8 = vmul.f32 0.35355338, %v7144_v9  ;;  %v28436_v13 = vpop.f32.mrb[136].mxu1  ;;  %28602 = vmatprep.mubr.msk.f32.mxu0 %vm31099_vm1, %v36071_v61  ;;  %28607 = vmatprep.mubr.msk.f32.mxu1 %vm31099_vm1, %v36071_v61  ;;  %v32731_v21 = vadd.f32 %v28522_v33, %v32592_v20  ;;  %v7523_v55 = vpop.f32.mrb[153].mxu0  ;;  %v7444_v9 = vadd.f32 %v32592_v20, %v32635_v35 }
 0x516   : > { %v7153_v62 = vpop.f32.mrb[137].mxu1  ;;  %28610 = vmatprep.subr.mxu0 %v36071_v61  ;;  %28615 = vmatprep.subr.mxu1 %v36071_v61  ;;  %v32736_v22 = vadd.f32 %v32592_v20, %v7523_v55  ;;  %v7159_v42 = vadd.f32 %v28436_v13, %v32682_v30 }
 0x517   : > { %v7154_v63 = vadd.f32 %v32682_v30, %v7153_v62  ;;  %28603 = vmatmul.mubr.msk.f32.vlgmr.msra.gmra.mrb[162].mxu0 %vm1567_vm2, %v7285_v58  ;;  %28608 = vmatmul.mubr.msk.f32.vlgmr.msra.gmra.mrb[196].mxu1 %vm1567_vm2, %v7286_v8 }
 0x518   : > { %28611 = vmatpush3.xpose.msk.msra.mxu0 %vm1567_vm2, %v7419_v17  ;;  %28616 = vmatpush3.xpose.msk.msra.mxu1 %vm1567_vm2, %v7424_v29  ;;  %v28525_v6 = vpop.f32.mrb[154].mxu0  ;;  %v7289_v29 = vmul.f32 0.35355338, %v7159_v42 }
 0x519   : > { %v7288_v53 = vmul.f32 0.35355338, %v7154_v63  ;;  %v28439_v24 = vpop.f32.mrb[138].mxu1  ;;  %28612 = vmatprep.mubr.msk.f32.mxu0 %vm31099_vm1, %v36071_v61  ;;  %28617 = vmatprep.mubr.msk.f32.mxu1 %vm31099_vm1, %v36071_v61  ;;  %v32753_v36 = vadd.f32 %v28525_v6, %v32592_v20  ;;  %v7533_v18 = vpop.f32.mrb[155].mxu0 }
 0x51a   : > { %v7163_v37 = vpop.f32.mrb[139].mxu1  ;;  %28620 = vmatprep.subr.mxu0 %v36071_v61  ;;  %28625 = vmatprep.subr.mxu1 %v36071_v61  ;;  %v32758_v31 = vadd.f32 %v32592_v20, %v7533_v18  ;;  %v7169_v33 = vadd.f32 %v28439_v24, %v32682_v30 }
 0x51b   : > { %v7164_v44 = vadd.f32 %v32682_v30, %v7163_v37  ;;  %28613 = vmatmul.mubr.msk.f32.vlgmr.msra.gmra.mrb[164].mxu0 %vm1567_vm2, %v7287_v59  ;;  %28618 = vmatmul.mubr.msk.f32.vlgmr.msra.gmra.mrb[198].mxu1 %vm1567_vm2, %v7288_v53 }
 0x51c   : > { %28621 = vmatpush3.xpose.msk.msra.mxu0 %vm1567_vm2, %v7429_v7  ;;  %28626 = vmatpush3.xpose.msk.msra.mxu1 %vm1567_vm2, %v7434_v41  ;;  %v28528_v17 = vpop.f32.mrb[156].mxu0  ;;  %v7291_v62 = vmul.f32 0.35355338, %v7169_v33 }
 0x51d   : > { %v7290_v58 = vmul.f32 0.35355338, %v7164_v44  ;;  %v28442_v27 = vpop.f32.mrb[140].mxu1  ;;  %28622 = vmatprep.mubr.msk.f32.mxu0 %vm31099_vm1, %v36071_v61  ;;  %28627 = vmatprep.mubr.msk.f32.mxu1 %vm31099_vm1, %v36071_v61  ;;  %v32775_v49 = vadd.f32 %v28528_v17, %v32592_v20  ;;  %v7543_v8 = vpop.f32.mrb[157].mxu0 }
 0x51e   : > { %v7173_v13 = vpop.f32.mrb[141].mxu1  ;;  %28630 = vmatprep.subr.mxu0 %v36071_v61  ;;  %28635 = vmatprep.subr.mxu1 %v36071_v61  ;;  %v32780_v35 = vadd.f32 %v32592_v20, %v7543_v8  ;;  %v7179_v63 = vadd.f32 %v28442_v27, %v32682_v30 }
 0x51f   : > { %v7174_v55 = vadd.f32 %v32682_v30, %v7173_v13  ;;  %28623 = vmatmul.mubr.msk.f32.vlgmr.msra.gmra.mrb[166].mxu0 %vm1567_vm2, %v7289_v29  ;;  %28628 = vmatmul.mubr.msk.f32.vlgmr.msra.gmra.mrb[200].mxu1 %vm1567_vm2, %v7290_v58 }
 0x520   : > { %28631 = vmatpush3.xpose.msk.msra.mxu0 %vm1567_vm2, %v7439_v43  ;;  %28636 = vmatpush3.xpose.msk.msra.mxu1 %vm1567_vm2, %v7444_v9  ;;  %v7293_v59 = vmul.f32 0.35355338, %v7179_v63 }
 0x521   : > { %v7292_v7 = vmul.f32 0.35355338, %v7174_v55  ;;  %v28445_v41 = vpop.f32.mrb[142].mxu1  ;;  %28632 = vmatprep.mubr.msk.f32.mxu0 %vm31099_vm1, %v36071_v61  ;;  %28637 = vmatprep.mubr.msk.f32.mxu1 %vm31099_vm1, %v36071_v61 }
 0x522   : > { %v7183_v20 = vpop.f32.mrb[143].mxu1  ;;  %28640 = vmatprep.subr.mxu0 %v36071_v61  ;;  %28645 = vmatprep.subr.mxu1 %v36071_v61  ;;  %v7189_v42 = vadd.f32 %v28445_v41, %v32682_v30 }
 0x523   : > { %v7184_v6 = vadd.f32 %v32682_v30, %v7183_v20  ;;  %28633 = vmatmul.mubr.msk.f32.vlgmr.msra.gmra.mrb[168].mxu0 %vm1567_vm2, %v7291_v62  ;;  %28638 = vmatmul.mubr.msk.f32.vlgmr.msra.gmra.mrb[202].mxu1 %vm1567_vm2, %v7292_v7 }
 0x524   : > { %28641 = vmatpush3.xpose.msk.msra.mxu0 %vm1567_vm2, %v32633_v47  ;;  %28646 = vmatpush3.xpose.msk.msra.mxu1 %vm1567_vm2, %v32647_v32  ;;  %v7295_v32 = vmul.f32 0.35355338, %v7189_v42 }
 0x525   : > { %v7294_v53 = vmul.f32 0.35355338, %v7184_v6  ;;  %v28448_v24 = vpop.f32.mrb[144].mxu1  ;;  %28642 = vmatprep.mubr.msk.f32.mxu0 %vm31099_vm1, %v36071_v61  ;;  %28647 = vmatprep.mubr.msk.f32.mxu1 %vm31099_vm1, %v36071_v61 }
 0x526   : > { %v7193_v18 = vpop.f32.mrb[145].mxu1  ;;  %28650 = vmatprep.subr.mxu0 %v36071_v61  ;;  %28655 = vmatprep.subr.mxu1 %v36071_v61  ;;  %v7199_v37 = vadd.f32 %v28448_v24, %v32682_v30 }
 0x527   : > { %v7194_v47 = vadd.f32 %v32682_v30, %v7193_v18  ;;  %28643 = vmatmul.mubr.msk.f32.vlgmr.msra.gmra.mrb[170].mxu0 %vm1567_vm2, %v7293_v59  ;;  %28648 = vmatmul.mubr.msk.f32.vlgmr.msra.gmra.mrb[204].mxu1 %vm1567_vm2, %v7294_v53 }
 0x528   : > { %28651 = vmatpush3.xpose.msk.msra.mxu0 %vm1567_vm2, %v32642_v19  ;;  %28656 = vmatpush3.xpose.msk.msra.mxu1 %vm1567_vm2, %v32657_v48  ;;  %v7297_v48 = vmul.f32 0.35355338, %v7199_v37 }
 0x529   : > { %v7296_v44 = vmul.f32 0.35355338, %v7194_v47  ;;  %v28451_v43 = vpop.f32.mrb[146].mxu1  ;;  %28652 = vmatprep.mubr.msk.f32.mxu0 %vm31099_vm1, %v36071_v61  ;;  %28657 = vmatprep.mubr.msk.f32.mxu1 %vm31099_vm1, %v36071_v61 }
 0x52a   : > { %v7203_v9 = vpop.f32.mrb[147].mxu1  ;;  %28660 = vmatprep.subr.mxu0 %v36071_v61  ;;  %28665 = vmatprep.subr.mxu1 %v36071_v61  ;;  %v7209_v17 = vadd.f32 %v28451_v43, %v32682_v30 }
 0x52b   : > { %v7204_v19 = vadd.f32 %v32682_v30, %v7203_v9  ;;  %28653 = vmatmul.mubr.msk.f32.vlgmr.msra.gmra.mrb[172].mxu0 %vm1567_vm2, %v7295_v32  ;;  %28658 = vmatmul.mubr.msk.f32.vlgmr.msra.gmra.mrb[206].mxu1 %vm1567_vm2, %v7296_v44 }
 0x52c   : > { %28661 = vmatpush3.xpose.msk.msra.mxu0 %vm1567_vm2, %v32652_v10  ;;  %28666 = vmatpush3.xpose.msk.msra.mxu1 %vm1567_vm2, %v32667_v4  ;;  %v7299_v4 = vmul.f32 0.35355338, %v7209_v17 }
 0x52d   : > { %v7298_v29 = vmul.f32 0.35355338, %v7204_v19  ;;  %v28454_v33 = vpop.f32.mrb[148].mxu1  ;;  %28662 = vmatprep.mubr.msk.f32.mxu0 %vm31099_vm1, %v36071_v61  ;;  %28667 = vmatprep.mubr.msk.f32.mxu1 %vm31099_vm1, %v36071_v61 }
 0x52e   : > { %v7213_v58 = vpop.f32.mrb[149].mxu1  ;;  %28670 = vmatprep.subr.mxu0 %v36071_v61  ;;  %28675 = vmatprep.subr.mxu1 %v36071_v61  ;;  %v7219_v27 = vadd.f32 %v28454_v33, %v32682_v30 }
 0x52f   : > { %v7214_v10 = vadd.f32 %v32682_v30, %v7213_v58  ;;  %28663 = vmatmul.mubr.msk.f32.vlgmr.msra.gmra.mrb[174].mxu0 %vm1567_vm2, %v7297_v48  ;;  %28668 = vmatmul.mubr.msk.f32.vlgmr.msra.gmra.mrb[208].mxu1 %vm1567_vm2, %v7298_v29 }
 0x530   : > { %28671 = vmatpush3.xpose.msk.msra.mxu0 %vm1567_vm2, %v32662_v57  ;;  %28676 = vmatpush3.xpose.msk.msra.mxu1 %vm1567_vm2, %v32677_v52  ;;  %v7301_v52 = vmul.f32 0.35355338, %v7219_v27 }
 0x531   : > { %v7300_v8 = vmul.f32 0.35355338, %v7214_v10  ;;  %v28457_v13 = vpop.f32.mrb[150].mxu1  ;;  %28672 = vmatprep.mubr.msk.f32.mxu0 %vm31099_vm1, %v36071_v61  ;;  %28677 = vmatprep.mubr.msk.f32.mxu1 %vm31099_vm1, %v36071_v61 }
 0x532   : > { %v7223_v55 = vpop.f32.mrb[151].mxu1  ;;  %28680 = vmatprep.subr.mxu0 %v36071_v61  ;;  %28685 = vmatprep.subr.mxu1 %v36071_v61  ;;  %v7229_v62 = vadd.f32 %v28457_v13, %v32682_v30 }
 0x533   : > { %v7224_v57 = vadd.f32 %v32682_v30, %v7223_v55  ;;  %28673 = vmatmul.mubr.msk.f32.vlgmr.msra.gmra.mrb[176].mxu0 %vm1567_vm2, %v7299_v4  ;;  %28678 = vmatmul.mubr.msk.f32.vlgmr.msra.gmra.mrb[210].mxu1 %vm1567_vm2, %v7300_v8 }
 0x534   : > { %28681 = vmatpush3.xpose.msk.msra.mxu0 %vm1567_vm2, %v32672_v39  ;;  %28686 = vmatpush3.xpose.msk.msra.mxu1 %vm1567_vm2, %v32688_v54  ;;  %v7303_v54 = vmul.f32 0.35355338, %v7229_v62 }
 0x535   : > { %v7302_v63 = vmul.f32 0.35355338, %v7224_v57  ;;  %v28460_v7 = vpop.f32.mrb[152].mxu1  ;;  %28682 = vmatprep.mubr.msk.f32.mxu0 %vm31099_vm1, %v36071_v61  ;;  %28687 = vmatprep.mubr.msk.f32.mxu1 %vm31099_vm1, %v36071_v61 }
 0x536   : > { %v7233_v41 = vpop.f32.mrb[153].mxu1  ;;  %28690 = vmatprep.subr.mxu0 %v36071_v61  ;;  %28695 = vmatprep.subr.mxu1 %v36071_v61  ;;  %v7239_v20 = vadd.f32 %v28460_v7, %v32682_v30 }
 0x537   : > { %v7234_v39 = vadd.f32 %v32682_v30, %v7233_v41  ;;  %28683 = vmatmul.mubr.msk.f32.vlgmr.msra.gmra.mrb[178].mxu0 %vm1567_vm2, %v7301_v52  ;;  %28688 = vmatmul.mubr.msk.f32.vlgmr.msra.gmra.mrb[212].mxu1 %vm1567_vm2, %v7302_v63 }
 0x538   : > { %28691 = vmatpush3.xpose.msk.msra.mxu0 %vm1567_vm2, %v32685_v60  ;;  %28696 = vmatpush3.xpose.msk.msra.mxu1 %vm1567_vm2, %v32698_v34  ;;  %v7305_v34 = vmul.f32 0.35355338, %v7239_v20 }
 0x539   : > { %v7304_v6 = vmul.f32 0.35355338, %v7234_v39  ;;  %v28463_v59 = vpop.f32.mrb[154].mxu1  ;;  %28692 = vmatprep.mubr.msk.f32.mxu0 %vm31099_vm1, %v36071_v61  ;;  %28697 = vmatprep.mubr.msk.f32.mxu1 %vm31099_vm1, %v36071_v61 }
 0x53a   : > { %v7243_v42 = vpop.f32.mrb[155].mxu1  ;;  %28700 = vmatprep.subr.mxu0 %v36071_v61  ;;  %28705 = vmatprep.subr.mxu1 %v36071_v61  ;;  %v7249_v53 = vadd.f32 %v28463_v59, %v32682_v30 }
 0x53b   : > { %v7244_v60 = vadd.f32 %v32682_v30, %v7243_v42  ;;  %28693 = vmatmul.mubr.msk.f32.vlgmr.msra.gmra.mrb[180].mxu0 %vm1567_vm2, %v7303_v54  ;;  %28698 = vmatmul.mubr.msk.f32.vlgmr.msra.gmra.mrb[214].mxu1 %vm1567_vm2, %v7304_v6 }
 0x53c   : > { %28701 = vmatpush3.xpose.msk.msra.mxu0 %vm1567_vm2, %v32693_v2  ;;  %28706 = vmatpush3.xpose.msk.msra.mxu1 %vm1567_vm2, %v32714_v23  ;;  %v7307_v23 = vmul.f32 0.35355338, %v7249_v53 }
 0x53d   : > { %v7306_v24 = vmul.f32 0.35355338, %v7244_v60  ;;  %v28466_v18 = vpop.f32.mrb[156].mxu1  ;;  %28702 = vmatprep.mubr.msk.f32.mxu0 %vm31099_vm1, %v36071_v61  ;;  %28707 = vmatprep.mubr.msk.f32.mxu1 %vm31099_vm1, %v36071_v61 }
 0x53e   : > { %v7253_v47 = vpop.f32.mrb[157].mxu1  ;;  %28710 = vmatprep.subr.mxu0 %v36071_v61  ;;  %28715 = vmatprep.subr.mxu1 %v36071_v61  ;;  %v7259_v32 = vadd.f32 %v28466_v18, %v32682_v30 }
 0x53f   : > { %v7254_v2 = vadd.f32 %v32682_v30, %v7253_v47  ;;  %28703 = vmatmul.mubr.msk.f32.vlgmr.msra.gmra.mrb[182].mxu0 %vm1567_vm2, %v7305_v34  ;;  %28708 = vmatmul.mubr.msk.f32.vlgmr.msra.gmra.mrb[216].mxu1 %vm1567_vm2, %v7306_v24 }
 0x540   : > { %28711 = vmatpush3.xpose.msk.msra.mxu0 %vm1567_vm2, %v32711_v38  ;;  %28716 = vmatpush3.xpose.msk.msra.mxu1 %vm1567_vm2, %v32736_v22  ;;  %v7309_v22 = vmul.f32 0.35355338, %v7259_v32 }
 0x541   : > { %v7308_v37 = vmul.f32 0.35355338, %v7254_v2  ;;  %v28469_v44 = vpop.f32.mrb[158].mxu1  ;;  %28712 = vmatprep.mubr.msk.f32.mxu0 %vm31099_vm1, %v36071_v61  ;;  %28717 = vmatprep.mubr.msk.f32.mxu1 %vm31099_vm1, %v36071_v61 }
 0x542   : > { %v7263_v43 = vpop.f32.mrb[159].mxu1  ;;  %28720 = vmatprep.subr.mxu0 %v36071_v61  ;;  %28725 = vmatprep.subr.mxu1 %v36071_v61  ;;  %v7269_v9 = vadd.f32 %v28469_v44, %v32682_v30 }
 0x543   : > { %v7264_v38 = vadd.f32 %v32682_v30, %v7263_v43  ;;  %28713 = vmatmul.mubr.msk.f32.vlgmr.msra.gmra.mrb[184].mxu0 %vm1567_vm2, %v7307_v23  ;;  %28718 = vmatmul.mubr.msk.f32.vlgmr.msra.gmra.mrb[218].mxu1 %vm1567_vm2, %v7308_v37 }
 0x544   : > { %28721 = vmatpush3.xpose.msk.msra.mxu0 %vm1567_vm2, %v32731_v21  ;;  %28726 = vmatpush3.xpose.msk.msra.mxu1 %vm1567_vm2, %v32758_v31  ;;  %v32931_v31 = vld [vmem:[%s36053_s8 + $0x1] ss:$0 sm:$0xff]  ;;  %v7311_v33 = vmul.f32 0.35355338, %v7269_v9 }
 0x545   : > { %v7310_v19 = vmul.f32 0.35355338, %v7264_v38  ;;  %v28472_v48 = vpop.f32.mrb[160].mxu1  ;;  %28722 = vmatprep.mubr.msk.f32.mxu0 %vm31099_vm1, %v36071_v61  ;;  %28727 = vmatprep.mubr.msk.f32.mxu1 %vm31099_vm1, %v36071_v61 }
 0x546   : > { %v7279_v17 = vadd.f32 %v28472_v48, %v32682_v30  ;;  %v7273_v29 = vpop.f32.mrb[161].mxu1  ;;  %28730 = vmatprep.subr.mxu0 %v36071_v61  ;;  %28735 = vmatprep.subr.mxu1 %v36071_v61 }
 0x547   : > { %v7274_v21 = vadd.f32 %v32682_v30, %v7273_v29  ;;  %28723 = vmatmul.mubr.msk.f32.vlgmr.msra.gmra.mrb[186].mxu0 %vm1567_vm2, %v7309_v22  ;;  %28728 = vmatmul.mubr.msk.f32.vlgmr.msra.gmra.mrb[220].mxu1 %vm1567_vm2, %v7310_v19 }
 0x548   : > { %28731 = vmatpush3.xpose.msk.msra.mxu0 %vm1567_vm2, %v32753_v36  ;;  %28736 = vmatpush3.xpose.msk.msra.mxu1 %vm1567_vm2, %v32780_v35  ;;  %v7313_v4 = vmul.f32 0.35355338, %v7279_v17 }
 0x549   : > { %v7312_v58 = vmul.f32 0.35355338, %v7274_v21  ;;  %28732 = vmatprep.mubr.msk.f32.mxu0 %vm31099_vm1, %v36071_v61  ;;  %28737 = vmatprep.mubr.msk.f32.mxu1 %vm31099_vm1, %v36071_v61  ;;  %v28539_v30 = vpop.f32.mrb[162].mxu1 }
 0x54a   : > { %28740 = vmatprep.subr.mxu0 %v36071_v61  ;;  %v7631_v36 = vpop.f32.mrb[163].mxu1  ;;  %28745 = vmatprep.subr.mxu1 %v36071_v61  ;;  %v7637_v10 = vadd.f32 %v28539_v30, %v32931_v31 }
 0x54b   : > { %28733 = vmatmul.mubr.msk.f32.vlgmr.msra.gmra.mrb[188].mxu0 %vm1567_vm2, %v7311_v33  ;;  %28738 = vmatmul.mubr.msk.f32.vlgmr.msra.gmra.mrb[222].mxu1 %vm1567_vm2, %v7312_v58  ;;  %v7632_v35 = vadd.f32 %v32931_v31, %v7631_v36 }
 0x54c   : > { %28741 = vmatpush3.xpose.msk.msra.mxu0 %vm1567_vm2, %v32775_v49  ;;  %28742 = vmatprep.mubr.msk.f32.mxu0 %vm31099_vm1, %v36071_v61 }
 0x54d   : > { %28750 = vmatprep.subr.mxu0 %v36071_v61  ;;  %v28542_v27 = vpop.f32.mrb[164].mxu1  ;;  %28746 = vmatpush3.msra.mxu1 %v7632_v35 }
 0x54e   : > { %v32949_v8 = vadd.f32 %v28542_v27, %v32931_v31  ;;  %v7641_v13 = vpop.f32.mrb[165].mxu1  ;;  %28747 = vmatprep.mubr.msk.f32.mxu1 %vm31099_vm1, %v36071_v61  ;;  %28755 = vmatprep.subr.mxu1 %v36071_v61 }
 0x54f   : > { %28743 = vmatmul.mubr.msk.f32.vlgmr.msra.gmra.mrb[190].mxu0 %vm1567_vm2, %v7313_v4  ;;  %v32956_v49 = vadd.f32 %v32931_v31, %v7641_v13 }
 0x550   : > { %28751 = vmatpush3.msra.mxu0 %v7637_v10  ;;  %28752 = vmatprep.mubr.msk.f32.mxu0 %vm31099_vm1, %v36071_v61 }
 0x551   : > { %v28545_v55 = vpop.f32.mrb[166].mxu1  ;;  %28760 = vmatprep.subr.mxu0 %v36071_v61 }
 0x552   : > { %v32962_v57 = vadd.f32 %v28545_v55, %v32931_v31  ;;  %v7651_v52 = vpop.f32.mrb[167].mxu1 }
 0x553   : > { %v32965_v62 = vadd.f32 %v32931_v31, %v7651_v52 }
 0x555   : > { %v28548_v63 = vpop.f32.mrb[168].mxu1 }
 0x556   : > { %v32968_v7 = vadd.f32 %v28548_v63, %v32931_v31  ;;  %v7661_v41 = vpop.f32.mrb[169].mxu1 }
 0x557   : > { %v32971_v39 = vadd.f32 %v32931_v31, %v7661_v41 }
 0x559   : > { %v28551_v54 = vpop.f32.mrb[170].mxu1 }
 0x55a   : > { %v32974_v20 = vadd.f32 %v28551_v54, %v32931_v31  ;;  %v7671_v6 = vpop.f32.mrb[171].mxu1 }
 0x55b   : > { %v32977_v59 = vadd.f32 %v32931_v31, %v7671_v6 }
 0x55d   : > { %v28554_v42 = vpop.f32.mrb[172].mxu1 }
 0x55e   : > { %v32980_v60 = vadd.f32 %v28554_v42, %v32931_v31  ;;  %v7681_v34 = vpop.f32.mrb[173].mxu1 }
 0x55f   : > { %v32983_v53 = vadd.f32 %v32931_v31, %v7681_v34 }
 0x561   : > { %v28557_v24 = vpop.f32.mrb[174].mxu1 }
 0x562   : > { %v32986_v18 = vadd.f32 %v28557_v24, %v32931_v31  ;;  %v7691_v47 = vpop.f32.mrb[175].mxu1 }
 0x563   : > { %v32989_v2 = vadd.f32 %v32931_v31, %v7691_v47 }
 0x565   : > { %v28560_v23 = vpop.f32.mrb[176].mxu1 }
 0x566   : > { %v32992_v32 = vadd.f32 %v28560_v23, %v32931_v31  ;;  %v7701_v37 = vpop.f32.mrb[177].mxu1 }
 0x567   : > { %v32995_v44 = vadd.f32 %v32931_v31, %v7701_v37 }
 0x569   : > { %v28563_v43 = vpop.f32.mrb[178].mxu1 }
 0x56a   : > { %v32998_v38 = vadd.f32 %v28563_v43, %v32931_v31  ;;  %v7711_v22 = vpop.f32.mrb[179].mxu1 }
 0x56b   : > { %v33001_v9 = vadd.f32 %v32931_v31, %v7711_v22 }
 0x56d   : > { %v28566_v19 = vpop.f32.mrb[180].mxu1 }
 0x56e   : > { %v33004_v48 = vadd.f32 %v28566_v19, %v32931_v31  ;;  %v7721_v17 = vpop.f32.mrb[181].mxu1 }
 0x56f   : > { %v33007_v29 = vadd.f32 %v32931_v31, %v7721_v17 }
 0x570   : > { %36102 = vst [vmem:[#allocation20_spill] sm:$0xff] %v33004_v48 }
 0x571   : > { %v28569_v21 = vpop.f32.mrb[182].mxu1 }
 0x572   : > { %v33010_v33 = vadd.f32 %v28569_v21, %v32931_v31  ;;  %v7731_v58 = vpop.f32.mrb[183].mxu1 }
 0x573   : > { %v33013_v30 = vadd.f32 %v32931_v31, %v7731_v58 }
 0x574   : > { %36103 = vst [vmem:[#allocation21_spill] sm:$0xff] %v33010_v33 }
 0x575   : > { %36104 = vst [vmem:[#allocation22_spill] sm:$0xff] %v33013_v30  ;;  %v28572_v36 = vpop.f32.mrb[184].mxu1 }
 0x576   : > { %v33016_v35 = vadd.f32 %v28572_v36, %v32931_v31  ;;  %v7741_v10 = vpop.f32.mrb[185].mxu1 }
 0x577   : > { %v33019_v4 = vadd.f32 %v32931_v31, %v7741_v10 }
 0x578   : > { %36105 = vst [vmem:[#allocation23_spill] sm:$0xff] %v33016_v35 }
 0x579   : > { %36106 = vst [vmem:[#allocation24_spill] sm:$0xff] %v33019_v4  ;;  %v28575_v27 = vpop.f32.mrb[186].mxu1 }
 0x57a   : > { %v33022_v13 = vadd.f32 %v28575_v27, %v32931_v31  ;;  %v7751_v55 = vpop.f32.mrb[187].mxu1 }
 0x57b   : > { %v33025_v52 = vadd.f32 %v32931_v31, %v7751_v55 }
 0x57c   : > { %36107 = vst [vmem:[#allocation25_spill] sm:$0xff] %v33022_v13 }
 0x57d   : > { %36108 = vst [vmem:[#allocation26_spill] sm:$0xff] %v33025_v52  ;;  %v28578_v63 = vpop.f32.mrb[188].mxu1 }
 0x57e   : > { %v33028_v41 = vadd.f32 %v28578_v63, %v32931_v31  ;;  %v7761_v54 = vpop.f32.mrb[189].mxu1 }
 0x57f   : > { %v33031_v6 = vadd.f32 %v32931_v31, %v7761_v54 }
 0x580   : > { %36109 = vst [vmem:[#allocation27_spill] sm:$0xff] %v33028_v41 }
 0x581   : > { %36110 = vst [vmem:[#allocation28_spill] sm:$0xff] %v33031_v6  ;;  %v28581_v42 = vpop.f32.mrb[190].mxu1 }
 0x582   : > { %v33034_v34 = vadd.f32 %v28581_v42, %v32931_v31  ;;  %v7771_v24 = vpop.f32.mrb[191].mxu1 }
 0x583   : > { %v33037_v47 = vadd.f32 %v32931_v31, %v7771_v24 }
 0x584   : > { %36111 = vst [vmem:[#allocation29_spill] sm:$0xff] %v33034_v34 }
 0x585   : > { %36112 = vst [vmem:[#allocation30_spill] sm:$0xff] %v33037_v47  ;;  %v28584_v23 = vpop.f32.mrb[192].mxu1 }
 0x586   : > { %v33040_v37 = vadd.f32 %v28584_v23, %v32931_v31  ;;  %v7781_v43 = vpop.f32.mrb[193].mxu1 }
 0x587   : > { %v33043_v22 = vadd.f32 %v32931_v31, %v7781_v43 }
 0x588   : > { %36113 = vst [vmem:[#allocation31_spill] sm:$0xff] %v33040_v37 }
 0x589   : > { %36114 = vst [vmem:[#allocation32_spill] sm:$0xff] %v33043_v22 }
 0x5e2   : > { %v33045_v19 = vpop.f32.mrb[158].mxu0 }
 0x5e3   : > { %v28589_v17 = vpop.f32.mrb[159].mxu0  ;;  %v10222_v21 = vsel %vm4000_vm3, %v33045_v19, -inf }
 0x5e4   : > { %10223 = vmax.xlane.f32.xlu0 %v10222_v21 }
 0x5e6   : > { %v33049_v58 = vpop.f32.mrb[160].mxu0  ;;  %v33051_v36 = vpop.f32.mrb[194].mxu1 }
 0x5e7   : > { %v28594_v10 = vpop.f32.mrb[161].mxu0  ;;  %v28599_v27 = vpop.f32.mrb[195].mxu1  ;;  %v10228_v55 = vsel %vm4000_vm3, %v33051_v36, -inf  ;;  %v10225_v31 = vsel %vm4000_vm3, %v33049_v58, -inf }
 0x5e8   : > { %10229 = vmax.xlane.f32.xlu0 %v10228_v55  ;;  %10226 = vmax.xlane.f32.xlu1 %v10225_v31 }
 0x5ea   : > { %v33057_v63 = vpop.f32.mrb[162].mxu0  ;;  %v33059_v54 = vpop.f32.mrb[196].mxu1 }
 0x5eb   : > { %v28604_v42 = vpop.f32.mrb[163].mxu0  ;;  %v28609_v24 = vpop.f32.mrb[197].mxu1  ;;  %v10234_v23 = vsel %vm4000_vm3, %v33059_v54, -inf  ;;  %v10231_v43 = vsel %vm4000_vm3, %v33057_v63, -inf }
 0x5ec   : > { %10235 = vmax.xlane.f32.xlu0 %v10234_v23  ;;  %10232 = vmax.xlane.f32.xlu1 %v10231_v43 }
 0x5ee   : > { %v33065_v17 = vpop.f32.mrb[164].mxu0  ;;  %v33067_v21 = vpop.f32.mrb[198].mxu1 }
 0x5ef   : > { %v28614_v10 = vpop.f32.mrb[165].mxu0  ;;  %v28619_v27 = vpop.f32.mrb[199].mxu1  ;;  %v10240_v55 = vsel %vm4000_vm3, %v33067_v21, -inf  ;;  %v10237_v31 = vsel %vm4000_vm3, %v33065_v17, -inf }
 0x5f0   : > { %10241 = vmax.xlane.f32.xlu0 %v10240_v55  ;;  %10238 = vmax.xlane.f32.xlu1 %v10237_v31 }
 0x5f2   : > { %v33073_v42 = vpop.f32.mrb[166].mxu0  ;;  %v33075_v24 = vpop.f32.mrb[200].mxu1 }
 0x5f3   : > { %v28624_v23 = vpop.f32.mrb[167].mxu0  ;;  %v28629_v43 = vpop.f32.mrb[201].mxu1  ;;  %v10246_v26 = vsel %vm4000_vm3, %v33075_v24, -inf  ;;  %v10243_v10 = vsel %vm4000_vm3, %v33073_v42, -inf }
 0x5f4   : > { %10247 = vmax.xlane.f32.xlu0 %v10246_v26  ;;  %10244 = vmax.xlane.f32.xlu1 %v10243_v10 }
 0x5f6   : > { %v33081_v27 = vpop.f32.mrb[168].mxu0  ;;  %v33083_v56 = vpop.f32.mrb[202].mxu1 }
 0x5f7   : > { %v28634_v55 = vpop.f32.mrb[169].mxu0  ;;  %v28639_v31 = vpop.f32.mrb[203].mxu1  ;;  %v10252_v50 = vsel %vm4000_vm3, %v33083_v56, -inf  ;;  %v10249_v23 = vsel %vm4000_vm3, %v33081_v27, -inf }
 0x5f8   : > { %10253 = vmax.xlane.f32.xlu0 %v10252_v50  ;;  %10250 = vmax.xlane.f32.xlu1 %v10249_v23 }
 0x5fa   : > { %v33089_v43 = vpop.f32.mrb[170].mxu0  ;;  %v33091_v25 = vpop.f32.mrb[204].mxu1 }
 0x5fb   : > { %v28644_v26 = vpop.f32.mrb[171].mxu0  ;;  %v28649_v10 = vpop.f32.mrb[205].mxu1  ;;  %v10258_v15 = vsel %vm4000_vm3, %v33091_v25, -inf  ;;  %v10255_v55 = vsel %vm4000_vm3, %v33089_v43, -inf }
 0x5fc   : > { %10259 = vmax.xlane.f32.xlu0 %v10258_v15  ;;  %10256 = vmax.xlane.f32.xlu1 %v10255_v55 }
 0x5fe   : > { %v33097_v31 = vpop.f32.mrb[172].mxu0  ;;  %v33099_v16 = vpop.f32.mrb[206].mxu1 }
 0x5ff   : > { %v28654_v50 = vpop.f32.mrb[173].mxu0  ;;  %v28659_v23 = vpop.f32.mrb[207].mxu1  ;;  %v10264_v14 = vsel %vm4000_vm3, %v33099_v16, -inf  ;;  %v10261_v26 = vsel %vm4000_vm3, %v33097_v31, -inf }
 0x600   : > { %10265 = vmax.xlane.f32.xlu0 %v10264_v14  ;;  %10262 = vmax.xlane.f32.xlu1 %v10261_v26 }
 0x602   : > { %v33105_v10 = vpop.f32.mrb[174].mxu0  ;;  %v33107_v11 = vpop.f32.mrb[208].mxu1 }
 0x603   : > { %v28664_v15 = vpop.f32.mrb[175].mxu0  ;;  %v28669_v55 = vpop.f32.mrb[209].mxu1  ;;  %v10270_v12 = vsel %vm4000_vm3, %v33107_v11, -inf  ;;  %v10267_v50 = vsel %vm4000_vm3, %v33105_v10, -inf }
 0x604   : > { %10271 = vmax.xlane.f32.xlu0 %v10270_v12  ;;  %10268 = vmax.xlane.f32.xlu1 %v10267_v50 }
 0x606   : > { %v33113_v23 = vpop.f32.mrb[176].mxu0  ;;  %v33115_v1 = vpop.f32.mrb[210].mxu1 }
 0x607   : > { %v28674_v14 = vpop.f32.mrb[177].mxu0  ;;  %v28679_v26 = vpop.f32.mrb[211].mxu1  ;;  %v10276_v46 = vsel %vm4000_vm3, %v33115_v1, -inf  ;;  %v10273_v15 = vsel %vm4000_vm3, %v33113_v23, -inf }
 0x608   : > { %10277 = vmax.xlane.f32.xlu0 %v10276_v46  ;;  %10274 = vmax.xlane.f32.xlu1 %v10273_v15 }
 0x60a   : > { %v33121_v55 = vpop.f32.mrb[178].mxu0  ;;  %v33123_v28 = vpop.f32.mrb[212].mxu1 }
 0x60b   : > { %v28684_v12 = vpop.f32.mrb[179].mxu0  ;;  %v28689_v50 = vpop.f32.mrb[213].mxu1  ;;  %v10282_v40 = vsel %vm4000_vm3, %v33123_v28, -inf  ;;  %v10279_v14 = vsel %vm4000_vm3, %v33121_v55, -inf }
 0x60c   : > { %10283 = vmax.xlane.f32.xlu0 %v10282_v40  ;;  %10280 = vmax.xlane.f32.xlu1 %v10279_v14 }
 0x60e   : > { %v33129_v26 = vpop.f32.mrb[180].mxu0  ;;  %v33131_v3 = vpop.f32.mrb[214].mxu1 }
 0x60f   : > { %v28694_v46 = vpop.f32.mrb[181].mxu0  ;;  %v28699_v15 = vpop.f32.mrb[215].mxu1  ;;  %v10288_v51 = vsel %vm4000_vm3, %v33131_v3, -inf  ;;  %v10285_v12 = vsel %vm4000_vm3, %v33129_v26, -inf }
 0x610   : > { %10289 = vmax.xlane.f32.xlu0 %v10288_v51  ;;  %10286 = vmax.xlane.f32.xlu1 %v10285_v12 }
 0x612   : > { %v33137_v50 = vpop.f32.mrb[182].mxu0  ;;  %v33139_v5 = vpop.f32.mrb[216].mxu1 }
 0x613   : > { %v28704_v40 = vpop.f32.mrb[183].mxu0  ;;  %v28709_v14 = vpop.f32.mrb[217].mxu1  ;;  %v10294_v0 = vsel %vm4000_vm3, %v33139_v5, -inf  ;;  %v10291_v46 = vsel %vm4000_vm3, %v33137_v50, -inf }
 0x614   : > { %10295 = vmax.xlane.f32.xlu0 %v10294_v0  ;;  %10292 = vmax.xlane.f32.xlu1 %v10291_v46 }
 0x616   : > { %v33145_v15 = vpop.f32.mrb[184].mxu0  ;;  %v33147_v45 = vpop.f32.mrb[218].mxu1 }
 0x617   : > { %v28714_v51 = vpop.f32.mrb[185].mxu0  ;;  %v28719_v12 = vpop.f32.mrb[219].mxu1  ;;  %v10300_v37 = vsel %vm4000_vm3, %v33147_v45, -inf  ;;  %v10297_v40 = vsel %vm4000_vm3, %v33145_v15, -inf }
 0x618   : > { %10301 = vmax.xlane.f32.xlu0 %v10300_v37  ;;  %10298 = vmax.xlane.f32.xlu1 %v10297_v40 }
 0x61a   : > { %v33153_v14 = vpop.f32.mrb[186].mxu0  ;;  %v33155_v34 = vpop.f32.mrb[220].mxu1 }
 0x61b   : > { %v28724_v0 = vpop.f32.mrb[187].mxu0  ;;  %v28729_v46 = vpop.f32.mrb[221].mxu1  ;;  %v10306_v22 = vsel %vm4000_vm3, %v33155_v34, -inf  ;;  %v10303_v51 = vsel %vm4000_vm3, %v33153_v14, -inf }
 0x61c   : > { %10307 = vmax.xlane.f32.xlu0 %v10306_v22  ;;  %10304 = vmax.xlane.f32.xlu1 %v10303_v51 }
 0x61e   : > { %v33161_v12 = vpop.f32.mrb[188].mxu0  ;;  %v33163_v41 = vpop.f32.mrb[222].mxu1 }
 0x61f   : > { %v28734_v37 = vpop.f32.mrb[189].mxu0  ;;  %v28739_v40 = vpop.f32.mrb[223].mxu1  ;;  %v10312_v47 = vsel %vm4000_vm3, %v33163_v41, -inf  ;;  %v10309_v0 = vsel %vm4000_vm3, %v33161_v12, -inf }
 0x620   : > { %10313 = vmax.xlane.f32.xlu0 %v10312_v47  ;;  %10310 = vmax.xlane.f32.xlu1 %v10309_v0 }
 0x622   : > { %v33169_v46 = vpop.f32.mrb[190].mxu0 }
 0x623   : > { %v28744_v13 = vpop.f32.mrb[191].mxu0  ;;  %v10315_v22 = vsel %vm4000_vm3, %v33169_v46, -inf }
 0x624   : > { %10316 = vmax.xlane.f32.xlu1 %v10315_v22 }
 0x671   : > { %v10224_v51 = vpop.xlane.xlu0 %10223 }
 0x672   : > { %v10318_v6 = vsub.f32 %v33045_v19, %v10224_v51 }
 0x674   : > { %v10350_v37 = vmul.f32 1.442695, %v10318_v6 }
 0x675   : > { %v10230_v40 = vpop.xlane.xlu0 %10229  ;;  %v10227_v35 = vpop.xlane.xlu1 %10226 }
 0x676   : > { %30417 = vpow2.f32 %v10350_v37  ;;  %v10320_v52 = vsub.f32 %v33051_v36, %v10230_v40  ;;  %v10319_v33 = vsub.f32 %v33049_v58, %v10227_v35 }
 0x678   : > { %v10354_v47 = vmul.f32 1.442695, %v10320_v52  ;;  %v10352_v0 = vmul.f32 1.442695, %v10319_v33 }
 0x679   : > { %v10236_v4 = vpop.xlane.xlu0 %10235  ;;  %v10233_v48 = vpop.xlane.xlu1 %10232 }
 0x67a   : > { %30419 = vpow2.f32 %v10354_v47  ;;  %v10322_v13 = vsub.f32 %v33059_v54, %v10236_v4  ;;  %v10321_v22 = vsub.f32 %v33057_v63, %v10233_v48 }
 0x67b   : > { %30421 = vpow2.f32 %v10352_v0 }
 0x67c   : > { %v10358_v30 = vmul.f32 1.442695, %v10322_v13  ;;  %v10356_v19 = vmul.f32 1.442695, %v10321_v22 }
 0x67d   : > { %v10242_v6 = vpop.xlane.xlu0 %10241  ;;  %v10239_v51 = vpop.xlane.xlu1 %10238 }
 0x67e   : > { %30423 = vpow2.f32 %v10358_v30  ;;  %v10324_v37 = vsub.f32 %v33067_v21, %v10242_v6  ;;  %v10323_v36 = vsub.f32 %v33065_v17, %v10239_v51 }
 0x67f   : > { %30425 = vpow2.f32 %v10356_v19 }
 0x680   : > { %v33180_v35 = vpop.eup %30417  ;;  %v10362_v33 = vmul.f32 1.442695, %v10324_v37  ;;  %v10360_v52 = vmul.f32 1.442695, %v10323_v36 }
 0x681   : > { %v10248_v58 = vpop.xlane.xlu0 %10247  ;;  %v10245_v40 = vpop.xlane.xlu1 %10244  ;;  %v10414_v48 = vsel %vm4000_vm3, %v33180_v35, 0.0 }
 0x682   : > { %30427 = vpow2.f32 %v10362_v33  ;;  %v10326_v4 = vsub.f32 %v33075_v24, %v10248_v58  ;;  %v10325_v63 = vsub.f32 %v33073_v42, %v10245_v40  ;;  %10415 = vadd.xlane.f32.xlu0 %v10414_v48 }
 0x683   : > { %30429 = vpow2.f32 %v10360_v52 }
 0x684   : > { %v33186_v30 = vpop.eup %30419  ;;  %v10366_v54 = vmul.f32 1.442695, %v10326_v4  ;;  %v10364_v17 = vmul.f32 1.442695, %v10325_v63 }
 0x685   : > { %v33188_v21 = vpop.eup %30421  ;;  %v10254_v47 = vpop.xlane.xlu0 %10253  ;;  %v10420_v13 = vsel %vm4000_vm3, %v33186_v30, 0.0 }
 0x686   : > { %v10251_v0 = vpop.xlane.xlu1 %10250  ;;  %30431 = vpow2.f32 %v10366_v54  ;;  %v10328_v22 = vsub.f32 %v33083_v56, %v10254_v47  ;;  %10421 = vadd.xlane.f32.xlu0 %v10420_v13  ;;  %v10417_v42 = vsel %vm4000_vm3, %v33188_v21, 0.0 }
 0x687   : > { %v10327_v24 = vsub.f32 %v33081_v27, %v10251_v0  ;;  %30433 = vpow2.f32 %v10364_v17  ;;  %10418 = vadd.xlane.f32.xlu1 %v10417_v42 }
 0x688   : > { %v33196_v19 = vpop.eup %30423  ;;  %v10370_v6 = vmul.f32 1.442695, %v10328_v22 }
 0x689   : > { %v10368_v51 = vmul.f32 1.442695, %v10327_v24  ;;  %v33198_v37 = vpop.eup %30425  ;;  %v10260_v36 = vpop.xlane.xlu0 %10259  ;;  %v10426_v52 = vsel %vm4000_vm3, %v33196_v19, 0.0 }
 0x68a   : > { %v10257_v33 = vpop.xlane.xlu1 %10256  ;;  %30435 = vpow2.f32 %v10370_v6  ;;  %v10330_v56 = vsub.f32 %v33091_v25, %v10260_v36  ;;  %10427 = vadd.xlane.f32.xlu0 %v10426_v52  ;;  %v10423_v58 = vsel %vm4000_vm3, %v33198_v37, 0.0 }
 0x68b   : > { %v10329_v27 = vsub.f32 %v33089_v43, %v10257_v33  ;;  %30437 = vpow2.f32 %v10368_v51  ;;  %10424 = vadd.xlane.f32.xlu1 %v10423_v58 }
 0x68c   : > { %v33206_v40 = vpop.eup %30427  ;;  %v10374_v48 = vmul.f32 1.442695, %v10330_v56 }
 0x68d   : > { %v10372_v4 = vmul.f32 1.442695, %v10329_v27  ;;  %v33208_v63 = vpop.eup %30429  ;;  %v10266_v54 = vpop.xlane.xlu0 %10265  ;;  %v10432_v47 = vsel %vm4000_vm3, %v33206_v40, 0.0 }
 0x68e   : > { %v10263_v17 = vpop.xlane.xlu1 %10262  ;;  %30439 = vpow2.f32 %v10374_v48  ;;  %v10332_v25 = vsub.f32 %v33099_v16, %v10266_v54  ;;  %10433 = vadd.xlane.f32.xlu0 %v10432_v47  ;;  %v10429_v0 = vsel %vm4000_vm3, %v33208_v63, 0.0 }
 0x68f   : > { %v10331_v43 = vsub.f32 %v33097_v31, %v10263_v17  ;;  %30441 = vpow2.f32 %v10372_v4  ;;  %10430 = vadd.xlane.f32.xlu1 %v10429_v0 }
 0x690   : > { %v33216_v13 = vpop.eup %30431  ;;  %v10378_v22 = vmul.f32 1.442695, %v10332_v25 }
 0x691   : > { %v10376_v24 = vmul.f32 1.442695, %v10331_v43  ;;  %v33218_v42 = vpop.eup %30433  ;;  %v10272_v6 = vpop.xlane.xlu0 %10271  ;;  %v10438_v36 = vsel %vm4000_vm3, %v33216_v13, 0.0 }
 0x692   : > { %v10269_v51 = vpop.xlane.xlu1 %10268  ;;  %30443 = vpow2.f32 %v10378_v22  ;;  %v10334_v16 = vsub.f32 %v33107_v11, %v10272_v6  ;;  %10439 = vadd.xlane.f32.xlu0 %v10438_v36  ;;  %v10435_v33 = vsel %vm4000_vm3, %v33218_v42, 0.0 }
 0x693   : > { %v10333_v31 = vsub.f32 %v33105_v10, %v10269_v51  ;;  %30445 = vpow2.f32 %v10376_v24  ;;  %10436 = vadd.xlane.f32.xlu1 %v10435_v33 }
 0x694   : > { %v33226_v52 = vpop.eup %30435  ;;  %v10382_v56 = vmul.f32 1.442695, %v10334_v16 }
 0x695   : > { %v10380_v27 = vmul.f32 1.442695, %v10333_v31  ;;  %v33228_v58 = vpop.eup %30437  ;;  %v10278_v48 = vpop.xlane.xlu0 %10277  ;;  %v10444_v54 = vsel %vm4000_vm3, %v33226_v52, 0.0 }
 0x696   : > { %v10275_v4 = vpop.xlane.xlu1 %10274  ;;  %30447 = vpow2.f32 %v10382_v56  ;;  %v10336_v11 = vsub.f32 %v33115_v1, %v10278_v48  ;;  %10445 = vadd.xlane.f32.xlu0 %v10444_v54  ;;  %v10441_v17 = vsel %vm4000_vm3, %v33228_v58, 0.0 }
 0x697   : > { %v10335_v10 = vsub.f32 %v33113_v23, %v10275_v4  ;;  %30449 = vpow2.f32 %v10380_v27  ;;  %10442 = vadd.xlane.f32.xlu1 %v10441_v17 }
 0x698   : > { %v33236_v47 = vpop.eup %30439  ;;  %v10386_v25 = vmul.f32 1.442695, %v10336_v11 }
 0x699   : > { %v10384_v43 = vmul.f32 1.442695, %v10335_v10  ;;  %v33238_v0 = vpop.eup %30441  ;;  %v10284_v22 = vpop.xlane.xlu0 %10283  ;;  %v10450_v6 = vsel %vm4000_vm3, %v33236_v47, 0.0 }
 0x69a   : > { %v10281_v24 = vpop.xlane.xlu1 %10280  ;;  %30451 = vpow2.f32 %v10386_v25  ;;  %v10338_v1 = vsub.f32 %v33123_v28, %v10284_v22  ;;  %10451 = vadd.xlane.f32.xlu0 %v10450_v6  ;;  %v10447_v51 = vsel %vm4000_vm3, %v33238_v0, 0.0 }
 0x69b   : > { %v10337_v23 = vsub.f32 %v33121_v55, %v10281_v24  ;;  %30453 = vpow2.f32 %v10384_v43  ;;  %10448 = vadd.xlane.f32.xlu1 %v10447_v51 }
 0x69c   : > { %v33246_v36 = vpop.eup %30443  ;;  %v10390_v16 = vmul.f32 1.442695, %v10338_v1 }
 0x69d   : > { %v10388_v31 = vmul.f32 1.442695, %v10337_v23  ;;  %v33248_v33 = vpop.eup %30445  ;;  %v10290_v56 = vpop.xlane.xlu0 %10289  ;;  %v10456_v48 = vsel %vm4000_vm3, %v33246_v36, 0.0 }
 0x69e   : > { %v10287_v27 = vpop.xlane.xlu1 %10286  ;;  %30455 = vpow2.f32 %v10390_v16  ;;  %v10340_v28 = vsub.f32 %v33131_v3, %v10290_v56  ;;  %10457 = vadd.xlane.f32.xlu0 %v10456_v48  ;;  %v10453_v4 = vsel %vm4000_vm3, %v33248_v33, 0.0 }
 0x69f   : > { %v10339_v55 = vsub.f32 %v33129_v26, %v10287_v27  ;;  %30457 = vpow2.f32 %v10388_v31  ;;  %10454 = vadd.xlane.f32.xlu1 %v10453_v4 }
 0x6a0   : > { %v33256_v54 = vpop.eup %30447  ;;  %v10394_v11 = vmul.f32 1.442695, %v10340_v28 }
 0x6a1   : > { %v10392_v10 = vmul.f32 1.442695, %v10339_v55  ;;  %v33258_v17 = vpop.eup %30449  ;;  %v10296_v25 = vpop.xlane.xlu0 %10295  ;;  %v10462_v22 = vsel %vm4000_vm3, %v33256_v54, 0.0 }
 0x6a2   : > { %v10293_v43 = vpop.xlane.xlu1 %10292  ;;  %30459 = vpow2.f32 %v10394_v11  ;;  %v10342_v3 = vsub.f32 %v33139_v5, %v10296_v25  ;;  %10463 = vadd.xlane.f32.xlu0 %v10462_v22  ;;  %v10459_v24 = vsel %vm4000_vm3, %v33258_v17, 0.0 }
 0x6a3   : > { %v10341_v26 = vsub.f32 %v33137_v50, %v10293_v43  ;;  %30461 = vpow2.f32 %v10392_v10  ;;  %10460 = vadd.xlane.f32.xlu1 %v10459_v24 }
 0x6a4   : > { %v33266_v6 = vpop.eup %30451  ;;  %v10398_v1 = vmul.f32 1.442695, %v10342_v3 }
 0x6a5   : > { %v10396_v23 = vmul.f32 1.442695, %v10341_v26  ;;  %v33268_v51 = vpop.eup %30453  ;;  %v10302_v16 = vpop.xlane.xlu0 %10301  ;;  %v10468_v56 = vsel %vm4000_vm3, %v33266_v6, 0.0 }
 0x6a6   : > { %v10299_v31 = vpop.xlane.xlu1 %10298  ;;  %30463 = vpow2.f32 %v10398_v1  ;;  %v10344_v5 = vsub.f32 %v33147_v45, %v10302_v16  ;;  %10469 = vadd.xlane.f32.xlu0 %v10468_v56  ;;  %v10465_v27 = vsel %vm4000_vm3, %v33268_v51, 0.0 }
 0x6a7   : > { %v10343_v50 = vsub.f32 %v33145_v15, %v10299_v31  ;;  %30465 = vpow2.f32 %v10396_v23  ;;  %10466 = vadd.xlane.f32.xlu1 %v10465_v27 }
 0x6a8   : > { %v33276_v48 = vpop.eup %30455  ;;  %v10402_v28 = vmul.f32 1.442695, %v10344_v5 }
 0x6a9   : > { %v10400_v55 = vmul.f32 1.442695, %v10343_v50  ;;  %v33278_v4 = vpop.eup %30457  ;;  %v10308_v11 = vpop.xlane.xlu0 %10307  ;;  %v10474_v25 = vsel %vm4000_vm3, %v33276_v48, 0.0 }
 0x6aa   : > { %v10305_v10 = vpop.xlane.xlu1 %10304  ;;  %30467 = vpow2.f32 %v10402_v28  ;;  %v10346_v45 = vsub.f32 %v33155_v34, %v10308_v11  ;;  %10475 = vadd.xlane.f32.xlu0 %v10474_v25  ;;  %v10471_v43 = vsel %vm4000_vm3, %v33278_v4, 0.0 }
 0x6ab   : > { %v10345_v15 = vsub.f32 %v33153_v14, %v10305_v10  ;;  %30469 = vpow2.f32 %v10400_v55  ;;  %10472 = vadd.xlane.f32.xlu1 %v10471_v43 }
 0x6ac   : > { %v33286_v22 = vpop.eup %30459  ;;  %v10406_v3 = vmul.f32 1.442695, %v10346_v45 }
 0x6ad   : > { %v10404_v26 = vmul.f32 1.442695, %v10345_v15  ;;  %v33288_v24 = vpop.eup %30461  ;;  %v10314_v1 = vpop.xlane.xlu0 %10313  ;;  %v10480_v16 = vsel %vm4000_vm3, %v33286_v22, 0.0 }
 0x6ae   : > { %v10311_v23 = vpop.xlane.xlu1 %10310  ;;  %30471 = vpow2.f32 %v10406_v3  ;;  %v10348_v34 = vsub.f32 %v33163_v41, %v10314_v1  ;;  %10481 = vadd.xlane.f32.xlu0 %v10480_v16  ;;  %v10477_v31 = vsel %vm4000_vm3, %v33288_v24, 0.0 }
 0x6af   : > { %v10347_v14 = vsub.f32 %v33161_v12, %v10311_v23  ;;  %30473 = vpow2.f32 %v10404_v26  ;;  %10478 = vadd.xlane.f32.xlu1 %v10477_v31 }
 0x6b0   : > { %v33296_v56 = vpop.eup %30463  ;;  %v10410_v5 = vmul.f32 1.442695, %v10348_v34 }
 0x6b1   : > { %v10408_v50 = vmul.f32 1.442695, %v10347_v14  ;;  %v33298_v27 = vpop.eup %30465  ;;  %v10486_v55 = vsel %vm4000_vm3, %v33296_v56, 0.0 }
 0x6b2   : > { %v10317_v28 = vpop.xlane.xlu1 %10316  ;;  %30475 = vpow2.f32 %v10410_v5  ;;  %10487 = vadd.xlane.f32.xlu0 %v10486_v55  ;;  %v10483_v12 = vsel %vm4000_vm3, %v33298_v27, 0.0 }
 0x6b3   : > { %v10349_v41 = vsub.f32 %v33169_v46, %v10317_v28  ;;  %30477 = vpow2.f32 %v10408_v50  ;;  %10484 = vadd.xlane.f32.xlu1 %v10483_v12 }
 0x6b4   : > { %v33305_v11 = vpop.eup %30467 }
 0x6b5   : > { %v10412_v10 = vmul.f32 1.442695, %v10349_v41  ;;  %v33307_v25 = vpop.eup %30469  ;;  %v10492_v45 = vsel %vm4000_vm3, %v33305_v11, 0.0 }
 0x6b6   : > { %10493 = vadd.xlane.f32.xlu0 %v10492_v45  ;;  %v10489_v15 = vsel %vm4000_vm3, %v33307_v25, 0.0 }
 0x6b7   : > { %30479 = vpow2.f32 %v10412_v10  ;;  %10490 = vadd.xlane.f32.xlu1 %v10489_v15 }
 0x6b8   : > { %v33313_v46 = vpop.eup %30471 }
 0x6b9   : > { %v33315_v43 = vpop.eup %30473  ;;  %v10498_v3 = vsel %vm4000_vm3, %v33313_v46, 0.0 }
 0x6ba   : > { %10499 = vadd.xlane.f32.xlu0 %v10498_v3  ;;  %v10495_v26 = vsel %vm4000_vm3, %v33315_v43, 0.0 }
 0x6bb   : > { %10496 = vadd.xlane.f32.xlu1 %v10495_v26 }
 0x6bc   : > { %v33321_v1 = vpop.eup %30475 }
 0x6bd   : > { %v33323_v23 = vpop.eup %30477  ;;  %v10504_v16 = vsel %vm4000_vm3, %v33321_v1, 0.0 }
 0x6be   : > { %10505 = vadd.xlane.f32.xlu0 %v10504_v16  ;;  %v10501_v34 = vsel %vm4000_vm3, %v33323_v23, 0.0 }
 0x6bf   : > { %10502 = vadd.xlane.f32.xlu1 %v10501_v34 }
 0x6c1   : > { %v33329_v14 = vpop.eup %30479 }
 0x6c2   : > { %v10507_v31 = vsel %vm4000_vm3, %v33329_v14, 0.0 }
 0x6c3   : > { %10508 = vadd.xlane.f32.xlu1 %v10507_v31 }
 0x70f   : > { %v10416_v5 = vpop.xlane.xlu0 %10415 }
 0x710   : > { %30481 = vrcp.f32 %v10416_v5 }
 0x713   : > { %v10422_v50 = vpop.xlane.xlu0 %10421 }
 0x714   : > { %30483 = vrcp.f32 %v10422_v50  ;;  %v10419_v28 = vpop.xlane.xlu1 %10418 }
 0x715   : > { %30485 = vrcp.f32 %v10419_v28 }
 0x717   : > { %v10428_v55 = vpop.xlane.xlu0 %10427 }
 0x718   : > { %30487 = vrcp.f32 %v10428_v55  ;;  %v10425_v41 = vpop.xlane.xlu1 %10424 }
 0x719   : > { %30489 = vrcp.f32 %v10425_v41 }
 0x71a   : > { %v30482_v12 = vpop.eup %30481 }
 0x71b   : > { %v10434_v10 = vpop.xlane.xlu0 %10433  ;;  %v10542_v45 = vmul.f32 %v30482_v12, %v33180_v35 }
 0x71c   : > { %30491 = vrcp.f32 %v10434_v10  ;;  %v10431_v15 = vpop.xlane.xlu1 %10430 }
 0x71d   : > { %30493 = vrcp.f32 %v10431_v15  ;;  %28748 = vmatmul.mubr.msk.f32.vlgmr.msra.gmra.mrb[224].mxu1 %vm4000_vm3, %v10542_v45 }
 0x71e   : > { %v30484_v3 = vpop.eup %30483  ;;  %28756 = vmatpush3.msra.mxu1 %v32956_v49  ;;  %28757 = vmatprep.mubr.msk.f32.mxu1 %vm31099_vm1, %v36071_v61 }
 0x71f   : > { %v30486_v26 = vpop.eup %30485  ;;  %v10440_v16 = vpop.xlane.xlu0 %10439  ;;  %28765 = vmatprep.subr.mxu1 %v36071_v61  ;;  %v10544_v34 = vmul.f32 %v30484_v3, %v33186_v30 }
 0x720   : > { %30495 = vrcp.f32 %v10440_v16  ;;  %v10437_v31 = vpop.xlane.xlu1 %10436  ;;  %v10543_v35 = vmul.f32 %v30486_v26, %v33188_v21 }
 0x721   : > { %30497 = vrcp.f32 %v10437_v31  ;;  %28758 = vmatmul.mubr.msk.f32.vlgmr.msra.gmra.mrb[226].mxu1 %vm4000_vm3, %v10544_v34 }
 0x722   : > { %v30488_v5 = vpop.eup %30487  ;;  %28753 = vmatmul.mubr.msk.f32.vlgmr.msra.gmra.mrb[192].mxu0 %vm4000_vm3, %v10543_v35  ;;  %28766 = vmatpush3.msra.mxu1 %v32965_v62 }
 0x723   : > { %v30490_v49 = vpop.eup %30489  ;;  %28761 = vmatpush3.msra.mxu0 %v32949_v8  ;;  %v10446_v50 = vpop.xlane.xlu0 %10445  ;;  %28762 = vmatprep.mubr.msk.f32.mxu0 %vm31099_vm1, %v36071_v61  ;;  %v10546_v30 = vmul.f32 %v30488_v5, %v33196_v19 }
 0x724   : > { %30499 = vrcp.f32 %v10446_v50  ;;  %v10443_v28 = vpop.xlane.xlu1 %10442  ;;  %28767 = vmatprep.mubr.msk.f32.mxu1 %vm31099_vm1, %v36071_v61  ;;  %28770 = vmatprep.subr.mxu0 %v36071_v61  ;;  %v10545_v21 = vmul.f32 %v30490_v49, %v33198_v37  ;;  %v36116_v50 = vld [vmem:[#allocation20_spill] sm:$0xff] }
 0x725   : > { %30501 = vrcp.f32 %v10443_v28  ;;  %28775 = vmatprep.subr.mxu1 %v36071_v61  ;;  %28768 = vmatmul.mubr.msk.f32.vlgmr.msra.gmra.mrb[228].mxu1 %vm4000_vm3, %v10546_v30 }
 0x726   : > { %v30492_v8 = vpop.eup %30491  ;;  %28763 = vmatmul.mubr.msk.f32.vlgmr.msra.gmra.mrb[194].mxu0 %vm4000_vm3, %v10545_v21  ;;  %28776 = vmatpush3.msra.mxu1 %v32971_v39 }
 0x727   : > { %v30494_v62 = vpop.eup %30493  ;;  %28771 = vmatpush3.msra.mxu0 %v32962_v57  ;;  %v10452_v19 = vpop.xlane.xlu0 %10451  ;;  %28772 = vmatprep.mubr.msk.f32.mxu0 %vm31099_vm1, %v36071_v61  ;;  %v10548_v55 = vmul.f32 %v30492_v8, %v33206_v40 }
 0x728   : > { %30503 = vrcp.f32 %v10452_v19  ;;  %v10449_v37 = vpop.xlane.xlu1 %10448  ;;  %28777 = vmatprep.mubr.msk.f32.mxu1 %vm31099_vm1, %v36071_v61  ;;  %28780 = vmatprep.subr.mxu0 %v36071_v61  ;;  %v10547_v41 = vmul.f32 %v30494_v62, %v33208_v63  ;;  %v36117_v62 = vld [vmem:[#allocation24_spill] sm:$0xff]  ;;  %v36118_v19 = vld [vmem:[#allocation21_spill] sm:$0xff] }
 0x729   : > { %30505 = vrcp.f32 %v10449_v37  ;;  %28785 = vmatprep.subr.mxu1 %v36071_v61  ;;  %28778 = vmatmul.mubr.msk.f32.vlgmr.msra.gmra.mrb[230].mxu1 %vm4000_vm3, %v10548_v55 }
 0x72a   : > { %v30496_v57 = vpop.eup %30495  ;;  %28773 = vmatmul.mubr.msk.f32.vlgmr.msra.gmra.mrb[196].mxu0 %vm4000_vm3, %v10547_v41  ;;  %28786 = vmatpush3.msra.mxu1 %v32977_v59 }
 0x72b   : > { %v30498_v39 = vpop.eup %30497  ;;  %28781 = vmatpush3.msra.mxu0 %v32968_v7  ;;  %v10458_v40 = vpop.xlane.xlu0 %10457  ;;  %28782 = vmatprep.mubr.msk.f32.mxu0 %vm31099_vm1, %v36071_v61  ;;  %v10550_v12 = vmul.f32 %v30496_v57, %v33216_v13 }
 0x72c   : > { %30507 = vrcp.f32 %v10458_v40  ;;  %v10455_v63 = vpop.xlane.xlu1 %10454  ;;  %28787 = vmatprep.mubr.msk.f32.mxu1 %vm31099_vm1, %v36071_v61  ;;  %28790 = vmatprep.subr.mxu0 %v36071_v61  ;;  %v10549_v10 = vmul.f32 %v30498_v39, %v33218_v42  ;;  %v36119_v39 = vld [vmem:[#allocation26_spill] sm:$0xff]  ;;  %v36120_v40 = vld [vmem:[#allocation23_spill] sm:$0xff] }
 0x72d   : > { %30509 = vrcp.f32 %v10455_v63  ;;  %28795 = vmatprep.subr.mxu1 %v36071_v61  ;;  %28788 = vmatmul.mubr.msk.f32.vlgmr.msra.gmra.mrb[232].mxu1 %vm4000_vm3, %v10550_v12 }
 0x72e   : > { %v30500_v7 = vpop.eup %30499  ;;  %28783 = vmatmul.mubr.msk.f32.vlgmr.msra.gmra.mrb[198].mxu0 %vm4000_vm3, %v10549_v10  ;;  %28796 = vmatpush3.msra.mxu1 %v32983_v53 }
 0x72f   : > { %v30502_v59 = vpop.eup %30501  ;;  %28791 = vmatpush3.msra.mxu0 %v32974_v20  ;;  %v10464_v13 = vpop.xlane.xlu0 %10463  ;;  %28792 = vmatprep.mubr.msk.f32.mxu0 %vm31099_vm1, %v36071_v61  ;;  %v10552_v45 = vmul.f32 %v30500_v7, %v33226_v52 }
 0x730   : > { %30511 = vrcp.f32 %v10464_v13  ;;  %v10461_v42 = vpop.xlane.xlu1 %10460  ;;  %28797 = vmatprep.mubr.msk.f32.mxu1 %vm31099_vm1, %v36071_v61  ;;  %28800 = vmatprep.subr.mxu0 %v36071_v61  ;;  %v10551_v15 = vmul.f32 %v30502_v59, %v33228_v58  ;;  %v36121_v59 = vld [vmem:[#allocation28_spill] sm:$0xff]  ;;  %v36122_v13 = vld [vmem:[#allocation25_spill] sm:$0xff] }
 0x731   : > { %30513 = vrcp.f32 %v10461_v42  ;;  %28805 = vmatprep.subr.mxu1 %v36071_v61  ;;  %28798 = vmatmul.mubr.msk.f32.vlgmr.msra.gmra.mrb[234].mxu1 %vm4000_vm3, %v10552_v45 }
 0x732   : > { %v30504_v20 = vpop.eup %30503  ;;  %28793 = vmatmul.mubr.msk.f32.vlgmr.msra.gmra.mrb[200].mxu0 %vm4000_vm3, %v10551_v15  ;;  %28806 = vmatpush3.msra.mxu1 %v32989_v2 }
 0x733   : > { %v30506_v53 = vpop.eup %30505  ;;  %28801 = vmatpush3.msra.mxu0 %v32980_v60  ;;  %v10470_v52 = vpop.xlane.xlu0 %10469  ;;  %28802 = vmatprep.mubr.msk.f32.mxu0 %vm31099_vm1, %v36071_v61  ;;  %v10554_v3 = vmul.f32 %v30504_v20, %v33236_v47  ;;  %v36123_v20 = vld [vmem:[#allocation30_spill] sm:$0xff] }
 0x734   : > { %30515 = vrcp.f32 %v10470_v52  ;;  %v10467_v58 = vpop.xlane.xlu1 %10466  ;;  %28807 = vmatprep.mubr.msk.f32.mxu1 %vm31099_vm1, %v36071_v61  ;;  %28810 = vmatprep.subr.mxu0 %v36071_v61  ;;  %v10553_v26 = vmul.f32 %v30506_v53, %v33238_v0 }
 0x735   : > { %30517 = vrcp.f32 %v10467_v58  ;;  %28815 = vmatprep.subr.mxu1 %v36071_v61  ;;  %28808 = vmatmul.mubr.msk.f32.vlgmr.msra.gmra.mrb[236].mxu1 %vm4000_vm3, %v10554_v3  ;;  %v36125_v58 = vld [vmem:[#allocation32_spill] sm:$0xff] }
 0x736   : > { %v30508_v60 = vpop.eup %30507  ;;  %28803 = vmatmul.mubr.msk.f32.vlgmr.msra.gmra.mrb[202].mxu0 %vm4000_vm3, %v10553_v26  ;;  %28816 = vmatpush3.msra.mxu1 %v32995_v44 }
 0x737   : > { %v30510_v2 = vpop.eup %30509  ;;  %28811 = vmatpush3.msra.mxu0 %v32986_v18  ;;  %v10476_v47 = vpop.xlane.xlu0 %10475  ;;  %28812 = vmatprep.mubr.msk.f32.mxu0 %vm31099_vm1, %v36071_v61  ;;  %v10556_v16 = vmul.f32 %v30508_v60, %v33246_v36  ;;  %v36126_v60 = vld [vmem:[#allocation29_spill] sm:$0xff] }
 0x738   : > { %30519 = vrcp.f32 %v10476_v47  ;;  %v10473_v0 = vpop.xlane.xlu1 %10472  ;;  %28817 = vmatprep.mubr.msk.f32.mxu1 %vm31099_vm1, %v36071_v61  ;;  %28820 = vmatprep.subr.mxu0 %v36071_v61  ;;  %v10555_v34 = vmul.f32 %v30510_v2, %v33248_v33  ;;  %v30897_v2 = vld [vmem:[%s31204_s26] sm:$0xff] }
 0x739   : > { %30521 = vrcp.f32 %v10473_v0  ;;  %28825 = vmatprep.subr.mxu1 %v36071_v61  ;;  %28818 = vmatmul.mubr.msk.f32.vlgmr.msra.gmra.mrb[238].mxu1 %vm4000_vm3, %v10556_v16  ;;  %v36127_v16 = vld [vmem:[#allocation31_spill] sm:$0xff]  ;;  %v26274_v0 = vld [vmem:[%s36054_s9 + $0x18] sm:$0xff] }
 0x73a   : > { %v30512_v18 = vpop.eup %30511  ;;  %28813 = vmatmul.mubr.msk.f32.vlgmr.msra.gmra.mrb[204].mxu0 %vm4000_vm3, %v10555_v34  ;;  %28826 = vmatpush3.msra.mxu1 %v33001_v9 }
 0x73b   : > { %v30514_v44 = vpop.eup %30513  ;;  %28821 = vmatpush3.msra.mxu0 %v32992_v32  ;;  %v10482_v36 = vpop.xlane.xlu0 %10481  ;;  %28822 = vmatprep.mubr.msk.f32.mxu0 %vm31099_vm1, %v36071_v61  ;;  %v10558_v31 = vmul.f32 %v30512_v18, %v33256_v54  ;;  %v26307_v18 = vld [vmem:[%s36048_s3 + $0x40] sm:$0xff] }
 0x73c   : > { %30523 = vrcp.f32 %v10482_v36  ;;  %v10479_v33 = vpop.xlane.xlu1 %10478  ;;  %28827 = vmatprep.mubr.msk.f32.mxu1 %vm31099_vm1, %v36071_v61  ;;  %28830 = vmatprep.subr.mxu0 %v36071_v61  ;;  %v10557_v35 = vmul.f32 %v30514_v44, %v33258_v17  ;;  %v26345_v44 = vld [vmem:[%s36050_s5 + $0x40] sm:$0xff] }
 0x73d   : > { %30525 = vrcp.f32 %v10479_v33  ;;  %28835 = vmatprep.subr.mxu1 %v36071_v61  ;;  %28828 = vmatmul.mubr.msk.f32.vlgmr.msra.gmra.mrb[240].mxu1 %vm4000_vm3, %v10558_v31  ;;  %v26346_v31 = vld [vmem:[%s36050_s5 + $0x48] sm:$0xff] }
 0x73e   : > { %v30516_v32 = vpop.eup %30515  ;;  %28823 = vmatmul.mubr.msk.f32.vlgmr.msra.gmra.mrb[206].mxu0 %vm4000_vm3, %v10557_v35  ;;  %28836 = vmatpush3.msra.mxu1 %v33007_v29  ;;  %v36115_v29 = vld [vmem:[#allocation22_spill] sm:$0xff]  ;;  %v33535_v33 = vpack.c.bf16 %v26346_v31, %v26345_v44  ;;  %v26309_v35 = vld [vmem:[%s36048_s3 + $0x50] sm:$0xff] }
 0x73f   : > { %v30518_v9 = vpop.eup %30517  ;;  %28831 = vmatpush3.msra.mxu0 %v32998_v38  ;;  %v10488_v54 = vpop.xlane.xlu0 %10487  ;;  %28832 = vmatprep.mubr.msk.f32.mxu0 %vm31099_vm1, %v36071_v61  ;;  %v10560_v5 = vmul.f32 %v30516_v32, %v33266_v6  ;;  %v26310_v32 = vld [vmem:[%s36048_s3 + $0x58] sm:$0xff]  ;;  %v30931_v44 = vld [vmem:[%s31350_s16 + $0x10] sm:$0xff] }
 0x740   : > { %30527 = vrcp.f32 %v10488_v54  ;;  %v10485_v17 = vpop.xlane.xlu1 %10484  ;;  %28837 = vmatprep.mubr.msk.f32.mxu1 %vm31099_vm1, %v36071_v61  ;;  %28840 = vmatprep.subr.mxu0 %v36071_v61  ;;  %v10559_v49 = vmul.f32 %v30518_v9, %v33268_v51  ;;  %v30097_v9 = vpack.c.bf16 %v26310_v32, %v26309_v35  ;;  %v30898_v54 = vld [vmem:[%s31204_s26 + $0x8] sm:$0xff]  ;;  %v30932_v35 = vld [vmem:[%s31350_s16 + $0x18] sm:$0xff] }
 0x741   : > { %30529 = vrcp.f32 %v10485_v17  ;;  %28845 = vmatprep.subr.mxu1 %v36071_v61  ;;  %28838 = vmatmul.mubr.msk.f32.vlgmr.msra.gmra.mrb[242].mxu1 %vm4000_vm3, %v10560_v5  ;;  %v30899_v5 = vld [vmem:[%s31204_s26 + $0x10] sm:$0xff]  ;;  %v30900_v17 = vld [vmem:[%s31204_s26 + $0x18] sm:$0xff] }
 0x742   : > { %v30520_v38 = vpop.eup %30519  ;;  %28833 = vmatmul.mubr.msk.f32.vlgmr.msra.gmra.mrb[208].mxu0 %vm4000_vm3, %v10559_v49  ;;  %28846 = vmatpush3.msra.mxu1 %v36115_v29  ;;  %v30901_v49 = vld [vmem:[%s31204_s26 + $0x20] sm:$0xff]  ;;  %v30903_v29 = vld [vmem:[%s31204_s26 + $0x30] sm:$0xff] }
 0x743   : > { %v30522_v6 = vpop.eup %30521  ;;  %28841 = vmatpush3.msra.mxu0 %v36116_v50  ;;  %v10494_v30 = vpop.xlane.xlu0 %10493  ;;  %28842 = vmatprep.mubr.msk.f32.mxu0 %vm31099_vm1, %v36071_v61  ;;  %v10562_v28 = vmul.f32 %v30520_v38, %v33276_v48  ;;  %v30902_v38 = vld [vmem:[%s31204_s26 + $0x28] sm:$0xff]  ;;  %v30905_v50 = vld [vmem:[%s31204_s26 + $0x40] sm:$0xff] }
 0x744   : > { %30531 = vrcp.f32 %v10494_v30  ;;  %v10491_v51 = vpop.xlane.xlu1 %10490  ;;  %28847 = vmatprep.mubr.msk.f32.mxu1 %vm31099_vm1, %v36071_v61  ;;  %28850 = vmatprep.subr.mxu0 %v36071_v61  ;;  %v10561_v21 = vmul.f32 %v30522_v6, %v33278_v4  ;;  %v30904_v6 = vld [vmem:[%s31204_s26 + $0x38] sm:$0xff]  ;;  %v30906_v30 = vld [vmem:[%s31204_s26 + $0x48] sm:$0xff] }
 0x745   : > { %30533 = vrcp.f32 %v10491_v51  ;;  %28855 = vmatprep.subr.mxu1 %v36071_v61  ;;  %28848 = vmatmul.mubr.msk.f32.vlgmr.msra.gmra.mrb[244].mxu1 %vm4000_vm3, %v10562_v28  ;;  %v30907_v28 = vld [vmem:[%s31204_s26 + $0x50] sm:$0xff]  ;;  %v30908_v51 = vld [vmem:[%s31204_s26 + $0x58] sm:$0xff] }
 0x746   : > { %v30524_v8 = vpop.eup %30523  ;;  %28843 = vmatmul.mubr.msk.f32.vlgmr.msra.gmra.mrb[210].mxu0 %vm4000_vm3, %v10561_v21  ;;  %28856 = vmatpush3.msra.mxu1 %v36117_v62  ;;  %v30909_v21 = vld [vmem:[%s31204_s26 + $0x60] sm:$0xff]  ;;  %v30911_v62 = vld [vmem:[%s31204_s26 + $0x70] sm:$0xff] }
 0x747   : > { %v30526_v48 = vpop.eup %30525  ;;  %28851 = vmatpush3.msra.mxu0 %v36118_v19  ;;  %v10500_v55 = vpop.xlane.xlu0 %10499  ;;  %28852 = vmatprep.mubr.msk.f32.mxu0 %vm31099_vm1, %v36071_v61  ;;  %v10564_v37 = vmul.f32 %v30524_v8, %v33286_v22  ;;  %v30910_v8 = vld [vmem:[%s31204_s26 + $0x68] sm:$0xff]  ;;  %v30913_v19 = vld [vmem:[%s31204_s26 + $0x80] sm:$0xff] }
 0x748   : > { %30535 = vrcp.f32 %v10500_v55  ;;  %v10497_v4 = vpop.xlane.xlu1 %10496  ;;  %28857 = vmatprep.mubr.msk.f32.mxu1 %vm31099_vm1, %v36071_v61  ;;  %28860 = vmatprep.subr.mxu0 %v36071_v61  ;;  %v10563_v41 = vmul.f32 %v30526_v48, %v33288_v24  ;;  %v30912_v48 = vld [vmem:[%s31204_s26 + $0x78] sm:$0xff]  ;;  %v30914_v55 = vld [vmem:[%s31204_s26 + $0x88] sm:$0xff] }
 0x749   : > { %30537 = vrcp.f32 %v10497_v4  ;;  %28865 = vmatprep.subr.mxu1 %v36071_v61  ;;  %28858 = vmatmul.mubr.msk.f32.vlgmr.msra.gmra.mrb[246].mxu1 %vm4000_vm3, %v10564_v37  ;;  %v30915_v37 = vld [vmem:[%s31204_s26 + $0x90] sm:$0xff]  ;;  %v30916_v4 = vld [vmem:[%s31204_s26 + $0x98] sm:$0xff] }
 0x74a   : > { %v30528_v57 = vpop.eup %30527  ;;  %28853 = vmatmul.mubr.msk.f32.vlgmr.msra.gmra.mrb[212].mxu0 %vm4000_vm3, %v10563_v41  ;;  %28866 = vmatpush3.msra.mxu1 %v36119_v39  ;;  %v30917_v41 = vld [vmem:[%s31204_s26 + $0xa0] sm:$0xff]  ;;  %v30919_v39 = vld [vmem:[%s31204_s26 + $0xb0] sm:$0xff] }
 0x74b   : > { %v30530_v22 = vpop.eup %30529  ;;  %28861 = vmatpush3.msra.mxu0 %v36120_v40  ;;  %v10506_v12 = vpop.xlane.xlu0 %10505  ;;  %28862 = vmatprep.mubr.msk.f32.mxu0 %vm31099_vm1, %v36071_v61  ;;  %v10566_v63 = vmul.f32 %v30528_v57, %v33296_v56  ;;  %v30918_v57 = vld [vmem:[%s31204_s26 + $0xa8] sm:$0xff]  ;;  %v30921_v40 = vld [vmem:[%s31204_s26 + $0xc0] sm:$0xff] }
 0x74c   : > { %30539 = vrcp.f32 %v10506_v12  ;;  %v10503_v24 = vpop.xlane.xlu1 %10502  ;;  %28867 = vmatprep.mubr.msk.f32.mxu1 %vm31099_vm1, %v36071_v61  ;;  %28870 = vmatprep.subr.mxu0 %v36071_v61  ;;  %v10565_v10 = vmul.f32 %v30530_v22, %v33298_v27  ;;  %v30920_v22 = vld [vmem:[%s31204_s26 + $0xb8] sm:$0xff]  ;;  %v30922_v12 = vld [vmem:[%s31204_s26 + $0xc8] sm:$0xff] }
 0x74d   : > { %30541 = vrcp.f32 %v10503_v24  ;;  %28875 = vmatprep.subr.mxu1 %v36071_v61  ;;  %28868 = vmatmul.mubr.msk.f32.vlgmr.msra.gmra.mrb[248].mxu1 %vm4000_vm3, %v10566_v63  ;;  %v30923_v63 = vld [vmem:[%s31204_s26 + $0xd0] sm:$0xff]  ;;  %v30924_v24 = vld [vmem:[%s31204_s26 + $0xd8] sm:$0xff] }
 0x74e   : > { %v30532_v7 = vpop.eup %30531  ;;  %28863 = vmatmul.mubr.msk.f32.vlgmr.msra.gmra.mrb[214].mxu0 %vm4000_vm3, %v10565_v10  ;;  %28876 = vmatpush3.msra.mxu1 %v36121_v59  ;;  %v30925_v10 = vld [vmem:[%s31204_s26 + $0xe0] sm:$0xff] }
 0x74f   : > { %v30534_v56 = vpop.eup %30533  ;;  %28871 = vmatpush3.msra.mxu0 %v36122_v13  ;;  %28872 = vmatprep.mubr.msk.f32.mxu0 %vm31099_vm1, %v36071_v61  ;;  %v10568_v45 = vmul.f32 %v30532_v7, %v33305_v11  ;;  %v36124_v11 = vld [vmem:[#allocation27_spill] sm:$0xff] }
 0x750   : > { %v10509_v42 = vpop.xlane.xlu1 %10508  ;;  %28877 = vmatprep.mubr.msk.f32.mxu1 %vm31099_vm1, %v36071_v61  ;;  %28880 = vmatprep.subr.mxu0 %v36071_v61  ;;  %v10567_v27 = vmul.f32 %v30534_v56, %v33307_v25  ;;  %v30926_v7 = vld [vmem:[%s31204_s26 + $0xe8] sm:$0xff]  ;;  %v30927_v56 = vld [vmem:[%s31204_s26 + $0xf0] sm:$0xff] }
 0x751   : > { %30543 = vrcp.f32 %v10509_v42  ;;  %28885 = vmatprep.subr.mxu1 %v36071_v61  ;;  %28878 = vmatmul.mubr.msk.f32.vlgmr.msra.gmra.mrb[250].mxu1 %vm4000_vm3, %v10568_v45  ;;  %v26347_v45 = vld [vmem:[%s36050_s5 + $0x50] sm:$0xff]  ;;  %v26348_v42 = vld [vmem:[%s36050_s5 + $0x58] sm:$0xff] }
 0x752   : > { %v30536_v15 = vpop.eup %30535  ;;  %28873 = vmatmul.mubr.msk.f32.vlgmr.msra.gmra.mrb[216].mxu0 %vm4000_vm3, %v10567_v27  ;;  %28886 = vmatpush3.msra.mxu1 %v36123_v20  ;;  %v26383_v27 = vld [vmem:[%s36052_s7 + $0x40] sm:$0xff]  ;;  %v26385_v20 = vld [vmem:[%s36052_s7 + $0x50] sm:$0xff] }
 0x753   : > { %v30538_v53 = vpop.eup %30537  ;;  %28881 = vmatpush3.msra.mxu0 %v36124_v11  ;;  %28882 = vmatprep.mubr.msk.f32.mxu0 %vm31099_vm1, %v36071_v61  ;;  %v10570_v52 = vmul.f32 %v30536_v15, %v33313_v46  ;;  %v26384_v15 = vld [vmem:[%s36052_s7 + $0x48] sm:$0xff] }
 0x754   : > { %28887 = vmatprep.mubr.msk.f32.mxu1 %vm31099_vm1, %v36071_v61  ;;  %28890 = vmatprep.subr.mxu0 %v36071_v61  ;;  %v10569_v25 = vmul.f32 %v30538_v53, %v33315_v43  ;;  %v30928_v53 = vld [vmem:[%s31204_s26 + $0xf8] sm:$0xff]  ;;  %v30109_v11 = vpack.c.bf16 %v26384_v15, %v26383_v27  ;;  %v30945_v15 = vld [vmem:[%s31350_s16 + $0x80] sm:$0xff] }
 0x755   : > { %28895 = vmatprep.subr.mxu1 %v36071_v61  ;;  %28888 = vmatmul.mubr.msk.f32.vlgmr.msra.gmra.mrb[252].mxu1 %vm4000_vm3, %v10570_v52  ;;  %v26386_v52 = vld [vmem:[%s36052_s7 + $0x58] sm:$0xff] }
 0x756   : > { %v30540_v3 = vpop.eup %30539  ;;  %28883 = vmatmul.mubr.msk.f32.vlgmr.msra.gmra.mrb[218].mxu0 %vm4000_vm3, %v10569_v25  ;;  %28896 = vmatpush3.msra.mxu1 %v36125_v58  ;;  %v30113_v58 = vpack.c.bf16 %v26386_v52, %v26385_v20  ;;  %v30946_v52 = vld [vmem:[%s31350_s16 + $0x88] sm:$0xff] }
 0x757   : > { %v30542_v26 = vpop.eup %30541  ;;  %28891 = vmatpush3.msra.mxu0 %v36126_v60  ;;  %28892 = vmatprep.mubr.msk.f32.mxu0 %vm31099_vm1, %v36071_v61  ;;  %v10572_v46 = vmul.f32 %v30540_v3, %v33321_v1  ;;  %v30105_v3 = vpack.c.bf16 %v26348_v42, %v26347_v45  ;;  %v30944_v42 = vld [vmem:[%s31350_s16 + $0x78] sm:$0xff] }
 0x758   : > { %28897 = vmatprep.mubr.msk.f32.mxu1 %vm31099_vm1, %v36071_v61  ;;  %28900 = vmatprep.subr.mxu0 %v36071_v61  ;;  %v10571_v43 = vmul.f32 %v30542_v26, %v33323_v23  ;;  %v26273_v23 = vld [vmem:[%s36054_s9 + $0x10] sm:$0xff]  ;;  %v30929_v26 = vld [vmem:[%s31350_s16] sm:$0xff] }
 0x759   : > { %28898 = vmatmul.mubr.msk.f32.vlgmr.msra.gmra.mrb[254].mxu1 %vm4000_vm3, %v10572_v46  ;;  %v30089_v34 = vpack.c.bf16 %v26274_v0, %v26273_v23 }
 0x75a   : > { %28893 = vmatmul.mubr.msk.f32.vlgmr.msra.gmra.mrb[220].mxu0 %vm4000_vm3, %v10571_v43  ;;  %28965 = vmatprep.mubr.msk.f32.mxu1 %vm549_vm0, %v30897_v2 }
 0x75b   : > { %v30544_v47 = vpop.eup %30543  ;;  %28901 = vmatpush3.msra.mxu0 %v36127_v16  ;;  %28902 = vmatprep.mubr.msk.f32.mxu0 %vm31099_vm1, %v36071_v61 }
 0x75c   : > { %v10573_v1 = vmul.f32 %v30544_v47, %v33329_v14  ;;  %30090 = vmatprep.subr.bf16.mxu0 %v30089_v34  ;;  %v26308_v14 = vld [vmem:[%s36048_s3 + $0x48] sm:$0xff] }
 0x75d   : > { %v30093_v36 = vpack.c.bf16 %v26308_v14, %v26307_v18  ;;  %v30930_v18 = vld [vmem:[%s31350_s16 + $0x8] sm:$0xff] }
 0x75e   : > { %28903 = vmatmul.mubr.msk.f32.vlgmr.msra.gmra.mrb[222].mxu0 %vm4000_vm3, %v10573_v1 }
 0x75f   : > { %30092 = vmatpush3.bf16.msra.mxu0 %v30089_v34  ;;  %30094 = vmatprep.subr.bf16.mxu1 %v30093_v36 }
 0x760   : > { %30102 = vmatprep.subr.bf16.mxu0 %v33535_v33  ;;  %30096 = vmatpush3.bf16.msra.mxu1 %v30093_v36 }
 0x761   : > { %30098 = vmatprep.subr.bf16.mxu1 %v30097_v9 }
 0x764   : > { %30100 = vmatpush3.bf16.msra.mxu1 %v30097_v9  ;;  %v30933_v9 = vld [vmem:[%s31350_s16 + $0x20] sm:$0xff] }
 0x765   : > { %30110 = vmatprep.subr.bf16.mxu1 %v30109_v11 }
 0x767   : > { %28966 = vmatmul.mubr.msk.f32.vlgmr.msra.gmra.mrb[0].mxu1 %vm549_vm0, %v30898_v54 }
 0x768   : > { %28968 = vmatprep.mubr.msk.f32.mxu1 %vm549_vm0, %v30899_v5  ;;  %30112 = vmatpush3.bf16.msra.mxu1 %v30109_v11 }
 0x769   : > { %30114 = vmatprep.subr.bf16.mxu1 %v30113_v58 }
 0x76b   : > { %28969 = vmatmul.mubr.msk.f32.gmra.mrb[2].mxu1 %vm549_vm0, %v30900_v17 }
 0x76c   : > { %28971 = vmatprep.mubr.msk.f32.mxu1 %vm549_vm0, %v30901_v49  ;;  %30116 = vmatpush3.bf16.msra.mxu1 %v30113_v58  ;;  %v30934_v49 = vld [vmem:[%s31350_s16 + $0x28] sm:$0xff] }
 0x76d   : > { %29130 = vmatprep.subr.mxu1 %v36071_v61 }
 0x76f   : > { %28972 = vmatmul.mubr.msk.f32.gmra.mrb[4].mxu1 %vm549_vm0, %v30902_v38 }
 0x770   : > { %28974 = vmatprep.mubr.msk.f32.mxu1 %vm549_vm0, %v30903_v29  ;;  %v30935_v29 = vld [vmem:[%s31350_s16 + $0x30] sm:$0xff] }
 0x773   : > { %28975 = vmatmul.mubr.msk.f32.gmra.mrb[6].mxu1 %vm549_vm0, %v30904_v6 }
 0x774   : > { %28977 = vmatprep.mubr.msk.f32.mxu1 %vm549_vm0, %v30905_v50 }
 0x777   : > { %28978 = vmatmul.mubr.msk.f32.gmra.mrb[8].mxu1 %vm549_vm0, %v30906_v30 }
 0x778   : > { %28980 = vmatprep.mubr.msk.f32.mxu1 %vm549_vm0, %v30907_v28  ;;  %v30936_v28 = vld [vmem:[%s31350_s16 + $0x38] sm:$0xff] }
 0x77b   : > { %28981 = vmatmul.mubr.msk.f32.gmra.mrb[10].mxu1 %vm549_vm0, %v30908_v51 }
 0x77c   : > { %28983 = vmatprep.mubr.msk.f32.mxu1 %vm549_vm0, %v30909_v21  ;;  %v30937_v21 = vld [vmem:[%s31350_s16 + $0x40] sm:$0xff] }
 0x77f   : > { %28984 = vmatmul.mubr.msk.f32.gmra.mrb[12].mxu1 %vm549_vm0, %v30910_v8 }
 0x780   : > { %28986 = vmatprep.mubr.msk.f32.mxu1 %vm549_vm0, %v30911_v62 }
 0x783   : > { %28987 = vmatmul.mubr.msk.f32.gmra.mrb[14].mxu1 %vm549_vm0, %v30912_v48 }
 0x784   : > { %28989 = vmatprep.mubr.msk.f32.mxu1 %vm549_vm0, %v30913_v19  ;;  %v30938_v19 = vld [vmem:[%s31350_s16 + $0x48] sm:$0xff] }
 0x787   : > { %28990 = vmatmul.mubr.msk.f32.gmra.mrb[16].mxu1 %vm549_vm0, %v30914_v55 }
 0x788   : > { %28992 = vmatprep.mubr.msk.f32.mxu1 %vm549_vm0, %v30915_v37  ;;  %v30939_v37 = vld [vmem:[%s31350_s16 + $0x50] sm:$0xff] }
 0x78b   : > { %28993 = vmatmul.mubr.msk.f32.gmra.mrb[18].mxu1 %vm549_vm0, %v30916_v4 }
 0x78c   : > { %28995 = vmatprep.mubr.msk.f32.mxu1 %vm549_vm0, %v30917_v41 }
 0x78f   : > { %28996 = vmatmul.mubr.msk.f32.gmra.mrb[20].mxu1 %vm549_vm0, %v30918_v57 }
 0x790   : > { %28998 = vmatprep.mubr.msk.f32.mxu1 %vm549_vm0, %v30919_v39  ;;  %v30940_v39 = vld [vmem:[%s31350_s16 + $0x58] sm:$0xff] }
 0x793   : > { %28999 = vmatmul.mubr.msk.f32.gmra.mrb[22].mxu1 %vm549_vm0, %v30920_v22 }
 0x794   : > { %29001 = vmatprep.mubr.msk.f32.mxu1 %vm549_vm0, %v30921_v40  ;;  %v30941_v40 = vld [vmem:[%s31350_s16 + $0x60] sm:$0xff] }
 0x797   : > { %29002 = vmatmul.mubr.msk.f32.gmra.mrb[24].mxu1 %vm549_vm0, %v30922_v12 }
 0x798   : > { %29004 = vmatprep.mubr.msk.f32.mxu1 %vm549_vm0, %v30923_v63 }
 0x79b   : > { %29005 = vmatmul.mubr.msk.f32.gmra.mrb[26].mxu1 %vm549_vm0, %v30924_v24 }
 0x79c   : > { %29007 = vmatprep.mubr.msk.f32.mxu1 %vm549_vm0, %v30925_v10  ;;  %v30942_v10 = vld [vmem:[%s31350_s16 + $0x68] sm:$0xff] }
 0x79f   : > { %29008 = vmatmul.mubr.msk.f32.gmra.mrb[28].mxu1 %vm549_vm0, %v30926_v7 }
 0x7a0   : > { %29010 = vmatprep.mubr.msk.f32.mxu1 %vm549_vm0, %v30927_v56 }
 0x7a3   : > { %29011 = vmatmul.mubr.msk.f32.gmra.mrb[30].mxu1 %vm549_vm0, %v30928_v53 }
 0x7a4   : > { %29077 = vmatprep.mubr.msk.f32.mxu1 %vm549_vm0, %v30929_v26 }
 0x7a7   : > { %29078 = vmatmul.mubr.msk.f32.vlgmr.msra.gmra.mrb[32].mxu1 %vm549_vm0, %v30930_v18 }
 0x7a8   : > { %29080 = vmatprep.mubr.msk.f32.mxu1 %vm549_vm0, %v30931_v44 }
 0x7ab   : > { %29081 = vmatmul.mubr.msk.f32.gmra.mrb[34].mxu1 %vm549_vm0, %v30932_v35 }
 0x7ac   : > { %29083 = vmatprep.mubr.msk.f32.mxu1 %vm549_vm0, %v30933_v9 }
 0x7af   : > { %29084 = vmatmul.mubr.msk.f32.gmra.mrb[36].mxu1 %vm549_vm0, %v30934_v49 }
 0x7b0   : > { %29086 = vmatprep.mubr.msk.f32.mxu1 %vm549_vm0, %v30935_v29 }
 0x7b3   : > { %29087 = vmatmul.mubr.msk.f32.gmra.mrb[38].mxu1 %vm549_vm0, %v30936_v28  ;;  %v30960_v28 = vld [vmem:[%s31210_s29 + $0x8] sm:$0xff] }
 0x7b4   : > { %29089 = vmatprep.mubr.msk.f32.mxu1 %vm549_vm0, %v30937_v21  ;;  %v30962_v21 = vld [vmem:[%s31210_s29 + $0x10] sm:$0xff] }
 0x7b7   : > { %29090 = vmatmul.mubr.msk.f32.gmra.mrb[40].mxu1 %vm549_vm0, %v30938_v19  ;;  %v30966_v19 = vld [vmem:[%s31210_s29 + $0x28] sm:$0xff] }
 0x7b8   : > { %29092 = vmatprep.mubr.msk.f32.mxu1 %vm549_vm0, %v30939_v37  ;;  %v30968_v37 = vld [vmem:[%s31210_s29 + $0x38] sm:$0xff] }
 0x7bb   : > { %29093 = vmatmul.mubr.msk.f32.gmra.mrb[42].mxu1 %vm549_vm0, %v30940_v39  ;;  %v30972_v39 = vld [vmem:[%s31210_s29 + $0x58] sm:$0xff] }
 0x7bc   : > { %29095 = vmatprep.mubr.msk.f32.mxu1 %vm549_vm0, %v30941_v40  ;;  %v30974_v40 = vld [vmem:[%s31210_s29 + $0x68] sm:$0xff] }
 0x7bf   : > { %29096 = vmatmul.mubr.msk.f32.gmra.mrb[44].mxu1 %vm549_vm0, %v30942_v10  ;;  %v30978_v10 = vld [vmem:[%s31210_s29 + $0x88] sm:$0xff] }
 0x7f0   : > { %v10643_v59 = vpop.f32.mrb[224].mxu1 }
 0x7f1   : > { %v28749_v13 = vpop.f32.mrb[225].mxu1  ;;  %28909 = vmatprep.mubr.msk.f32.mxu0 %vm1567_vm2, %v10643_v59  ;;  %v30943_v59 = vld [vmem:[%s31350_s16 + $0x70] sm:$0xff] }
 0x7f2   : > { %29098 = vmatprep.mubr.msk.f32.mxu1 %vm549_vm0, %v30943_v59  ;;  %v30980_v59 = vld [vmem:[%s31210_s29 + $0x98] sm:$0xff] }
 0x7f3   : > { %29099 = vmatmul.mubr.msk.f32.gmra.mrb[46].mxu1 %vm549_vm0, %v30944_v42  ;;  %v30984_v42 = vld [vmem:[%s31210_s29 + $0xb8] sm:$0xff] }
 0x7f4   : > { %v10789_v25 = vpop.f32.mrb[226].mxu1  ;;  %29101 = vmatprep.mubr.msk.f32.mxu1 %vm549_vm0, %v30945_v15  ;;  %v30986_v15 = vld [vmem:[%s31210_s29 + $0xc8] sm:$0xff] }
 0x7f5   : > { %v10716_v60 = vpop.f32.mrb[192].mxu0  ;;  %v28759_v46 = vpop.f32.mrb[227].mxu1 }
 0x7f6   : > { %v28754_v43 = vpop.f32.mrb[193].mxu0  ;;  %28910 = vmatmul.mubr.msk.f32.vlgmr.msra.gmra.mrb[112].mxu0 %vm1567_vm2, %v10716_v60  ;;  %v30948_v46 = vld [vmem:[%s31350_s16 + $0x98] sm:$0xff] }
 0x7f7   : > { %28912 = vmatprep.mubr.msk.f32.mxu0 %vm1567_vm2, %v10789_v25  ;;  %30104 = vmatpush3.bf16.msra.mxu0 %v33535_v33 }
 0x7f8   : > { %v10935_v2 = vpop.f32.mrb[228].mxu1  ;;  %30106 = vmatprep.subr.bf16.mxu0 %v30105_v3  ;;  %29102 = vmatmul.mubr.msk.f32.gmra.mrb[48].mxu1 %vm549_vm0, %v30946_v52  ;;  %v30990_v52 = vld [vmem:[%s31210_s29 + $0xe8] sm:$0xff] }
 0x7f9   : > { %v10862_v47 = vpop.f32.mrb[194].mxu0  ;;  %v28769_v16 = vpop.f32.mrb[229].mxu1 }
 0x7fa   : > { %v28764_v1 = vpop.f32.mrb[195].mxu0  ;;  %28913 = vmatmul.mubr.msk.f32.gmra.mrb[114].mxu0 %vm1567_vm2, %v10862_v47 }
 0x7fb   : > { %28915 = vmatprep.mubr.msk.f32.mxu0 %vm1567_vm2, %v10935_v2  ;;  %30108 = vmatpush3.bf16.msra.mxu0 %v30105_v3  ;;  %v30947_v3 = vld [vmem:[%s31350_s16 + $0x90] sm:$0xff]  ;;  %v30949_v2 = vld [vmem:[%s31350_s16 + $0xa0] sm:$0xff] }
 0x7fc   : > { %v11081_v23 = vpop.f32.mrb[230].mxu1  ;;  %29125 = vmatprep.subr.mxu0 %v36071_v61  ;;  %29104 = vmatprep.mubr.msk.f32.mxu1 %vm549_vm0, %v30947_v3  ;;  %v30992_v3 = vld [vmem:[%s31210_s29 + $0xf8] sm:$0xff] }
 0x7fd   : > { %v11008_v0 = vpop.f32.mrb[196].mxu0  ;;  %v28779_v34 = vpop.f32.mrb[231].mxu1  ;;  %29105 = vmatmul.mubr.msk.f32.gmra.mrb[50].mxu1 %vm549_vm0, %v30948_v46 }
 0x7fe   : > { %v28774_v14 = vpop.f32.mrb[197].mxu0  ;;  %28916 = vmatmul.mubr.msk.f32.gmra.mrb[116].mxu0 %vm1567_vm2, %v11008_v0  ;;  %29107 = vmatprep.mubr.msk.f32.mxu1 %vm549_vm0, %v30949_v2  ;;  %v30951_v34 = vld [vmem:[%s31350_s16 + $0xb0] sm:$0xff] }
 0x7ff   : > { %28918 = vmatprep.mubr.msk.f32.mxu0 %vm1567_vm2, %v11081_v23  ;;  %v30950_v23 = vld [vmem:[%s31350_s16 + $0xa8] sm:$0xff] }
 0x800   : > { %v11227_v36 = vpop.f32.mrb[232].mxu1 }
 0x801   : > { %v11154_v31 = vpop.f32.mrb[198].mxu0  ;;  %v28789_v33 = vpop.f32.mrb[233].mxu1  ;;  %29108 = vmatmul.mubr.msk.f32.gmra.mrb[52].mxu1 %vm549_vm0, %v30950_v23 }
 0x802   : > { %v28784_v32 = vpop.f32.mrb[199].mxu0  ;;  %28919 = vmatmul.mubr.msk.f32.gmra.mrb[118].mxu0 %vm1567_vm2, %v11154_v31  ;;  %29110 = vmatprep.mubr.msk.f32.mxu1 %vm549_vm0, %v30951_v34  ;;  %v30953_v33 = vld [vmem:[%s31350_s16 + $0xc0] sm:$0xff] }
 0x803   : > { %28921 = vmatprep.mubr.msk.f32.mxu0 %vm1567_vm2, %v11227_v36  ;;  %v30952_v36 = vld [vmem:[%s31350_s16 + $0xb8] sm:$0xff] }
 0x804   : > { %v11373_v54 = vpop.f32.mrb[234].mxu1 }
 0x805   : > { %v11300_v5 = vpop.f32.mrb[200].mxu0  ;;  %v28799_v17 = vpop.f32.mrb[235].mxu1  ;;  %29111 = vmatmul.mubr.msk.f32.gmra.mrb[54].mxu1 %vm549_vm0, %v30952_v36 }
 0x806   : > { %v28794_v38 = vpop.f32.mrb[201].mxu0  ;;  %28922 = vmatmul.mubr.msk.f32.gmra.mrb[120].mxu0 %vm1567_vm2, %v11300_v5  ;;  %29113 = vmatprep.mubr.msk.f32.mxu1 %vm549_vm0, %v30953_v33  ;;  %v30955_v17 = vld [vmem:[%s31350_s16 + $0xd0] sm:$0xff] }
 0x807   : > { %28924 = vmatprep.mubr.msk.f32.mxu0 %vm1567_vm2, %v11373_v54  ;;  %v30954_v54 = vld [vmem:[%s31350_s16 + $0xc8] sm:$0xff]  ;;  %v30956_v38 = vld [vmem:[%s31350_s16 + $0xd8] sm:$0xff] }
 0x808   : > { %v11519_v6 = vpop.f32.mrb[236].mxu1 }
 0x809   : > { %v11446_v50 = vpop.f32.mrb[202].mxu0  ;;  %v28809_v30 = vpop.f32.mrb[237].mxu1  ;;  %29114 = vmatmul.mubr.msk.f32.gmra.mrb[56].mxu1 %vm549_vm0, %v30954_v54 }
 0x80a   : > { %v28804_v51 = vpop.f32.mrb[203].mxu0  ;;  %28925 = vmatmul.mubr.msk.f32.gmra.mrb[122].mxu0 %vm1567_vm2, %v11446_v50  ;;  %29116 = vmatprep.mubr.msk.f32.mxu1 %vm549_vm0, %v30955_v17  ;;  %v30958_v50 = vld [vmem:[%s31210_s29] sm:$0xff]  ;;  %v30959_v30 = vld [vmem:[%s31350_s16 + $0xe8] sm:$0xff] }
 0x80b   : > { %28927 = vmatprep.mubr.msk.f32.mxu0 %vm1567_vm2, %v11519_v6  ;;  %v30957_v6 = vld [vmem:[%s31350_s16 + $0xe0] sm:$0xff]  ;;  %v30961_v51 = vld [vmem:[%s31350_s16 + $0xf0] sm:$0xff] }
 0x80c   : > { %v11665_v8 = vpop.f32.mrb[238].mxu1 }
 0x80d   : > { %v11592_v62 = vpop.f32.mrb[204].mxu0  ;;  %v28819_v48 = vpop.f32.mrb[239].mxu1  ;;  %29117 = vmatmul.mubr.msk.f32.gmra.mrb[58].mxu1 %vm549_vm0, %v30956_v38 }
 0x80e   : > { %v28814_v55 = vpop.f32.mrb[205].mxu0  ;;  %28928 = vmatmul.mubr.msk.f32.gmra.mrb[124].mxu0 %vm1567_vm2, %v11592_v62  ;;  %29119 = vmatprep.mubr.msk.f32.mxu1 %vm549_vm0, %v30957_v6  ;;  %v30964_v62 = vld [vmem:[%s31210_s29 + $0x18] sm:$0xff]  ;;  %v30965_v48 = vld [vmem:[%s31210_s29 + $0x20] sm:$0xff] }
 0x80f   : > { %28930 = vmatprep.mubr.msk.f32.mxu0 %vm1567_vm2, %v11665_v8  ;;  %v30963_v8 = vld [vmem:[%s31350_s16 + $0xf8] sm:$0xff]  ;;  %v30967_v55 = vld [vmem:[%s31210_s29 + $0x30] sm:$0xff] }
 0x810   : > { %v11811_v4 = vpop.f32.mrb[240].mxu1 }
 0x811   : > { %v11738_v41 = vpop.f32.mrb[206].mxu0  ;;  %v28829_v57 = vpop.f32.mrb[241].mxu1  ;;  %29120 = vmatmul.mubr.msk.f32.gmra.mrb[60].mxu1 %vm549_vm0, %v30959_v30 }
 0x812   : > { %v28824_v22 = vpop.f32.mrb[207].mxu0  ;;  %28931 = vmatmul.mubr.msk.f32.gmra.mrb[224].mxu0 %vm1567_vm2, %v11738_v41  ;;  %29122 = vmatprep.mubr.msk.f32.mxu1 %vm549_vm0, %v30961_v51  ;;  %v30970_v41 = vld [vmem:[%s31210_s29 + $0x48] sm:$0xff]  ;;  %v30971_v57 = vld [vmem:[%s31210_s29 + $0x50] sm:$0xff] }
 0x813   : > { %28933 = vmatprep.mubr.msk.f32.mxu0 %vm1567_vm2, %v11811_v4  ;;  %v30969_v4 = vld [vmem:[%s31210_s29 + $0x40] sm:$0xff] }
 0x814   : > { %v11957_v12 = vpop.f32.mrb[242].mxu1  ;;  %v30973_v22 = vld [vmem:[%s31210_s29 + $0x60] sm:$0xff] }
 0x815   : > { %v11884_v63 = vpop.f32.mrb[208].mxu0  ;;  %v28839_v24 = vpop.f32.mrb[243].mxu1  ;;  %29123 = vmatmul.mubr.msk.f32.gmra.mrb[62].mxu1 %vm549_vm0, %v30963_v8 }
 0x816   : > { %v28834_v7 = vpop.f32.mrb[209].mxu0  ;;  %28934 = vmatmul.mubr.msk.f32.gmra.mrb[226].mxu0 %vm1567_vm2, %v11884_v63  ;;  %29132 = vmatprep.mubr.msk.f32.mxu1 %vm31099_vm1, %v36071_v61  ;;  %v30976_v63 = vld [vmem:[%s31210_s29 + $0x78] sm:$0xff]  ;;  %v30977_v24 = vld [vmem:[%s31210_s29 + $0x80] sm:$0xff] }
 0x817   : > { %28936 = vmatprep.mubr.msk.f32.mxu0 %vm1567_vm2, %v11957_v12  ;;  %v30975_v12 = vld [vmem:[%s31210_s29 + $0x70] sm:$0xff] }
 0x818   : > { %v12103_v56 = vpop.f32.mrb[244].mxu1  ;;  %v30979_v7 = vld [vmem:[%s31210_s29 + $0x90] sm:$0xff] }
 0x819   : > { %v12030_v13 = vpop.f32.mrb[210].mxu0  ;;  %v28849_v45 = vpop.f32.mrb[245].mxu1 }
 0x81a   : > { %v28844_v27 = vpop.f32.mrb[211].mxu0  ;;  %28937 = vmatmul.mubr.msk.f32.gmra.mrb[228].mxu0 %vm1567_vm2, %v12030_v13  ;;  %v30982_v13 = vld [vmem:[%s31210_s29 + $0xa8] sm:$0xff]  ;;  %v30983_v45 = vld [vmem:[%s31210_s29 + $0xb0] sm:$0xff] }
 0x81b   : > { %28939 = vmatprep.mubr.msk.f32.mxu0 %vm1567_vm2, %v12103_v56  ;;  %v30981_v56 = vld [vmem:[%s31210_s29 + $0xa0] sm:$0xff] }
 0x81c   : > { %v12249_v20 = vpop.f32.mrb[246].mxu1  ;;  %v30985_v27 = vld [vmem:[%s31210_s29 + $0xc0] sm:$0xff] }
 0x81d   : > { %v12176_v53 = vpop.f32.mrb[212].mxu0  ;;  %v28859_v11 = vpop.f32.mrb[247].mxu1 }
 0x81e   : > { %v28854_v25 = vpop.f32.mrb[213].mxu0  ;;  %28940 = vmatmul.mubr.msk.f32.gmra.mrb[230].mxu0 %vm1567_vm2, %v12176_v53  ;;  %v30988_v53 = vld [vmem:[%s31210_s29 + $0xd8] sm:$0xff]  ;;  %v30989_v11 = vld [vmem:[%s31210_s29 + $0xe0] sm:$0xff] }
 0x81f   : > { %28942 = vmatprep.mubr.msk.f32.mxu0 %vm1567_vm2, %v12249_v20  ;;  %v30987_v20 = vld [vmem:[%s31210_s29 + $0xd0] sm:$0xff] }
 0x820   : > { %v12395_v58 = vpop.f32.mrb[248].mxu1  ;;  %v30991_v25 = vld [vmem:[%s31210_s29 + $0xf0] sm:$0xff] }
 0x821   : > { %v12322_v26 = vpop.f32.mrb[214].mxu0  ;;  %v28869_v60 = vpop.f32.mrb[249].mxu1 }
 0x822   : > { %v28864_v43 = vpop.f32.mrb[215].mxu0  ;;  %28943 = vmatmul.mubr.msk.f32.gmra.mrb[232].mxu0 %vm1567_vm2, %v12322_v26 }
 0x823   : > { %28945 = vmatprep.mubr.msk.f32.mxu0 %vm1567_vm2, %v12395_v58 }
 0x824   : > { %v12541_v47 = vpop.f32.mrb[250].mxu1 }
 0x825   : > { %v12468_v16 = vpop.f32.mrb[216].mxu0  ;;  %v28879_v1 = vpop.f32.mrb[251].mxu1 }
 0x826   : > { %v28874_v0 = vpop.f32.mrb[217].mxu0  ;;  %28946 = vmatmul.mubr.msk.f32.gmra.mrb[234].mxu0 %vm1567_vm2, %v12468_v16 }
 0x827   : > { %28948 = vmatprep.mubr.msk.f32.mxu0 %vm1567_vm2, %v12541_v47 }
 0x828   : > { %v12687_v18 = vpop.f32.mrb[252].mxu1 }
 0x829   : > { %v12614_v14 = vpop.f32.mrb[218].mxu0  ;;  %v28889_v44 = vpop.f32.mrb[253].mxu1 }
 0x82a   : > { %v28884_v31 = vpop.f32.mrb[219].mxu0  ;;  %28949 = vmatmul.mubr.msk.f32.gmra.mrb[236].mxu0 %vm1567_vm2, %v12614_v14 }
 0x82b   : > { %28951 = vmatprep.mubr.msk.f32.mxu0 %vm1567_vm2, %v12687_v18 }
 0x82c   : > { %v12833_v35 = vpop.f32.mrb[254].mxu1 }
 0x82d   : > { %v12760_v32 = vpop.f32.mrb[220].mxu0  ;;  %v28899_v9 = vpop.f32.mrb[255].mxu1 }
 0x82e   : > { %v28894_v5 = vpop.f32.mrb[221].mxu0  ;;  %28952 = vmatmul.mubr.msk.f32.gmra.mrb[238].mxu0 %vm1567_vm2, %v12760_v32 }
 0x82f   : > { %28954 = vmatprep.mubr.msk.f32.mxu0 %vm1567_vm2, %v12833_v35 }
 0x831   : > { %v12906_v49 = vpop.f32.mrb[222].mxu0 }
 0x832   : > { %v28904_v29 = vpop.f32.mrb[223].mxu0  ;;  %28955 = vmatmul.mubr.msk.f32.gmra.mrb[240].mxu0 %vm1567_vm2, %v12906_v49 }
 0x833   : > { %29021 = vmatprep.mubr.msk.f32.mxu0 %vm549_vm0, %v30958_v50 }
 0x836   : > { %29022 = vmatmul.mubr.msk.f32.vlgmr.msra.gmra.mrb[242].mxu0 %vm549_vm0, %v30960_v28 }
 0x837   : > { %29024 = vmatprep.mubr.msk.f32.mxu0 %vm549_vm0, %v30962_v21 }
 0x83a   : > { %29025 = vmatmul.mubr.msk.f32.gmra.mrb[244].mxu0 %vm549_vm0, %v30964_v62  ;;  %v33791_v58 = vpop.f32.mrb[0].mxu1  ;;  %v33862_v62 = vld [vmem:[%s36053_s8 + $0x2] ss:$0 sm:$0xff] }
 0x83b   : > { %29027 = vmatprep.mubr.msk.f32.mxu0 %vm549_vm0, %v30965_v48  ;;  %v33793_v26 = vpop.f32.mrb[1].mxu1 }
 0x83e   : > { %29028 = vmatmul.mubr.msk.f32.gmra.mrb[246].mxu0 %vm549_vm0, %v30966_v19  ;;  %v33795_v60 = vpop.f32.mrb[2].mxu1 }
 0x83f   : > { %29030 = vmatprep.mubr.msk.f32.mxu0 %vm549_vm0, %v30967_v55  ;;  %v33797_v46 = vpop.f32.mrb[3].mxu1 }
 0x842   : > { %29031 = vmatmul.mubr.msk.f32.gmra.mrb[248].mxu0 %vm549_vm0, %v30968_v37  ;;  %v33799_v43 = vpop.f32.mrb[4].mxu1 }
 0x843   : > { %29033 = vmatprep.mubr.msk.f32.mxu0 %vm549_vm0, %v30969_v4  ;;  %v33801_v2 = vpop.f32.mrb[5].mxu1 }
 0x846   : > { %29034 = vmatmul.mubr.msk.f32.gmra.mrb[250].mxu0 %vm549_vm0, %v30970_v41  ;;  %v33803_v47 = vpop.f32.mrb[6].mxu1 }
 0x847   : > { %29036 = vmatprep.mubr.msk.f32.mxu0 %vm549_vm0, %v30971_v57  ;;  %v33805_v16 = vpop.f32.mrb[7].mxu1 }
 0x84a   : > { %29037 = vmatmul.mubr.msk.f32.gmra.mrb[252].mxu0 %vm549_vm0, %v30972_v39  ;;  %v33807_v1 = vpop.f32.mrb[8].mxu1 }
 0x84b   : > { %29039 = vmatprep.mubr.msk.f32.mxu0 %vm549_vm0, %v30973_v22  ;;  %v33809_v23 = vpop.f32.mrb[9].mxu1 }
 0x84e   : > { %29040 = vmatmul.mubr.msk.f32.gmra.mrb[254].mxu0 %vm549_vm0, %v30974_v40  ;;  %v33811_v0 = vpop.f32.mrb[10].mxu1 }
 0x84f   : > { %29042 = vmatprep.mubr.msk.f32.mxu0 %vm549_vm0, %v30975_v12  ;;  %v33813_v34 = vpop.f32.mrb[11].mxu1 }
 0x852   : > { %29043 = vmatmul.mubr.msk.f32.gmra.mrb[0].mxu0 %vm549_vm0, %v30976_v63  ;;  %v33815_v18 = vpop.f32.mrb[12].mxu1 }
 0x853   : > { %29045 = vmatprep.mubr.msk.f32.mxu0 %vm549_vm0, %v30977_v24  ;;  %v33817_v14 = vpop.f32.mrb[13].mxu1 }
 0x856   : > { %29046 = vmatmul.mubr.msk.f32.gmra.mrb[2].mxu0 %vm549_vm0, %v30978_v10  ;;  %v33819_v44 = vpop.f32.mrb[14].mxu1 }
 0x857   : > { %29048 = vmatprep.mubr.msk.f32.mxu0 %vm549_vm0, %v30979_v7  ;;  %v33821_v36 = vpop.f32.mrb[15].mxu1 }
 0x85a   : > { %29049 = vmatmul.mubr.msk.f32.gmra.mrb[4].mxu0 %vm549_vm0, %v30980_v59  ;;  %v33823_v31 = vpop.f32.mrb[16].mxu1 }
 0x85b   : > { %29051 = vmatprep.mubr.msk.f32.mxu0 %vm549_vm0, %v30981_v56  ;;  %v33825_v33 = vpop.f32.mrb[17].mxu1 }
 0x85e   : > { %29052 = vmatmul.mubr.msk.f32.gmra.mrb[6].mxu0 %vm549_vm0, %v30982_v13  ;;  %v33827_v35 = vpop.f32.mrb[18].mxu1 }
 0x85f   : > { %29054 = vmatprep.mubr.msk.f32.mxu0 %vm549_vm0, %v30983_v45  ;;  %v33829_v32 = vpop.f32.mrb[19].mxu1 }
 0x862   : > { %29055 = vmatmul.mubr.msk.f32.gmra.mrb[8].mxu0 %vm549_vm0, %v30984_v42  ;;  %v33831_v9 = vpop.f32.mrb[20].mxu1 }
 0x863   : > { %29057 = vmatprep.mubr.msk.f32.mxu0 %vm549_vm0, %v30985_v27  ;;  %v33833_v54 = vpop.f32.mrb[21].mxu1 }
 0x866   : > { %29058 = vmatmul.mubr.msk.f32.gmra.mrb[10].mxu0 %vm549_vm0, %v30986_v15  ;;  %v33835_v5 = vpop.f32.mrb[22].mxu1 }
 0x867   : > { %29060 = vmatprep.mubr.msk.f32.mxu0 %vm549_vm0, %v30987_v20  ;;  %v33837_v17 = vpop.f32.mrb[23].mxu1 }
 0x86a   : > { %29061 = vmatmul.mubr.msk.f32.gmra.mrb[12].mxu0 %vm549_vm0, %v30988_v53  ;;  %v33839_v49 = vpop.f32.mrb[24].mxu1 }
 0x86b   : > { %29063 = vmatprep.mubr.msk.f32.mxu0 %vm549_vm0, %v30989_v11  ;;  %v33841_v38 = vpop.f32.mrb[25].mxu1 }
 0x86e   : > { %29064 = vmatmul.mubr.msk.f32.gmra.mrb[14].mxu0 %vm549_vm0, %v30990_v52  ;;  %v33843_v29 = vpop.f32.mrb[26].mxu1 }
 0x86f   : > { %29066 = vmatprep.mubr.msk.f32.mxu0 %vm549_vm0, %v30991_v25  ;;  %v33845_v6 = vpop.f32.mrb[27].mxu1 }
 0x872   : > { %29067 = vmatmul.mubr.msk.f32.gmra.mrb[16].mxu0 %vm549_vm0, %v30992_v3  ;;  %v33847_v50 = vpop.f32.mrb[28].mxu1 }
 0x873   : > { %29127 = vmatprep.mubr.msk.f32.mxu0 %vm31099_vm1, %v36071_v61  ;;  %v33849_v30 = vpop.f32.mrb[29].mxu1 }
 0x876   : > { %v33851_v28 = vpop.f32.mrb[30].mxu1 }
 0x877   : > { %v33853_v51 = vpop.f32.mrb[31].mxu1 }
 0x87a   : > { %v33855_v21 = vpop.f32.mrb[32].mxu1 }
 0x87b   : > { %v33857_v8 = vpop.f32.mrb[33].mxu1 }
 0x87e   : > { %v29082_v48 = vpop.f32.mrb[34].mxu1 }
 0x87f   : > { %v33865_v19 = vadd.f32 %v29082_v48, %v33862_v62  ;;  %v13863_v55 = vpop.f32.mrb[35].mxu1 }
 0x880   : > { %v33868_v37 = vadd.f32 %v33862_v62, %v13863_v55 }
 0x882   : > { %v29085_v4 = vpop.f32.mrb[36].mxu1 }
 0x883   : > { %v33871_v41 = vadd.f32 %v29085_v4, %v33862_v62  ;;  %v13873_v57 = vpop.f32.mrb[37].mxu1 }
 0x884   : > { %v33874_v39 = vadd.f32 %v33862_v62, %v13873_v57 }
 0x886   : > { %v29088_v22 = vpop.f32.mrb[38].mxu1 }
 0x887   : > { %v33877_v40 = vadd.f32 %v29088_v22, %v33862_v62  ;;  %v13883_v12 = vpop.f32.mrb[39].mxu1 }
 0x888   : > { %v33880_v63 = vadd.f32 %v33862_v62, %v13883_v12 }
 0x88a   : > { %v29091_v24 = vpop.f32.mrb[40].mxu1 }
 0x88b   : > { %v33883_v10 = vadd.f32 %v29091_v24, %v33862_v62  ;;  %v13893_v7 = vpop.f32.mrb[41].mxu1 }
 0x88c   : > { %v33886_v59 = vadd.f32 %v33862_v62, %v13893_v7 }
 0x88e   : > { %v29094_v56 = vpop.f32.mrb[42].mxu1 }
 0x88f   : > { %v33889_v13 = vadd.f32 %v29094_v56, %v33862_v62  ;;  %v13903_v45 = vpop.f32.mrb[43].mxu1 }
 0x890   : > { %v33892_v42 = vadd.f32 %v33862_v62, %v13903_v45 }
 0x892   : > { %v29097_v27 = vpop.f32.mrb[44].mxu1 }
 0x893   : > { %v33895_v15 = vadd.f32 %v29097_v27, %v33862_v62  ;;  %v13913_v20 = vpop.f32.mrb[45].mxu1 }
 0x894   : > { %v33898_v53 = vadd.f32 %v33862_v62, %v13913_v20 }
 0x8c6   : > { %v29100_v11 = vpop.f32.mrb[46].mxu1 }
 0x8c7   : > { %v33901_v52 = vadd.f32 %v29100_v11, %v33862_v62  ;;  %v13923_v25 = vpop.f32.mrb[47].mxu1 }
 0x8c8   : > { %v33904_v3 = vadd.f32 %v33862_v62, %v13923_v25 }
 0x8cb   : > { %v29103_v48 = vpop.f32.mrb[48].mxu1 }
 0x8cc   : > { %v33907_v55 = vadd.f32 %v29103_v48, %v33862_v62  ;;  %v13933_v4 = vpop.f32.mrb[49].mxu1 }
 0x8cd   : > { %v33910_v57 = vadd.f32 %v33862_v62, %v13933_v4 }
 0x8ce   : > { %36128 = vst [vmem:[#allocation22_spill] sm:$0xff] %v33907_v55 }
 0x8cf   : > { %36129 = vst [vmem:[#allocation20_spill] sm:$0xff] %v33910_v57 }
 0x8d0   : > { %v29106_v22 = vpop.f32.mrb[50].mxu1 }
 0x8d1   : > { %v33913_v12 = vadd.f32 %v29106_v22, %v33862_v62  ;;  %v13943_v24 = vpop.f32.mrb[51].mxu1 }
 0x8d2   : > { %v33916_v7 = vadd.f32 %v33862_v62, %v13943_v24 }
 0x8d3   : > { %36130 = vst [vmem:[#allocation24_spill] sm:$0xff] %v33913_v12 }
 0x8d4   : > { %36131 = vst [vmem:[#allocation21_spill] sm:$0xff] %v33916_v7  ;;  %v29109_v56 = vpop.f32.mrb[52].mxu1 }
 0x8d5   : > { %v33919_v45 = vadd.f32 %v29109_v56, %v33862_v62  ;;  %v13953_v27 = vpop.f32.mrb[53].mxu1 }
 0x8d6   : > { %v33922_v20 = vadd.f32 %v33862_v62, %v13953_v27  ;;  %v33939_v27 = vld [vmem:[%s36049_s4 + $0x2] ss:$0 sm:$0xff] }
 0x8d7   : > { %36132 = vst [vmem:[#allocation26_spill] sm:$0xff] %v33919_v45  ;;  %v13361_v57 = vadd.f32 %v33795_v60, %v33939_v27 }
 0x8d8   : > { %36133 = vst [vmem:[#allocation23_spill] sm:$0xff] %v33922_v20  ;;  %v29112_v11 = vpop.f32.mrb[54].mxu1 }
 0x8d9   : > { %v33925_v25 = vadd.f32 %v29112_v11, %v33862_v62  ;;  %v13963_v48 = vpop.f32.mrb[55].mxu1 }
 0x8da   : > { %v33928_v4 = vadd.f32 %v33862_v62, %v13963_v48 }
 0x8db   : > { %36134 = vst [vmem:[#allocation28_spill] sm:$0xff] %v33925_v25 }
 0x8dc   : > { %36135 = vst [vmem:[#allocation25_spill] sm:$0xff] %v33928_v4  ;;  %v29115_v22 = vpop.f32.mrb[56].mxu1 }
 0x8dd   : > { %v33931_v24 = vadd.f32 %v29115_v22, %v33862_v62  ;;  %v13973_v7 = vpop.f32.mrb[57].mxu1  ;;  %v13351_v22 = vadd.f32 %v33791_v58, %v33939_v27 }
 0x8de   : > { %v33934_v56 = vadd.f32 %v33862_v62, %v13973_v7  ;;  %v33952_v7 = vld [vmem:[%s36051_s6 + $0x2] ss:$0 sm:$0xff] }
 0x8df   : > { %36136 = vst [vmem:[#allocation30_spill] sm:$0xff] %v33931_v24  ;;  %v13505_v58 = vmul.f32 0.35355338, %v13351_v22 }
 0x8e0   : > { %36137 = vst [vmem:[#allocation27_spill] sm:$0xff] %v33934_v56  ;;  %v29118_v20 = vpop.f32.mrb[58].mxu1  ;;  %v13346_v56 = vadd.f32 %v33939_v27, %v33793_v26  ;;  %v13356_v26 = vadd.f32 %v33939_v27, %v33797_v46 }
 0x8e1   : > { %v33942_v11 = vadd.f32 %v29118_v20, %v33862_v62  ;;  %v13983_v25 = vpop.f32.mrb[59].mxu1 }
 0x8e2   : > { %v33945_v48 = vadd.f32 %v33862_v62, %v13983_v25  ;;  %v13504_v55 = vmul.f32 0.35355338, %v13346_v56  ;;  %v13507_v56 = vmul.f32 0.35355338, %v13361_v57 }
 0x8e3   : > { %36138 = vst [vmem:[#allocation32_spill] sm:$0xff] %v33942_v11 }
 0x8e4   : > { %36139 = vst [vmem:[#allocation29_spill] sm:$0xff] %v33945_v48  ;;  %v29121_v24 = vpop.f32.mrb[60].mxu1 }
 0x8e5   : > { %v33957_v20 = vadd.f32 %v29121_v24, %v33862_v62  ;;  %v13993_v11 = vpop.f32.mrb[61].mxu1 }
 0x8e6   : > { %v33961_v45 = vadd.f32 %v33862_v62, %v13993_v11 }
 0x8e7   : > { %36140 = vst [vmem:[#allocation31_spill] sm:$0xff] %v33957_v20 }
 0x8e8   : > { %v29124_v24 = vpop.f32.mrb[62].mxu1 }
 0x8e9   : > { %v14003_v11 = vpop.f32.mrb[63].mxu1 }
 0x8ea   : > { %v33977_v60 = vadd.f32 %v33862_v62, %v14003_v11  ;;  %v13376_v11 = vadd.f32 %v33939_v27, %v33805_v16  ;;  %v13391_v16 = vadd.f32 %v33807_v1, %v33939_v27 }
 0x8ec   : > { %v13513_v1 = vmul.f32 0.35355338, %v13391_v16 }
 0x909   : > { %v29023_v4 = vpop.f32.mrb[242].mxu0 }
 0x90a   : > { %v13621_v25 = vadd.f32 %v29023_v4, %v33952_v7  ;;  %v13615_v48 = vpop.f32.mrb[243].mxu0  ;;  %v33972_v4 = vadd.f32 %v29124_v24, %v33862_v62 }
 0x90b   : > { %v13616_v12 = vadd.f32 %v33952_v7, %v13615_v48 }
 0x90c   : > { %29131 = vmatpush3.xpose.msk.msra.mxu1 %vm1567_vm2, %v13621_v25  ;;  %v13506_v25 = vmul.f32 0.35355338, %v13356_v26 }
 0x90d   : > { %v29026_v20 = vpop.f32.mrb[244].mxu0  ;;  %29126 = vmatpush3.xpose.msk.msra.mxu0 %vm1567_vm2, %v13616_v12  ;;  %29140 = vmatprep.subr.mxu1 %v36071_v61  ;;  %v13371_v12 = vadd.f32 %v33799_v43, %v33939_v27 }
 0x90e   : > { %v13631_v48 = vadd.f32 %v29026_v20, %v33952_v7  ;;  %v13625_v22 = vpop.f32.mrb[245].mxu0  ;;  %29135 = vmatprep.subr.mxu0 %v36071_v61  ;;  %v13366_v20 = vadd.f32 %v33939_v27, %v33801_v2  ;;  %v13381_v2 = vadd.f32 %v33803_v47, %v33939_v27 }
 0x90f   : > { %v13626_v46 = vadd.f32 %v33952_v7, %v13625_v22  ;;  %29133 = vmatmul.mubr.msk.f32.vlgmr.msra.gmra.mrb[64].mxu1 %vm1567_vm2, %v13505_v58  ;;  %v13509_v43 = vmul.f32 0.35355338, %v13371_v12  ;;  %v13510_v12 = vmul.f32 0.35355338, %v13376_v11 }
 0x910   : > { %29128 = vmatmul.mubr.msk.f32.vlgmr.msra.gmra.mrb[18].mxu0 %vm1567_vm2, %v13504_v55  ;;  %29141 = vmatpush3.xpose.msk.msra.mxu1 %vm1567_vm2, %v13631_v48  ;;  %v13508_v26 = vmul.f32 0.35355338, %v13366_v20  ;;  %v13511_v47 = vmul.f32 0.35355338, %v13381_v2 }
 0x911   : > { %v29029_v24 = vpop.f32.mrb[246].mxu0  ;;  %29136 = vmatpush3.xpose.msk.msra.mxu0 %vm1567_vm2, %v13626_v46  ;;  %29142 = vmatprep.mubr.msk.f32.mxu1 %vm31099_vm1, %v36071_v61 }
 0x912   : > { %v13641_v57 = vadd.f32 %v29029_v24, %v33952_v7  ;;  %v13635_v58 = vpop.f32.mrb[247].mxu0  ;;  %29137 = vmatprep.mubr.msk.f32.mxu0 %vm31099_vm1, %v36071_v61  ;;  %29150 = vmatprep.subr.mxu1 %v36071_v61 }
 0x913   : > { %v13636_v55 = vadd.f32 %v33952_v7, %v13635_v58  ;;  %29143 = vmatmul.mubr.msk.f32.vlgmr.msra.gmra.mrb[66].mxu1 %vm1567_vm2, %v13507_v56  ;;  %29145 = vmatprep.subr.mxu0 %v36071_v61 }
 0x914   : > { %29138 = vmatmul.mubr.msk.f32.vlgmr.msra.gmra.mrb[20].mxu0 %vm1567_vm2, %v13506_v25  ;;  %29151 = vmatpush3.xpose.msk.msra.mxu1 %vm1567_vm2, %v13641_v57  ;;  %v13386_v25 = vadd.f32 %v33939_v27, %v33809_v23  ;;  %v13401_v23 = vadd.f32 %v33811_v0, %v33939_v27 }
 0x915   : > { %v29032_v48 = vpop.f32.mrb[248].mxu0  ;;  %29146 = vmatpush3.xpose.msk.msra.mxu0 %vm1567_vm2, %v13636_v55  ;;  %29152 = vmatprep.mubr.msk.f32.mxu1 %vm31099_vm1, %v36071_v61  ;;  %v13396_v55 = vadd.f32 %v33939_v27, %v33813_v34  ;;  %v13411_v34 = vadd.f32 %v33815_v18, %v33939_v27 }
 0x916   : > { %v13651_v22 = vadd.f32 %v29032_v48, %v33952_v7  ;;  %v13645_v56 = vpop.f32.mrb[249].mxu0  ;;  %29147 = vmatprep.mubr.msk.f32.mxu0 %vm31099_vm1, %v36071_v61  ;;  %29160 = vmatprep.subr.mxu1 %v36071_v61  ;;  %v13515_v0 = vmul.f32 0.35355338, %v13401_v23 }
 0x917   : > { %v13646_v46 = vadd.f32 %v33952_v7, %v13645_v56  ;;  %29153 = vmatmul.mubr.msk.f32.vlgmr.msra.gmra.mrb[68].mxu1 %vm1567_vm2, %v13509_v43  ;;  %29155 = vmatprep.subr.mxu0 %v36071_v61  ;;  %v13512_v43 = vmul.f32 0.35355338, %v13386_v25  ;;  %v13406_v56 = vadd.f32 %v33939_v27, %v33817_v14  ;;  %v13517_v18 = vmul.f32 0.35355338, %v13411_v34 }
 0x918   : > { %29148 = vmatmul.mubr.msk.f32.vlgmr.msra.gmra.mrb[22].mxu0 %vm1567_vm2, %v13508_v26  ;;  %29161 = vmatpush3.xpose.msk.msra.mxu1 %vm1567_vm2, %v13651_v22  ;;  %v13514_v22 = vmul.f32 0.35355338, %v13396_v55  ;;  %v13421_v14 = vadd.f32 %v33819_v44, %v33939_v27 }
 0x919   : > { %v29035_v20 = vpop.f32.mrb[250].mxu0  ;;  %29156 = vmatpush3.xpose.msk.msra.mxu0 %vm1567_vm2, %v13646_v46  ;;  %29162 = vmatprep.mubr.msk.f32.mxu1 %vm31099_vm1, %v36071_v61  ;;  %v13516_v25 = vmul.f32 0.35355338, %v13406_v56 }
 0x91a   : > { %v13661_v24 = vadd.f32 %v29035_v20, %v33952_v7  ;;  %v13655_v57 = vpop.f32.mrb[251].mxu0  ;;  %29157 = vmatprep.mubr.msk.f32.mxu0 %vm31099_vm1, %v36071_v61  ;;  %29170 = vmatprep.subr.mxu1 %v36071_v61  ;;  %v13416_v20 = vadd.f32 %v33939_v27, %v33821_v36  ;;  %v13519_v44 = vmul.f32 0.35355338, %v13421_v14  ;;  %v13431_v36 = vadd.f32 %v33823_v31, %v33939_v27 }
 0x91b   : > { %v13656_v58 = vadd.f32 %v33952_v7, %v13655_v57  ;;  %29163 = vmatmul.mubr.msk.f32.vlgmr.msra.gmra.mrb[70].mxu1 %vm1567_vm2, %v13511_v47  ;;  %29165 = vmatprep.subr.mxu0 %v36071_v61 }
 0x91c   : > { %29158 = vmatmul.mubr.msk.f32.vlgmr.msra.gmra.mrb[24].mxu0 %vm1567_vm2, %v13510_v12  ;;  %29171 = vmatpush3.xpose.msk.msra.mxu1 %vm1567_vm2, %v13661_v24  ;;  %v13518_v23 = vmul.f32 0.35355338, %v13416_v20  ;;  %v13521_v31 = vmul.f32 0.35355338, %v13431_v36 }
 0x91d   : > { %v29038_v2 = vpop.f32.mrb[252].mxu0  ;;  %29166 = vmatpush3.xpose.msk.msra.mxu0 %vm1567_vm2, %v13656_v58  ;;  %29172 = vmatprep.mubr.msk.f32.mxu1 %vm31099_vm1, %v36071_v61 }
 0x91e   : > { %v13671_v26 = vadd.f32 %v29038_v2, %v33952_v7  ;;  %v13665_v11 = vpop.f32.mrb[253].mxu0  ;;  %29167 = vmatprep.mubr.msk.f32.mxu0 %vm31099_vm1, %v36071_v61  ;;  %29180 = vmatprep.subr.mxu1 %v36071_v61 }
 0x91f   : > { %v13666_v48 = vadd.f32 %v33952_v7, %v13665_v11  ;;  %29173 = vmatmul.mubr.msk.f32.vlgmr.msra.gmra.mrb[72].mxu1 %vm1567_vm2, %v13513_v1  ;;  %29175 = vmatprep.subr.mxu0 %v36071_v61 }
 0x920   : > { %29168 = vmatmul.mubr.msk.f32.vlgmr.msra.gmra.mrb[26].mxu0 %vm1567_vm2, %v13512_v43  ;;  %29181 = vmatpush3.xpose.msk.msra.mxu1 %vm1567_vm2, %v13671_v26  ;;  %v13426_v43 = vadd.f32 %v33939_v27, %v33825_v33  ;;  %v13441_v33 = vadd.f32 %v33827_v35, %v33939_v27 }
 0x921   : > { %v29041_v47 = vpop.f32.mrb[254].mxu0  ;;  %29176 = vmatpush3.xpose.msk.msra.mxu0 %vm1567_vm2, %v13666_v48  ;;  %29182 = vmatprep.mubr.msk.f32.mxu1 %vm31099_vm1, %v36071_v61  ;;  %v13436_v48 = vadd.f32 %v33939_v27, %v33829_v32  ;;  %v13451_v32 = vadd.f32 %v33831_v9, %v33939_v27 }
 0x922   : > { %v13681_v46 = vadd.f32 %v29041_v47, %v33952_v7  ;;  %v13675_v16 = vpop.f32.mrb[255].mxu0  ;;  %29177 = vmatprep.mubr.msk.f32.mxu0 %vm31099_vm1, %v36071_v61  ;;  %29190 = vmatprep.subr.mxu1 %v36071_v61  ;;  %v13523_v35 = vmul.f32 0.35355338, %v13441_v33 }
 0x923   : > { %v13676_v12 = vadd.f32 %v33952_v7, %v13675_v16  ;;  %29183 = vmatmul.mubr.msk.f32.vlgmr.msra.gmra.mrb[74].mxu1 %vm1567_vm2, %v13515_v0  ;;  %29185 = vmatprep.subr.mxu0 %v36071_v61  ;;  %v13520_v0 = vmul.f32 0.35355338, %v13426_v43  ;;  %v13446_v16 = vadd.f32 %v33939_v27, %v33833_v54  ;;  %v13525_v9 = vmul.f32 0.35355338, %v13451_v32 }
 0x924   : > { %29178 = vmatmul.mubr.msk.f32.vlgmr.msra.gmra.mrb[28].mxu0 %vm1567_vm2, %v13514_v22  ;;  %29191 = vmatpush3.xpose.msk.msra.mxu1 %vm1567_vm2, %v13681_v46  ;;  %v13522_v46 = vmul.f32 0.35355338, %v13436_v48  ;;  %v13461_v54 = vadd.f32 %v33835_v5, %v33939_v27 }
 0x925   : > { %v29044_v24 = vpop.f32.mrb[0].mxu0  ;;  %29186 = vmatpush3.xpose.msk.msra.mxu0 %vm1567_vm2, %v13676_v12  ;;  %29192 = vmatprep.mubr.msk.f32.mxu1 %vm31099_vm1, %v36071_v61  ;;  %v13524_v20 = vmul.f32 0.35355338, %v13446_v16 }
 0x926   : > { %v13691_v57 = vadd.f32 %v29044_v24, %v33952_v7  ;;  %v13685_v1 = vpop.f32.mrb[1].mxu0  ;;  %29187 = vmatprep.mubr.msk.f32.mxu0 %vm31099_vm1, %v36071_v61  ;;  %29200 = vmatprep.subr.mxu1 %v36071_v61  ;;  %v13456_v24 = vadd.f32 %v33939_v27, %v33837_v17  ;;  %v13527_v5 = vmul.f32 0.35355338, %v13461_v54  ;;  %v13471_v17 = vadd.f32 %v33839_v49, %v33939_v27 }
 0x927   : > { %v13686_v58 = vadd.f32 %v33952_v7, %v13685_v1  ;;  %29193 = vmatmul.mubr.msk.f32.vlgmr.msra.gmra.mrb[76].mxu1 %vm1567_vm2, %v13517_v18  ;;  %29195 = vmatprep.subr.mxu0 %v36071_v61 }
 0x928   : > { %29188 = vmatmul.mubr.msk.f32.vlgmr.msra.gmra.mrb[30].mxu0 %vm1567_vm2, %v13516_v25  ;;  %29201 = vmatpush3.xpose.msk.msra.mxu1 %vm1567_vm2, %v13691_v57  ;;  %v13526_v36 = vmul.f32 0.35355338, %v13456_v24  ;;  %v13529_v49 = vmul.f32 0.35355338, %v13471_v17 }
 0x929   : > { %v29047_v55 = vpop.f32.mrb[2].mxu0  ;;  %29196 = vmatpush3.xpose.msk.msra.mxu0 %vm1567_vm2, %v13686_v58  ;;  %29202 = vmatprep.mubr.msk.f32.mxu1 %vm31099_vm1, %v36071_v61 }
 0x92a   : > { %v13701_v2 = vadd.f32 %v29047_v55, %v33952_v7  ;;  %v13695_v26 = vpop.f32.mrb[3].mxu0  ;;  %29197 = vmatprep.mubr.msk.f32.mxu0 %vm31099_vm1, %v36071_v61  ;;  %29210 = vmatprep.subr.mxu1 %v36071_v61 }
 0x92b   : > { %v13696_v11 = vadd.f32 %v33952_v7, %v13695_v26  ;;  %29203 = vmatmul.mubr.msk.f32.vlgmr.msra.gmra.mrb[78].mxu1 %vm1567_vm2, %v13519_v44  ;;  %29205 = vmatprep.subr.mxu0 %v36071_v61 }
 0x92c   : > { %29198 = vmatmul.mubr.msk.f32.vlgmr.msra.gmra.mrb[32].mxu0 %vm1567_vm2, %v13518_v23  ;;  %29211 = vmatpush3.xpose.msk.msra.mxu1 %vm1567_vm2, %v13701_v2  ;;  %v13466_v23 = vadd.f32 %v33939_v27, %v33841_v38  ;;  %v13481_v38 = vadd.f32 %v33843_v29, %v33939_v27 }
 0x92d   : > { %v29050_v34 = vpop.f32.mrb[4].mxu0  ;;  %29206 = vmatpush3.xpose.msk.msra.mxu0 %vm1567_vm2, %v13696_v11  ;;  %29212 = vmatprep.mubr.msk.f32.mxu1 %vm31099_vm1, %v36071_v61  ;;  %v13476_v11 = vadd.f32 %v33939_v27, %v33845_v6  ;;  %v13491_v6 = vadd.f32 %v33847_v50, %v33939_v27 }
 0x92e   : > { %v13711_v22 = vadd.f32 %v29050_v34, %v33952_v7  ;;  %v13705_v56 = vpop.f32.mrb[5].mxu0  ;;  %29207 = vmatprep.mubr.msk.f32.mxu0 %vm31099_vm1, %v36071_v61  ;;  %29220 = vmatprep.subr.mxu1 %v36071_v61  ;;  %v13531_v29 = vmul.f32 0.35355338, %v13481_v38 }
 0x92f   : > { %v13706_v47 = vadd.f32 %v33952_v7, %v13705_v56  ;;  %29213 = vmatmul.mubr.msk.f32.vlgmr.msra.gmra.mrb[80].mxu1 %vm1567_vm2, %v13521_v31  ;;  %29215 = vmatprep.subr.mxu0 %v36071_v61  ;;  %v13528_v31 = vmul.f32 0.35355338, %v13466_v23  ;;  %v13486_v56 = vadd.f32 %v33939_v27, %v33849_v30  ;;  %v13533_v50 = vmul.f32 0.35355338, %v13491_v6 }
 0x930   : > { %29208 = vmatmul.mubr.msk.f32.vlgmr.msra.gmra.mrb[34].mxu0 %vm1567_vm2, %v13520_v0  ;;  %29221 = vmatpush3.xpose.msk.msra.mxu1 %vm1567_vm2, %v13711_v22  ;;  %v13530_v22 = vmul.f32 0.35355338, %v13476_v11  ;;  %v13501_v30 = vadd.f32 %v33851_v28, %v33939_v27 }
 0x931   : > { %v29053_v18 = vpop.f32.mrb[6].mxu0  ;;  %29216 = vmatpush3.xpose.msk.msra.mxu0 %vm1567_vm2, %v13706_v47  ;;  %29222 = vmatprep.mubr.msk.f32.mxu1 %vm31099_vm1, %v36071_v61  ;;  %v13532_v16 = vmul.f32 0.35355338, %v13486_v56 }
 0x932   : > { %v13721_v12 = vadd.f32 %v29053_v18, %v33952_v7  ;;  %v13715_v14 = vpop.f32.mrb[7].mxu0  ;;  %29217 = vmatprep.mubr.msk.f32.mxu0 %vm31099_vm1, %v36071_v61  ;;  %29230 = vmatprep.subr.mxu1 %v36071_v61  ;;  %v13496_v18 = vadd.f32 %v33939_v27, %v33853_v51  ;;  %v13535_v28 = vmul.f32 0.35355338, %v13501_v30  ;;  %v13859_v27 = vadd.f32 %v33855_v21, %v33862_v62 }
 0x933   : > { %v13716_v25 = vadd.f32 %v33952_v7, %v13715_v14  ;;  %29223 = vmatmul.mubr.msk.f32.vlgmr.msra.gmra.mrb[82].mxu1 %vm1567_vm2, %v13523_v35  ;;  %29225 = vmatprep.subr.mxu0 %v36071_v61 }
 0x934   : > { %29218 = vmatmul.mubr.msk.f32.vlgmr.msra.gmra.mrb[36].mxu0 %vm1567_vm2, %v13522_v46  ;;  %29231 = vmatpush3.xpose.msk.msra.mxu1 %vm1567_vm2, %v13721_v12  ;;  %v13534_v51 = vmul.f32 0.35355338, %v13496_v18 }
 0x935   : > { %v29056_v57 = vpop.f32.mrb[8].mxu0  ;;  %29226 = vmatpush3.xpose.msk.msra.mxu0 %vm1567_vm2, %v13716_v25  ;;  %29232 = vmatprep.mubr.msk.f32.mxu1 %vm31099_vm1, %v36071_v61 }
 0x936   : > { %v13731_v1 = vadd.f32 %v29056_v57, %v33952_v7  ;;  %v13725_v44 = vpop.f32.mrb[9].mxu0  ;;  %29227 = vmatprep.mubr.msk.f32.mxu0 %vm31099_vm1, %v36071_v61  ;;  %29240 = vmatprep.subr.mxu1 %v36071_v61 }
 0x937   : > { %v13726_v58 = vadd.f32 %v33952_v7, %v13725_v44  ;;  %29233 = vmatmul.mubr.msk.f32.vlgmr.msra.gmra.mrb[84].mxu1 %vm1567_vm2, %v13525_v9  ;;  %29235 = vmatprep.subr.mxu0 %v36071_v61 }
 0x938   : > { %29228 = vmatmul.mubr.msk.f32.vlgmr.msra.gmra.mrb[38].mxu0 %vm1567_vm2, %v13524_v20  ;;  %29241 = vmatpush3.xpose.msk.msra.mxu1 %vm1567_vm2, %v13731_v1 }
 0x939   : > { %v29059_v43 = vpop.f32.mrb[10].mxu0  ;;  %29236 = vmatpush3.xpose.msk.msra.mxu0 %vm1567_vm2, %v13726_v58  ;;  %29242 = vmatprep.mubr.msk.f32.mxu1 %vm31099_vm1, %v36071_v61 }
 0x93a   : > { %v13741_v55 = vadd.f32 %v29059_v43, %v33952_v7  ;;  %v13735_v2 = vpop.f32.mrb[11].mxu0  ;;  %29237 = vmatprep.mubr.msk.f32.mxu0 %vm31099_vm1, %v36071_v61  ;;  %29250 = vmatprep.subr.mxu1 %v36071_v61 }
 0x93b   : > { %v13736_v26 = vadd.f32 %v33952_v7, %v13735_v2  ;;  %29243 = vmatmul.mubr.msk.f32.vlgmr.msra.gmra.mrb[86].mxu1 %vm1567_vm2, %v13527_v5  ;;  %29245 = vmatprep.subr.mxu0 %v36071_v61 }
 0x93c   : > { %29238 = vmatmul.mubr.msk.f32.vlgmr.msra.gmra.mrb[40].mxu0 %vm1567_vm2, %v13526_v36  ;;  %29251 = vmatpush3.xpose.msk.msra.mxu1 %vm1567_vm2, %v13741_v55 }
 0x93d   : > { %v29062_v33 = vpop.f32.mrb[12].mxu0  ;;  %29246 = vmatpush3.xpose.msk.msra.mxu0 %vm1567_vm2, %v13736_v26  ;;  %29252 = vmatprep.mubr.msk.f32.mxu1 %vm31099_vm1, %v36071_v61 }
 0x93e   : > { %v13751_v0 = vadd.f32 %v29062_v33, %v33952_v7  ;;  %v13745_v48 = vpop.f32.mrb[13].mxu0  ;;  %29247 = vmatprep.mubr.msk.f32.mxu0 %vm31099_vm1, %v36071_v61  ;;  %29260 = vmatprep.subr.mxu1 %v36071_v61 }
 0x93f   : > { %v13746_v34 = vadd.f32 %v33952_v7, %v13745_v48  ;;  %29253 = vmatmul.mubr.msk.f32.vlgmr.msra.gmra.mrb[88].mxu1 %vm1567_vm2, %v13529_v49  ;;  %29255 = vmatprep.subr.mxu0 %v36071_v61 }
 0x940   : > { %29248 = vmatmul.mubr.msk.f32.vlgmr.msra.gmra.mrb[42].mxu0 %vm1567_vm2, %v13528_v31  ;;  %29261 = vmatpush3.xpose.msk.msra.mxu1 %vm1567_vm2, %v13751_v0 }
 0x941   : > { %v29065_v35 = vpop.f32.mrb[14].mxu0  ;;  %29256 = vmatpush3.xpose.msk.msra.mxu0 %vm1567_vm2, %v13746_v34  ;;  %29262 = vmatprep.mubr.msk.f32.mxu1 %vm31099_vm1, %v36071_v61 }
 0x942   : > { %v13761_v47 = vadd.f32 %v29065_v35, %v33952_v7  ;;  %v13755_v32 = vpop.f32.mrb[15].mxu0  ;;  %29257 = vmatprep.mubr.msk.f32.mxu0 %vm31099_vm1, %v36071_v61  ;;  %29270 = vmatprep.subr.mxu1 %v36071_v61 }
 0x943   : > { %v13756_v46 = vadd.f32 %v33952_v7, %v13755_v32  ;;  %29263 = vmatmul.mubr.msk.f32.vlgmr.msra.gmra.mrb[90].mxu1 %vm1567_vm2, %v13531_v29  ;;  %29265 = vmatprep.subr.mxu0 %v36071_v61 }
 0x944   : > { %29258 = vmatmul.mubr.msk.f32.vlgmr.msra.gmra.mrb[44].mxu0 %vm1567_vm2, %v13530_v22  ;;  %29271 = vmatpush3.xpose.msk.msra.mxu1 %vm1567_vm2, %v13761_v47 }
 0x945   : > { %v29068_v12 = vpop.f32.mrb[16].mxu0  ;;  %29266 = vmatpush3.xpose.msk.msra.mxu0 %vm1567_vm2, %v13756_v46  ;;  %29272 = vmatprep.mubr.msk.f32.mxu1 %vm31099_vm1, %v36071_v61 }
 0x946   : > { %v13771_v14 = vadd.f32 %v29068_v12, %v33952_v7  ;;  %v13765_v9 = vpop.f32.mrb[17].mxu0  ;;  %29267 = vmatprep.mubr.msk.f32.mxu0 %vm31099_vm1, %v36071_v61  ;;  %29280 = vmatprep.subr.mxu1 %v36071_v61 }
 0x947   : > { %v13766_v25 = vadd.f32 %v33952_v7, %v13765_v9  ;;  %29273 = vmatmul.mubr.msk.f32.vlgmr.msra.gmra.mrb[92].mxu1 %vm1567_vm2, %v13533_v50  ;;  %29275 = vmatprep.subr.mxu0 %v36071_v61  ;;  %v13854_v7 = vadd.f32 %v33862_v62, %v33857_v8 }
 0x948   : > { %29268 = vmatmul.mubr.msk.f32.vlgmr.msra.gmra.mrb[46].mxu0 %vm1567_vm2, %v13532_v16  ;;  %29281 = vmatpush3.xpose.msk.msra.mxu1 %vm1567_vm2, %v13771_v14 }
 0x949   : > { %29276 = vmatpush3.xpose.msk.msra.mxu0 %vm1567_vm2, %v13766_v25  ;;  %29282 = vmatprep.mubr.msk.f32.mxu1 %vm31099_vm1, %v36071_v61 }
 0x94a   : > { %29277 = vmatprep.mubr.msk.f32.mxu0 %vm31099_vm1, %v36071_v61  ;;  %29285 = vmatprep.subr.mxu0 %v36071_v61 }
 0x94b   : > { %29283 = vmatmul.mubr.msk.f32.vlgmr.msra.gmra.mrb[94].mxu1 %vm1567_vm2, %v13535_v28  ;;  %29290 = vmatprep.subr.mxu1 %v36071_v61 }
 0x94c   : > { %29278 = vmatmul.mubr.msk.f32.vlgmr.msra.gmra.mrb[48].mxu0 %vm1567_vm2, %v13534_v51  ;;  %29291 = vmatpush3.msra.mxu1 %v13859_v27 }
 0x94d   : > { %29286 = vmatpush3.msra.mxu0 %v13854_v7  ;;  %29292 = vmatprep.mubr.msk.f32.mxu1 %vm31099_vm1, %v36071_v61 }
 0x94e   : > { %29300 = vmatprep.subr.mxu1 %v36071_v61  ;;  %29287 = vmatprep.mubr.msk.f32.mxu0 %vm31099_vm1, %v36071_v61 }
 0x94f   : > { %29295 = vmatprep.subr.mxu0 %v36071_v61 }
 0x9e2   : > { %v34226_v21 = vpop.f32.mrb[64].mxu1 }
 0x9e3   : > { %v34228_v8 = vpop.f32.mrb[18].mxu0  ;;  %v29134_v62 = vpop.f32.mrb[65].mxu1  ;;  %v16447_v54 = vsel %vm4000_vm3, %v34226_v21, -inf }
 0x9e4   : > { %16448 = vmax.xlane.f32.xlu1 %v16447_v54  ;;  %v29129_v20 = vpop.f32.mrb[19].mxu0  ;;  %v16444_v24 = vsel %vm4000_vm3, %v34228_v8, -inf }
 0x9e5   : > { %16445 = vmax.xlane.f32.xlu0 %v16444_v24 }
 0x9e6   : > { %v34234_v57 = vpop.f32.mrb[66].mxu1 }
 0x9e7   : > { %v34236_v1 = vpop.f32.mrb[20].mxu0  ;;  %v29144_v44 = vpop.f32.mrb[67].mxu1  ;;  %v16453_v5 = vsel %vm4000_vm3, %v34234_v57, -inf }
 0x9e8   : > { %16454 = vmax.xlane.f32.xlu1 %v16453_v5  ;;  %v29139_v58 = vpop.f32.mrb[21].mxu0  ;;  %v16450_v17 = vsel %vm4000_vm3, %v34236_v1, -inf }
 0x9e9   : > { %16451 = vmax.xlane.f32.xlu0 %v16450_v17 }
 0x9ea   : > { %v34242_v36 = vpop.f32.mrb[68].mxu1 }
 0x9eb   : > { %v34244_v23 = vpop.f32.mrb[22].mxu0  ;;  %v29154_v43 = vpop.f32.mrb[69].mxu1  ;;  %v16459_v55 = vsel %vm4000_vm3, %v34242_v36, -inf }
 0x9ec   : > { %16460 = vmax.xlane.f32.xlu1 %v16459_v55  ;;  %v29149_v2 = vpop.f32.mrb[23].mxu0  ;;  %v16456_v49 = vsel %vm4000_vm3, %v34244_v23, -inf }
 0x9ed   : > { %16457 = vmax.xlane.f32.xlu0 %v16456_v49 }
 0x9ee   : > { %v34250_v26 = vpop.f32.mrb[70].mxu1 }
 0x9ef   : > { %v34252_v38 = vpop.f32.mrb[24].mxu0  ;;  %v29164_v31 = vpop.f32.mrb[71].mxu1  ;;  %v16465_v11 = vsel %vm4000_vm3, %v34250_v26, -inf }
 0x9f0   : > { %16466 = vmax.xlane.f32.xlu1 %v16465_v11  ;;  %v29159_v33 = vpop.f32.mrb[25].mxu0  ;;  %v16462_v0 = vsel %vm4000_vm3, %v34252_v38, -inf }
 0x9f1   : > { %16463 = vmax.xlane.f32.xlu0 %v16462_v0 }
 0x9f2   : > { %v34258_v48 = vpop.f32.mrb[72].mxu1 }
 0x9f3   : > { %v34260_v29 = vpop.f32.mrb[26].mxu0  ;;  %v29174_v34 = vpop.f32.mrb[73].mxu1  ;;  %v16471_v6 = vsel %vm4000_vm3, %v34258_v48, -inf }
 0x9f4   : > { %16472 = vmax.xlane.f32.xlu1 %v16471_v6  ;;  %v29169_v22 = vpop.f32.mrb[27].mxu0  ;;  %v16468_v56 = vsel %vm4000_vm3, %v34260_v29, -inf }
 0x9f5   : > { %16469 = vmax.xlane.f32.xlu0 %v16468_v56 }
 0x9f6   : > { %v34266_v35 = vpop.f32.mrb[74].mxu1 }
 0x9f7   : > { %v34268_v47 = vpop.f32.mrb[28].mxu0  ;;  %v29184_v32 = vpop.f32.mrb[75].mxu1  ;;  %v16477_v50 = vsel %vm4000_vm3, %v34266_v35, -inf }
 0x9f8   : > { %16478 = vmax.xlane.f32.xlu1 %v16477_v50  ;;  %v29179_v46 = vpop.f32.mrb[29].mxu0  ;;  %v16474_v30 = vsel %vm4000_vm3, %v34268_v47, -inf }
 0x9f9   : > { %16475 = vmax.xlane.f32.xlu0 %v16474_v30 }
 0x9fa   : > { %v34274_v16 = vpop.f32.mrb[76].mxu1 }
 0x9fb   : > { %v34276_v18 = vpop.f32.mrb[30].mxu0  ;;  %v29194_v12 = vpop.f32.mrb[77].mxu1  ;;  %v16483_v14 = vsel %vm4000_vm3, %v34274_v16, -inf }
 0x9fc   : > { %16484 = vmax.xlane.f32.xlu1 %v16483_v14  ;;  %v29189_v9 = vpop.f32.mrb[31].mxu0  ;;  %v16480_v28 = vsel %vm4000_vm3, %v34276_v18, -inf }
 0x9fd   : > { %16481 = vmax.xlane.f32.xlu0 %v16480_v28 }
 0x9fe   : > { %v34282_v25 = vpop.f32.mrb[78].mxu1 }
 0x9ff   : > { %v34284_v51 = vpop.f32.mrb[32].mxu0  ;;  %v29204_v27 = vpop.f32.mrb[79].mxu1  ;;  %v16489_v7 = vsel %vm4000_vm3, %v34282_v25, -inf }
 0xa00   : > { %16490 = vmax.xlane.f32.xlu1 %v16489_v7  ;;  %v29199_v62 = vpop.f32.mrb[33].mxu0  ;;  %v16486_v54 = vsel %vm4000_vm3, %v34284_v51, -inf }
 0xa01   : > { %16487 = vmax.xlane.f32.xlu0 %v16486_v54 }
 0xa02   : > { %v34290_v20 = vpop.f32.mrb[80].mxu1 }
 0xa03   : > { %v34292_v24 = vpop.f32.mrb[34].mxu0  ;;  %v29214_v44 = vpop.f32.mrb[81].mxu1  ;;  %v16495_v5 = vsel %vm4000_vm3, %v34290_v20, -inf }
 0xa04   : > { %16496 = vmax.xlane.f32.xlu1 %v16495_v5  ;;  %v29209_v58 = vpop.f32.mrb[35].mxu0  ;;  %v16492_v17 = vsel %vm4000_vm3, %v34292_v24, -inf }
 0xa05   : > { %16493 = vmax.xlane.f32.xlu0 %v16492_v17 }
 0xa06   : > { %v34298_v43 = vpop.f32.mrb[82].mxu1 }
 0xa07   : > { %v34300_v55 = vpop.f32.mrb[36].mxu0  ;;  %v29224_v2 = vpop.f32.mrb[83].mxu1  ;;  %v16501_v49 = vsel %vm4000_vm3, %v34298_v43, -inf }
 0xa08   : > { %16502 = vmax.xlane.f32.xlu1 %v16501_v49  ;;  %v29219_v31 = vpop.f32.mrb[37].mxu0  ;;  %v16498_v11 = vsel %vm4000_vm3, %v34300_v55, -inf }
 0xa09   : > { %16499 = vmax.xlane.f32.xlu0 %v16498_v11 }
 0xa0a   : > { %v34306_v33 = vpop.f32.mrb[84].mxu1 }
 0xa0b   : > { %v34308_v0 = vpop.f32.mrb[38].mxu0  ;;  %v29234_v34 = vpop.f32.mrb[85].mxu1  ;;  %v16507_v6 = vsel %vm4000_vm3, %v34306_v33, -inf }
 0xa0c   : > { %16508 = vmax.xlane.f32.xlu1 %v16507_v6  ;;  %v29229_v22 = vpop.f32.mrb[39].mxu0  ;;  %v16504_v56 = vsel %vm4000_vm3, %v34308_v0, -inf }
 0xa0d   : > { %16505 = vmax.xlane.f32.xlu0 %v16504_v56 }
 0xa0e   : > { %v34314_v32 = vpop.f32.mrb[86].mxu1 }
 0xa0f   : > { %v34316_v50 = vpop.f32.mrb[40].mxu0  ;;  %v29244_v46 = vpop.f32.mrb[87].mxu1  ;;  %v16513_v30 = vsel %vm4000_vm3, %v34314_v32, -inf }
 0xa10   : > { %16514 = vmax.xlane.f32.xlu1 %v16513_v30  ;;  %v29239_v12 = vpop.f32.mrb[41].mxu0  ;;  %v16510_v14 = vsel %vm4000_vm3, %v34316_v50, -inf }
 0xa11   : > { %16511 = vmax.xlane.f32.xlu0 %v16510_v14 }
 0xa12   : > { %v34322_v9 = vpop.f32.mrb[88].mxu1 }
 0xa13   : > { %v34324_v28 = vpop.f32.mrb[42].mxu0  ;;  %v29254_v27 = vpop.f32.mrb[89].mxu1  ;;  %v16519_v7 = vsel %vm4000_vm3, %v34322_v9, -inf }
 0xa14   : > { %16520 = vmax.xlane.f32.xlu1 %v16519_v7  ;;  %v29249_v62 = vpop.f32.mrb[43].mxu0  ;;  %v16516_v54 = vsel %vm4000_vm3, %v34324_v28, -inf }
 0xa15   : > { %16517 = vmax.xlane.f32.xlu0 %v16516_v54 }
 0xa16   : > { %v34330_v44 = vpop.f32.mrb[90].mxu1 }
 0xa17   : > { %v34332_v5 = vpop.f32.mrb[44].mxu0  ;;  %v29264_v58 = vpop.f32.mrb[91].mxu1  ;;  %v16525_v17 = vsel %vm4000_vm3, %v34330_v44, -inf }
 0xa18   : > { %16526 = vmax.xlane.f32.xlu1 %v16525_v17  ;;  %v29259_v2 = vpop.f32.mrb[45].mxu0  ;;  %v16522_v49 = vsel %vm4000_vm3, %v34332_v5, -inf }
 0xa19   : > { %16523 = vmax.xlane.f32.xlu0 %v16522_v49 }
 0xa1a   : > { %v34338_v31 = vpop.f32.mrb[92].mxu1 }
 0xa1b   : > { %v34340_v11 = vpop.f32.mrb[46].mxu0  ;;  %v29274_v34 = vpop.f32.mrb[93].mxu1  ;;  %v16531_v6 = vsel %vm4000_vm3, %v34338_v31, -inf }
 0xa1c   : > { %16532 = vmax.xlane.f32.xlu1 %v16531_v6  ;;  %v29269_v22 = vpop.f32.mrb[47].mxu0  ;;  %v16528_v56 = vsel %vm4000_vm3, %v34340_v11, -inf }
 0xa1d   : > { %16529 = vmax.xlane.f32.xlu0 %v16528_v56 }
 0xa1e   : > { %v34346_v46 = vpop.f32.mrb[94].mxu1 }
 0xa1f   : > { %v34348_v30 = vpop.f32.mrb[48].mxu0  ;;  %v29284_v12 = vpop.f32.mrb[95].mxu1  ;;  %v16537_v14 = vsel %vm4000_vm3, %v34346_v46, -inf }
 0xa20   : > { %16538 = vmax.xlane.f32.xlu1 %v16537_v14  ;;  %v29279_v27 = vpop.f32.mrb[49].mxu0  ;;  %v16534_v7 = vsel %vm4000_vm3, %v34348_v30, -inf }
 0xa21   : > { %16535 = vmax.xlane.f32.xlu0 %v16534_v7 }
 0xa71   : > { %v16449_v62 = vpop.xlane.xlu1 %16448 }
 0xa72   : > { %v16541_v54 = vsub.f32 %v34226_v21, %v16449_v62  ;;  %v16446_v58 = vpop.xlane.xlu0 %16445 }
 0xa73   : > { %v16540_v17 = vsub.f32 %v34228_v8, %v16446_v58 }
 0xa74   : > { %v16574_v2 = vmul.f32 1.442695, %v16541_v54 }
 0xa75   : > { %v16572_v49 = vmul.f32 1.442695, %v16540_v17  ;;  %v16455_v34 = vpop.xlane.xlu1 %16454 }
 0xa76   : > { %30545 = vpow2.f32 %v16574_v2  ;;  %v16543_v6 = vsub.f32 %v34234_v57, %v16455_v34  ;;  %v16452_v22 = vpop.xlane.xlu0 %16451 }
 0xa77   : > { %30547 = vpow2.f32 %v16572_v49  ;;  %v16542_v56 = vsub.f32 %v34236_v1, %v16452_v22 }
 0xa78   : > { %v16578_v12 = vmul.f32 1.442695, %v16543_v6 }
 0xa79   : > { %v16576_v14 = vmul.f32 1.442695, %v16542_v56  ;;  %v16461_v27 = vpop.xlane.xlu1 %16460 }
 0xa7a   : > { %30549 = vpow2.f32 %v16578_v12  ;;  %v16545_v7 = vsub.f32 %v34242_v36, %v16461_v27  ;;  %v16458_v21 = vpop.xlane.xlu0 %16457 }
 0xa7b   : > { %30551 = vpow2.f32 %v16576_v14  ;;  %v16544_v8 = vsub.f32 %v34244_v23, %v16458_v21 }
 0xa7c   : > { %v16582_v62 = vmul.f32 1.442695, %v16545_v7 }
 0xa7d   : > { %v16580_v54 = vmul.f32 1.442695, %v16544_v8  ;;  %v16467_v58 = vpop.xlane.xlu1 %16466 }
 0xa7e   : > { %30553 = vpow2.f32 %v16582_v62  ;;  %v16547_v57 = vsub.f32 %v34250_v26, %v16467_v58  ;;  %v16464_v17 = vpop.xlane.xlu0 %16463 }
 0xa7f   : > { %30555 = vpow2.f32 %v16580_v54  ;;  %v16546_v1 = vsub.f32 %v34252_v38, %v16464_v17 }
 0xa80   : > { %v34362_v2 = vpop.eup %30545  ;;  %v16586_v49 = vmul.f32 1.442695, %v16547_v57 }
 0xa81   : > { %v34364_v34 = vpop.eup %30547  ;;  %v16584_v36 = vmul.f32 1.442695, %v16546_v1  ;;  %v16473_v6 = vpop.xlane.xlu1 %16472  ;;  %v16639_v23 = vsel %vm4000_vm3, %v34362_v2, 0.0 }
 0xa82   : > { %30557 = vpow2.f32 %v16586_v49  ;;  %v16549_v22 = vsub.f32 %v34258_v48, %v16473_v6  ;;  %16640 = vadd.xlane.f32.xlu1 %v16639_v23  ;;  %v16470_v56 = vpop.xlane.xlu0 %16469  ;;  %v16636_v26 = vsel %vm4000_vm3, %v34364_v34, 0.0 }
 0xa83   : > { %30559 = vpow2.f32 %v16584_v36  ;;  %v16548_v38 = vsub.f32 %v34260_v29, %v16470_v56  ;;  %16637 = vadd.xlane.f32.xlu0 %v16636_v26 }
 0xa84   : > { %v34372_v12 = vpop.eup %30549  ;;  %v16590_v14 = vmul.f32 1.442695, %v16549_v22 }
 0xa85   : > { %v34374_v27 = vpop.eup %30551  ;;  %v16588_v7 = vmul.f32 1.442695, %v16548_v38  ;;  %v16479_v21 = vpop.xlane.xlu1 %16478  ;;  %v16645_v8 = vsel %vm4000_vm3, %v34372_v12, 0.0 }
 0xa86   : > { %30561 = vpow2.f32 %v16590_v14  ;;  %v16551_v48 = vsub.f32 %v34266_v35, %v16479_v21  ;;  %16646 = vadd.xlane.f32.xlu1 %v16645_v8  ;;  %v16476_v62 = vpop.xlane.xlu0 %16475  ;;  %v16642_v54 = vsel %vm4000_vm3, %v34374_v27, 0.0 }
 0xa87   : > { %30563 = vpow2.f32 %v16588_v7  ;;  %v16550_v29 = vsub.f32 %v34268_v47, %v16476_v62  ;;  %16643 = vadd.xlane.f32.xlu0 %v16642_v54 }
 0xa88   : > { %v34382_v58 = vpop.eup %30553  ;;  %v16594_v57 = vmul.f32 1.442695, %v16551_v48 }
 0xa89   : > { %v34384_v17 = vpop.eup %30555  ;;  %v16592_v1 = vmul.f32 1.442695, %v16550_v29  ;;  %v16485_v49 = vpop.xlane.xlu1 %16484  ;;  %v16651_v36 = vsel %vm4000_vm3, %v34382_v58, 0.0 }
 0xa8a   : > { %30565 = vpow2.f32 %v16594_v57  ;;  %v16553_v35 = vsub.f32 %v34274_v16, %v16485_v49  ;;  %16652 = vadd.xlane.f32.xlu1 %v16651_v36  ;;  %v16482_v6 = vpop.xlane.xlu0 %16481  ;;  %v16648_v23 = vsel %vm4000_vm3, %v34384_v17, 0.0 }
 0xa8b   : > { %30567 = vpow2.f32 %v16592_v1  ;;  %v16552_v47 = vsub.f32 %v34276_v18, %v16482_v6  ;;  %16649 = vadd.xlane.f32.xlu0 %v16648_v23 }
 0xa8c   : > { %v34392_v22 = vpop.eup %30557  ;;  %v16598_v56 = vmul.f32 1.442695, %v16553_v35 }
 0xa8d   : > { %v34394_v26 = vpop.eup %30559  ;;  %v16596_v38 = vmul.f32 1.442695, %v16552_v47  ;;  %v16491_v14 = vpop.xlane.xlu1 %16490  ;;  %v16657_v7 = vsel %vm4000_vm3, %v34392_v22, 0.0 }
 0xa8e   : > { %30569 = vpow2.f32 %v16598_v56  ;;  %v16555_v16 = vsub.f32 %v34282_v25, %v16491_v14  ;;  %16658 = vadd.xlane.f32.xlu1 %v16657_v7  ;;  %v16488_v21 = vpop.xlane.xlu0 %16487  ;;  %v16654_v8 = vsel %vm4000_vm3, %v34394_v26, 0.0 }
 0xa8f   : > { %30571 = vpow2.f32 %v16596_v38  ;;  %v16554_v18 = vsub.f32 %v34284_v51, %v16488_v21  ;;  %16655 = vadd.xlane.f32.xlu0 %v16654_v8 }
 0xa90   : > { %v34402_v48 = vpop.eup %30561  ;;  %v16602_v62 = vmul.f32 1.442695, %v16555_v16 }
 0xa91   : > { %v34404_v54 = vpop.eup %30563  ;;  %v16600_v29 = vmul.f32 1.442695, %v16554_v18  ;;  %v16497_v57 = vpop.xlane.xlu1 %16496  ;;  %v16663_v1 = vsel %vm4000_vm3, %v34402_v48, 0.0 }
 0xa92   : > { %30573 = vpow2.f32 %v16602_v62  ;;  %v16557_v25 = vsub.f32 %v34290_v20, %v16497_v57  ;;  %16664 = vadd.xlane.f32.xlu1 %v16663_v1  ;;  %v16494_v49 = vpop.xlane.xlu0 %16493  ;;  %v16660_v36 = vsel %vm4000_vm3, %v34404_v54, 0.0 }
 0xa93   : > { %30575 = vpow2.f32 %v16600_v29  ;;  %v16556_v51 = vsub.f32 %v34292_v24, %v16494_v49  ;;  %16661 = vadd.xlane.f32.xlu0 %v16660_v36 }
 0xa94   : > { %v34412_v35 = vpop.eup %30565  ;;  %v16606_v6 = vmul.f32 1.442695, %v16557_v25 }
 0xa95   : > { %v34414_v23 = vpop.eup %30567  ;;  %v16604_v47 = vmul.f32 1.442695, %v16556_v51  ;;  %v16503_v56 = vpop.xlane.xlu1 %16502  ;;  %v16669_v38 = vsel %vm4000_vm3, %v34412_v35, 0.0 }
 0xa96   : > { %30577 = vpow2.f32 %v16606_v6  ;;  %v16559_v20 = vsub.f32 %v34298_v43, %v16503_v56  ;;  %16670 = vadd.xlane.f32.xlu1 %v16669_v38  ;;  %v16500_v14 = vpop.xlane.xlu0 %16499  ;;  %v16666_v7 = vsel %vm4000_vm3, %v34414_v23, 0.0 }
 0xa97   : > { %30579 = vpow2.f32 %v16604_v47  ;;  %v16558_v24 = vsub.f32 %v34300_v55, %v16500_v14  ;;  %16667 = vadd.xlane.f32.xlu0 %v16666_v7 }
 0xa98   : > { %v34422_v16 = vpop.eup %30569  ;;  %v16610_v21 = vmul.f32 1.442695, %v16559_v20 }
 0xa99   : > { %v34424_v8 = vpop.eup %30571  ;;  %v16608_v18 = vmul.f32 1.442695, %v16558_v24  ;;  %v16509_v62 = vpop.xlane.xlu1 %16508  ;;  %v16675_v29 = vsel %vm4000_vm3, %v34422_v16, 0.0 }
 0xa9a   : > { %30581 = vpow2.f32 %v16610_v21  ;;  %v16561_v43 = vsub.f32 %v34306_v33, %v16509_v62  ;;  %16676 = vadd.xlane.f32.xlu1 %v16675_v29  ;;  %v16506_v57 = vpop.xlane.xlu0 %16505  ;;  %v16672_v1 = vsel %vm4000_vm3, %v34424_v8, 0.0 }
 0xa9b   : > { %30583 = vpow2.f32 %v16608_v18  ;;  %v16560_v55 = vsub.f32 %v34308_v0, %v16506_v57  ;;  %16673 = vadd.xlane.f32.xlu0 %v16672_v1 }
 0xa9c   : > { %v34432_v25 = vpop.eup %30573  ;;  %v16614_v49 = vmul.f32 1.442695, %v16561_v43 }
 0xa9d   : > { %v34434_v36 = vpop.eup %30575  ;;  %v16612_v51 = vmul.f32 1.442695, %v16560_v55  ;;  %v16515_v6 = vpop.xlane.xlu1 %16514  ;;  %v16681_v47 = vsel %vm4000_vm3, %v34432_v25, 0.0 }
 0xa9e   : > { %30585 = vpow2.f32 %v16614_v49  ;;  %v16563_v33 = vsub.f32 %v34314_v32, %v16515_v6  ;;  %16682 = vadd.xlane.f32.xlu1 %v16681_v47  ;;  %v16512_v56 = vpop.xlane.xlu0 %16511  ;;  %v16678_v38 = vsel %vm4000_vm3, %v34434_v36, 0.0 }
 0xa9f   : > { %30587 = vpow2.f32 %v16612_v51  ;;  %v16562_v0 = vsub.f32 %v34316_v50, %v16512_v56  ;;  %16679 = vadd.xlane.f32.xlu0 %v16678_v38 }
 0xaa0   : > { %v34442_v20 = vpop.eup %30577  ;;  %v16618_v14 = vmul.f32 1.442695, %v16563_v33 }
 0xaa1   : > { %v34444_v7 = vpop.eup %30579  ;;  %v16616_v24 = vmul.f32 1.442695, %v16562_v0  ;;  %v16521_v21 = vpop.xlane.xlu1 %16520  ;;  %v16687_v18 = vsel %vm4000_vm3, %v34442_v20, 0.0 }
 0xaa2   : > { %30589 = vpow2.f32 %v16618_v14  ;;  %v16565_v32 = vsub.f32 %v34322_v9, %v16521_v21  ;;  %16688 = vadd.xlane.f32.xlu1 %v16687_v18  ;;  %v16518_v62 = vpop.xlane.xlu0 %16517  ;;  %v16684_v29 = vsel %vm4000_vm3, %v34444_v7, 0.0 }
 0xaa3   : > { %30591 = vpow2.f32 %v16616_v24  ;;  %v16564_v50 = vsub.f32 %v34324_v28, %v16518_v62  ;;  %16685 = vadd.xlane.f32.xlu0 %v16684_v29 }
 0xaa4   : > { %v34452_v43 = vpop.eup %30581  ;;  %v16622_v57 = vmul.f32 1.442695, %v16565_v32 }
 0xaa5   : > { %v34454_v1 = vpop.eup %30583  ;;  %v16620_v55 = vmul.f32 1.442695, %v16564_v50  ;;  %v16527_v49 = vpop.xlane.xlu1 %16526  ;;  %v16693_v51 = vsel %vm4000_vm3, %v34452_v43, 0.0 }
 0xaa6   : > { %30593 = vpow2.f32 %v16622_v57  ;;  %v16567_v9 = vsub.f32 %v34330_v44, %v16527_v49  ;;  %16694 = vadd.xlane.f32.xlu1 %v16693_v51  ;;  %v16524_v6 = vpop.xlane.xlu0 %16523  ;;  %v16690_v47 = vsel %vm4000_vm3, %v34454_v1, 0.0 }
 0xaa7   : > { %30595 = vpow2.f32 %v16620_v55  ;;  %v16566_v28 = vsub.f32 %v34332_v5, %v16524_v6  ;;  %16691 = vadd.xlane.f32.xlu0 %v16690_v47 }
 0xaa8   : > { %v34462_v33 = vpop.eup %30585  ;;  %v16626_v56 = vmul.f32 1.442695, %v16567_v9 }
 0xaa9   : > { %v34464_v38 = vpop.eup %30587  ;;  %v16624_v0 = vmul.f32 1.442695, %v16566_v28  ;;  %v16533_v14 = vpop.xlane.xlu1 %16532  ;;  %v16699_v24 = vsel %vm4000_vm3, %v34462_v33, 0.0 }
 0xaaa   : > { %30597 = vpow2.f32 %v16626_v56  ;;  %v16569_v44 = vsub.f32 %v34338_v31, %v16533_v14  ;;  %16700 = vadd.xlane.f32.xlu1 %v16699_v24  ;;  %v16530_v21 = vpop.xlane.xlu0 %16529  ;;  %v16696_v18 = vsel %vm4000_vm3, %v34464_v38, 0.0 }
 0xaab   : > { %30599 = vpow2.f32 %v16624_v0  ;;  %v16568_v5 = vsub.f32 %v34340_v11, %v16530_v21  ;;  %16697 = vadd.xlane.f32.xlu0 %v16696_v18 }
 0xaac   : > { %v34472_v32 = vpop.eup %30589  ;;  %v16630_v62 = vmul.f32 1.442695, %v16569_v44 }
 0xaad   : > { %v34474_v29 = vpop.eup %30591  ;;  %v16628_v50 = vmul.f32 1.442695, %v16568_v5  ;;  %v16539_v57 = vpop.xlane.xlu1 %16538  ;;  %v16705_v55 = vsel %vm4000_vm3, %v34472_v32, 0.0 }
 0xaae   : > { %30601 = vpow2.f32 %v16630_v62  ;;  %v16571_v31 = vsub.f32 %v34346_v46, %v16539_v57  ;;  %16706 = vadd.xlane.f32.xlu1 %v16705_v55  ;;  %v16536_v49 = vpop.xlane.xlu0 %16535  ;;  %v16702_v51 = vsel %vm4000_vm3, %v34474_v29, 0.0 }
 0xaaf   : > { %30603 = vpow2.f32 %v16628_v50  ;;  %v16570_v11 = vsub.f32 %v34348_v30, %v16536_v49  ;;  %16703 = vadd.xlane.f32.xlu0 %v16702_v51 }
 0xab0   : > { %v34482_v9 = vpop.eup %30593  ;;  %v16634_v6 = vmul.f32 1.442695, %v16571_v31 }
 0xab1   : > { %v34484_v47 = vpop.eup %30595  ;;  %v16632_v28 = vmul.f32 1.442695, %v16570_v11  ;;  %v16711_v56 = vsel %vm4000_vm3, %v34482_v9, 0.0 }
 0xab2   : > { %30605 = vpow2.f32 %v16634_v6  ;;  %16712 = vadd.xlane.f32.xlu1 %v16711_v56  ;;  %v16708_v46 = vsel %vm4000_vm3, %v34484_v47, 0.0 }
 0xab3   : > { %30607 = vpow2.f32 %v16632_v28  ;;  %16709 = vadd.xlane.f32.xlu0 %v16708_v46 }
 0xab4   : > { %v34490_v0 = vpop.eup %30597 }
 0xab5   : > { %v34492_v30 = vpop.eup %30599  ;;  %v16717_v14 = vsel %vm4000_vm3, %v34490_v0, 0.0 }
 0xab6   : > { %16718 = vadd.xlane.f32.xlu1 %v16717_v14  ;;  %v16714_v24 = vsel %vm4000_vm3, %v34492_v30, 0.0 }
 0xab7   : > { %16715 = vadd.xlane.f32.xlu0 %v16714_v24 }
 0xab8   : > { %v34498_v44 = vpop.eup %30601 }
 0xab9   : > { %v34500_v21 = vpop.eup %30603  ;;  %v16723_v18 = vsel %vm4000_vm3, %v34498_v44, 0.0 }
 0xaba   : > { %16724 = vadd.xlane.f32.xlu1 %v16723_v18  ;;  %v16720_v5 = vsel %vm4000_vm3, %v34500_v21, 0.0 }
 0xabb   : > { %16721 = vadd.xlane.f32.xlu0 %v16720_v5 }
 0xabc   : > { %v34506_v62 = vpop.eup %30605 }
 0xabd   : > { %v34508_v50 = vpop.eup %30607  ;;  %v16729_v57 = vsel %vm4000_vm3, %v34506_v62, 0.0 }
 0xabe   : > { %16730 = vadd.xlane.f32.xlu1 %v16729_v57  ;;  %v16726_v55 = vsel %vm4000_vm3, %v34508_v50, 0.0 }
 0xabf   : > { %16727 = vadd.xlane.f32.xlu0 %v16726_v55 }
 0xb0f   : > { %v16641_v31 = vpop.xlane.xlu1 %16640 }
 0xb10   : > { %30609 = vrcp.f32 %v16641_v31  ;;  %v16638_v49 = vpop.xlane.xlu0 %16637 }
 0xb11   : > { %30611 = vrcp.f32 %v16638_v49 }
 0xb13   : > { %v16647_v51 = vpop.xlane.xlu1 %16646 }
 0xb14   : > { %30613 = vrcp.f32 %v16647_v51  ;;  %v16644_v11 = vpop.xlane.xlu0 %16643 }
 0xb15   : > { %30615 = vrcp.f32 %v16644_v11 }
 0xb17   : > { %v16653_v6 = vpop.xlane.xlu1 %16652 }
 0xb18   : > { %30617 = vrcp.f32 %v16653_v6  ;;  %v16650_v28 = vpop.xlane.xlu0 %16649 }
 0xb19   : > { %30619 = vrcp.f32 %v16650_v28 }
 0xb1a   : > { %v30610_v56 = vpop.eup %30609 }
 0xb1b   : > { %v30612_v46 = vpop.eup %30611  ;;  %v16765_v14 = vmul.f32 %v30610_v56, %v34362_v2  ;;  %v16659_v24 = vpop.xlane.xlu1 %16658 }
 0xb1c   : > { %v16764_v18 = vmul.f32 %v30612_v46, %v34364_v34  ;;  %30621 = vrcp.f32 %v16659_v24  ;;  %v16656_v5 = vpop.xlane.xlu0 %16655 }
 0xb1d   : > { %30623 = vrcp.f32 %v16656_v5  ;;  %29293 = vmatmul.mubr.msk.f32.vlgmr.msra.gmra.mrb[96].mxu1 %vm4000_vm3, %v16765_v14 }
 0xb1e   : > { %v30614_v57 = vpop.eup %30613  ;;  %29301 = vmatpush3.msra.mxu1 %v33865_v19  ;;  %29288 = vmatmul.mubr.msk.f32.vlgmr.msra.gmra.mrb[50].mxu0 %vm4000_vm3, %v16764_v18 }
 0xb1f   : > { %v30616_v55 = vpop.eup %30615  ;;  %v16767_v31 = vmul.f32 %v30614_v57, %v34372_v12  ;;  %29296 = vmatpush3.msra.mxu0 %v33868_v37  ;;  %v16665_v49 = vpop.xlane.xlu1 %16664  ;;  %29302 = vmatprep.mubr.msk.f32.mxu1 %vm31099_vm1, %v36071_v61 }
 0xb20   : > { %v16766_v2 = vmul.f32 %v30616_v55, %v34374_v27  ;;  %30625 = vrcp.f32 %v16665_v49  ;;  %29310 = vmatprep.subr.mxu1 %v36071_v61  ;;  %v16662_v34 = vpop.xlane.xlu0 %16661  ;;  %29297 = vmatprep.mubr.msk.f32.mxu0 %vm31099_vm1, %v36071_v61 }
 0xb21   : > { %30627 = vrcp.f32 %v16662_v34  ;;  %29303 = vmatmul.mubr.msk.f32.vlgmr.msra.gmra.mrb[98].mxu1 %vm4000_vm3, %v16767_v31  ;;  %29305 = vmatprep.subr.mxu0 %v36071_v61  ;;  %v36142_v31 = vld [vmem:[#allocation20_spill] sm:$0xff] }
 0xb22   : > { %v30618_v19 = vpop.eup %30617  ;;  %29311 = vmatpush3.msra.mxu1 %v33871_v41  ;;  %29298 = vmatmul.mubr.msk.f32.vlgmr.msra.gmra.mrb[52].mxu0 %vm4000_vm3, %v16766_v2 }
 0xb23   : > { %v30620_v37 = vpop.eup %30619  ;;  %v16769_v12 = vmul.f32 %v30618_v19, %v34382_v58  ;;  %29306 = vmatpush3.msra.mxu0 %v33874_v39  ;;  %v16671_v27 = vpop.xlane.xlu1 %16670  ;;  %29312 = vmatprep.mubr.msk.f32.mxu1 %vm31099_vm1, %v36071_v61  ;;  %v36143_v19 = vld [vmem:[#allocation24_spill] sm:$0xff] }
 0xb24   : > { %v16768_v51 = vmul.f32 %v30620_v37, %v34384_v17  ;;  %30629 = vrcp.f32 %v16671_v27  ;;  %29320 = vmatprep.subr.mxu1 %v36071_v61  ;;  %v16668_v11 = vpop.xlane.xlu0 %16667  ;;  %29307 = vmatprep.mubr.msk.f32.mxu0 %vm31099_vm1, %v36071_v61 }
 0xb25   : > { %30631 = vrcp.f32 %v16668_v11  ;;  %29313 = vmatmul.mubr.msk.f32.vlgmr.msra.gmra.mrb[100].mxu1 %vm4000_vm3, %v16769_v12  ;;  %29315 = vmatprep.subr.mxu0 %v36071_v61  ;;  %v36144_v12 = vld [vmem:[#allocation21_spill] sm:$0xff] }
 0xb26   : > { %v30622_v41 = vpop.eup %30621  ;;  %29321 = vmatpush3.msra.mxu1 %v33877_v40  ;;  %29308 = vmatmul.mubr.msk.f32.vlgmr.msra.gmra.mrb[54].mxu0 %vm4000_vm3, %v16768_v51 }
 0xb27   : > { %v30624_v39 = vpop.eup %30623  ;;  %v16771_v58 = vmul.f32 %v30622_v41, %v34392_v22  ;;  %29316 = vmatpush3.msra.mxu0 %v33880_v63  ;;  %v16677_v17 = vpop.xlane.xlu1 %16676  ;;  %29322 = vmatprep.mubr.msk.f32.mxu1 %vm31099_vm1, %v36071_v61  ;;  %v36145_v41 = vld [vmem:[#allocation26_spill] sm:$0xff] }
 0xb28   : > { %v16770_v6 = vmul.f32 %v30624_v39, %v34394_v26  ;;  %30633 = vrcp.f32 %v16677_v17  ;;  %29330 = vmatprep.subr.mxu1 %v36071_v61  ;;  %v16674_v28 = vpop.xlane.xlu0 %16673  ;;  %29317 = vmatprep.mubr.msk.f32.mxu0 %vm31099_vm1, %v36071_v61 }
 0xb29   : > { %30635 = vrcp.f32 %v16674_v28  ;;  %29323 = vmatmul.mubr.msk.f32.vlgmr.msra.gmra.mrb[102].mxu1 %vm4000_vm3, %v16771_v58  ;;  %29325 = vmatprep.subr.mxu0 %v36071_v61  ;;  %v36146_v58 = vld [vmem:[#allocation23_spill] sm:$0xff] }
 0xb2a   : > { %v30626_v40 = vpop.eup %30625  ;;  %29331 = vmatpush3.msra.mxu1 %v33883_v10  ;;  %29318 = vmatmul.mubr.msk.f32.vlgmr.msra.gmra.mrb[56].mxu0 %vm4000_vm3, %v16770_v6 }
 0xb2b   : > { %v30628_v63 = vpop.eup %30627  ;;  %v16773_v22 = vmul.f32 %v30626_v40, %v34402_v48  ;;  %29326 = vmatpush3.msra.mxu0 %v33886_v59  ;;  %v16683_v26 = vpop.xlane.xlu1 %16682  ;;  %29332 = vmatprep.mubr.msk.f32.mxu1 %vm31099_vm1, %v36071_v61  ;;  %v36147_v40 = vld [vmem:[#allocation28_spill] sm:$0xff] }
 0xb2c   : > { %v16772_v56 = vmul.f32 %v30628_v63, %v34404_v54  ;;  %30637 = vrcp.f32 %v16683_v26  ;;  %29340 = vmatprep.subr.mxu1 %v36071_v61  ;;  %v16680_v46 = vpop.xlane.xlu0 %16679  ;;  %29327 = vmatprep.mubr.msk.f32.mxu0 %vm31099_vm1, %v36071_v61 }
 0xb2d   : > { %30639 = vrcp.f32 %v16680_v46  ;;  %29333 = vmatmul.mubr.msk.f32.vlgmr.msra.gmra.mrb[104].mxu1 %vm4000_vm3, %v16773_v22  ;;  %29335 = vmatprep.subr.mxu0 %v36071_v61  ;;  %v36148_v22 = vld [vmem:[#allocation25_spill] sm:$0xff] }
 0xb2e   : > { %v30630_v10 = vpop.eup %30629  ;;  %29341 = vmatpush3.msra.mxu1 %v33889_v13  ;;  %29328 = vmatmul.mubr.msk.f32.vlgmr.msra.gmra.mrb[58].mxu0 %vm4000_vm3, %v16772_v56 }
 0xb2f   : > { %v30632_v59 = vpop.eup %30631  ;;  %v16775_v48 = vmul.f32 %v30630_v10, %v34412_v35  ;;  %29336 = vmatpush3.msra.mxu0 %v33892_v42  ;;  %v16689_v54 = vpop.xlane.xlu1 %16688  ;;  %29342 = vmatprep.mubr.msk.f32.mxu1 %vm31099_vm1, %v36071_v61  ;;  %v36149_v10 = vld [vmem:[#allocation30_spill] sm:$0xff] }
 0xb30   : > { %v16774_v14 = vmul.f32 %v30632_v59, %v34414_v23  ;;  %30641 = vrcp.f32 %v16689_v54  ;;  %29350 = vmatprep.subr.mxu1 %v36071_v61  ;;  %v16686_v24 = vpop.xlane.xlu0 %16685  ;;  %29337 = vmatprep.mubr.msk.f32.mxu0 %vm31099_vm1, %v36071_v61 }
 0xb31   : > { %30643 = vrcp.f32 %v16686_v24  ;;  %29343 = vmatmul.mubr.msk.f32.vlgmr.msra.gmra.mrb[106].mxu1 %vm4000_vm3, %v16775_v48  ;;  %29345 = vmatprep.subr.mxu0 %v36071_v61  ;;  %v36150_v48 = vld [vmem:[#allocation27_spill] sm:$0xff] }
 0xb32   : > { %v30634_v13 = vpop.eup %30633  ;;  %29351 = vmatpush3.msra.mxu1 %v33895_v15  ;;  %29338 = vmatmul.mubr.msk.f32.vlgmr.msra.gmra.mrb[60].mxu0 %vm4000_vm3, %v16774_v14 }
 0xb33   : > { %v30636_v42 = vpop.eup %30635  ;;  %v16777_v35 = vmul.f32 %v30634_v13, %v34422_v16  ;;  %29346 = vmatpush3.msra.mxu0 %v33898_v53  ;;  %v16695_v23 = vpop.xlane.xlu1 %16694  ;;  %29352 = vmatprep.mubr.msk.f32.mxu1 %vm31099_vm1, %v36071_v61  ;;  %v36151_v13 = vld [vmem:[#allocation32_spill] sm:$0xff] }
 0xb34   : > { %v16776_v18 = vmul.f32 %v30636_v42, %v34424_v8  ;;  %30645 = vrcp.f32 %v16695_v23  ;;  %29360 = vmatprep.subr.mxu1 %v36071_v61  ;;  %v16692_v5 = vpop.xlane.xlu0 %16691  ;;  %29347 = vmatprep.mubr.msk.f32.mxu0 %vm31099_vm1, %v36071_v61 }
 0xb35   : > { %30647 = vrcp.f32 %v16692_v5  ;;  %29353 = vmatmul.mubr.msk.f32.vlgmr.msra.gmra.mrb[108].mxu1 %vm4000_vm3, %v16777_v35  ;;  %29355 = vmatprep.subr.mxu0 %v36071_v61  ;;  %v36152_v35 = vld [vmem:[#allocation29_spill] sm:$0xff] }
 0xb36   : > { %v30638_v15 = vpop.eup %30637  ;;  %29361 = vmatpush3.msra.mxu1 %v33901_v52  ;;  %29348 = vmatmul.mubr.msk.f32.vlgmr.msra.gmra.mrb[62].mxu0 %vm4000_vm3, %v16776_v18  ;;  %v26518_v18 = vld [vmem:[%s36054_s9 + $0x28] sm:$0xff] }
 0xb37   : > { %v30640_v53 = vpop.eup %30639  ;;  %v16779_v16 = vmul.f32 %v30638_v15, %v34432_v25  ;;  %29356 = vmatpush3.msra.mxu0 %v33904_v3  ;;  %v16701_v8 = vpop.xlane.xlu1 %16700  ;;  %29362 = vmatprep.mubr.msk.f32.mxu1 %vm31099_vm1, %v36071_v61  ;;  %v36141_v3 = vld [vmem:[#allocation22_spill] sm:$0xff]  ;;  %v36153_v15 = vld [vmem:[#allocation31_spill] sm:$0xff] }
 0xb38   : > { %v16778_v57 = vmul.f32 %v30640_v53, %v34434_v36  ;;  %30649 = vrcp.f32 %v16701_v8  ;;  %29370 = vmatprep.subr.mxu1 %v36071_v61  ;;  %v16698_v55 = vpop.xlane.xlu0 %16697  ;;  %29357 = vmatprep.mubr.msk.f32.mxu0 %vm31099_vm1, %v36071_v61 }
 0xb39   : > { %30651 = vrcp.f32 %v16698_v55  ;;  %29363 = vmatmul.mubr.msk.f32.vlgmr.msra.gmra.mrb[110].mxu1 %vm4000_vm3, %v16779_v16  ;;  %29365 = vmatprep.subr.mxu0 %v36071_v61 }
 0xb3a   : > { %v30642_v52 = vpop.eup %30641  ;;  %29371 = vmatpush3.msra.mxu1 %v36141_v3  ;;  %29358 = vmatmul.mubr.msk.f32.vlgmr.msra.gmra.mrb[64].mxu0 %vm4000_vm3, %v16778_v57 }
 0xb3b   : > { %v30644_v25 = vpop.eup %30643  ;;  %v16781_v36 = vmul.f32 %v30642_v52, %v34442_v20  ;;  %29366 = vmatpush3.msra.mxu0 %v36142_v31  ;;  %v16707_v49 = vpop.xlane.xlu1 %16706  ;;  %29372 = vmatprep.mubr.msk.f32.mxu1 %vm31099_vm1, %v36071_v61  ;;  %v26552_v52 = vld [vmem:[%s36048_s3 + $0x68] sm:$0xff] }
 0xb3c   : > { %v16780_v2 = vmul.f32 %v30644_v25, %v34444_v7  ;;  %30653 = vrcp.f32 %v16707_v49  ;;  %29380 = vmatprep.subr.mxu1 %v36071_v61  ;;  %v16704_v34 = vpop.xlane.xlu0 %16703  ;;  %29367 = vmatprep.mubr.msk.f32.mxu0 %vm31099_vm1, %v36071_v61  ;;  %v26553_v25 = vld [vmem:[%s36048_s3 + $0x70] sm:$0xff]  ;;  %v30994_v49 = vld [vmem:[%s31204_s26 + $0x8] sm:$0xff] }
 0xb3d   : > { %30655 = vrcp.f32 %v16704_v34  ;;  %29373 = vmatmul.mubr.msk.f32.vlgmr.msra.gmra.mrb[130].mxu1 %vm4000_vm3, %v16781_v36  ;;  %29375 = vmatprep.subr.mxu0 %v36071_v61  ;;  %v26554_v36 = vld [vmem:[%s36048_s3 + $0x78] sm:$0xff] }
 0xb3e   : > { %v30646_v20 = vpop.eup %30645  ;;  %29381 = vmatpush3.msra.mxu1 %v36143_v19  ;;  %29368 = vmatmul.mubr.msk.f32.vlgmr.msra.gmra.mrb[66].mxu0 %vm4000_vm3, %v16780_v2  ;;  %v30125_v31 = vpack.c.bf16 %v26554_v36, %v26553_v25  ;;  %v30995_v2 = vld [vmem:[%s31204_s26 + $0x10] sm:$0xff]  ;;  %v30996_v34 = vld [vmem:[%s31204_s26 + $0x18] sm:$0xff]  ;;  %v30998_v19 = vld [vmem:[%s31204_s26 + $0x28] sm:$0xff] }
 0xb3f   : > { %v30648_v37 = vpop.eup %30647  ;;  %v16783_v7 = vmul.f32 %v30646_v20, %v34452_v43  ;;  %29376 = vmatpush3.msra.mxu0 %v36144_v12  ;;  %v16713_v27 = vpop.xlane.xlu1 %16712  ;;  %29382 = vmatprep.mubr.msk.f32.mxu1 %vm31099_vm1, %v36071_v61  ;;  %v30997_v20 = vld [vmem:[%s31204_s26 + $0x20] sm:$0xff] }
 0xb40   : > { %v16782_v51 = vmul.f32 %v30648_v37, %v34454_v1  ;;  %30657 = vrcp.f32 %v16713_v27  ;;  %29390 = vmatprep.subr.mxu1 %v36071_v61  ;;  %v16710_v11 = vpop.xlane.xlu0 %16709  ;;  %29377 = vmatprep.mubr.msk.f32.mxu0 %vm31099_vm1, %v36071_v61  ;;  %v30999_v37 = vld [vmem:[%s31204_s26 + $0x30] sm:$0xff]  ;;  %v31001_v12 = vld [vmem:[%s31204_s26 + $0x40] sm:$0xff]  ;;  %v31002_v27 = vld [vmem:[%s31204_s26 + $0x48] sm:$0xff] }
 0xb41   : > { %30659 = vrcp.f32 %v16710_v11  ;;  %29383 = vmatmul.mubr.msk.f32.vlgmr.msra.gmra.mrb[132].mxu1 %vm4000_vm3, %v16783_v7  ;;  %29385 = vmatprep.subr.mxu0 %v36071_v61  ;;  %v31000_v7 = vld [vmem:[%s31204_s26 + $0x38] sm:$0xff]  ;;  %v31029_v25 = vld [vmem:[%s31350_s16 + $0x20] sm:$0xff] }
 0xb42   : > { %v30650_v43 = vpop.eup %30649  ;;  %29391 = vmatpush3.msra.mxu1 %v36145_v41  ;;  %29378 = vmatmul.mubr.msk.f32.vlgmr.msra.gmra.mrb[68].mxu0 %vm4000_vm3, %v16782_v51  ;;  %v31003_v51 = vld [vmem:[%s31204_s26 + $0x50] sm:$0xff]  ;;  %v31004_v11 = vld [vmem:[%s31204_s26 + $0x58] sm:$0xff]  ;;  %v31006_v41 = vld [vmem:[%s31204_s26 + $0x68] sm:$0xff] }
 0xb43   : > { %v30652_v39 = vpop.eup %30651  ;;  %v16785_v1 = vmul.f32 %v30650_v43, %v34462_v33  ;;  %29386 = vmatpush3.msra.mxu0 %v36146_v58  ;;  %v16719_v17 = vpop.xlane.xlu1 %16718  ;;  %29392 = vmatprep.mubr.msk.f32.mxu1 %vm31099_vm1, %v36071_v61  ;;  %v31005_v43 = vld [vmem:[%s31204_s26 + $0x60] sm:$0xff] }
 0xb44   : > { %v16784_v6 = vmul.f32 %v30652_v39, %v34464_v38  ;;  %30661 = vrcp.f32 %v16719_v17  ;;  %29400 = vmatprep.subr.mxu1 %v36071_v61  ;;  %v16716_v28 = vpop.xlane.xlu0 %16715  ;;  %29387 = vmatprep.mubr.msk.f32.mxu0 %vm31099_vm1, %v36071_v61  ;;  %v31007_v39 = vld [vmem:[%s31204_s26 + $0x70] sm:$0xff]  ;;  %v31009_v58 = vld [vmem:[%s31204_s26 + $0x80] sm:$0xff]  ;;  %v31010_v17 = vld [vmem:[%s31204_s26 + $0x88] sm:$0xff] }
 0xb45   : > { %30663 = vrcp.f32 %v16716_v28  ;;  %29393 = vmatmul.mubr.msk.f32.vlgmr.msra.gmra.mrb[134].mxu1 %vm4000_vm3, %v16785_v1  ;;  %29395 = vmatprep.subr.mxu0 %v36071_v61  ;;  %v31008_v1 = vld [vmem:[%s31204_s26 + $0x78] sm:$0xff] }
 0xb46   : > { %v30654_v33 = vpop.eup %30653  ;;  %29401 = vmatpush3.msra.mxu1 %v36147_v40  ;;  %29388 = vmatmul.mubr.msk.f32.vlgmr.msra.gmra.mrb[70].mxu0 %vm4000_vm3, %v16784_v6  ;;  %v31011_v6 = vld [vmem:[%s31204_s26 + $0x90] sm:$0xff]  ;;  %v31012_v28 = vld [vmem:[%s31204_s26 + $0x98] sm:$0xff]  ;;  %v31014_v40 = vld [vmem:[%s31204_s26 + $0xa8] sm:$0xff] }
 0xb47   : > { %v30656_v63 = vpop.eup %30655  ;;  %v16787_v38 = vmul.f32 %v30654_v33, %v34472_v32  ;;  %29396 = vmatpush3.msra.mxu0 %v36148_v22  ;;  %v16725_v26 = vpop.xlane.xlu1 %16724  ;;  %29402 = vmatprep.mubr.msk.f32.mxu1 %vm31099_vm1, %v36071_v61  ;;  %v31013_v33 = vld [vmem:[%s31204_s26 + $0xa0] sm:$0xff] }
 0xb48   : > { %v16786_v56 = vmul.f32 %v30656_v63, %v34474_v29  ;;  %30665 = vrcp.f32 %v16725_v26  ;;  %29410 = vmatprep.subr.mxu1 %v36071_v61  ;;  %v16722_v46 = vpop.xlane.xlu0 %16721  ;;  %29397 = vmatprep.mubr.msk.f32.mxu0 %vm31099_vm1, %v36071_v61  ;;  %v31015_v63 = vld [vmem:[%s31204_s26 + $0xb0] sm:$0xff]  ;;  %v31017_v22 = vld [vmem:[%s31204_s26 + $0xc0] sm:$0xff]  ;;  %v31018_v26 = vld [vmem:[%s31204_s26 + $0xc8] sm:$0xff] }
 0xb49   : > { %30667 = vrcp.f32 %v16722_v46  ;;  %29403 = vmatmul.mubr.msk.f32.vlgmr.msra.gmra.mrb[136].mxu1 %vm4000_vm3, %v16787_v38  ;;  %29405 = vmatprep.subr.mxu0 %v36071_v61  ;;  %v31016_v38 = vld [vmem:[%s31204_s26 + $0xb8] sm:$0xff] }
 0xb4a   : > { %v30658_v32 = vpop.eup %30657  ;;  %29411 = vmatpush3.msra.mxu1 %v36149_v10  ;;  %29398 = vmatmul.mubr.msk.f32.vlgmr.msra.gmra.mrb[72].mxu0 %vm4000_vm3, %v16786_v56  ;;  %v31019_v56 = vld [vmem:[%s31204_s26 + $0xd0] sm:$0xff]  ;;  %v31020_v46 = vld [vmem:[%s31204_s26 + $0xd8] sm:$0xff]  ;;  %v31022_v10 = vld [vmem:[%s31204_s26 + $0xe8] sm:$0xff] }
 0xb4b   : > { %v30660_v59 = vpop.eup %30659  ;;  %v16789_v29 = vmul.f32 %v30658_v32, %v34482_v9  ;;  %29406 = vmatpush3.msra.mxu0 %v36150_v48  ;;  %v16731_v54 = vpop.xlane.xlu1 %16730  ;;  %29412 = vmatprep.mubr.msk.f32.mxu1 %vm31099_vm1, %v36071_v61  ;;  %v31021_v32 = vld [vmem:[%s31204_s26 + $0xe0] sm:$0xff]  ;;  %v31023_v48 = vld [vmem:[%s31204_s26 + $0xf0] sm:$0xff] }
 0xb4c   : > { %v16788_v14 = vmul.f32 %v30660_v59, %v34484_v47  ;;  %30669 = vrcp.f32 %v16731_v54  ;;  %29420 = vmatprep.subr.mxu1 %v36071_v61  ;;  %v16728_v24 = vpop.xlane.xlu0 %16727  ;;  %29407 = vmatprep.mubr.msk.f32.mxu0 %vm31099_vm1, %v36071_v61  ;;  %v26591_v59 = vld [vmem:[%s36050_s5 + $0x70] sm:$0xff]  ;;  %v26627_v54 = vld [vmem:[%s36052_s7 + $0x60] sm:$0xff] }
 0xb4d   : > { %30671 = vrcp.f32 %v16728_v24  ;;  %29413 = vmatmul.mubr.msk.f32.vlgmr.msra.gmra.mrb[138].mxu1 %vm4000_vm3, %v16789_v29  ;;  %29415 = vmatprep.subr.mxu0 %v36071_v61  ;;  %v26592_v29 = vld [vmem:[%s36050_s5 + $0x78] sm:$0xff]  ;;  %v26629_v24 = vld [vmem:[%s36052_s7 + $0x70] sm:$0xff] }
 0xb4e   : > { %v30662_v9 = vpop.eup %30661  ;;  %29421 = vmatpush3.msra.mxu1 %v36151_v13  ;;  %29408 = vmatmul.mubr.msk.f32.vlgmr.msra.gmra.mrb[74].mxu0 %vm4000_vm3, %v16788_v14  ;;  %v26628_v14 = vld [vmem:[%s36052_s7 + $0x68] sm:$0xff] }
 0xb4f   : > { %v30664_v42 = vpop.eup %30663  ;;  %v16791_v47 = vmul.f32 %v30662_v9, %v34490_v0  ;;  %29416 = vmatpush3.msra.mxu0 %v36152_v35  ;;  %29422 = vmatprep.mubr.msk.f32.mxu1 %vm31099_vm1, %v36071_v61  ;;  %v26517_v0 = vld [vmem:[%s36054_s9 + $0x20] sm:$0xff]  ;;  %v30137_v13 = vpack.c.bf16 %v26628_v14, %v26627_v54  ;;  %v31040_v54 = vld [vmem:[%s31350_s16 + $0x78] sm:$0xff] }
 0xb50   : > { %v16790_v23 = vmul.f32 %v30664_v42, %v34492_v30  ;;  %29430 = vmatprep.subr.mxu1 %v36071_v61  ;;  %29417 = vmatprep.mubr.msk.f32.mxu0 %vm31099_vm1, %v36071_v61  ;;  %v30117_v8 = vpack.c.bf16 %v26518_v18, %v26517_v0  ;;  %v26630_v42 = vld [vmem:[%s36052_s7 + $0x78] sm:$0xff]  ;;  %v31041_v14 = vld [vmem:[%s31350_s16 + $0x80] sm:$0xff] }
 0xb51   : > { %29423 = vmatmul.mubr.msk.f32.vlgmr.msra.gmra.mrb[140].mxu1 %vm4000_vm3, %v16791_v47  ;;  %29425 = vmatprep.subr.mxu0 %v36071_v61  ;;  %v31024_v0 = vld [vmem:[%s31204_s26 + $0xf8] sm:$0xff]  ;;  %v30141_v18 = vpack.c.bf16 %v26630_v42, %v26629_v24 }
 0xb52   : > { %v30666_v5 = vpop.eup %30665  ;;  %29431 = vmatpush3.msra.mxu1 %v36153_v15  ;;  %29418 = vmatmul.mubr.msk.f32.vlgmr.msra.gmra.mrb[76].mxu0 %vm4000_vm3, %v16790_v23  ;;  %v30133_v23 = vpack.c.bf16 %v26592_v29, %v26591_v59 }
 0xb53   : > { %v30668_v30 = vpop.eup %30667  ;;  %v16793_v53 = vmul.f32 %v30666_v5, %v34498_v44  ;;  %29426 = vmatpush3.msra.mxu0 %v33961_v45  ;;  %29432 = vmatprep.mubr.msk.f32.mxu1 %vm31099_vm1, %v36071_v61 }
 0xb54   : > { %v16792_v16 = vmul.f32 %v30668_v30, %v34500_v21  ;;  %29440 = vmatprep.subr.mxu1 %v36071_v61  ;;  %29427 = vmatprep.mubr.msk.f32.mxu0 %vm31099_vm1, %v36071_v61 }
 0xb55   : > { %29433 = vmatmul.mubr.msk.f32.vlgmr.msra.gmra.mrb[142].mxu1 %vm4000_vm3, %v16793_v53  ;;  %29435 = vmatprep.subr.mxu0 %v36071_v61 }
 0xb56   : > { %v30670_v57 = vpop.eup %30669  ;;  %29441 = vmatpush3.msra.mxu1 %v33972_v4  ;;  %29428 = vmatmul.mubr.msk.f32.vlgmr.msra.gmra.mrb[78].mxu0 %vm4000_vm3, %v16792_v16  ;;  %v30993_v4 = vld [vmem:[%s31204_s26] sm:$0xff] }
 0xb57   : > { %v30672_v45 = vpop.eup %30671  ;;  %v16795_v44 = vmul.f32 %v30670_v57, %v34506_v62  ;;  %29436 = vmatpush3.msra.mxu0 %v33977_v60  ;;  %29442 = vmatprep.mubr.msk.f32.mxu1 %vm31099_vm1, %v36071_v61  ;;  %v26589_v60 = vld [vmem:[%s36050_s5 + $0x60] sm:$0xff]  ;;  %v26590_v62 = vld [vmem:[%s36050_s5 + $0x68] sm:$0xff] }
 0xb58   : > { %v16794_v21 = vmul.f32 %v30672_v45, %v34508_v50  ;;  %29437 = vmatprep.mubr.msk.f32.mxu0 %vm31099_vm1, %v36071_v61  ;;  %30118 = vmatprep.subr.bf16.mxu0 %v30117_v8  ;;  %v26551_v50 = vld [vmem:[%s36048_s3 + $0x60] sm:$0xff]  ;;  %v34713_v55 = vpack.c.bf16 %v26590_v62, %v26589_v60  ;;  %v31027_v60 = vld [vmem:[%s31350_s16 + $0x10] sm:$0xff] }
 0xb59   : > { %29443 = vmatmul.mubr.msk.f32.vlgmr.msra.gmra.mrb[144].mxu1 %vm4000_vm3, %v16795_v44  ;;  %v30121_v3 = vpack.c.bf16 %v26552_v52, %v26551_v50  ;;  %v31025_v16 = vld [vmem:[%s31350_s16] sm:$0xff] }
 0xb5a   : > { %29438 = vmatmul.mubr.msk.f32.vlgmr.msra.gmra.mrb[80].mxu0 %vm4000_vm3, %v16794_v21  ;;  %29505 = vmatprep.mubr.msk.f32.mxu1 %vm549_vm0, %v30993_v4  ;;  %v31026_v4 = vld [vmem:[%s31350_s16 + $0x8] sm:$0xff] }
 0xb5b   : > { %30120 = vmatpush3.bf16.msra.mxu0 %v30117_v8  ;;  %30122 = vmatprep.subr.bf16.mxu1 %v30121_v3 }
 0xb5c   : > { %30130 = vmatprep.subr.bf16.mxu0 %v34713_v55  ;;  %30124 = vmatpush3.bf16.msra.mxu1 %v30121_v3  ;;  %v31028_v3 = vld [vmem:[%s31350_s16 + $0x18] sm:$0xff] }
 0xb5d   : > { %30126 = vmatprep.subr.bf16.mxu1 %v30125_v31 }
 0xb60   : > { %30128 = vmatpush3.bf16.msra.mxu1 %v30125_v31 }
 0xb61   : > { %30138 = vmatprep.subr.bf16.mxu1 %v30137_v13 }
 0xb63   : > { %29506 = vmatmul.mubr.msk.f32.vlgmr.msra.gmra.mrb[146].mxu1 %vm549_vm0, %v30994_v49 }
 0xb64   : > { %29508 = vmatprep.mubr.msk.f32.mxu1 %vm549_vm0, %v30995_v2  ;;  %30140 = vmatpush3.bf16.msra.mxu1 %v30137_v13 }
 0xb65   : > { %30142 = vmatprep.subr.bf16.mxu1 %v30141_v18 }
 0xb67   : > { %29509 = vmatmul.mubr.msk.f32.gmra.mrb[148].mxu1 %vm549_vm0, %v30996_v34  ;;  %v31030_v34 = vld [vmem:[%s31350_s16 + $0x28] sm:$0xff] }
 0xb68   : > { %29511 = vmatprep.mubr.msk.f32.mxu1 %vm549_vm0, %v30997_v20  ;;  %30144 = vmatpush3.bf16.msra.mxu1 %v30141_v18  ;;  %v31031_v20 = vld [vmem:[%s31350_s16 + $0x30] sm:$0xff] }
 0xb69   : > { %29675 = vmatprep.subr.mxu1 %v36071_v61 }
 0xb6b   : > { %29512 = vmatmul.mubr.msk.f32.gmra.mrb[150].mxu1 %vm549_vm0, %v30998_v19 }
 0xb6c   : > { %29514 = vmatprep.mubr.msk.f32.mxu1 %vm549_vm0, %v30999_v37 }
 0xb6f   : > { %29515 = vmatmul.mubr.msk.f32.gmra.mrb[152].mxu1 %vm549_vm0, %v31000_v7 }
 0xb70   : > { %29517 = vmatprep.mubr.msk.f32.mxu1 %vm549_vm0, %v31001_v12 }
 0xb73   : > { %29518 = vmatmul.mubr.msk.f32.gmra.mrb[154].mxu1 %vm549_vm0, %v31002_v27  ;;  %v31032_v27 = vld [vmem:[%s31350_s16 + $0x38] sm:$0xff] }
 0xb74   : > { %29520 = vmatprep.mubr.msk.f32.mxu1 %vm549_vm0, %v31003_v51  ;;  %v31033_v51 = vld [vmem:[%s31350_s16 + $0x40] sm:$0xff] }
 0xb77   : > { %29521 = vmatmul.mubr.msk.f32.gmra.mrb[156].mxu1 %vm549_vm0, %v31004_v11 }
 0xb78   : > { %29523 = vmatprep.mubr.msk.f32.mxu1 %vm549_vm0, %v31005_v43 }
 0xb7b   : > { %29524 = vmatmul.mubr.msk.f32.gmra.mrb[158].mxu1 %vm549_vm0, %v31006_v41 }
 0xb7c   : > { %29526 = vmatprep.mubr.msk.f32.mxu1 %vm549_vm0, %v31007_v39 }
 0xb7f   : > { %29527 = vmatmul.mubr.msk.f32.gmra.mrb[160].mxu1 %vm549_vm0, %v31008_v1  ;;  %v31034_v1 = vld [vmem:[%s31350_s16 + $0x48] sm:$0xff] }
 0xb80   : > { %29529 = vmatprep.mubr.msk.f32.mxu1 %vm549_vm0, %v31009_v58  ;;  %v31035_v58 = vld [vmem:[%s31350_s16 + $0x50] sm:$0xff] }
 0xb83   : > { %29530 = vmatmul.mubr.msk.f32.gmra.mrb[162].mxu1 %vm549_vm0, %v31010_v17 }
 0xb84   : > { %29532 = vmatprep.mubr.msk.f32.mxu1 %vm549_vm0, %v31011_v6 }
 0xb87   : > { %29533 = vmatmul.mubr.msk.f32.gmra.mrb[164].mxu1 %vm549_vm0, %v31012_v28 }
 0xb88   : > { %29535 = vmatprep.mubr.msk.f32.mxu1 %vm549_vm0, %v31013_v33 }
 0xb8b   : > { %29536 = vmatmul.mubr.msk.f32.gmra.mrb[166].mxu1 %vm549_vm0, %v31014_v40  ;;  %v31036_v40 = vld [vmem:[%s31350_s16 + $0x58] sm:$0xff] }
 0xb8c   : > { %29538 = vmatprep.mubr.msk.f32.mxu1 %vm549_vm0, %v31015_v63  ;;  %v31037_v63 = vld [vmem:[%s31350_s16 + $0x60] sm:$0xff] }
 0xb8f   : > { %29539 = vmatmul.mubr.msk.f32.gmra.mrb[168].mxu1 %vm549_vm0, %v31016_v38 }
 0xb90   : > { %29541 = vmatprep.mubr.msk.f32.mxu1 %vm549_vm0, %v31017_v22 }
 0xb93   : > { %29542 = vmatmul.mubr.msk.f32.gmra.mrb[170].mxu1 %vm549_vm0, %v31018_v26 }
 0xb94   : > { %29544 = vmatprep.mubr.msk.f32.mxu1 %vm549_vm0, %v31019_v56 }
 0xb97   : > { %29545 = vmatmul.mubr.msk.f32.gmra.mrb[172].mxu1 %vm549_vm0, %v31020_v46  ;;  %v31038_v46 = vld [vmem:[%s31350_s16 + $0x68] sm:$0xff] }
 0xb98   : > { %29547 = vmatprep.mubr.msk.f32.mxu1 %vm549_vm0, %v31021_v32  ;;  %v31039_v32 = vld [vmem:[%s31350_s16 + $0x70] sm:$0xff] }
 0xb9b   : > { %29548 = vmatmul.mubr.msk.f32.gmra.mrb[174].mxu1 %vm549_vm0, %v31022_v10 }
 0xb9c   : > { %29550 = vmatprep.mubr.msk.f32.mxu1 %vm549_vm0, %v31023_v48 }
 0xb9f   : > { %29551 = vmatmul.mubr.msk.f32.gmra.mrb[176].mxu1 %vm549_vm0, %v31024_v0 }
 0xba0   : > { %29617 = vmatprep.mubr.msk.f32.mxu1 %vm549_vm0, %v31025_v16 }
 0xba3   : > { %29618 = vmatmul.mubr.msk.f32.vlgmr.msra.gmra.mrb[178].mxu1 %vm549_vm0, %v31026_v4 }
 0xba4   : > { %29620 = vmatprep.mubr.msk.f32.mxu1 %vm549_vm0, %v31027_v60 }
 0xba7   : > { %29621 = vmatmul.mubr.msk.f32.gmra.mrb[180].mxu1 %vm549_vm0, %v31028_v3 }
 0xba8   : > { %29623 = vmatprep.mubr.msk.f32.mxu1 %vm549_vm0, %v31029_v25 }
 0xbab   : > { %29624 = vmatmul.mubr.msk.f32.gmra.mrb[182].mxu1 %vm549_vm0, %v31030_v34 }
 0xbac   : > { %29626 = vmatprep.mubr.msk.f32.mxu1 %vm549_vm0, %v31031_v20 }
 0xbaf   : > { %29627 = vmatmul.mubr.msk.f32.gmra.mrb[184].mxu1 %vm549_vm0, %v31032_v27  ;;  %v31055_v27 = vld [vmem:[%s31350_s16 + $0xe8] sm:$0xff] }
 0xbb0   : > { %29629 = vmatprep.mubr.msk.f32.mxu1 %vm549_vm0, %v31033_v51  ;;  %v31056_v51 = vld [vmem:[%s31210_s29 + $0x8] sm:$0xff] }
 0xbb3   : > { %29630 = vmatmul.mubr.msk.f32.gmra.mrb[186].mxu1 %vm549_vm0, %v31034_v1  ;;  %v31061_v1 = vld [vmem:[%s31210_s29 + $0x20] sm:$0xff] }
 0xbb4   : > { %29632 = vmatprep.mubr.msk.f32.mxu1 %vm549_vm0, %v31035_v58  ;;  %v31062_v58 = vld [vmem:[%s31210_s29 + $0x28] sm:$0xff] }
 0xbb7   : > { %29633 = vmatmul.mubr.msk.f32.gmra.mrb[188].mxu1 %vm549_vm0, %v31036_v40  ;;  %v31067_v40 = vld [vmem:[%s31210_s29 + $0x50] sm:$0xff] }
 0xbb8   : > { %29635 = vmatprep.mubr.msk.f32.mxu1 %vm549_vm0, %v31037_v63  ;;  %v31068_v63 = vld [vmem:[%s31210_s29 + $0x58] sm:$0xff] }
 0xbbb   : > { %29636 = vmatmul.mubr.msk.f32.gmra.mrb[190].mxu1 %vm549_vm0, %v31038_v46  ;;  %v31073_v46 = vld [vmem:[%s31210_s29 + $0x80] sm:$0xff] }
 0xbbc   : > { %29638 = vmatprep.mubr.msk.f32.mxu1 %vm549_vm0, %v31039_v32  ;;  %v31074_v32 = vld [vmem:[%s31210_s29 + $0x88] sm:$0xff] }
 0xbbf   : > { %29639 = vmatmul.mubr.msk.f32.gmra.mrb[192].mxu1 %vm549_vm0, %v31040_v54  ;;  %v31079_v54 = vld [vmem:[%s31210_s29 + $0xb0] sm:$0xff] }
 0xbc0   : > { %29641 = vmatprep.mubr.msk.f32.mxu1 %vm549_vm0, %v31041_v14  ;;  %v31080_v14 = vld [vmem:[%s31210_s29 + $0xb8] sm:$0xff] }
 0xbf0   : > { %v16938_v9 = vpop.f32.mrb[96].mxu1 }
 0xbf1   : > { %v16865_v47 = vpop.f32.mrb[50].mxu0  ;;  %v29294_v35 = vpop.f32.mrb[97].mxu1 }
 0xbf2   : > { %v29289_v5 = vpop.f32.mrb[51].mxu0  ;;  %29449 = vmatprep.mubr.msk.f32.mxu0 %vm1567_vm2, %v16865_v47  ;;  %v31042_v47 = vld [vmem:[%s31350_s16 + $0x88] sm:$0xff]  ;;  %v31043_v35 = vld [vmem:[%s31350_s16 + $0x90] sm:$0xff] }
 0xbf3   : > { %29450 = vmatmul.mubr.msk.f32.vlgmr.msra.gmra.mrb[112].mxu0 %vm1567_vm2, %v16938_v9  ;;  %29642 = vmatmul.mubr.msk.f32.gmra.mrb[194].mxu1 %vm549_vm0, %v31042_v47  ;;  %v31085_v47 = vld [vmem:[%s31210_s29 + $0xe0] sm:$0xff] }
 0xbf4   : > { %v17084_v15 = vpop.f32.mrb[98].mxu1  ;;  %30132 = vmatpush3.bf16.msra.mxu0 %v34713_v55  ;;  %29644 = vmatprep.mubr.msk.f32.mxu1 %vm549_vm0, %v31043_v35  ;;  %v31086_v35 = vld [vmem:[%s31210_s29 + $0xe8] sm:$0xff] }
 0xbf5   : > { %v17011_v30 = vpop.f32.mrb[52].mxu0  ;;  %v29304_v53 = vpop.f32.mrb[99].mxu1  ;;  %30134 = vmatprep.subr.bf16.mxu0 %v30133_v23 }
 0xbf6   : > { %v29299_v8 = vpop.f32.mrb[53].mxu0  ;;  %29452 = vmatprep.mubr.msk.f32.mxu0 %vm1567_vm2, %v17011_v30  ;;  %v31045_v30 = vld [vmem:[%s31350_s16 + $0xa0] sm:$0xff] }
 0xbf7   : > { %29453 = vmatmul.mubr.msk.f32.gmra.mrb[114].mxu0 %vm1567_vm2, %v17084_v15  ;;  %v31044_v15 = vld [vmem:[%s31350_s16 + $0x98] sm:$0xff] }
 0xbf8   : > { %v17230_v57 = vpop.f32.mrb[100].mxu1  ;;  %30136 = vmatpush3.bf16.msra.mxu0 %v30133_v23  ;;  %29645 = vmatmul.mubr.msk.f32.gmra.mrb[196].mxu1 %vm549_vm0, %v31044_v15 }
 0xbf9   : > { %v17157_v45 = vpop.f32.mrb[54].mxu0  ;;  %v29314_v44 = vpop.f32.mrb[101].mxu1  ;;  %29665 = vmatprep.subr.mxu0 %v36071_v61  ;;  %29647 = vmatprep.mubr.msk.f32.mxu1 %vm549_vm0, %v31045_v30 }
 0xbfa   : > { %v29309_v21 = vpop.f32.mrb[55].mxu0  ;;  %29455 = vmatprep.mubr.msk.f32.mxu0 %vm1567_vm2, %v17157_v45  ;;  %v31046_v45 = vld [vmem:[%s31350_s16 + $0xa8] sm:$0xff]  ;;  %v31047_v44 = vld [vmem:[%s31350_s16 + $0xb0] sm:$0xff] }
 0xbfb   : > { %29456 = vmatmul.mubr.msk.f32.gmra.mrb[116].mxu0 %vm1567_vm2, %v17230_v57 }
 0xbfc   : > { %v17376_v62 = vpop.f32.mrb[102].mxu1  ;;  %29648 = vmatmul.mubr.msk.f32.gmra.mrb[198].mxu1 %vm549_vm0, %v31046_v45 }
 0xbfd   : > { %v17303_v50 = vpop.f32.mrb[56].mxu0  ;;  %v29324_v55 = vpop.f32.mrb[103].mxu1  ;;  %29650 = vmatprep.mubr.msk.f32.mxu1 %vm549_vm0, %v31047_v44 }
 0xbfe   : > { %v29319_v52 = vpop.f32.mrb[57].mxu0  ;;  %29458 = vmatprep.mubr.msk.f32.mxu0 %vm1567_vm2, %v17303_v50  ;;  %v31048_v50 = vld [vmem:[%s31350_s16 + $0xb8] sm:$0xff]  ;;  %v31049_v55 = vld [vmem:[%s31350_s16 + $0xc0] sm:$0xff] }
 0xbff   : > { %29459 = vmatmul.mubr.msk.f32.gmra.mrb[118].mxu0 %vm1567_vm2, %v17376_v62 }
 0xc00   : > { %v17522_v36 = vpop.f32.mrb[104].mxu1  ;;  %29651 = vmatmul.mubr.msk.f32.gmra.mrb[200].mxu1 %vm549_vm0, %v31048_v50 }
 0xc01   : > { %v17449_v31 = vpop.f32.mrb[58].mxu0  ;;  %v29334_v49 = vpop.f32.mrb[105].mxu1  ;;  %29653 = vmatprep.mubr.msk.f32.mxu1 %vm549_vm0, %v31049_v55 }
 0xc02   : > { %v29329_v2 = vpop.f32.mrb[59].mxu0  ;;  %29461 = vmatprep.mubr.msk.f32.mxu0 %vm1567_vm2, %v17449_v31  ;;  %v31050_v31 = vld [vmem:[%s31350_s16 + $0xc8] sm:$0xff]  ;;  %v31051_v49 = vld [vmem:[%s31350_s16 + $0xd0] sm:$0xff] }
 0xc03   : > { %29462 = vmatmul.mubr.msk.f32.gmra.mrb[120].mxu0 %vm1567_vm2, %v17522_v36 }
 0xc04   : > { %v17668_v19 = vpop.f32.mrb[106].mxu1  ;;  %29654 = vmatmul.mubr.msk.f32.gmra.mrb[202].mxu1 %vm549_vm0, %v31050_v31 }
 0xc05   : > { %v17595_v37 = vpop.f32.mrb[60].mxu0  ;;  %v29344_v7 = vpop.f32.mrb[107].mxu1  ;;  %29656 = vmatprep.mubr.msk.f32.mxu1 %vm549_vm0, %v31051_v49 }
 0xc06   : > { %v29339_v12 = vpop.f32.mrb[61].mxu0  ;;  %29464 = vmatprep.mubr.msk.f32.mxu0 %vm1567_vm2, %v17595_v37  ;;  %v31052_v37 = vld [vmem:[%s31350_s16 + $0xd8] sm:$0xff]  ;;  %v31053_v7 = vld [vmem:[%s31350_s16 + $0xe0] sm:$0xff] }
 0xc07   : > { %29465 = vmatmul.mubr.msk.f32.gmra.mrb[122].mxu0 %vm1567_vm2, %v17668_v19  ;;  %v31054_v12 = vld [vmem:[%s31210_s29] sm:$0xff] }
 0xc08   : > { %v17814_v11 = vpop.f32.mrb[108].mxu1  ;;  %29657 = vmatmul.mubr.msk.f32.gmra.mrb[204].mxu1 %vm549_vm0, %v31052_v37 }
 0xc09   : > { %v17741_v43 = vpop.f32.mrb[62].mxu0  ;;  %v29354_v41 = vpop.f32.mrb[109].mxu1  ;;  %29659 = vmatprep.mubr.msk.f32.mxu1 %vm549_vm0, %v31053_v7 }
 0xc0a   : > { %v29349_v39 = vpop.f32.mrb[63].mxu0  ;;  %29467 = vmatprep.mubr.msk.f32.mxu0 %vm1567_vm2, %v17741_v43  ;;  %v31058_v43 = vld [vmem:[%s31210_s29 + $0x10] sm:$0xff]  ;;  %v31059_v41 = vld [vmem:[%s31350_s16 + $0xf8] sm:$0xff] }
 0xc0b   : > { %29468 = vmatmul.mubr.msk.f32.gmra.mrb[124].mxu0 %vm1567_vm2, %v17814_v11  ;;  %v31057_v11 = vld [vmem:[%s31350_s16 + $0xf0] sm:$0xff]  ;;  %v31060_v39 = vld [vmem:[%s31210_s29 + $0x18] sm:$0xff] }
 0xc0c   : > { %v17960_v17 = vpop.f32.mrb[110].mxu1  ;;  %29660 = vmatmul.mubr.msk.f32.gmra.mrb[206].mxu1 %vm549_vm0, %v31055_v27 }
 0xc0d   : > { %v17887_v6 = vpop.f32.mrb[64].mxu0  ;;  %v29364_v28 = vpop.f32.mrb[111].mxu1  ;;  %29662 = vmatprep.mubr.msk.f32.mxu1 %vm549_vm0, %v31057_v11 }
 0xc0e   : > { %v29359_v33 = vpop.f32.mrb[65].mxu0  ;;  %29470 = vmatprep.mubr.msk.f32.mxu0 %vm1567_vm2, %v17887_v6  ;;  %v31064_v6 = vld [vmem:[%s31210_s29 + $0x38] sm:$0xff]  ;;  %v31065_v28 = vld [vmem:[%s31210_s29 + $0x40] sm:$0xff] }
 0xc0f   : > { %29471 = vmatmul.mubr.msk.f32.gmra.mrb[224].mxu0 %vm1567_vm2, %v17960_v17  ;;  %v31063_v17 = vld [vmem:[%s31210_s29 + $0x30] sm:$0xff]  ;;  %v31066_v33 = vld [vmem:[%s31210_s29 + $0x48] sm:$0xff] }
 0xc10   : > { %v18106_v38 = vpop.f32.mrb[130].mxu1  ;;  %29663 = vmatmul.mubr.msk.f32.gmra.mrb[208].mxu1 %vm549_vm0, %v31059_v41 }
 0xc11   : > { %v18033_v22 = vpop.f32.mrb[66].mxu0  ;;  %v29374_v26 = vpop.f32.mrb[131].mxu1  ;;  %29677 = vmatprep.mubr.msk.f32.mxu1 %vm31099_vm1, %v36071_v61 }
 0xc12   : > { %v29369_v56 = vpop.f32.mrb[67].mxu0  ;;  %29473 = vmatprep.mubr.msk.f32.mxu0 %vm1567_vm2, %v18033_v22  ;;  %v31070_v22 = vld [vmem:[%s31210_s29 + $0x68] sm:$0xff]  ;;  %v31071_v26 = vld [vmem:[%s31210_s29 + $0x70] sm:$0xff] }
 0xc13   : > { %29474 = vmatmul.mubr.msk.f32.gmra.mrb[226].mxu0 %vm1567_vm2, %v18106_v38  ;;  %v31069_v38 = vld [vmem:[%s31210_s29 + $0x60] sm:$0xff]  ;;  %v31072_v56 = vld [vmem:[%s31210_s29 + $0x78] sm:$0xff] }
 0xc14   : > { %v18252_v10 = vpop.f32.mrb[132].mxu1 }
 0xc15   : > { %v18179_v59 = vpop.f32.mrb[68].mxu0  ;;  %v29384_v29 = vpop.f32.mrb[133].mxu1 }
 0xc16   : > { %v29379_v48 = vpop.f32.mrb[69].mxu0  ;;  %29476 = vmatprep.mubr.msk.f32.mxu0 %vm1567_vm2, %v18179_v59  ;;  %v31076_v59 = vld [vmem:[%s31210_s29 + $0x98] sm:$0xff]  ;;  %v31077_v29 = vld [vmem:[%s31210_s29 + $0xa0] sm:$0xff] }
 0xc17   : > { %29477 = vmatmul.mubr.msk.f32.gmra.mrb[228].mxu0 %vm1567_vm2, %v18252_v10  ;;  %v31075_v10 = vld [vmem:[%s31210_s29 + $0x90] sm:$0xff]  ;;  %v31078_v48 = vld [vmem:[%s31210_s29 + $0xa8] sm:$0xff] }
 0xc18   : > { %v18398_v24 = vpop.f32.mrb[134].mxu1 }
 0xc19   : > { %v18325_v9 = vpop.f32.mrb[70].mxu0  ;;  %v29394_v13 = vpop.f32.mrb[135].mxu1 }
 0xc1a   : > { %v29389_v42 = vpop.f32.mrb[71].mxu0  ;;  %29479 = vmatprep.mubr.msk.f32.mxu0 %vm1567_vm2, %v18325_v9  ;;  %v31082_v9 = vld [vmem:[%s31210_s29 + $0xc8] sm:$0xff]  ;;  %v31083_v13 = vld [vmem:[%s31210_s29 + $0xd0] sm:$0xff] }
 0xc1b   : > { %29480 = vmatmul.mubr.msk.f32.gmra.mrb[230].mxu0 %vm1567_vm2, %v18398_v24  ;;  %v31081_v24 = vld [vmem:[%s31210_s29 + $0xc0] sm:$0xff]  ;;  %v31084_v42 = vld [vmem:[%s31210_s29 + $0xd8] sm:$0xff] }
 0xc1c   : > { %v18544_v23 = vpop.f32.mrb[136].mxu1 }
 0xc1d   : > { %v18471_v0 = vpop.f32.mrb[72].mxu0  ;;  %v29404_v18 = vpop.f32.mrb[137].mxu1 }
 0xc1e   : > { %v29399_v5 = vpop.f32.mrb[73].mxu0  ;;  %29482 = vmatprep.mubr.msk.f32.mxu0 %vm1567_vm2, %v18471_v0  ;;  %v31088_v0 = vld [vmem:[%s31210_s29 + $0xf8] sm:$0xff] }
 0xc1f   : > { %29483 = vmatmul.mubr.msk.f32.gmra.mrb[232].mxu0 %vm1567_vm2, %v18544_v23  ;;  %v31087_v23 = vld [vmem:[%s31210_s29 + $0xf0] sm:$0xff] }
 0xc20   : > { %v18690_v53 = vpop.f32.mrb[138].mxu1 }
 0xc21   : > { %v18617_v16 = vpop.f32.mrb[74].mxu0  ;;  %v29414_v8 = vpop.f32.mrb[139].mxu1 }
 0xc22   : > { %v29409_v57 = vpop.f32.mrb[75].mxu0  ;;  %29485 = vmatprep.mubr.msk.f32.mxu0 %vm1567_vm2, %v18617_v16 }
 0xc23   : > { %29486 = vmatmul.mubr.msk.f32.gmra.mrb[234].mxu0 %vm1567_vm2, %v18690_v53 }
 0xc24   : > { %v18836_v21 = vpop.f32.mrb[140].mxu1 }
 0xc25   : > { %v18763_v4 = vpop.f32.mrb[76].mxu0  ;;  %v29424_v60 = vpop.f32.mrb[141].mxu1 }
 0xc26   : > { %v29419_v62 = vpop.f32.mrb[77].mxu0  ;;  %29488 = vmatprep.mubr.msk.f32.mxu0 %vm1567_vm2, %v18763_v4 }
 0xc27   : > { %29489 = vmatmul.mubr.msk.f32.gmra.mrb[236].mxu0 %vm1567_vm2, %v18836_v21 }
 0xc28   : > { %v18982_v52 = vpop.f32.mrb[142].mxu1 }
 0xc29   : > { %v18909_v3 = vpop.f32.mrb[78].mxu0  ;;  %v29434_v25 = vpop.f32.mrb[143].mxu1 }
 0xc2a   : > { %v29429_v36 = vpop.f32.mrb[79].mxu0  ;;  %29491 = vmatprep.mubr.msk.f32.mxu0 %vm1567_vm2, %v18909_v3 }
 0xc2b   : > { %29492 = vmatmul.mubr.msk.f32.gmra.mrb[238].mxu0 %vm1567_vm2, %v18982_v52 }
 0xc2c   : > { %v19128_v2 = vpop.f32.mrb[144].mxu1 }
 0xc2d   : > { %v19055_v34 = vpop.f32.mrb[80].mxu0  ;;  %v29444_v20 = vpop.f32.mrb[145].mxu1 }
 0xc2e   : > { %v29439_v19 = vpop.f32.mrb[81].mxu0  ;;  %29494 = vmatprep.mubr.msk.f32.mxu0 %vm1567_vm2, %v19055_v34 }
 0xc2f   : > { %29495 = vmatmul.mubr.msk.f32.gmra.mrb[240].mxu0 %vm1567_vm2, %v19128_v2 }
 0xc30   : > { %29561 = vmatprep.mubr.msk.f32.mxu0 %vm549_vm0, %v31054_v12 }
 0xc33   : > { %29562 = vmatmul.mubr.msk.f32.vlgmr.msra.gmra.mrb[82].mxu0 %vm549_vm0, %v31056_v51  ;;  %v35033_v51 = vld [vmem:[%s36049_s4 + $0x3] ss:$0 sm:$0xff] }
 0xc34   : > { %29564 = vmatprep.mubr.msk.f32.mxu0 %vm549_vm0, %v31058_v43 }
 0xc36   : > { %v34972_v18 = vpop.f32.mrb[146].mxu1 }
 0xc37   : > { %29565 = vmatmul.mubr.msk.f32.gmra.mrb[84].mxu0 %vm549_vm0, %v31060_v39  ;;  %v19567_v5 = vpop.f32.mrb[147].mxu1 }
 0xc38   : > { %29567 = vmatprep.mubr.msk.f32.mxu0 %vm549_vm0, %v31061_v1 }
 0xc3a   : > { %v34974_v15 = vpop.f32.mrb[148].mxu1 }
 0xc3b   : > { %29568 = vmatmul.mubr.msk.f32.gmra.mrb[86].mxu0 %vm549_vm0, %v31062_v58  ;;  %v34976_v30 = vpop.f32.mrb[149].mxu1 }
 0xc3c   : > { %29570 = vmatprep.mubr.msk.f32.mxu0 %vm549_vm0, %v31063_v17 }
 0xc3e   : > { %v34978_v53 = vpop.f32.mrb[150].mxu1 }
 0xc3f   : > { %29571 = vmatmul.mubr.msk.f32.gmra.mrb[88].mxu0 %vm549_vm0, %v31064_v6  ;;  %v34980_v16 = vpop.f32.mrb[151].mxu1 }
 0xc40   : > { %29573 = vmatprep.mubr.msk.f32.mxu0 %vm549_vm0, %v31065_v28 }
 0xc42   : > { %v34982_v8 = vpop.f32.mrb[152].mxu1 }
 0xc43   : > { %29574 = vmatmul.mubr.msk.f32.gmra.mrb[90].mxu0 %vm549_vm0, %v31066_v33  ;;  %v34984_v57 = vpop.f32.mrb[153].mxu1 }
 0xc44   : > { %29576 = vmatprep.mubr.msk.f32.mxu0 %vm549_vm0, %v31067_v40 }
 0xc46   : > { %v34986_v45 = vpop.f32.mrb[154].mxu1 }
 0xc47   : > { %29577 = vmatmul.mubr.msk.f32.gmra.mrb[92].mxu0 %vm549_vm0, %v31068_v63  ;;  %v34988_v44 = vpop.f32.mrb[155].mxu1 }
 0xc48   : > { %29579 = vmatprep.mubr.msk.f32.mxu0 %vm549_vm0, %v31069_v38 }
 0xc4a   : > { %v34990_v21 = vpop.f32.mrb[156].mxu1 }
 0xc4b   : > { %29580 = vmatmul.mubr.msk.f32.gmra.mrb[94].mxu0 %vm549_vm0, %v31070_v22  ;;  %v34992_v4 = vpop.f32.mrb[157].mxu1 }
 0xc4c   : > { %29582 = vmatprep.mubr.msk.f32.mxu0 %vm549_vm0, %v31071_v26 }
 0xc4e   : > { %v34994_v60 = vpop.f32.mrb[158].mxu1 }
 0xc4f   : > { %29583 = vmatmul.mubr.msk.f32.gmra.mrb[96].mxu0 %vm549_vm0, %v31072_v56  ;;  %v34996_v62 = vpop.f32.mrb[159].mxu1 }
 0xc50   : > { %29585 = vmatprep.mubr.msk.f32.mxu0 %vm549_vm0, %v31073_v46 }
 0xc52   : > { %v34998_v50 = vpop.f32.mrb[160].mxu1 }
 0xc53   : > { %29586 = vmatmul.mubr.msk.f32.gmra.mrb[98].mxu0 %vm549_vm0, %v31074_v32  ;;  %v35000_v55 = vpop.f32.mrb[161].mxu1 }
 0xc54   : > { %29588 = vmatprep.mubr.msk.f32.mxu0 %vm549_vm0, %v31075_v10 }
 0xc56   : > { %v35002_v52 = vpop.f32.mrb[162].mxu1 }
 0xc57   : > { %29589 = vmatmul.mubr.msk.f32.gmra.mrb[100].mxu0 %vm549_vm0, %v31076_v59  ;;  %v35004_v3 = vpop.f32.mrb[163].mxu1 }
 0xc58   : > { %29591 = vmatprep.mubr.msk.f32.mxu0 %vm549_vm0, %v31077_v29 }
 0xc5a   : > { %v35006_v25 = vpop.f32.mrb[164].mxu1 }
 0xc5b   : > { %29592 = vmatmul.mubr.msk.f32.gmra.mrb[102].mxu0 %vm549_vm0, %v31078_v48  ;;  %v35008_v36 = vpop.f32.mrb[165].mxu1 }
 0xc5c   : > { %29594 = vmatprep.mubr.msk.f32.mxu0 %vm549_vm0, %v31079_v54 }
 0xc5e   : > { %v35010_v31 = vpop.f32.mrb[166].mxu1 }
 0xc5f   : > { %29595 = vmatmul.mubr.msk.f32.gmra.mrb[104].mxu0 %vm549_vm0, %v31080_v14  ;;  %v35012_v49 = vpop.f32.mrb[167].mxu1 }
 0xc60   : > { %29597 = vmatprep.mubr.msk.f32.mxu0 %vm549_vm0, %v31081_v24 }
 0xc62   : > { %v35014_v2 = vpop.f32.mrb[168].mxu1 }
 0xc63   : > { %29598 = vmatmul.mubr.msk.f32.gmra.mrb[106].mxu0 %vm549_vm0, %v31082_v9  ;;  %v35016_v34 = vpop.f32.mrb[169].mxu1 }
 0xc64   : > { %29600 = vmatprep.mubr.msk.f32.mxu0 %vm549_vm0, %v31083_v13 }
 0xc66   : > { %v35018_v20 = vpop.f32.mrb[170].mxu1 }
 0xc67   : > { %29601 = vmatmul.mubr.msk.f32.gmra.mrb[108].mxu0 %vm549_vm0, %v31084_v42  ;;  %v35020_v19 = vpop.f32.mrb[171].mxu1 }
 0xc68   : > { %29603 = vmatprep.mubr.msk.f32.mxu0 %vm549_vm0, %v31085_v47 }
 0xc6a   : > { %v35022_v37 = vpop.f32.mrb[172].mxu1 }
 0xc6b   : > { %29604 = vmatmul.mubr.msk.f32.gmra.mrb[110].mxu0 %vm549_vm0, %v31086_v35  ;;  %v35024_v7 = vpop.f32.mrb[173].mxu1 }
 0xc6c   : > { %29606 = vmatprep.mubr.msk.f32.mxu0 %vm549_vm0, %v31087_v23 }
 0xc6e   : > { %v35026_v12 = vpop.f32.mrb[174].mxu1 }
 0xc6f   : > { %29607 = vmatmul.mubr.msk.f32.gmra.mrb[126].mxu0 %vm549_vm0, %v31088_v0  ;;  %v35028_v27 = vpop.f32.mrb[175].mxu1  ;;  %v35099_v0 = vld [vmem:[%s36051_s6 + $0x3] ss:$0 sm:$0xff] }
 0xc70   : > { %29667 = vmatprep.mubr.msk.f32.mxu0 %vm31099_vm1, %v36071_v61 }
 0xc72   : > { %v29552_v11 = vpop.f32.mrb[176].mxu1 }
 0xc73   : > { %v35036_v43 = vadd.f32 %v29552_v11, %v35033_v51  ;;  %v35038_v41 = vpop.f32.mrb[177].mxu1  ;;  %v19568_v11 = vadd.f32 %v35033_v51, %v19567_v5 }
 0xc76   : > { %v35040_v39 = vpop.f32.mrb[178].mxu1 }
 0xc77   : > { %v35042_v1 = vpop.f32.mrb[179].mxu1 }
 0xc7a   : > { %v35044_v58 = vpop.f32.mrb[180].mxu1 }
 0xc7b   : > { %v35046_v17 = vpop.f32.mrb[181].mxu1 }
 0xc7e   : > { %v35048_v6 = vpop.f32.mrb[182].mxu1 }
 0xc7f   : > { %v35050_v28 = vpop.f32.mrb[183].mxu1 }
 0xc82   : > { %v35052_v33 = vpop.f32.mrb[184].mxu1 }
 0xc83   : > { %v35054_v40 = vpop.f32.mrb[185].mxu1 }
 0xc86   : > { %v35056_v63 = vpop.f32.mrb[186].mxu1 }
 0xc87   : > { %v35058_v38 = vpop.f32.mrb[187].mxu1 }
 0xc8a   : > { %v35060_v22 = vpop.f32.mrb[188].mxu1 }
 0xc8b   : > { %v35062_v26 = vpop.f32.mrb[189].mxu1 }
 0xc8e   : > { %v35064_v56 = vpop.f32.mrb[190].mxu1 }
 0xc8f   : > { %v35066_v46 = vpop.f32.mrb[191].mxu1 }
 0xc92   : > { %v35068_v32 = vpop.f32.mrb[192].mxu1 }
 0xc93   : > { %v35070_v10 = vpop.f32.mrb[193].mxu1 }
 0xcc6   : > { %v35072_v59 = vpop.f32.mrb[194].mxu1 }
 0xcc7   : > { %36154 = vst [vmem:[#allocation22_spill] sm:$0xff] %v35072_v59  ;;  %v35074_v29 = vpop.f32.mrb[195].mxu1 }
 0xccb   : > { %v35076_v48 = vpop.f32.mrb[196].mxu1 }
 0xccc   : > { %36155 = vst [vmem:[#allocation20_spill] sm:$0xff] %v35076_v48  ;;  %v35078_v54 = vpop.f32.mrb[197].mxu1 }
 0xccf   : > { %v35080_v14 = vpop.f32.mrb[198].mxu1 }
 0xcd0   : > { %36156 = vst [vmem:[#allocation24_spill] sm:$0xff] %v35080_v14  ;;  %v35082_v24 = vpop.f32.mrb[199].mxu1 }
 0xcd1   : > { %36157 = vst [vmem:[#allocation21_spill] sm:$0xff] %v35082_v24 }
 0xcd3   : > { %v35084_v9 = vpop.f32.mrb[200].mxu1 }
 0xcd4   : > { %36158 = vst [vmem:[#allocation26_spill] sm:$0xff] %v35084_v9  ;;  %v35086_v13 = vpop.f32.mrb[201].mxu1 }
 0xcd5   : > { %36159 = vst [vmem:[#allocation23_spill] sm:$0xff] %v35086_v13 }
 0xcd7   : > { %v35088_v42 = vpop.f32.mrb[202].mxu1 }
 0xcd8   : > { %36160 = vst [vmem:[#allocation28_spill] sm:$0xff] %v35088_v42  ;;  %v35090_v47 = vpop.f32.mrb[203].mxu1  ;;  %v19726_v42 = vmul.f32 0.35355338, %v19568_v11 }
 0xcd9   : > { %36161 = vst [vmem:[#allocation25_spill] sm:$0xff] %v35090_v47  ;;  %v19578_v47 = vadd.f32 %v35033_v51, %v34976_v30 }
 0xcdb   : > { %v35092_v35 = vpop.f32.mrb[204].mxu1  ;;  %v19728_v59 = vmul.f32 0.35355338, %v19578_v47  ;;  %v19593_v47 = vadd.f32 %v34978_v53, %v35033_v51  ;;  %v19608_v53 = vadd.f32 %v35033_v51, %v34988_v44 }
 0xcdc   : > { %36162 = vst [vmem:[#allocation30_spill] sm:$0xff] %v35092_v35  ;;  %v35094_v23 = vpop.f32.mrb[205].mxu1 }
 0xcdd   : > { %36163 = vst [vmem:[#allocation27_spill] sm:$0xff] %v35094_v23  ;;  %v19573_v23 = vadd.f32 %v34972_v18, %v35033_v51  ;;  %v19583_v18 = vadd.f32 %v34974_v15, %v35033_v51  ;;  %v19598_v15 = vadd.f32 %v35033_v51, %v34984_v57 }
 0xcdf   : > { %v35102_v14 = vpop.f32.mrb[206].mxu1 }
 0xce0   : > { %36164 = vst [vmem:[#allocation32_spill] sm:$0xff] %v35102_v14 }
 0xd06   : > { %v29563_v9 = vpop.f32.mrb[82].mxu0 }
 0xd07   : > { %v19837_v48 = vpop.f32.mrb[83].mxu0  ;;  %v19843_v5 = vadd.f32 %v29563_v9, %v35099_v0 }
 0xd08   : > { %v19838_v13 = vadd.f32 %v35099_v0, %v19837_v48  ;;  %v19588_v48 = vadd.f32 %v35033_v51, %v34980_v16 }
 0xd0a   : > { %v29566_v35 = vpop.f32.mrb[84].mxu0  ;;  %29666 = vmatpush3.xpose.msk.msra.mxu0 %vm1567_vm2, %v19838_v13  ;;  %v19727_v13 = vmul.f32 0.35355338, %v19573_v23  ;;  %v19730_v16 = vmul.f32 0.35355338, %v19588_v48 }
 0xd0b   : > { %v19847_v24 = vpop.f32.mrb[85].mxu0  ;;  %29670 = vmatprep.subr.mxu0 %v36071_v61  ;;  %v19732_v23 = vmul.f32 0.35355338, %v19598_v15  ;;  %v19731_v48 = vmul.f32 0.35355338, %v19593_v47 }
 0xd0c   : > { %v19848_v14 = vadd.f32 %v35099_v0, %v19847_v24  ;;  %v19853_v24 = vadd.f32 %v29566_v35, %v35099_v0 }
 0xd0d   : > { %29668 = vmatmul.mubr.msk.f32.vlgmr.msra.gmra.mrb[128].mxu0 %vm1567_vm2, %v19726_v42  ;;  %v19729_v42 = vmul.f32 0.35355338, %v19583_v18 }
 0xd0e   : > { %v29569_v30 = vpop.f32.mrb[86].mxu0  ;;  %29671 = vmatpush3.xpose.msk.msra.mxu0 %vm1567_vm2, %v19843_v5  ;;  %29676 = vmatpush3.xpose.msk.msra.mxu1 %vm1567_vm2, %v19848_v14 }
 0xd0f   : > { %v19857_v11 = vpop.f32.mrb[87].mxu0  ;;  %29672 = vmatprep.mubr.msk.f32.mxu0 %vm31099_vm1, %v36071_v61  ;;  %29680 = vmatprep.subr.mxu0 %v36071_v61 }
 0xd10   : > { %v19858_v9 = vadd.f32 %v35099_v0, %v19857_v11  ;;  %29685 = vmatprep.subr.mxu1 %v36071_v61  ;;  %v19734_v11 = vmul.f32 0.35355338, %v19608_v53 }
 0xd11   : > { %29673 = vmatmul.mubr.msk.f32.vlgmr.msra.gmra.mrb[130].mxu0 %vm1567_vm2, %v19727_v13  ;;  %29678 = vmatmul.mubr.msk.f32.vlgmr.msra.gmra.mrb[210].mxu1 %vm1567_vm2, %v19728_v59  ;;  %v19863_v59 = vadd.f32 %v29569_v30, %v35099_v0  ;;  %v19603_v30 = vadd.f32 %v34982_v8, %v35033_v51  ;;  %v19618_v8 = vadd.f32 %v35033_v51, %v34992_v4 }
 0xd12   : > { %v29572_v14 = vpop.f32.mrb[88].mxu0  ;;  %29681 = vmatpush3.xpose.msk.msra.mxu0 %vm1567_vm2, %v19853_v24  ;;  %29686 = vmatpush3.xpose.msk.msra.mxu1 %vm1567_vm2, %v19858_v9 }
 0xd13   : > { %v19867_v35 = vpop.f32.mrb[89].mxu0  ;;  %29682 = vmatprep.mubr.msk.f32.mxu0 %vm31099_vm1, %v36071_v61  ;;  %29687 = vmatprep.mubr.msk.f32.mxu1 %vm31099_vm1, %v36071_v61  ;;  %v19873_v18 = vadd.f32 %v29572_v14, %v35099_v0  ;;  %v19733_v9 = vmul.f32 0.35355338, %v19603_v30  ;;  %v19633_v30 = vadd.f32 %v34994_v60, %v35033_v51  ;;  %v19648_v60 = vadd.f32 %v35033_v51, %v35004_v3 }
 0xd14   : > { %v19868_v57 = vadd.f32 %v35099_v0, %v19867_v35  ;;  %29690 = vmatprep.subr.mxu0 %v36071_v61  ;;  %29695 = vmatprep.subr.mxu1 %v36071_v61 }
 0xd15   : > { %29683 = vmatmul.mubr.msk.f32.vlgmr.msra.gmra.mrb[132].mxu0 %vm1567_vm2, %v19729_v42  ;;  %29688 = vmatmul.mubr.msk.f32.vlgmr.msra.gmra.mrb[212].mxu1 %vm1567_vm2, %v19730_v16  ;;  %v19613_v16 = vadd.f32 %v34986_v45, %v35033_v51  ;;  %v19736_v42 = vmul.f32 0.35355338, %v19618_v8  ;;  %v19628_v45 = vadd.f32 %v35033_v51, %v34996_v62  ;;  %v19739_v8 = vmul.f32 0.35355338, %v19633_v30 }
 0xd16   : > { %v29575_v5 = vpop.f32.mrb[90].mxu0  ;;  %29691 = vmatpush3.xpose.msk.msra.mxu0 %vm1567_vm2, %v19863_v59  ;;  %29696 = vmatpush3.xpose.msk.msra.mxu1 %vm1567_vm2, %v19868_v57  ;;  %v19623_v59 = vadd.f32 %v34990_v21, %v35033_v51  ;;  %v19638_v21 = vadd.f32 %v35033_v51, %v35000_v55  ;;  %v19673_v30 = vadd.f32 %v35010_v31, %v35033_v51 }
 0xd17   : > { %v19877_v13 = vpop.f32.mrb[91].mxu0  ;;  %29692 = vmatprep.mubr.msk.f32.mxu0 %vm31099_vm1, %v36071_v61  ;;  %29697 = vmatprep.mubr.msk.f32.mxu1 %vm31099_vm1, %v36071_v61  ;;  %v19883_v14 = vadd.f32 %v29575_v5, %v35099_v0  ;;  %v19735_v35 = vmul.f32 0.35355338, %v19613_v16  ;;  %v19738_v53 = vmul.f32 0.35355338, %v19628_v45  ;;  %v19688_v31 = vadd.f32 %v35033_v51, %v35020_v19 }
 0xd18   : > { %v19878_v44 = vadd.f32 %v35099_v0, %v19877_v13  ;;  %29700 = vmatprep.subr.mxu0 %v36071_v61  ;;  %29705 = vmatprep.subr.mxu1 %v36071_v61 }
 0xd19   : > { %29693 = vmatmul.mubr.msk.f32.vlgmr.msra.gmra.mrb[134].mxu0 %vm1567_vm2, %v19731_v48  ;;  %29698 = vmatmul.mubr.msk.f32.vlgmr.msra.gmra.mrb[214].mxu1 %vm1567_vm2, %v19732_v23  ;;  %v19737_v48 = vmul.f32 0.35355338, %v19623_v59 }
 0xd1a   : > { %v29578_v24 = vpop.f32.mrb[92].mxu0  ;;  %29701 = vmatpush3.xpose.msk.msra.mxu0 %vm1567_vm2, %v19873_v18  ;;  %29706 = vmatpush3.xpose.msk.msra.mxu1 %vm1567_vm2, %v19878_v44  ;;  %v19740_v44 = vmul.f32 0.35355338, %v19638_v21 }
 0xd1b   : > { %v19887_v15 = vpop.f32.mrb[93].mxu0  ;;  %29702 = vmatprep.mubr.msk.f32.mxu0 %vm31099_vm1, %v36071_v61  ;;  %29707 = vmatprep.mubr.msk.f32.mxu1 %vm31099_vm1, %v36071_v61  ;;  %v19893_v23 = vadd.f32 %v29578_v24, %v35099_v0  ;;  %v19643_v24 = vadd.f32 %v34998_v50, %v35033_v51  ;;  %v19658_v50 = vadd.f32 %v35033_v51, %v35008_v36 }
 0xd1c   : > { %v19888_v4 = vadd.f32 %v35099_v0, %v19887_v15  ;;  %29710 = vmatprep.subr.mxu0 %v36071_v61  ;;  %29715 = vmatprep.subr.mxu1 %v36071_v61  ;;  %v19742_v15 = vmul.f32 0.35355338, %v19648_v60  ;;  %v19747_v60 = vmul.f32 0.35355338, %v19673_v30 }
 0xd1d   : > { %29703 = vmatmul.mubr.msk.f32.vlgmr.msra.gmra.mrb[136].mxu0 %vm1567_vm2, %v19733_v9  ;;  %29708 = vmatmul.mubr.msk.f32.vlgmr.msra.gmra.mrb[216].mxu1 %vm1567_vm2, %v19734_v11 }
 0xd1e   : > { %v29581_v47 = vpop.f32.mrb[94].mxu0  ;;  %29711 = vmatpush3.xpose.msk.msra.mxu0 %vm1567_vm2, %v19883_v14  ;;  %29716 = vmatpush3.xpose.msk.msra.mxu1 %vm1567_vm2, %v19888_v4  ;;  %v19741_v4 = vmul.f32 0.35355338, %v19643_v24 }
 0xd1f   : > { %v19897_v57 = vpop.f32.mrb[95].mxu0  ;;  %29712 = vmatprep.mubr.msk.f32.mxu0 %vm31099_vm1, %v36071_v61  ;;  %29717 = vmatprep.mubr.msk.f32.mxu1 %vm31099_vm1, %v36071_v61  ;;  %v19903_v18 = vadd.f32 %v29581_v47, %v35099_v0 }
 0xd20   : > { %v19898_v62 = vadd.f32 %v35099_v0, %v19897_v57  ;;  %29720 = vmatprep.subr.mxu0 %v36071_v61  ;;  %29725 = vmatprep.subr.mxu1 %v36071_v61 }
 0xd21   : > { %29713 = vmatmul.mubr.msk.f32.vlgmr.msra.gmra.mrb[138].mxu0 %vm1567_vm2, %v19735_v35  ;;  %29718 = vmatmul.mubr.msk.f32.vlgmr.msra.gmra.mrb[218].mxu1 %vm1567_vm2, %v19736_v42  ;;  %v19653_v42 = vadd.f32 %v35002_v52, %v35033_v51  ;;  %v19744_v35 = vmul.f32 0.35355338, %v19658_v50  ;;  %v19668_v52 = vadd.f32 %v35033_v51, %v35012_v49 }
 0xd22   : > { %v29584_v5 = vpop.f32.mrb[96].mxu0  ;;  %29721 = vmatpush3.xpose.msk.msra.mxu0 %vm1567_vm2, %v19893_v23  ;;  %29726 = vmatpush3.xpose.msk.msra.mxu1 %vm1567_vm2, %v19898_v62  ;;  %v19663_v23 = vadd.f32 %v35006_v25, %v35033_v51  ;;  %v19678_v25 = vadd.f32 %v35033_v51, %v35016_v34 }
 0xd23   : > { %v19907_v13 = vpop.f32.mrb[97].mxu0  ;;  %29722 = vmatprep.mubr.msk.f32.mxu0 %vm31099_vm1, %v36071_v61  ;;  %29727 = vmatprep.mubr.msk.f32.mxu1 %vm31099_vm1, %v36071_v61  ;;  %v19913_v16 = vadd.f32 %v29584_v5, %v35099_v0  ;;  %v19743_v57 = vmul.f32 0.35355338, %v19653_v42  ;;  %v19746_v21 = vmul.f32 0.35355338, %v19668_v52 }
 0xd24   : > { %v19908_v55 = vadd.f32 %v35099_v0, %v19907_v13  ;;  %29730 = vmatprep.subr.mxu0 %v36071_v61  ;;  %29735 = vmatprep.subr.mxu1 %v36071_v61 }
 0xd25   : > { %29723 = vmatmul.mubr.msk.f32.vlgmr.msra.gmra.mrb[140].mxu0 %vm1567_vm2, %v19737_v48  ;;  %29728 = vmatmul.mubr.msk.f32.vlgmr.msra.gmra.mrb[220].mxu1 %vm1567_vm2, %v19738_v53  ;;  %v19745_v48 = vmul.f32 0.35355338, %v19663_v23  ;;  %v19713_v23 = vadd.f32 %v35026_v12, %v35033_v51  ;;  %v35338_v12 = vld [vmem:[%s36053_s8 + $0x3] ss:$0 sm:$0xff] }
 0xd26   : > { %v29587_v11 = vpop.f32.mrb[98].mxu0  ;;  %29731 = vmatpush3.xpose.msk.msra.mxu0 %vm1567_vm2, %v19903_v18  ;;  %29736 = vmatpush3.xpose.msk.msra.mxu1 %vm1567_vm2, %v19908_v55  ;;  %v19748_v55 = vmul.f32 0.35355338, %v19678_v25  ;;  %v20081_v25 = vadd.f32 %v35040_v39, %v35338_v12 }
 0xd27   : > { %v19917_v9 = vpop.f32.mrb[99].mxu0  ;;  %29732 = vmatprep.mubr.msk.f32.mxu0 %vm31099_vm1, %v36071_v61  ;;  %29737 = vmatprep.mubr.msk.f32.mxu1 %vm31099_vm1, %v36071_v61  ;;  %v19923_v47 = vadd.f32 %v29587_v11, %v35099_v0  ;;  %v19683_v11 = vadd.f32 %v35014_v2, %v35033_v51  ;;  %v19698_v2 = vadd.f32 %v35033_v51, %v35024_v7 }
 0xd28   : > { %v19918_v3 = vadd.f32 %v35099_v0, %v19917_v9  ;;  %29740 = vmatprep.subr.mxu0 %v36071_v61  ;;  %29745 = vmatprep.subr.mxu1 %v36071_v61  ;;  %v19750_v9 = vmul.f32 0.35355338, %v19688_v31 }
 0xd29   : > { %29733 = vmatmul.mubr.msk.f32.vlgmr.msra.gmra.mrb[142].mxu0 %vm1567_vm2, %v19739_v8  ;;  %29738 = vmatmul.mubr.msk.f32.vlgmr.msra.gmra.mrb[222].mxu1 %vm1567_vm2, %v19740_v44 }
 0xd2a   : > { %v29590_v14 = vpop.f32.mrb[100].mxu0  ;;  %29741 = vmatpush3.xpose.msk.msra.mxu0 %vm1567_vm2, %v19913_v16  ;;  %29746 = vmatpush3.xpose.msk.msra.mxu1 %vm1567_vm2, %v19918_v3  ;;  %v19749_v3 = vmul.f32 0.35355338, %v19683_v11 }
 0xd2b   : > { %v19927_v45 = vpop.f32.mrb[101].mxu0  ;;  %29742 = vmatprep.mubr.msk.f32.mxu0 %vm31099_vm1, %v36071_v61  ;;  %29747 = vmatprep.mubr.msk.f32.mxu1 %vm31099_vm1, %v36071_v61  ;;  %v19933_v53 = vadd.f32 %v29590_v14, %v35099_v0 }
 0xd2c   : > { %v19928_v36 = vadd.f32 %v35099_v0, %v19927_v45  ;;  %29750 = vmatprep.subr.mxu0 %v36071_v61  ;;  %29755 = vmatprep.subr.mxu1 %v36071_v61 }
 0xd2d   : > { %29743 = vmatmul.mubr.msk.f32.vlgmr.msra.gmra.mrb[144].mxu0 %vm1567_vm2, %v19741_v4  ;;  %29748 = vmatmul.mubr.msk.f32.vlgmr.msra.gmra.mrb[224].mxu1 %vm1567_vm2, %v19742_v15  ;;  %v19693_v15 = vadd.f32 %v35018_v20, %v35033_v51  ;;  %v19752_v4 = vmul.f32 0.35355338, %v19698_v2  ;;  %v19708_v20 = vadd.f32 %v35033_v51, %v35028_v27 }
 0xd2e   : > { %v29593_v59 = vpop.f32.mrb[102].mxu0  ;;  %29751 = vmatpush3.xpose.msk.msra.mxu0 %vm1567_vm2, %v19923_v47  ;;  %29756 = vmatpush3.xpose.msk.msra.mxu1 %vm1567_vm2, %v19928_v36  ;;  %v19703_v47 = vadd.f32 %v35022_v37, %v35033_v51  ;;  %v19718_v37 = vadd.f32 %v35033_v51, %v35038_v41 }
 0xd2f   : > { %v19937_v62 = vpop.f32.mrb[103].mxu0  ;;  %29752 = vmatprep.mubr.msk.f32.mxu0 %vm31099_vm1, %v36071_v61  ;;  %29757 = vmatprep.mubr.msk.f32.mxu1 %vm31099_vm1, %v36071_v61  ;;  %v19943_v18 = vadd.f32 %v29593_v59, %v35099_v0  ;;  %v19751_v45 = vmul.f32 0.35355338, %v19693_v15  ;;  %v19754_v52 = vmul.f32 0.35355338, %v19708_v20 }
 0xd30   : > { %v19938_v49 = vadd.f32 %v35099_v0, %v19937_v62  ;;  %29760 = vmatprep.subr.mxu0 %v36071_v61  ;;  %29765 = vmatprep.subr.mxu1 %v36071_v61  ;;  %v19756_v51 = vmul.f32 0.35355338, %v19718_v37 }
 0xd31   : > { %29753 = vmatmul.mubr.msk.f32.vlgmr.msra.gmra.mrb[146].mxu0 %vm1567_vm2, %v19743_v57  ;;  %29758 = vmatmul.mubr.msk.f32.vlgmr.msra.gmra.mrb[226].mxu1 %vm1567_vm2, %v19744_v35  ;;  %v19753_v57 = vmul.f32 0.35355338, %v19703_v47 }
 0xd32   : > { %v29596_v5 = vpop.f32.mrb[104].mxu0  ;;  %29761 = vmatpush3.xpose.msk.msra.mxu0 %vm1567_vm2, %v19933_v53  ;;  %29766 = vmatpush3.xpose.msk.msra.mxu1 %vm1567_vm2, %v19938_v49 }
 0xd33   : > { %v19947_v13 = vpop.f32.mrb[105].mxu0  ;;  %29762 = vmatprep.mubr.msk.f32.mxu0 %vm31099_vm1, %v36071_v61  ;;  %29767 = vmatprep.mubr.msk.f32.mxu1 %vm31099_vm1, %v36071_v61  ;;  %v19953_v24 = vadd.f32 %v29596_v5, %v35099_v0  ;;  %v19757_v5 = vmul.f32 0.35355338, %v35036_v43 }
 0xd34   : > { %v19948_v34 = vadd.f32 %v35099_v0, %v19947_v13  ;;  %29770 = vmatprep.subr.mxu0 %v36071_v61  ;;  %29775 = vmatprep.subr.mxu1 %v36071_v61 }
 0xd35   : > { %29763 = vmatmul.mubr.msk.f32.vlgmr.msra.gmra.mrb[148].mxu0 %vm1567_vm2, %v19745_v48  ;;  %29768 = vmatmul.mubr.msk.f32.vlgmr.msra.gmra.mrb[228].mxu1 %vm1567_vm2, %v19746_v21  ;;  %v19755_v21 = vmul.f32 0.35355338, %v19713_v23 }
 0xd36   : > { %v29599_v44 = vpop.f32.mrb[106].mxu0  ;;  %29771 = vmatpush3.xpose.msk.msra.mxu0 %vm1567_vm2, %v19943_v18  ;;  %29776 = vmatpush3.xpose.msk.msra.mxu1 %vm1567_vm2, %v19948_v34 }
 0xd37   : > { %v19957_v8 = vpop.f32.mrb[107].mxu0  ;;  %29772 = vmatprep.mubr.msk.f32.mxu0 %vm31099_vm1, %v36071_v61  ;;  %29777 = vmatprep.mubr.msk.f32.mxu1 %vm31099_vm1, %v36071_v61  ;;  %v19963_v14 = vadd.f32 %v29599_v44, %v35099_v0 }
 0xd38   : > { %v19958_v19 = vadd.f32 %v35099_v0, %v19957_v8  ;;  %29780 = vmatprep.subr.mxu0 %v36071_v61  ;;  %29785 = vmatprep.subr.mxu1 %v36071_v61 }
 0xd39   : > { %29773 = vmatmul.mubr.msk.f32.vlgmr.msra.gmra.mrb[150].mxu0 %vm1567_vm2, %v19747_v60  ;;  %29778 = vmatmul.mubr.msk.f32.vlgmr.msra.gmra.mrb[230].mxu1 %vm1567_vm2, %v19748_v55 }
 0xd3a   : > { %v29602_v16 = vpop.f32.mrb[108].mxu0  ;;  %29781 = vmatpush3.xpose.msk.msra.mxu0 %vm1567_vm2, %v19953_v24  ;;  %29786 = vmatpush3.xpose.msk.msra.mxu1 %vm1567_vm2, %v19958_v19 }
 0xd3b   : > { %v19967_v50 = vpop.f32.mrb[109].mxu0  ;;  %29782 = vmatprep.mubr.msk.f32.mxu0 %vm31099_vm1, %v36071_v61  ;;  %29787 = vmatprep.mubr.msk.f32.mxu1 %vm31099_vm1, %v36071_v61  ;;  %v19973_v35 = vadd.f32 %v29602_v16, %v35099_v0 }
 0xd3c   : > { %v19968_v7 = vadd.f32 %v35099_v0, %v19967_v50  ;;  %29790 = vmatprep.subr.mxu0 %v36071_v61  ;;  %29795 = vmatprep.subr.mxu1 %v36071_v61 }
 0xd3d   : > { %29783 = vmatmul.mubr.msk.f32.vlgmr.msra.gmra.mrb[152].mxu0 %vm1567_vm2, %v19749_v3  ;;  %29788 = vmatmul.mubr.msk.f32.vlgmr.msra.gmra.mrb[232].mxu1 %vm1567_vm2, %v19750_v9 }
 0xd3e   : > { %v29605_v42 = vpop.f32.mrb[110].mxu0  ;;  %29791 = vmatpush3.xpose.msk.msra.mxu0 %vm1567_vm2, %v19963_v14  ;;  %29796 = vmatpush3.xpose.msk.msra.mxu1 %vm1567_vm2, %v19968_v7 }
 0xd3f   : > { %v19977_v36 = vpop.f32.mrb[111].mxu0  ;;  %29792 = vmatprep.mubr.msk.f32.mxu0 %vm31099_vm1, %v36071_v61  ;;  %29797 = vmatprep.mubr.msk.f32.mxu1 %vm31099_vm1, %v36071_v61  ;;  %v19983_v41 = vadd.f32 %v29605_v42, %v35099_v0 }
 0xd40   : > { %v19978_v27 = vadd.f32 %v35099_v0, %v19977_v36  ;;  %29800 = vmatprep.subr.mxu0 %v36071_v61  ;;  %29805 = vmatprep.subr.mxu1 %v36071_v61 }
 0xd41   : > { %29793 = vmatmul.mubr.msk.f32.vlgmr.msra.gmra.mrb[154].mxu0 %vm1567_vm2, %v19751_v45  ;;  %29798 = vmatmul.mubr.msk.f32.vlgmr.msra.gmra.mrb[234].mxu1 %vm1567_vm2, %v19752_v4 }
 0xd42   : > { %v29608_v59 = vpop.f32.mrb[126].mxu0  ;;  %29801 = vmatpush3.xpose.msk.msra.mxu0 %vm1567_vm2, %v19973_v35  ;;  %29806 = vmatpush3.xpose.msk.msra.mxu1 %vm1567_vm2, %v19978_v27 }
 0xd43   : > { %v19993_v62 = vadd.f32 %v29608_v59, %v35099_v0  ;;  %v19987_v53 = vpop.f32.mrb[127].mxu0  ;;  %29802 = vmatprep.mubr.msk.f32.mxu0 %vm31099_vm1, %v36071_v61  ;;  %29807 = vmatprep.mubr.msk.f32.mxu1 %vm31099_vm1, %v36071_v61 }
 0xd44   : > { %v19988_v49 = vadd.f32 %v35099_v0, %v19987_v53  ;;  %29810 = vmatprep.subr.mxu0 %v36071_v61  ;;  %29815 = vmatprep.subr.mxu1 %v36071_v61  ;;  %v20076_v0 = vadd.f32 %v35338_v12, %v35042_v1  ;;  %v35368_v1 = vpop.f32.mrb[207].mxu1 }
 0xd45   : > { %29803 = vmatmul.mubr.msk.f32.vlgmr.msra.gmra.mrb[156].mxu0 %vm1567_vm2, %v19753_v57  ;;  %29808 = vmatmul.mubr.msk.f32.vlgmr.msra.gmra.mrb[236].mxu1 %vm1567_vm2, %v19754_v52  ;;  %36165 = vst [vmem:[#allocation29_spill] sm:$0xff] %v35368_v1  ;;  %v35370_v39 = vpop.f32.mrb[208].mxu1 }
 0xd46   : > { %29811 = vmatpush3.xpose.msk.msra.mxu0 %vm1567_vm2, %v19983_v41  ;;  %29816 = vmatpush3.xpose.msk.msra.mxu1 %vm1567_vm2, %v19988_v49  ;;  %36166 = vst [vmem:[#allocation31_spill] sm:$0xff] %v35370_v39  ;;  %v35372_v43 = vpop.f32.mrb[209].mxu1 }
 0xd47   : > { %29812 = vmatprep.mubr.msk.f32.mxu0 %vm31099_vm1, %v36071_v61  ;;  %29817 = vmatprep.mubr.msk.f32.mxu1 %vm31099_vm1, %v36071_v61  ;;  %36167 = vst [vmem:[#allocation33_spill] sm:$0xff] %v35372_v43 }
 0xd48   : > { %29820 = vmatprep.subr.mxu0 %v36071_v61  ;;  %29825 = vmatprep.subr.mxu1 %v36071_v61 }
 0xd49   : > { %29813 = vmatmul.mubr.msk.f32.vlgmr.msra.gmra.mrb[158].mxu0 %vm1567_vm2, %v19755_v21  ;;  %29818 = vmatmul.mubr.msk.f32.vlgmr.msra.gmra.mrb[238].mxu1 %vm1567_vm2, %v19756_v51 }
 0xd4a   : > { %29821 = vmatpush3.xpose.msk.msra.mxu0 %vm1567_vm2, %v19993_v62  ;;  %29822 = vmatprep.mubr.msk.f32.mxu0 %vm31099_vm1, %v36071_v61 }
 0xd4b   : > { %29830 = vmatprep.subr.mxu0 %v36071_v61  ;;  %29826 = vmatpush3.msra.mxu1 %v20076_v0 }
 0xd4c   : > { %29827 = vmatprep.mubr.msk.f32.mxu1 %vm31099_vm1, %v36071_v61  ;;  %29835 = vmatprep.subr.mxu1 %v36071_v61 }
 0xd4d   : > { %29823 = vmatmul.mubr.msk.f32.vlgmr.msra.gmra.mrb[160].mxu0 %vm1567_vm2, %v19757_v5 }
 0xd4e   : > { %29831 = vmatpush3.msra.mxu0 %v20081_v25  ;;  %29832 = vmatprep.mubr.msk.f32.mxu0 %vm31099_vm1, %v36071_v61 }
 0xd4f   : > { %29840 = vmatprep.subr.mxu0 %v36071_v61 }
 0xde0   : > { %v35374_v48 = vpop.f32.mrb[128].mxu0 }
 0xde1   : > { %v22666_v30 = vsel %vm4000_vm3, %v35374_v48, -inf  ;;  %v29669_v13 = vpop.f32.mrb[129].mxu0 }
 0xde2   : > { %22667 = vmax.xlane.f32.xlu0 %v22666_v30 }
 0xde4   : > { %v35378_v18 = vpop.f32.mrb[130].mxu0  ;;  %v35380_v34 = vpop.f32.mrb[210].mxu1 }
 0xde5   : > { %v22672_v55 = vsel %vm4000_vm3, %v35380_v34, -inf  ;;  %v22669_v31 = vsel %vm4000_vm3, %v35378_v18, -inf  ;;  %v29674_v44 = vpop.f32.mrb[131].mxu0  ;;  %v29679_v60 = vpop.f32.mrb[211].mxu1 }
 0xde6   : > { %22673 = vmax.xlane.f32.xlu0 %v22672_v55  ;;  %22670 = vmax.xlane.f32.xlu1 %v22669_v31 }
 0xde8   : > { %v35386_v11 = vpop.f32.mrb[132].mxu0  ;;  %v35388_v8 = vpop.f32.mrb[212].mxu1 }
 0xde9   : > { %v22678_v24 = vsel %vm4000_vm3, %v35388_v8, -inf  ;;  %v22675_v19 = vsel %vm4000_vm3, %v35386_v11, -inf  ;;  %v29684_v9 = vpop.f32.mrb[133].mxu0  ;;  %v29689_v2 = vpop.f32.mrb[213].mxu1 }
 0xdea   : > { %22679 = vmax.xlane.f32.xlu0 %v22678_v24  ;;  %22676 = vmax.xlane.f32.xlu1 %v22675_v19 }
 0xdec   : > { %v35394_v16 = vpop.f32.mrb[134].mxu0  ;;  %v35396_v3 = vpop.f32.mrb[214].mxu1 }
 0xded   : > { %v22684_v15 = vsel %vm4000_vm3, %v35396_v3, -inf  ;;  %v22681_v50 = vsel %vm4000_vm3, %v35394_v16, -inf  ;;  %v29694_v14 = vpop.f32.mrb[135].mxu0  ;;  %v29699_v7 = vpop.f32.mrb[215].mxu1 }
 0xdee   : > { %22685 = vmax.xlane.f32.xlu0 %v22684_v15  ;;  %22682 = vmax.xlane.f32.xlu1 %v22681_v50 }
 0xdf0   : > { %v35402_v4 = vpop.f32.mrb[136].mxu0  ;;  %v35404_v20 = vpop.f32.mrb[216].mxu1 }
 0xdf1   : > { %v22690_v42 = vsel %vm4000_vm3, %v35404_v20, -inf  ;;  %v22687_v45 = vsel %vm4000_vm3, %v35402_v4, -inf  ;;  %v29704_v47 = vpop.f32.mrb[137].mxu0  ;;  %v29709_v36 = vpop.f32.mrb[217].mxu1 }
 0xdf2   : > { %22691 = vmax.xlane.f32.xlu0 %v22690_v42  ;;  %22688 = vmax.xlane.f32.xlu1 %v22687_v45 }
 0xdf4   : > { %v35410_v35 = vpop.f32.mrb[138].mxu0  ;;  %v35412_v27 = vpop.f32.mrb[218].mxu1 }
 0xdf5   : > { %v22696_v52 = vsel %vm4000_vm3, %v35412_v27, -inf  ;;  %v22693_v37 = vsel %vm4000_vm3, %v35410_v35, -inf  ;;  %v29714_v59 = vpop.f32.mrb[139].mxu0  ;;  %v29719_v57 = vpop.f32.mrb[219].mxu1 }
 0xdf6   : > { %22697 = vmax.xlane.f32.xlu0 %v22696_v52  ;;  %22694 = vmax.xlane.f32.xlu1 %v22693_v37 }
 0xdf8   : > { %v35418_v23 = vpop.f32.mrb[140].mxu0  ;;  %v35420_v62 = vpop.f32.mrb[220].mxu1 }
 0xdf9   : > { %v22702_v53 = vsel %vm4000_vm3, %v35420_v62, -inf  ;;  %v22699_v41 = vsel %vm4000_vm3, %v35418_v23, -inf  ;;  %v29724_v49 = vpop.f32.mrb[141].mxu0  ;;  %v29729_v51 = vpop.f32.mrb[221].mxu1 }
 0xdfa   : > { %22703 = vmax.xlane.f32.xlu0 %v22702_v53  ;;  %22700 = vmax.xlane.f32.xlu1 %v22699_v41 }
 0xdfc   : > { %v35426_v21 = vpop.f32.mrb[142].mxu0  ;;  %v35428_v0 = vpop.f32.mrb[222].mxu1 }
 0xdfd   : > { %v22708_v25 = vsel %vm4000_vm3, %v35428_v0, -inf  ;;  %v22705_v5 = vsel %vm4000_vm3, %v35426_v21, -inf  ;;  %v29734_v30 = vpop.f32.mrb[143].mxu0  ;;  %v29739_v13 = vpop.f32.mrb[223].mxu1 }
 0xdfe   : > { %22709 = vmax.xlane.f32.xlu0 %v22708_v25  ;;  %22706 = vmax.xlane.f32.xlu1 %v22705_v5 }
 0xe00   : > { %v35434_v55 = vpop.f32.mrb[144].mxu0  ;;  %v35436_v31 = vpop.f32.mrb[224].mxu1 }
 0xe01   : > { %v22714_v44 = vsel %vm4000_vm3, %v35436_v31, -inf  ;;  %v22711_v60 = vsel %vm4000_vm3, %v35434_v55, -inf  ;;  %v29744_v24 = vpop.f32.mrb[145].mxu0  ;;  %v29749_v19 = vpop.f32.mrb[225].mxu1 }
 0xe02   : > { %22715 = vmax.xlane.f32.xlu0 %v22714_v44  ;;  %22712 = vmax.xlane.f32.xlu1 %v22711_v60 }
 0xe04   : > { %v35442_v9 = vpop.f32.mrb[146].mxu0  ;;  %v35444_v2 = vpop.f32.mrb[226].mxu1 }
 0xe05   : > { %v22720_v15 = vsel %vm4000_vm3, %v35444_v2, -inf  ;;  %v22717_v50 = vsel %vm4000_vm3, %v35442_v9, -inf  ;;  %v29754_v14 = vpop.f32.mrb[147].mxu0  ;;  %v29759_v7 = vpop.f32.mrb[227].mxu1 }
 0xe06   : > { %22721 = vmax.xlane.f32.xlu0 %v22720_v15  ;;  %22718 = vmax.xlane.f32.xlu1 %v22717_v50 }
 0xe08   : > { %v35450_v42 = vpop.f32.mrb[148].mxu0  ;;  %v35452_v45 = vpop.f32.mrb[228].mxu1 }
 0xe09   : > { %v22726_v47 = vsel %vm4000_vm3, %v35452_v45, -inf  ;;  %v22723_v36 = vsel %vm4000_vm3, %v35450_v42, -inf  ;;  %v29764_v52 = vpop.f32.mrb[149].mxu0  ;;  %v29769_v37 = vpop.f32.mrb[229].mxu1 }
 0xe0a   : > { %22727 = vmax.xlane.f32.xlu0 %v22726_v47  ;;  %22724 = vmax.xlane.f32.xlu1 %v22723_v36 }
 0xe0c   : > { %v35458_v59 = vpop.f32.mrb[150].mxu0  ;;  %v35460_v57 = vpop.f32.mrb[230].mxu1 }
 0xe0d   : > { %v22732_v53 = vsel %vm4000_vm3, %v35460_v57, -inf  ;;  %v22729_v41 = vsel %vm4000_vm3, %v35458_v59, -inf  ;;  %v29774_v49 = vpop.f32.mrb[151].mxu0  ;;  %v29779_v51 = vpop.f32.mrb[231].mxu1 }
 0xe0e   : > { %22733 = vmax.xlane.f32.xlu0 %v22732_v53  ;;  %22730 = vmax.xlane.f32.xlu1 %v22729_v41 }
 0xe10   : > { %v35466_v25 = vpop.f32.mrb[152].mxu0  ;;  %v35468_v5 = vpop.f32.mrb[232].mxu1 }
 0xe11   : > { %v22738_v30 = vsel %vm4000_vm3, %v35468_v5, -inf  ;;  %v22735_v13 = vsel %vm4000_vm3, %v35466_v25, -inf  ;;  %v29784_v44 = vpop.f32.mrb[153].mxu0  ;;  %v29789_v60 = vpop.f32.mrb[233].mxu1 }
 0xe12   : > { %22739 = vmax.xlane.f32.xlu0 %v22738_v30  ;;  %22736 = vmax.xlane.f32.xlu1 %v22735_v13 }
 0xe14   : > { %v35474_v24 = vpop.f32.mrb[154].mxu0  ;;  %v35476_v19 = vpop.f32.mrb[234].mxu1 }
 0xe15   : > { %v22744_v15 = vsel %vm4000_vm3, %v35476_v19, -inf  ;;  %v22741_v50 = vsel %vm4000_vm3, %v35474_v24, -inf  ;;  %v29794_v14 = vpop.f32.mrb[155].mxu0  ;;  %v29799_v7 = vpop.f32.mrb[235].mxu1 }
 0xe16   : > { %22745 = vmax.xlane.f32.xlu0 %v22744_v15  ;;  %22742 = vmax.xlane.f32.xlu1 %v22741_v50 }
 0xe18   : > { %v35482_v47 = vpop.f32.mrb[156].mxu0  ;;  %v35484_v36 = vpop.f32.mrb[236].mxu1 }
 0xe19   : > { %v22750_v52 = vsel %vm4000_vm3, %v35484_v36, -inf  ;;  %v22747_v37 = vsel %vm4000_vm3, %v35482_v47, -inf  ;;  %v29804_v53 = vpop.f32.mrb[157].mxu0  ;;  %v29809_v41 = vpop.f32.mrb[237].mxu1 }
 0xe1a   : > { %22751 = vmax.xlane.f32.xlu0 %v22750_v52  ;;  %22748 = vmax.xlane.f32.xlu1 %v22747_v37 }
 0xe1c   : > { %v35490_v49 = vpop.f32.mrb[158].mxu0  ;;  %v35492_v51 = vpop.f32.mrb[238].mxu1 }
 0xe1d   : > { %v22756_v30 = vsel %vm4000_vm3, %v35492_v51, -inf  ;;  %v22753_v13 = vsel %vm4000_vm3, %v35490_v49, -inf  ;;  %v29814_v44 = vpop.f32.mrb[159].mxu0  ;;  %v29819_v60 = vpop.f32.mrb[239].mxu1 }
 0xe1e   : > { %22757 = vmax.xlane.f32.xlu0 %v22756_v30  ;;  %22754 = vmax.xlane.f32.xlu1 %v22753_v13 }
 0xe20   : > { %v35498_v15 = vpop.f32.mrb[160].mxu0 }
 0xe21   : > { %v22759_v50 = vsel %vm4000_vm3, %v35498_v15, -inf  ;;  %v29824_v14 = vpop.f32.mrb[161].mxu0 }
 0xe22   : > { %22760 = vmax.xlane.f32.xlu1 %v22759_v50 }
 0xe6f   : > { %v22668_v7 = vpop.xlane.xlu0 %22667 }
 0xe70   : > { %v22762_v52 = vsub.f32 %v35374_v48, %v22668_v7 }
 0xe72   : > { %v22794_v37 = vmul.f32 1.442695, %v22762_v52 }
 0xe73   : > { %v22674_v53 = vpop.xlane.xlu0 %22673  ;;  %v22671_v41 = vpop.xlane.xlu1 %22670 }
 0xe74   : > { %30673 = vpow2.f32 %v22794_v37  ;;  %v22764_v39 = vsub.f32 %v35380_v34, %v22674_v53  ;;  %v22763_v44 = vsub.f32 %v35378_v18, %v22671_v41 }
 0xe76   : > { %v22798_v30 = vmul.f32 1.442695, %v22764_v39  ;;  %v22796_v13 = vmul.f32 1.442695, %v22763_v44 }
 0xe77   : > { %v22680_v60 = vpop.xlane.xlu0 %22679  ;;  %v22677_v43 = vpop.xlane.xlu1 %22676 }
 0xe78   : > { %30675 = vpow2.f32 %v22798_v30  ;;  %v22766_v1 = vsub.f32 %v35388_v8, %v22680_v60  ;;  %v22765_v50 = vsub.f32 %v35386_v11, %v22677_v43 }
 0xe79   : > { %30677 = vpow2.f32 %v22796_v13 }
 0xe7a   : > { %v22802_v14 = vmul.f32 1.442695, %v22766_v1  ;;  %v22800_v48 = vmul.f32 1.442695, %v22765_v50 }
 0xe7b   : > { %v22686_v7 = vpop.xlane.xlu0 %22685  ;;  %v22683_v52 = vpop.xlane.xlu1 %22682 }
 0xe7c   : > { %30679 = vpow2.f32 %v22802_v14  ;;  %v22768_v37 = vsub.f32 %v35396_v3, %v22686_v7  ;;  %v22767_v34 = vsub.f32 %v35394_v16, %v22683_v52 }
 0xe7d   : > { %30681 = vpow2.f32 %v22800_v48 }
 0xe7e   : > { %v35509_v39 = vpop.eup %30673  ;;  %v22806_v18 = vmul.f32 1.442695, %v22768_v37  ;;  %v22804_v53 = vmul.f32 1.442695, %v22767_v34 }
 0xe7f   : > { %v22692_v41 = vpop.xlane.xlu0 %22691  ;;  %v22689_v44 = vpop.xlane.xlu1 %22688  ;;  %v22858_v43 = vsel %vm4000_vm3, %v35509_v39, 0.0 }
 0xe80   : > { %30683 = vpow2.f32 %v22806_v18  ;;  %v22770_v1 = vsub.f32 %v35404_v20, %v22692_v41  ;;  %v22769_v11 = vsub.f32 %v35402_v4, %v22689_v44  ;;  %22859 = vadd.xlane.f32.xlu0 %v22858_v43 }
 0xe81   : > { %30685 = vpow2.f32 %v22804_v53 }
 0xe82   : > { %v35515_v8 = vpop.eup %30675  ;;  %v22810_v16 = vmul.f32 1.442695, %v22770_v1  ;;  %v22808_v3 = vmul.f32 1.442695, %v22769_v11 }
 0xe83   : > { %v35517_v30 = vpop.eup %30677  ;;  %v22698_v13 = vpop.xlane.xlu0 %22697  ;;  %v22864_v50 = vsel %vm4000_vm3, %v35515_v8, 0.0 }
 0xe84   : > { %v22695_v60 = vpop.xlane.xlu1 %22694  ;;  %30687 = vpow2.f32 %v22810_v16  ;;  %v22772_v14 = vsub.f32 %v35412_v27, %v22698_v13  ;;  %22865 = vadd.xlane.f32.xlu0 %v22864_v50  ;;  %v22861_v4 = vsel %vm4000_vm3, %v35517_v30, 0.0 }
 0xe85   : > { %v22771_v20 = vsub.f32 %v35410_v35, %v22695_v60  ;;  %30689 = vpow2.f32 %v22808_v3  ;;  %22862 = vadd.xlane.f32.xlu1 %v22861_v4 }
 0xe86   : > { %v35525_v48 = vpop.eup %30679  ;;  %v22814_v7 = vmul.f32 1.442695, %v22772_v14 }
 0xe87   : > { %v22812_v52 = vmul.f32 1.442695, %v22771_v20  ;;  %v35527_v37 = vpop.eup %30681  ;;  %v22704_v34 = vpop.xlane.xlu0 %22703  ;;  %v22870_v53 = vsel %vm4000_vm3, %v35525_v48, 0.0 }
 0xe88   : > { %v22701_v18 = vpop.xlane.xlu1 %22700  ;;  %30691 = vpow2.f32 %v22814_v7  ;;  %v22774_v35 = vsub.f32 %v35420_v62, %v22704_v34  ;;  %22871 = vadd.xlane.f32.xlu0 %v22870_v53  ;;  %v22867_v41 = vsel %vm4000_vm3, %v35527_v37, 0.0 }
 0xe89   : > { %v22773_v27 = vsub.f32 %v35418_v23, %v22701_v18  ;;  %30693 = vpow2.f32 %v22812_v52  ;;  %22868 = vadd.xlane.f32.xlu1 %v22867_v41 }
 0xe8a   : > { %v35535_v44 = vpop.eup %30683  ;;  %v22818_v43 = vmul.f32 1.442695, %v22774_v35 }
 0xe8b   : > { %v22816_v1 = vmul.f32 1.442695, %v22773_v27  ;;  %v35537_v11 = vpop.eup %30685  ;;  %v22710_v16 = vpop.xlane.xlu0 %22709  ;;  %v22876_v13 = vsel %vm4000_vm3, %v35535_v44, 0.0 }
 0xe8c   : > { %v22707_v3 = vpop.xlane.xlu1 %22706  ;;  %30695 = vpow2.f32 %v22818_v43  ;;  %v22776_v23 = vsub.f32 %v35428_v0, %v22710_v16  ;;  %22877 = vadd.xlane.f32.xlu0 %v22876_v13  ;;  %v22873_v60 = vsel %vm4000_vm3, %v35537_v11, 0.0 }
 0xe8d   : > { %v22775_v62 = vsub.f32 %v35426_v21, %v22707_v3  ;;  %30697 = vpow2.f32 %v22816_v1  ;;  %22874 = vadd.xlane.f32.xlu1 %v22873_v60 }
 0xe8e   : > { %v35545_v50 = vpop.eup %30687  ;;  %v22822_v14 = vmul.f32 1.442695, %v22776_v23 }
 0xe8f   : > { %v22820_v20 = vmul.f32 1.442695, %v22775_v62  ;;  %v35547_v4 = vpop.eup %30689  ;;  %v22716_v7 = vpop.xlane.xlu0 %22715  ;;  %v22882_v34 = vsel %vm4000_vm3, %v35545_v50, 0.0 }
 0xe90   : > { %v22713_v52 = vpop.xlane.xlu1 %22712  ;;  %30699 = vpow2.f32 %v22822_v14  ;;  %v22778_v21 = vsub.f32 %v35436_v31, %v22716_v7  ;;  %22883 = vadd.xlane.f32.xlu0 %v22882_v34  ;;  %v22879_v18 = vsel %vm4000_vm3, %v35547_v4, 0.0 }
 0xe91   : > { %v22777_v0 = vsub.f32 %v35434_v55, %v22713_v52  ;;  %30701 = vpow2.f32 %v22820_v20  ;;  %22880 = vadd.xlane.f32.xlu1 %v22879_v18 }
 0xe92   : > { %v35555_v53 = vpop.eup %30691  ;;  %v22826_v35 = vmul.f32 1.442695, %v22778_v21 }
 0xe93   : > { %v22824_v27 = vmul.f32 1.442695, %v22777_v0  ;;  %v35557_v41 = vpop.eup %30693  ;;  %v22722_v43 = vpop.xlane.xlu0 %22721  ;;  %v22888_v16 = vsel %vm4000_vm3, %v35555_v53, 0.0 }
 0xe94   : > { %v22719_v1 = vpop.xlane.xlu1 %22718  ;;  %30703 = vpow2.f32 %v22826_v35  ;;  %v22780_v55 = vsub.f32 %v35444_v2, %v22722_v43  ;;  %22889 = vadd.xlane.f32.xlu0 %v22888_v16  ;;  %v22885_v3 = vsel %vm4000_vm3, %v35557_v41, 0.0 }
 0xe95   : > { %v22779_v31 = vsub.f32 %v35442_v9, %v22719_v1  ;;  %30705 = vpow2.f32 %v22824_v27  ;;  %22886 = vadd.xlane.f32.xlu1 %v22885_v3 }
 0xe96   : > { %v35565_v13 = vpop.eup %30695  ;;  %v22830_v23 = vmul.f32 1.442695, %v22780_v55 }
 0xe97   : > { %v22828_v62 = vmul.f32 1.442695, %v22779_v31  ;;  %v35567_v60 = vpop.eup %30697  ;;  %v22728_v14 = vpop.xlane.xlu0 %22727  ;;  %v22894_v7 = vsel %vm4000_vm3, %v35565_v13, 0.0 }
 0xe98   : > { %v22725_v20 = vpop.xlane.xlu1 %22724  ;;  %30707 = vpow2.f32 %v22830_v23  ;;  %v22782_v9 = vsub.f32 %v35452_v45, %v22728_v14  ;;  %22895 = vadd.xlane.f32.xlu0 %v22894_v7  ;;  %v22891_v52 = vsel %vm4000_vm3, %v35567_v60, 0.0 }
 0xe99   : > { %v22781_v2 = vsub.f32 %v35450_v42, %v22725_v20  ;;  %30709 = vpow2.f32 %v22828_v62  ;;  %22892 = vadd.xlane.f32.xlu1 %v22891_v52 }
 0xe9a   : > { %v35575_v34 = vpop.eup %30699  ;;  %v22834_v21 = vmul.f32 1.442695, %v22782_v9 }
 0xe9b   : > { %v22832_v0 = vmul.f32 1.442695, %v22781_v2  ;;  %v35577_v18 = vpop.eup %30701  ;;  %v22734_v35 = vpop.xlane.xlu0 %22733  ;;  %v22900_v43 = vsel %vm4000_vm3, %v35575_v34, 0.0 }
 0xe9c   : > { %v22731_v27 = vpop.xlane.xlu1 %22730  ;;  %30711 = vpow2.f32 %v22834_v21  ;;  %v22784_v42 = vsub.f32 %v35460_v57, %v22734_v35  ;;  %22901 = vadd.xlane.f32.xlu0 %v22900_v43  ;;  %v22897_v1 = vsel %vm4000_vm3, %v35577_v18, 0.0 }
 0xe9d   : > { %v22783_v45 = vsub.f32 %v35458_v59, %v22731_v27  ;;  %30713 = vpow2.f32 %v22832_v0  ;;  %22898 = vadd.xlane.f32.xlu1 %v22897_v1 }
 0xe9e   : > { %v35585_v16 = vpop.eup %30703  ;;  %v22838_v55 = vmul.f32 1.442695, %v22784_v42 }
 0xe9f   : > { %v22836_v31 = vmul.f32 1.442695, %v22783_v45  ;;  %v35587_v3 = vpop.eup %30705  ;;  %v22740_v23 = vpop.xlane.xlu0 %22739  ;;  %v22906_v14 = vsel %vm4000_vm3, %v35585_v16, 0.0 }
 0xea0   : > { %v22737_v62 = vpop.xlane.xlu1 %22736  ;;  %30715 = vpow2.f32 %v22838_v55  ;;  %v22786_v59 = vsub.f32 %v35468_v5, %v22740_v23  ;;  %22907 = vadd.xlane.f32.xlu0 %v22906_v14  ;;  %v22903_v20 = vsel %vm4000_vm3, %v35587_v3, 0.0 }
 0xea1   : > { %v22785_v57 = vsub.f32 %v35466_v25, %v22737_v62  ;;  %30717 = vpow2.f32 %v22836_v31  ;;  %22904 = vadd.xlane.f32.xlu1 %v22903_v20 }
 0xea2   : > { %v35595_v7 = vpop.eup %30707  ;;  %v22842_v9 = vmul.f32 1.442695, %v22786_v59 }
 0xea3   : > { %v22840_v2 = vmul.f32 1.442695, %v22785_v57  ;;  %v35597_v52 = vpop.eup %30709  ;;  %v22746_v21 = vpop.xlane.xlu0 %22745  ;;  %v22912_v35 = vsel %vm4000_vm3, %v35595_v7, 0.0 }
 0xea4   : > { %v22743_v0 = vpop.xlane.xlu1 %22742  ;;  %30719 = vpow2.f32 %v22842_v9  ;;  %v22788_v25 = vsub.f32 %v35476_v19, %v22746_v21  ;;  %22913 = vadd.xlane.f32.xlu0 %v22912_v35  ;;  %v22909_v27 = vsel %vm4000_vm3, %v35597_v52, 0.0 }
 0xea5   : > { %v22787_v5 = vsub.f32 %v35474_v24, %v22743_v0  ;;  %30721 = vpow2.f32 %v22840_v2  ;;  %22910 = vadd.xlane.f32.xlu1 %v22909_v27 }
 0xea6   : > { %v35605_v43 = vpop.eup %30711  ;;  %v22846_v42 = vmul.f32 1.442695, %v22788_v25 }
 0xea7   : > { %v22844_v45 = vmul.f32 1.442695, %v22787_v5  ;;  %v35607_v1 = vpop.eup %30713  ;;  %v22752_v55 = vpop.xlane.xlu0 %22751  ;;  %v22918_v23 = vsel %vm4000_vm3, %v35605_v43, 0.0 }
 0xea8   : > { %v22749_v31 = vpop.xlane.xlu1 %22748  ;;  %30723 = vpow2.f32 %v22846_v42  ;;  %v22790_v24 = vsub.f32 %v35484_v36, %v22752_v55  ;;  %22919 = vadd.xlane.f32.xlu0 %v22918_v23  ;;  %v22915_v62 = vsel %vm4000_vm3, %v35607_v1, 0.0 }
 0xea9   : > { %v22789_v19 = vsub.f32 %v35482_v47, %v22749_v31  ;;  %30725 = vpow2.f32 %v22844_v45  ;;  %22916 = vadd.xlane.f32.xlu1 %v22915_v62 }
 0xeaa   : > { %v35615_v14 = vpop.eup %30715  ;;  %v22850_v59 = vmul.f32 1.442695, %v22790_v24 }
 0xeab   : > { %v22848_v57 = vmul.f32 1.442695, %v22789_v19  ;;  %v35617_v20 = vpop.eup %30717  ;;  %v22758_v9 = vpop.xlane.xlu0 %22757  ;;  %v22924_v21 = vsel %vm4000_vm3, %v35615_v14, 0.0 }
 0xeac   : > { %v22755_v2 = vpop.xlane.xlu1 %22754  ;;  %30727 = vpow2.f32 %v22850_v59  ;;  %v22792_v47 = vsub.f32 %v35492_v51, %v22758_v9  ;;  %22925 = vadd.xlane.f32.xlu0 %v22924_v21  ;;  %v22921_v0 = vsel %vm4000_vm3, %v35617_v20, 0.0 }
 0xead   : > { %v22791_v36 = vsub.f32 %v35490_v49, %v22755_v2  ;;  %30729 = vpow2.f32 %v22848_v57  ;;  %22922 = vadd.xlane.f32.xlu1 %v22921_v0 }
 0xeae   : > { %v35625_v35 = vpop.eup %30719  ;;  %v22854_v25 = vmul.f32 1.442695, %v22792_v47 }
 0xeaf   : > { %v22852_v5 = vmul.f32 1.442695, %v22791_v36  ;;  %v35627_v27 = vpop.eup %30721  ;;  %v22930_v45 = vsel %vm4000_vm3, %v35625_v35, 0.0 }
 0xeb0   : > { %v22761_v42 = vpop.xlane.xlu1 %22760  ;;  %30731 = vpow2.f32 %v22854_v25  ;;  %22931 = vadd.xlane.f32.xlu0 %v22930_v45  ;;  %v22927_v49 = vsel %vm4000_vm3, %v35627_v27, 0.0 }
 0xeb1   : > { %v22793_v51 = vsub.f32 %v35498_v15, %v22761_v42  ;;  %30733 = vpow2.f32 %v22852_v5  ;;  %22928 = vadd.xlane.f32.xlu1 %v22927_v49 }
 0xeb2   : > { %v35634_v55 = vpop.eup %30723 }
 0xeb3   : > { %v22856_v31 = vmul.f32 1.442695, %v22793_v51  ;;  %v35636_v23 = vpop.eup %30725  ;;  %v22936_v24 = vsel %vm4000_vm3, %v35634_v55, 0.0 }
 0xeb4   : > { %22937 = vadd.xlane.f32.xlu0 %v22936_v24  ;;  %v22933_v19 = vsel %vm4000_vm3, %v35636_v23, 0.0 }
 0xeb5   : > { %30735 = vpow2.f32 %v22856_v31  ;;  %22934 = vadd.xlane.f32.xlu1 %v22933_v19  ;;  %v20086_v19 = vadd.f32 %v35338_v12, %v35046_v17 }
 0xeb6   : > { %v35642_v15 = vpop.eup %30727 }
 0xeb7   : > { %v35644_v62 = vpop.eup %30729  ;;  %v22942_v59 = vsel %vm4000_vm3, %v35642_v15, 0.0 }
 0xeb8   : > { %22943 = vadd.xlane.f32.xlu0 %v22942_v59  ;;  %v22939_v57 = vsel %vm4000_vm3, %v35644_v62, 0.0 }
 0xeb9   : > { %22940 = vadd.xlane.f32.xlu1 %v22939_v57 }
 0xeba   : > { %v35650_v9 = vpop.eup %30731 }
 0xebb   : > { %v35652_v2 = vpop.eup %30733  ;;  %v22948_v21 = vsel %vm4000_vm3, %v35650_v9, 0.0 }
 0xebc   : > { %22949 = vadd.xlane.f32.xlu0 %v22948_v21  ;;  %v22945_v47 = vsel %vm4000_vm3, %v35652_v2, 0.0 }
 0xebd   : > { %22946 = vadd.xlane.f32.xlu1 %v22945_v47 }
 0xebf   : > { %v35658_v36 = vpop.eup %30735 }
 0xec0   : > { %v22951_v0 = vsel %vm4000_vm3, %v35658_v36, 0.0 }
 0xec1   : > { %22952 = vadd.xlane.f32.xlu1 %v22951_v0 }
 0xf0d   : > { %v22860_v25 = vpop.xlane.xlu0 %22859 }
 0xf0e   : > { %30737 = vrcp.f32 %v22860_v25 }
 0xf11   : > { %v22866_v5 = vpop.xlane.xlu0 %22865 }
 0xf12   : > { %30739 = vrcp.f32 %v22866_v5  ;;  %v22863_v42 = vpop.xlane.xlu1 %22862  ;;  %v20091_v5 = vadd.f32 %v35044_v58, %v35338_v12 }
 0xf13   : > { %30741 = vrcp.f32 %v22863_v42 }
 0xf15   : > { %v22872_v45 = vpop.xlane.xlu0 %22871 }
 0xf16   : > { %30743 = vrcp.f32 %v22872_v45  ;;  %v22869_v51 = vpop.xlane.xlu1 %22868 }
 0xf17   : > { %30745 = vrcp.f32 %v22869_v51 }
 0xf18   : > { %v30738_v49 = vpop.eup %30737 }
 0xf19   : > { %v22986_v31 = vmul.f32 %v30738_v49, %v35509_v39  ;;  %v22878_v24 = vpop.xlane.xlu0 %22877  ;;  %v20096_v39 = vadd.f32 %v35338_v12, %v35050_v28  ;;  %v20106_v28 = vadd.f32 %v35338_v12, %v35054_v40 }
 0xf1a   : > { %30747 = vrcp.f32 %v22878_v24  ;;  %v22875_v59 = vpop.xlane.xlu1 %22874 }
 0xf1b   : > { %30749 = vrcp.f32 %v22875_v59  ;;  %29828 = vmatmul.mubr.msk.f32.vlgmr.msra.gmra.mrb[240].mxu1 %vm4000_vm3, %v22986_v31 }
 0xf1c   : > { %v30740_v57 = vpop.eup %30739  ;;  %29836 = vmatpush3.msra.mxu1 %v20086_v19  ;;  %29837 = vmatprep.mubr.msk.f32.mxu1 %vm31099_vm1, %v36071_v61 }
 0xf1d   : > { %v30742_v21 = vpop.eup %30741  ;;  %v22988_v47 = vmul.f32 %v30740_v57, %v35515_v8  ;;  %v22884_v0 = vpop.xlane.xlu0 %22883  ;;  %29845 = vmatprep.subr.mxu1 %v36071_v61 }
 0xf1e   : > { %v22987_v17 = vmul.f32 %v30742_v21, %v35517_v30  ;;  %30751 = vrcp.f32 %v22884_v0  ;;  %v22881_v25 = vpop.xlane.xlu1 %22880 }
 0xf1f   : > { %30753 = vrcp.f32 %v22881_v25  ;;  %29838 = vmatmul.mubr.msk.f32.vlgmr.msra.gmra.mrb[242].mxu1 %vm4000_vm3, %v22988_v47 }
 0xf20   : > { %v30744_v42 = vpop.eup %30743  ;;  %29833 = vmatmul.mubr.msk.f32.vlgmr.msra.gmra.mrb[162].mxu0 %vm4000_vm3, %v22987_v17  ;;  %29846 = vmatpush3.msra.mxu1 %v20096_v39 }
 0xf21   : > { %v30746_v8 = vpop.eup %30745  ;;  %v22990_v45 = vmul.f32 %v30744_v42, %v35525_v48  ;;  %29841 = vmatpush3.msra.mxu0 %v20091_v5  ;;  %v22890_v51 = vpop.xlane.xlu0 %22889  ;;  %29842 = vmatprep.mubr.msk.f32.mxu0 %vm31099_vm1, %v36071_v61  ;;  %v20101_v48 = vadd.f32 %v35048_v6, %v35338_v12  ;;  %v20116_v6 = vadd.f32 %v35338_v12, %v35058_v38 }
 0xf22   : > { %v22989_v58 = vmul.f32 %v30746_v8, %v35527_v37  ;;  %30755 = vrcp.f32 %v22890_v51  ;;  %v22887_v30 = vpop.xlane.xlu1 %22886  ;;  %29847 = vmatprep.mubr.msk.f32.mxu1 %vm31099_vm1, %v36071_v61  ;;  %29850 = vmatprep.subr.mxu0 %v36071_v61 }
 0xf23   : > { %30757 = vrcp.f32 %v22887_v30  ;;  %29855 = vmatprep.subr.mxu1 %v36071_v61  ;;  %29848 = vmatmul.mubr.msk.f32.vlgmr.msra.gmra.mrb[244].mxu1 %vm4000_vm3, %v22990_v45 }
 0xf24   : > { %v30748_v49 = vpop.eup %30747  ;;  %29843 = vmatmul.mubr.msk.f32.vlgmr.msra.gmra.mrb[164].mxu0 %vm4000_vm3, %v22989_v58  ;;  %29856 = vmatpush3.msra.mxu1 %v20106_v28 }
 0xf25   : > { %v30750_v40 = vpop.eup %30749  ;;  %v22992_v37 = vmul.f32 %v30748_v49, %v35535_v44  ;;  %29851 = vmatpush3.msra.mxu0 %v20101_v48  ;;  %v22896_v31 = vpop.xlane.xlu0 %22895  ;;  %29852 = vmatprep.mubr.msk.f32.mxu0 %vm31099_vm1, %v36071_v61  ;;  %v20111_v44 = vadd.f32 %v35052_v33, %v35338_v12  ;;  %v20126_v33 = vadd.f32 %v35338_v12, %v35062_v26 }
 0xf26   : > { %v22991_v24 = vmul.f32 %v30750_v40, %v35537_v11  ;;  %30759 = vrcp.f32 %v22896_v31  ;;  %v22893_v19 = vpop.xlane.xlu1 %22892  ;;  %29857 = vmatprep.mubr.msk.f32.mxu1 %vm31099_vm1, %v36071_v61  ;;  %29860 = vmatprep.subr.mxu0 %v36071_v61  ;;  %v36168_v31 = vld [vmem:[#allocation22_spill] sm:$0xff] }
 0xf27   : > { %30761 = vrcp.f32 %v22893_v19  ;;  %29865 = vmatprep.subr.mxu1 %v36071_v61  ;;  %29858 = vmatmul.mubr.msk.f32.vlgmr.msra.gmra.mrb[246].mxu1 %vm4000_vm3, %v22992_v37  ;;  %v36169_v19 = vld [vmem:[#allocation21_spill] sm:$0xff] }
 0xf28   : > { %v30752_v59 = vpop.eup %30751  ;;  %29853 = vmatmul.mubr.msk.f32.vlgmr.msra.gmra.mrb[166].mxu0 %vm4000_vm3, %v22991_v24  ;;  %29866 = vmatpush3.msra.mxu1 %v20116_v6 }
 0xf29   : > { %v30754_v38 = vpop.eup %30753  ;;  %v22994_v11 = vmul.f32 %v30752_v59, %v35545_v50  ;;  %29861 = vmatpush3.msra.mxu0 %v20111_v44  ;;  %v22902_v57 = vpop.xlane.xlu0 %22901  ;;  %29862 = vmatprep.mubr.msk.f32.mxu0 %vm31099_vm1, %v36071_v61  ;;  %v20121_v50 = vadd.f32 %v35056_v63, %v35338_v12  ;;  %v20136_v63 = vadd.f32 %v35338_v12, %v35066_v46 }
 0xf2a   : > { %v22993_v21 = vmul.f32 %v30754_v38, %v35547_v4  ;;  %30763 = vrcp.f32 %v22902_v57  ;;  %v22899_v47 = vpop.xlane.xlu1 %22898  ;;  %29867 = vmatprep.mubr.msk.f32.mxu1 %vm31099_vm1, %v36071_v61  ;;  %29870 = vmatprep.subr.mxu0 %v36071_v61 }
 0xf2b   : > { %30765 = vrcp.f32 %v22899_v47  ;;  %29875 = vmatprep.subr.mxu1 %v36071_v61  ;;  %29868 = vmatmul.mubr.msk.f32.vlgmr.msra.gmra.mrb[248].mxu1 %vm4000_vm3, %v22994_v11  ;;  %v36170_v11 = vld [vmem:[#allocation20_spill] sm:$0xff]  ;;  %v36171_v47 = vld [vmem:[#allocation23_spill] sm:$0xff] }
 0xf2c   : > { %v30756_v0 = vpop.eup %30755  ;;  %29863 = vmatmul.mubr.msk.f32.vlgmr.msra.gmra.mrb[168].mxu0 %vm4000_vm3, %v22993_v21  ;;  %29876 = vmatpush3.msra.mxu1 %v20126_v33 }
 0xf2d   : > { %v30758_v26 = vpop.eup %30757  ;;  %v22996_v4 = vmul.f32 %v30756_v0, %v35555_v53  ;;  %29871 = vmatpush3.msra.mxu0 %v20121_v50  ;;  %v22908_v39 = vpop.xlane.xlu0 %22907  ;;  %29872 = vmatprep.mubr.msk.f32.mxu0 %vm31099_vm1, %v36071_v61  ;;  %v20131_v53 = vadd.f32 %v35060_v22, %v35338_v12  ;;  %v20146_v22 = vadd.f32 %v35338_v12, %v35070_v10 }
 0xf2e   : > { %v22995_v17 = vmul.f32 %v30758_v26, %v35557_v41  ;;  %30767 = vrcp.f32 %v22908_v39  ;;  %v22905_v25 = vpop.xlane.xlu1 %22904  ;;  %29877 = vmatprep.mubr.msk.f32.mxu1 %vm31099_vm1, %v36071_v61  ;;  %29880 = vmatprep.subr.mxu0 %v36071_v61 }
 0xf2f   : > { %30769 = vrcp.f32 %v22905_v25  ;;  %29885 = vmatprep.subr.mxu1 %v36071_v61  ;;  %29878 = vmatmul.mubr.msk.f32.vlgmr.msra.gmra.mrb[250].mxu1 %vm4000_vm3, %v22996_v4  ;;  %v36172_v4 = vld [vmem:[#allocation24_spill] sm:$0xff]  ;;  %v36173_v25 = vld [vmem:[#allocation25_spill] sm:$0xff] }
 0xf30   : > { %v30760_v5 = vpop.eup %30759  ;;  %29873 = vmatmul.mubr.msk.f32.vlgmr.msra.gmra.mrb[170].mxu0 %vm4000_vm3, %v22995_v17  ;;  %29886 = vmatpush3.msra.mxu1 %v20136_v63 }
 0xf31   : > { %v30762_v46 = vpop.eup %30761  ;;  %v22998_v41 = vmul.f32 %v30760_v5, %v35565_v13  ;;  %29881 = vmatpush3.msra.mxu0 %v20131_v53  ;;  %v22914_v42 = vpop.xlane.xlu0 %22913  ;;  %29882 = vmatprep.mubr.msk.f32.mxu0 %vm31099_vm1, %v36071_v61  ;;  %v20141_v13 = vadd.f32 %v35064_v56, %v35338_v12  ;;  %v20156_v56 = vadd.f32 %v35338_v12, %v35074_v29 }
 0xf32   : > { %v22997_v8 = vmul.f32 %v30762_v46, %v35567_v60  ;;  %30771 = vrcp.f32 %v22914_v42  ;;  %v22911_v45 = vpop.xlane.xlu1 %22910  ;;  %29887 = vmatprep.mubr.msk.f32.mxu1 %vm31099_vm1, %v36071_v61  ;;  %29890 = vmatprep.subr.mxu0 %v36071_v61 }
 0xf33   : > { %30773 = vrcp.f32 %v22911_v45  ;;  %29895 = vmatprep.subr.mxu1 %v36071_v61  ;;  %29888 = vmatmul.mubr.msk.f32.vlgmr.msra.gmra.mrb[252].mxu1 %vm4000_vm3, %v22998_v41  ;;  %v36174_v41 = vld [vmem:[#allocation26_spill] sm:$0xff]  ;;  %v36175_v45 = vld [vmem:[#allocation27_spill] sm:$0xff] }
 0xf34   : > { %v30764_v51 = vpop.eup %30763  ;;  %29883 = vmatmul.mubr.msk.f32.vlgmr.msra.gmra.mrb[172].mxu0 %vm4000_vm3, %v22997_v8  ;;  %29896 = vmatpush3.msra.mxu1 %v20146_v22 }
 0xf35   : > { %v30766_v10 = vpop.eup %30765  ;;  %v23000_v60 = vmul.f32 %v30764_v51, %v35575_v34  ;;  %29891 = vmatpush3.msra.mxu0 %v20141_v13  ;;  %v22920_v28 = vpop.xlane.xlu0 %22919  ;;  %29892 = vmatprep.mubr.msk.f32.mxu0 %vm31099_vm1, %v36071_v61  ;;  %v35759_v34 = vld [vmem:[%s36053_s8 + $0x3] ss:$0 sm:$0xff] }
 0xf36   : > { %v22999_v58 = vmul.f32 %v30766_v10, %v35577_v18  ;;  %30775 = vrcp.f32 %v22920_v28  ;;  %v22917_v30 = vpop.xlane.xlu1 %22916  ;;  %29897 = vmatprep.mubr.msk.f32.mxu1 %vm31099_vm1, %v36071_v61  ;;  %29900 = vmatprep.subr.mxu0 %v36071_v61  ;;  %v20151_v48 = vadd.f32 %v35759_v34, %v35068_v32  ;;  %v20166_v32 = vadd.f32 %v35759_v34, %v35078_v54 }
 0xf37   : > { %30777 = vrcp.f32 %v22917_v30  ;;  %29905 = vmatprep.subr.mxu1 %v36071_v61  ;;  %29898 = vmatmul.mubr.msk.f32.vlgmr.msra.gmra.mrb[254].mxu1 %vm4000_vm3, %v23000_v60  ;;  %v20176_v44 = vadd.f32 %v35759_v34, %v36169_v19  ;;  %v20186_v50 = vadd.f32 %v35759_v34, %v36171_v47  ;;  %v20196_v53 = vadd.f32 %v35759_v34, %v36173_v25  ;;  %v36176_v60 = vld [vmem:[#allocation28_spill] sm:$0xff] }
 0xf38   : > { %v30768_v29 = vpop.eup %30767  ;;  %29893 = vmatmul.mubr.msk.f32.vlgmr.msra.gmra.mrb[174].mxu0 %vm4000_vm3, %v22999_v58  ;;  %29906 = vmatpush3.msra.mxu1 %v20156_v56  ;;  %v20206_v13 = vadd.f32 %v35759_v34, %v36175_v45  ;;  %v36177_v58 = vld [vmem:[#allocation29_spill] sm:$0xff] }
 0xf39   : > { %v30770_v12 = vpop.eup %30769  ;;  %v23002_v18 = vmul.f32 %v30768_v29, %v35585_v16  ;;  %29901 = vmatpush3.msra.mxu0 %v20151_v48  ;;  %v22926_v49 = vpop.xlane.xlu0 %22925  ;;  %29902 = vmatprep.mubr.msk.f32.mxu0 %vm31099_vm1, %v36071_v61  ;;  %v20161_v16 = vadd.f32 %v35759_v34, %v36168_v31  ;;  %v20216_v30 = vadd.f32 %v35759_v34, %v36177_v58  ;;  %v36180_v31 = vld [vmem:[#allocation32_spill] sm:$0xff] }
 0xf3a   : > { %v23001_v40 = vmul.f32 %v30770_v12, %v35587_v3  ;;  %30779 = vrcp.f32 %v22926_v49  ;;  %v22923_v37 = vpop.xlane.xlu1 %22922  ;;  %29907 = vmatprep.mubr.msk.f32.mxu1 %vm31099_vm1, %v36071_v61  ;;  %29910 = vmatprep.subr.mxu0 %v36071_v61  ;;  %v36178_v12 = vld [vmem:[#allocation30_spill] sm:$0xff] }
 0xf3b   : > { %30781 = vrcp.f32 %v22923_v37  ;;  %29915 = vmatprep.subr.mxu1 %v36071_v61  ;;  %29908 = vmatmul.mubr.msk.f32.vlgmr.msra.gmra.mrb[112].mxu1 %vm4000_vm3, %v23002_v18  ;;  %v20211_v18 = vadd.f32 %v35759_v34, %v36178_v12 }
 0xf3c   : > { %v30772_v6 = vpop.eup %30771  ;;  %29903 = vmatmul.mubr.msk.f32.vlgmr.msra.gmra.mrb[176].mxu0 %vm4000_vm3, %v23001_v40  ;;  %29916 = vmatpush3.msra.mxu1 %v20166_v32  ;;  %v36179_v32 = vld [vmem:[#allocation33_spill] sm:$0xff] }
 0xf3d   : > { %v30774_v54 = vpop.eup %30773  ;;  %v23004_v3 = vmul.f32 %v30772_v6, %v35595_v7  ;;  %29911 = vmatpush3.msra.mxu0 %v20161_v16  ;;  %v22932_v24 = vpop.xlane.xlu0 %22931  ;;  %29912 = vmatprep.mubr.msk.f32.mxu0 %vm31099_vm1, %v36071_v61  ;;  %v20171_v7 = vadd.f32 %v35759_v34, %v36170_v11  ;;  %v20226_v40 = vadd.f32 %v35759_v34, %v36179_v32 }
 0xf3e   : > { %v23003_v59 = vmul.f32 %v30774_v54, %v35597_v52  ;;  %30783 = vrcp.f32 %v22932_v24  ;;  %v22929_v38 = vpop.xlane.xlu1 %22928  ;;  %29917 = vmatprep.mubr.msk.f32.mxu1 %vm31099_vm1, %v36071_v61  ;;  %29920 = vmatprep.subr.mxu0 %v36071_v61  ;;  %v20221_v16 = vadd.f32 %v35759_v34, %v36180_v31 }
 0xf3f   : > { %30785 = vrcp.f32 %v22929_v38  ;;  %29925 = vmatprep.subr.mxu1 %v36071_v61  ;;  %29918 = vmatmul.mubr.msk.f32.vlgmr.msra.gmra.mrb[114].mxu1 %vm4000_vm3, %v23004_v3  ;;  %v36181_v3 = vld [vmem:[#allocation31_spill] sm:$0xff] }
 0xf40   : > { %v30776_v57 = vpop.eup %30775  ;;  %29913 = vmatmul.mubr.msk.f32.vlgmr.msra.gmra.mrb[178].mxu0 %vm4000_vm3, %v23003_v59  ;;  %29926 = vmatpush3.msra.mxu1 %v20176_v44  ;;  %v20231_v24 = vadd.f32 %v35759_v34, %v36181_v3 }
 0xf41   : > { %v30778_v52 = vpop.eup %30777  ;;  %v23006_v33 = vmul.f32 %v30776_v57, %v35605_v43  ;;  %29921 = vmatpush3.msra.mxu0 %v20171_v7  ;;  %v22938_v21 = vpop.xlane.xlu0 %22937  ;;  %29922 = vmatprep.mubr.msk.f32.mxu0 %vm31099_vm1, %v36071_v61  ;;  %v20181_v43 = vadd.f32 %v35759_v34, %v36172_v4 }
 0xf42   : > { %v23005_v0 = vmul.f32 %v30778_v52, %v35607_v1  ;;  %30787 = vrcp.f32 %v22938_v21  ;;  %v22935_v26 = vpop.xlane.xlu1 %22934  ;;  %29927 = vmatprep.mubr.msk.f32.mxu1 %vm31099_vm1, %v36071_v61  ;;  %29930 = vmatprep.subr.mxu0 %v36071_v61 }
 0xf43   : > { %30789 = vrcp.f32 %v22935_v26  ;;  %29935 = vmatprep.subr.mxu1 %v36071_v61  ;;  %29928 = vmatmul.mubr.msk.f32.vlgmr.msra.gmra.mrb[116].mxu1 %vm4000_vm3, %v23006_v33 }
 0xf44   : > { %v30780_v39 = vpop.eup %30779  ;;  %29923 = vmatmul.mubr.msk.f32.vlgmr.msra.gmra.mrb[180].mxu0 %vm4000_vm3, %v23005_v0  ;;  %29936 = vmatpush3.msra.mxu1 %v20186_v50 }
 0xf45   : > { %v30782_v1 = vpop.eup %30781  ;;  %v23008_v63 = vmul.f32 %v30780_v39, %v35615_v14  ;;  %29931 = vmatpush3.msra.mxu0 %v20181_v43  ;;  %v22944_v17 = vpop.xlane.xlu0 %22943  ;;  %29932 = vmatprep.mubr.msk.f32.mxu0 %vm31099_vm1, %v36071_v61  ;;  %v20191_v14 = vadd.f32 %v35759_v34, %v36174_v41 }
 0xf46   : > { %v23007_v5 = vmul.f32 %v30782_v1, %v35617_v20  ;;  %30791 = vrcp.f32 %v22944_v17  ;;  %v22941_v46 = vpop.xlane.xlu1 %22940  ;;  %29937 = vmatprep.mubr.msk.f32.mxu1 %vm31099_vm1, %v36071_v61  ;;  %29940 = vmatprep.subr.mxu0 %v36071_v61 }
 0xf47   : > { %30793 = vrcp.f32 %v22941_v46  ;;  %29945 = vmatprep.subr.mxu1 %v36071_v61  ;;  %29938 = vmatmul.mubr.msk.f32.vlgmr.msra.gmra.mrb[118].mxu1 %vm4000_vm3, %v23008_v63 }
 0xf48   : > { %v30784_v42 = vpop.eup %30783  ;;  %29933 = vmatmul.mubr.msk.f32.vlgmr.msra.gmra.mrb[182].mxu0 %vm4000_vm3, %v23007_v5  ;;  %29946 = vmatpush3.msra.mxu1 %v20196_v53 }
 0xf49   : > { %v30786_v20 = vpop.eup %30785  ;;  %v23010_v22 = vmul.f32 %v30784_v42, %v35625_v35  ;;  %29941 = vmatpush3.msra.mxu0 %v20191_v14  ;;  %v22950_v8 = vpop.xlane.xlu0 %22949  ;;  %29942 = vmatprep.mubr.msk.f32.mxu0 %vm31099_vm1, %v36071_v61  ;;  %v20201_v35 = vadd.f32 %v35759_v34, %v36176_v60  ;;  %v26762_v34 = vld [vmem:[%s36054_s9 + $0x38] sm:$0xff] }
 0xf4a   : > { %v23009_v51 = vmul.f32 %v30786_v20, %v35627_v27  ;;  %30795 = vrcp.f32 %v22950_v8  ;;  %v22947_v10 = vpop.xlane.xlu1 %22946  ;;  %29947 = vmatprep.mubr.msk.f32.mxu1 %vm31099_vm1, %v36071_v61  ;;  %29950 = vmatprep.subr.mxu0 %v36071_v61 }
 0xf4b   : > { %30797 = vrcp.f32 %v22947_v10  ;;  %29955 = vmatprep.subr.mxu1 %v36071_v61  ;;  %29948 = vmatmul.mubr.msk.f32.vlgmr.msra.gmra.mrb[120].mxu1 %vm4000_vm3, %v23010_v22 }
 0xf4c   : > { %v30788_v28 = vpop.eup %30787  ;;  %29943 = vmatmul.mubr.msk.f32.vlgmr.msra.gmra.mrb[184].mxu0 %vm4000_vm3, %v23009_v51  ;;  %29956 = vmatpush3.msra.mxu1 %v20206_v13 }
 0xf4d   : > { %v30790_v27 = vpop.eup %30789  ;;  %v23012_v56 = vmul.f32 %v30788_v28, %v35634_v55  ;;  %29951 = vmatpush3.msra.mxu0 %v20201_v35  ;;  %29952 = vmatprep.mubr.msk.f32.mxu0 %vm31099_vm1, %v36071_v61 }
 0xf4e   : > { %v23011_v48 = vmul.f32 %v30790_v27, %v35636_v23  ;;  %v22953_v29 = vpop.xlane.xlu1 %22952  ;;  %29957 = vmatprep.mubr.msk.f32.mxu1 %vm31099_vm1, %v36071_v61  ;;  %29960 = vmatprep.subr.mxu0 %v36071_v61 }
 0xf4f   : > { %30799 = vrcp.f32 %v22953_v29  ;;  %29965 = vmatprep.subr.mxu1 %v36071_v61  ;;  %29958 = vmatmul.mubr.msk.f32.vlgmr.msra.gmra.mrb[122].mxu1 %vm4000_vm3, %v23012_v56 }
 0xf50   : > { %v30792_v55 = vpop.eup %30791  ;;  %29953 = vmatmul.mubr.msk.f32.vlgmr.msra.gmra.mrb[186].mxu0 %vm4000_vm3, %v23011_v48  ;;  %29966 = vmatpush3.msra.mxu1 %v20216_v30 }
 0xf51   : > { %v30794_v49 = vpop.eup %30793  ;;  %v23014_v23 = vmul.f32 %v30792_v55, %v35642_v15  ;;  %29961 = vmatpush3.msra.mxu0 %v20211_v18  ;;  %29962 = vmatprep.mubr.msk.f32.mxu0 %vm31099_vm1, %v36071_v61 }
 0xf52   : > { %v23013_v37 = vmul.f32 %v30794_v49, %v35644_v62  ;;  %29967 = vmatprep.mubr.msk.f32.mxu1 %vm31099_vm1, %v36071_v61  ;;  %29970 = vmatprep.subr.mxu0 %v36071_v61 }
 0xf53   : > { %29975 = vmatprep.subr.mxu1 %v36071_v61  ;;  %29968 = vmatmul.mubr.msk.f32.vlgmr.msra.gmra.mrb[124].mxu1 %vm4000_vm3, %v23014_v23 }
 0xf54   : > { %v30796_v15 = vpop.eup %30795  ;;  %29963 = vmatmul.mubr.msk.f32.vlgmr.msra.gmra.mrb[188].mxu0 %vm4000_vm3, %v23013_v37  ;;  %29976 = vmatpush3.msra.mxu1 %v20226_v40 }
 0xf55   : > { %v30798_v6 = vpop.eup %30797  ;;  %v23016_v54 = vmul.f32 %v30796_v15, %v35650_v9  ;;  %29971 = vmatpush3.msra.mxu0 %v20221_v16  ;;  %29972 = vmatprep.mubr.msk.f32.mxu0 %vm31099_vm1, %v36071_v61 }
 0xf56   : > { %v23015_v62 = vmul.f32 %v30798_v6, %v35652_v2  ;;  %29977 = vmatprep.mubr.msk.f32.mxu1 %vm31099_vm1, %v36071_v61  ;;  %29980 = vmatprep.subr.mxu0 %v36071_v61  ;;  %v26761_v2 = vld [vmem:[%s36054_s9 + $0x30] sm:$0xff] }
 0xf57   : > { %29978 = vmatmul.mubr.msk.f32.vlgmr.msra.gmra.mrb[126].mxu1 %vm4000_vm3, %v23016_v54  ;;  %v30145_v44 = vpack.c.bf16 %v26762_v34, %v26761_v2 }
 0xf58   : > { %29973 = vmatmul.mubr.msk.f32.vlgmr.msra.gmra.mrb[190].mxu0 %vm4000_vm3, %v23015_v62 }
 0xf59   : > { %v30800_v19 = vpop.eup %30799  ;;  %29981 = vmatpush3.msra.mxu0 %v20231_v24  ;;  %29982 = vmatprep.mubr.msk.f32.mxu0 %vm31099_vm1, %v36071_v61 }
 0xf5a   : > { %v23017_v9 = vmul.f32 %v30800_v19, %v35658_v36  ;;  %30146 = vmatprep.subr.bf16.mxu0 %v30145_v44 }
 0xf5c   : > { %29983 = vmatmul.mubr.msk.f32.vlgmr.msra.gmra.mrb[192].mxu0 %vm4000_vm3, %v23017_v9 }
 0xf5d   : > { %30148 = vmatpush3.bf16.msra.mxu0 %v30145_v44 }
 0xfee   : > { %v23087_v59 = vpop.f32.mrb[240].mxu1 }
 0xfef   : > { %v29829_v38 = vpop.f32.mrb[241].mxu1  ;;  %29989 = vmatprep.mubr.msk.f32.mxu0 %vm1567_vm2, %v23087_v59  ;;  %v35920_v59 = vld [vmem:[%s36055_s10] ss:$0 sm:$0xff] }
 0xff2   : > { %v23233_v61 = vpop.f32.mrb[242].mxu1 }
 0xff3   : > { %v23160_v11 = vpop.f32.mrb[162].mxu0  ;;  %v29839_v36 = vpop.f32.mrb[243].mxu1 }
 0xff4   : > { %v29834_v7 = vpop.f32.mrb[163].mxu0  ;;  %29990 = vmatmul.mubr.msk.f32.vlgmr.msra.gmra.mrb[112].mxu0 %vm1567_vm2, %v23160_v11 }
 0xff5   : > { %29992 = vmatprep.mubr.msk.f32.mxu0 %vm1567_vm2, %v23233_v61 }
 0xff6   : > { %v23379_v57 = vpop.f32.mrb[244].mxu1 }
 0xff7   : > { %v23306_v52 = vpop.f32.mrb[164].mxu0  ;;  %v29849_v33 = vpop.f32.mrb[245].mxu1 }
 0xff8   : > { %v29844_v21 = vpop.f32.mrb[165].mxu0  ;;  %29993 = vmatmul.mubr.msk.f32.gmra.mrb[114].mxu0 %vm1567_vm2, %v23306_v52 }
 0xff9   : > { %29995 = vmatprep.mubr.msk.f32.mxu0 %vm1567_vm2, %v23379_v57 }
 0xffa   : > { %v23525_v47 = vpop.f32.mrb[246].mxu1 }
 0xffb   : > { %v23452_v50 = vpop.f32.mrb[166].mxu0  ;;  %v29859_v0 = vpop.f32.mrb[247].mxu1 }
 0xffc   : > { %v29854_v26 = vpop.f32.mrb[167].mxu0  ;;  %29996 = vmatmul.mubr.msk.f32.gmra.mrb[116].mxu0 %vm1567_vm2, %v23452_v50 }
 0xffd   : > { %29998 = vmatprep.mubr.msk.f32.mxu0 %vm1567_vm2, %v23525_v47 }
 0xffe   : > { %v23671_v4 = vpop.f32.mrb[248].mxu1 }
 0xfff   : > { %v23598_v43 = vpop.f32.mrb[168].mxu0  ;;  %v29869_v39 = vpop.f32.mrb[249].mxu1 }
0x1000   : > { %v29864_v1 = vpop.f32.mrb[169].mxu0  ;;  %29999 = vmatmul.mubr.msk.f32.gmra.mrb[118].mxu0 %vm1567_vm2, %v23598_v43 }
0x1001   : > { %30001 = vmatprep.mubr.msk.f32.mxu0 %vm1567_vm2, %v23671_v4 }
0x1002   : > { %v23817_v63 = vpop.f32.mrb[250].mxu1 }
0x1003   : > { %v23744_v17 = vpop.f32.mrb[170].mxu0  ;;  %v29879_v25 = vpop.f32.mrb[251].mxu1 }
0x1004   : > { %v29874_v53 = vpop.f32.mrb[171].mxu0  ;;  %30002 = vmatmul.mubr.msk.f32.gmra.mrb[120].mxu0 %vm1567_vm2, %v23744_v17 }
0x1005   : > { %30004 = vmatprep.mubr.msk.f32.mxu0 %vm1567_vm2, %v23817_v63 }
0x1006   : > { %v23963_v5 = vpop.f32.mrb[252].mxu1 }
0x1007   : > { %v23890_v46 = vpop.f32.mrb[172].mxu0  ;;  %v29889_v41 = vpop.f32.mrb[253].mxu1 }
0x1008   : > { %v29884_v14 = vpop.f32.mrb[173].mxu0  ;;  %30005 = vmatmul.mubr.msk.f32.gmra.mrb[122].mxu0 %vm1567_vm2, %v23890_v46 }
0x1009   : > { %30007 = vmatprep.mubr.msk.f32.mxu0 %vm1567_vm2, %v23963_v5 }
0x100a   : > { %v24109_v42 = vpop.f32.mrb[254].mxu1 }
0x100b   : > { %v24036_v20 = vpop.f32.mrb[174].mxu0  ;;  %v29899_v22 = vpop.f32.mrb[255].mxu1 }
0x100c   : > { %v29894_v8 = vpop.f32.mrb[175].mxu0  ;;  %30008 = vmatmul.mubr.msk.f32.gmra.mrb[124].mxu0 %vm1567_vm2, %v24036_v20 }
0x100d   : > { %30010 = vmatprep.mubr.msk.f32.mxu0 %vm1567_vm2, %v24109_v42  ;;  %v36182_v8 = vld [vmem:[#allocation2_spill] sm:$0xff] }
0x100e   : > { %v24255_v45 = vpop.f32.mrb[112].mxu1 }
0x100f   : > { %v24182_v13 = vpop.f32.mrb[176].mxu0  ;;  %v29909_v51 = vpop.f32.mrb[113].mxu1 }
0x1010   : > { %v29904_v10 = vpop.f32.mrb[177].mxu0  ;;  %30011 = vmatmul.mubr.msk.f32.gmra.mrb[224].mxu0 %vm1567_vm2, %v24182_v13  ;;  %v36183_v51 = vld [vmem:[#allocation5_spill] sm:$0xff] }
0x1011   : > { %30013 = vmatprep.mubr.msk.f32.mxu0 %vm1567_vm2, %v24255_v45  ;;  %v7027_v45 = vadd.f32 %v36182_v8, %v35920_v59  ;;  %v7026_v10 = vadd.f32 %v35920_v59, %v36183_v51  ;;  %v36199_v51 = vld [vmem:[#allocation19_spill] sm:$0xff] }
0x1012   : > { %v24401_v60 = vpop.f32.mrb[114].mxu1 }
0x1013   : > { %v24328_v35 = vpop.f32.mrb[178].mxu0  ;;  %v29919_v28 = vpop.f32.mrb[115].mxu1 }
0x1014   : > { %v29914_v27 = vpop.f32.mrb[179].mxu0  ;;  %30014 = vmatmul.mubr.msk.f32.gmra.mrb[226].mxu0 %vm1567_vm2, %v24328_v35 }
0x1015   : > { %30016 = vmatprep.mubr.msk.f32.mxu0 %vm1567_vm2, %v24401_v60  ;;  %v36184_v27 = vld [vmem:[#allocation3_spill] sm:$0xff] }
0x1016   : > { %v24547_v56 = vpop.f32.mrb[116].mxu1 }
0x1017   : > { %v24474_v58 = vpop.f32.mrb[180].mxu0  ;;  %v29929_v30 = vpop.f32.mrb[117].mxu1 }
0x1018   : > { %v29924_v48 = vpop.f32.mrb[181].mxu0  ;;  %30017 = vmatmul.mubr.msk.f32.gmra.mrb[228].mxu0 %vm1567_vm2, %v24474_v58  ;;  %v36185_v30 = vld [vmem:[#allocation7_spill] sm:$0xff] }
0x1019   : > { %30019 = vmatprep.mubr.msk.f32.mxu0 %vm1567_vm2, %v24547_v56  ;;  %v7029_v56 = vadd.f32 %v36184_v27, %v35920_v59  ;;  %v7028_v48 = vadd.f32 %v35920_v59, %v36185_v30 }
0x101a   : > { %v24693_v29 = vpop.f32.mrb[118].mxu1 }
0x101b   : > { %v24620_v12 = vpop.f32.mrb[182].mxu0  ;;  %v29939_v18 = vpop.f32.mrb[119].mxu1 }
0x101c   : > { %v29934_v55 = vpop.f32.mrb[183].mxu0  ;;  %30020 = vmatmul.mubr.msk.f32.gmra.mrb[230].mxu0 %vm1567_vm2, %v24620_v12 }
0x101d   : > { %30022 = vmatprep.mubr.msk.f32.mxu0 %vm1567_vm2, %v24693_v29  ;;  %v36186_v55 = vld [vmem:[#allocation4_spill] sm:$0xff] }
0x101e   : > { %v24839_v49 = vpop.f32.mrb[120].mxu1 }
0x101f   : > { %v24766_v23 = vpop.f32.mrb[184].mxu0  ;;  %v29949_v32 = vpop.f32.mrb[121].mxu1 }
0x1020   : > { %v29944_v40 = vpop.f32.mrb[185].mxu0  ;;  %30023 = vmatmul.mubr.msk.f32.gmra.mrb[232].mxu0 %vm1567_vm2, %v24766_v23  ;;  %v36187_v32 = vld [vmem:[#allocation9_spill] sm:$0xff] }
0x1021   : > { %30025 = vmatprep.mubr.msk.f32.mxu0 %vm1567_vm2, %v24839_v49  ;;  %v7031_v49 = vadd.f32 %v36186_v55, %v35920_v59  ;;  %v7030_v40 = vadd.f32 %v35920_v59, %v36187_v32 }
0x1022   : > { %v24985_v37 = vpop.f32.mrb[122].mxu1 }
0x1023   : > { %v24912_v31 = vpop.f32.mrb[186].mxu0  ;;  %v29959_v16 = vpop.f32.mrb[123].mxu1 }
0x1024   : > { %v29954_v15 = vpop.f32.mrb[187].mxu0  ;;  %30026 = vmatmul.mubr.msk.f32.gmra.mrb[234].mxu0 %vm1567_vm2, %v24912_v31 }
0x1025   : > { %30028 = vmatprep.mubr.msk.f32.mxu0 %vm1567_vm2, %v24985_v37  ;;  %v36188_v15 = vld [vmem:[#allocation6_spill] sm:$0xff] }
0x1026   : > { %v25131_v6 = vpop.f32.mrb[124].mxu1 }
0x1027   : > { %v25058_v54 = vpop.f32.mrb[188].mxu0  ;;  %v29969_v62 = vpop.f32.mrb[125].mxu1 }
0x1028   : > { %v29964_v3 = vpop.f32.mrb[189].mxu0  ;;  %30029 = vmatmul.mubr.msk.f32.gmra.mrb[236].mxu0 %vm1567_vm2, %v25058_v54  ;;  %v36189_v62 = vld [vmem:[#allocation11_spill] sm:$0xff] }
0x1029   : > { %30031 = vmatprep.mubr.msk.f32.mxu0 %vm1567_vm2, %v25131_v6  ;;  %v7033_v6 = vadd.f32 %v36188_v15, %v35920_v59  ;;  %v7032_v3 = vadd.f32 %v35920_v59, %v36189_v62 }
0x102a   : > { %v25277_v24 = vpop.f32.mrb[126].mxu1 }
0x102b   : > { %v25204_v19 = vpop.f32.mrb[190].mxu0  ;;  %v29979_v9 = vpop.f32.mrb[127].mxu1 }
0x102c   : > { %v29974_v2 = vpop.f32.mrb[191].mxu0  ;;  %30032 = vmatmul.mubr.msk.f32.gmra.mrb[238].mxu0 %vm1567_vm2, %v25204_v19 }
0x102d   : > { %30034 = vmatprep.mubr.msk.f32.mxu0 %vm1567_vm2, %v25277_v24  ;;  %v36190_v2 = vld [vmem:[#allocation8_spill] sm:$0xff] }
0x102f   : > { %v25350_v34 = vpop.f32.mrb[192].mxu0 }
0x1030   : > { %v29984_v44 = vpop.f32.mrb[193].mxu0  ;;  %30035 = vmatmul.mubr.msk.f32.gmra.mrb[240].mxu0 %vm1567_vm2, %v25350_v34  ;;  %v7035_v34 = vadd.f32 %v36190_v2, %v35920_v59 }
0x10c7   : > { %v29991_v38 = vpop.f32.mrb[112].mxu0 }
0x10c8   : > { %v30151_v61 = vadd.f32 %v29991_v38, %v35920_v59  ;;  %v25519_v11 = vpop.f32.mrb[113].mxu0  ;;  %v36191_v38 = vld [vmem:[#allocation13_spill] sm:$0xff] }
0x10c9   : > { %v30152_v36 = vadd.f32 %v35920_v59, %v25519_v11 }
0x10ca   : > { %25711 = vst.msk [vmem:[%s35926_s21 + $0x8] sm:$0xff] %vm549_vm0, %v30151_v61  ;;  %v7034_v61 = vadd.f32 %v35920_v59, %v36191_v38 }
0x10cb   : > { %25710 = vst.msk [vmem:[%s35926_s21] sm:$0xff] %vm549_vm0, %v30152_v36  ;;  %v29994_v7 = vpop.f32.mrb[114].mxu0 }
0x10cc   : > { %v30153_v57 = vadd.f32 %v29994_v7, %v35920_v59  ;;  %v25529_v52 = vpop.f32.mrb[115].mxu0 }
0x10cd   : > { %v30154_v33 = vadd.f32 %v35920_v59, %v25529_v52 }
0x10ce   : > { %25713 = vst.msk [vmem:[%s35926_s21 + $0x18] sm:$0xff] %vm549_vm0, %v30153_v57  ;;  %v36192_v57 = vld [vmem:[#allocation10_spill] sm:$0xff] }
0x10cf   : > { %25712 = vst.msk [vmem:[%s35926_s21 + $0x10] sm:$0xff] %vm549_vm0, %v30154_v33  ;;  %v29997_v21 = vpop.f32.mrb[116].mxu0  ;;  %v7037_v52 = vadd.f32 %v36192_v57, %v35920_v59 }
0x10d0   : > { %v30155_v47 = vadd.f32 %v29997_v21, %v35920_v59  ;;  %v25539_v50 = vpop.f32.mrb[117].mxu0  ;;  %v36193_v21 = vld [vmem:[#allocation12_spill] sm:$0xff] }
0x10d1   : > { %v30156_v0 = vadd.f32 %v35920_v59, %v25539_v50 }
0x10d2   : > { %25715 = vst.msk [vmem:[%s35926_s21 + $0x28] sm:$0xff] %vm549_vm0, %v30155_v47  ;;  %v7036_v47 = vadd.f32 %v35920_v59, %v36193_v21 }
0x10d3   : > { %25714 = vst.msk [vmem:[%s35926_s21 + $0x20] sm:$0xff] %vm549_vm0, %v30156_v0  ;;  %v30000_v26 = vpop.f32.mrb[118].mxu0 }
0x10d4   : > { %v30157_v4 = vadd.f32 %v30000_v26, %v35920_v59  ;;  %v25549_v43 = vpop.f32.mrb[119].mxu0 }
0x10d5   : > { %v30158_v39 = vadd.f32 %v35920_v59, %v25549_v43 }
0x10d6   : > { %25717 = vst.msk [vmem:[%s35926_s21 + $0x38] sm:$0xff] %vm549_vm0, %v30157_v4  ;;  %v36194_v4 = vld [vmem:[#allocation14_spill] sm:$0xff] }
0x10d7   : > { %25716 = vst.msk [vmem:[%s35926_s21 + $0x30] sm:$0xff] %vm549_vm0, %v30158_v39  ;;  %v30003_v1 = vpop.f32.mrb[120].mxu0  ;;  %v7039_v43 = vadd.f32 %v36194_v4, %v35920_v59 }
0x10d8   : > { %v30159_v63 = vadd.f32 %v30003_v1, %v35920_v59  ;;  %v25559_v17 = vpop.f32.mrb[121].mxu0  ;;  %v36195_v1 = vld [vmem:[#allocation15_spill] sm:$0xff] }
0x10d9   : > { %v30160_v25 = vadd.f32 %v35920_v59, %v25559_v17 }
0x10da   : > { %25719 = vst.msk [vmem:[%s35926_s21 + $0x48] sm:$0xff] %vm549_vm0, %v30159_v63  ;;  %v7038_v63 = vadd.f32 %v35920_v59, %v36195_v1 }
0x10db   : > { %25718 = vst.msk [vmem:[%s35926_s21 + $0x40] sm:$0xff] %vm549_vm0, %v30160_v25  ;;  %v30006_v53 = vpop.f32.mrb[122].mxu0 }
0x10dc   : > { %v30161_v5 = vadd.f32 %v30006_v53, %v35920_v59  ;;  %v25569_v46 = vpop.f32.mrb[123].mxu0 }
0x10dd   : > { %v30162_v41 = vadd.f32 %v35920_v59, %v25569_v46 }
0x10de   : > { %25721 = vst.msk [vmem:[%s35926_s21 + $0x58] sm:$0xff] %vm549_vm0, %v30161_v5  ;;  %v36196_v5 = vld [vmem:[#allocation16_spill] sm:$0xff] }
0x10df   : > { %25720 = vst.msk [vmem:[%s35926_s21 + $0x50] sm:$0xff] %vm549_vm0, %v30162_v41  ;;  %v30009_v14 = vpop.f32.mrb[124].mxu0  ;;  %v7041_v46 = vadd.f32 %v36196_v5, %v35920_v59 }
0x10e0   : > { %v30163_v42 = vadd.f32 %v30009_v14, %v35920_v59  ;;  %v25579_v20 = vpop.f32.mrb[125].mxu0  ;;  %v36197_v14 = vld [vmem:[#allocation17_spill] sm:$0xff] }
0x10e1   : > { %v30164_v22 = vadd.f32 %v35920_v59, %v25579_v20 }
0x10e2   : > { %25723 = vst.msk [vmem:[%s35926_s21 + $0x68] sm:$0xff] %vm549_vm0, %v30163_v42  ;;  %v7040_v42 = vadd.f32 %v35920_v59, %v36197_v14 }
0x10e3   : > { %25722 = vst.msk [vmem:[%s35926_s21 + $0x60] sm:$0xff] %vm549_vm0, %v30164_v22  ;;  %v30012_v13 = vpop.f32.mrb[224].mxu0 }
0x10e4   : > { %v30166_v60 = vadd.f32 %v30012_v13, %v7027_v45  ;;  %v25589_v35 = vpop.f32.mrb[225].mxu0  ;;  %v36198_v45 = vld [vmem:[#allocation18_spill] sm:$0xff] }
0x10e5   : > { %v30168_v28 = vadd.f32 %v25589_v35, %v7026_v10  ;;  %v7043_v13 = vadd.f32 %v36198_v45, %v35920_v59  ;;  %v7042_v10 = vadd.f32 %v35920_v59, %v36199_v51 }
0x10e6   : > { %25725 = vst.msk [vmem:[%s35926_s21 + $0x78] sm:$0xff] %vm549_vm0, %v30166_v60 }
0x10e7   : > { %25724 = vst.msk [vmem:[%s35926_s21 + $0x70] sm:$0xff] %vm549_vm0, %v30168_v28  ;;  %v30015_v58 = vpop.f32.mrb[226].mxu0 }
0x10e8   : > { %v30170_v29 = vadd.f32 %v30015_v58, %v7029_v56  ;;  %v25599_v12 = vpop.f32.mrb[227].mxu0 }
0x10e9   : > { %v30172_v18 = vadd.f32 %v25599_v12, %v7028_v48 }
0x10ea   : > { %25727 = vst.msk [vmem:[%s35926_s21 + $0x88] sm:$0xff] %vm549_vm0, %v30170_v29 }
0x10eb   : > { %25726 = vst.msk [vmem:[%s35926_s21 + $0x80] sm:$0xff] %vm549_vm0, %v30172_v18  ;;  %v30018_v23 = vpop.f32.mrb[228].mxu0 }
0x10ec   : > { %v30174_v37 = vadd.f32 %v30018_v23, %v7031_v49  ;;  %v25609_v31 = vpop.f32.mrb[229].mxu0 }
0x10ed   : > { %v30176_v16 = vadd.f32 %v25609_v31, %v7030_v40 }
0x10ee   : > { %25729 = vst.msk [vmem:[%s35926_s21 + $0x98] sm:$0xff] %vm549_vm0, %v30174_v37 }
0x10ef   : > { %25728 = vst.msk [vmem:[%s35926_s21 + $0x90] sm:$0xff] %vm549_vm0, %v30176_v16  ;;  %v30021_v54 = vpop.f32.mrb[230].mxu0 }
0x10f0   : > { %v30178_v24 = vadd.f32 %v30021_v54, %v7033_v6  ;;  %v25619_v19 = vpop.f32.mrb[231].mxu0 }
0x10f1   : > { %v30180_v9 = vadd.f32 %v25619_v19, %v7032_v3 }
0x10f2   : > { %25731 = vst.msk [vmem:[%s35926_s21 + $0xa8] sm:$0xff] %vm549_vm0, %v30178_v24 }
0x10f3   : > { %25730 = vst.msk [vmem:[%s35926_s21 + $0xa0] sm:$0xff] %vm549_vm0, %v30180_v9  ;;  %v30024_v44 = vpop.f32.mrb[232].mxu0 }
0x10f4   : > { %v30182_v11 = vadd.f32 %v30024_v44, %v7035_v34  ;;  %v25629_v36 = vpop.f32.mrb[233].mxu0 }
0x10f5   : > { %v30184_v7 = vadd.f32 %v25629_v36, %v7034_v61 }
0x10f6   : > { %25733 = vst.msk [vmem:[%s35926_s21 + $0xb8] sm:$0xff] %vm549_vm0, %v30182_v11 }
0x10f7   : > { %25732 = vst.msk [vmem:[%s35926_s21 + $0xb0] sm:$0xff] %vm549_vm0, %v30184_v7  ;;  %v30027_v33 = vpop.f32.mrb[234].mxu0 }
0x10f8   : > { %v30186_v50 = vadd.f32 %v30027_v33, %v7037_v52  ;;  %v25639_v0 = vpop.f32.mrb[235].mxu0 }
0x10f9   : > { %v30188_v26 = vadd.f32 %v25639_v0, %v7036_v47 }
0x10fa   : > { %25735 = vst.msk [vmem:[%s35926_s21 + $0xc8] sm:$0xff] %vm549_vm0, %v30186_v50 }
0x10fb   : > { %25734 = vst.msk [vmem:[%s35926_s21 + $0xc0] sm:$0xff] %vm549_vm0, %v30188_v26  ;;  %v30030_v39 = vpop.f32.mrb[236].mxu0 }
0x10fc   : > { %v30190_v17 = vadd.f32 %v30030_v39, %v7039_v43  ;;  %v25649_v25 = vpop.f32.mrb[237].mxu0 }
0x10fd   : > { %v30192_v53 = vadd.f32 %v25649_v25, %v7038_v63 }
0x10fe   : > { %25737 = vst.msk [vmem:[%s35926_s21 + $0xd8] sm:$0xff] %vm549_vm0, %v30190_v17 }
0x10ff   : > { %25736 = vst.msk [vmem:[%s35926_s21 + $0xd0] sm:$0xff] %vm549_vm0, %v30192_v53  ;;  %v30033_v41 = vpop.f32.mrb[238].mxu0 }
0x1100   : > { %v30194_v20 = vadd.f32 %v30033_v41, %v7041_v46  ;;  %v25659_v22 = vpop.f32.mrb[239].mxu0 }
0x1101   : > { %v30196_v8 = vadd.f32 %v25659_v22, %v7040_v42 }
0x1102   : > { %25739 = vst.msk [vmem:[%s35926_s21 + $0xe8] sm:$0xff] %vm549_vm0, %v30194_v20 }
0x1103   : > { %25738 = vst.msk [vmem:[%s35926_s21 + $0xe0] sm:$0xff] %vm549_vm0, %v30196_v8  ;;  %v30036_v60 = vpop.f32.mrb[240].mxu0 }
0x1104   : > { %v30198_v35 = vadd.f32 %v30036_v60, %v7043_v13  ;;  %v25669_v28 = vpop.f32.mrb[241].mxu0 }
0x1105   : > { %v30200_v27 = vadd.f32 %v25669_v28, %v7042_v10 }
0x1106   : > { %25741 = vst.msk [vmem:[%s35926_s21 + $0xf8] sm:$0xff] %vm549_vm0, %v30198_v35 }
0x1107   : > { %25740 = vst.msk [vmem:[%s35926_s21 + $0xf0] sm:$0xff] %vm549_vm0, %v30200_v27 }
0x1108 PF: > { %s21_s17 = sadd.s32 1, %s31096_s17  }
0x1109   : > { %p18_p4 = scmp.ge.s32.totalorder %s21_s17, 4  }
0x110b   :  { %20 = sbr.rel (!%p18_p4) target bundleno = 1 (0x1), region = 121 }

</bundles_post_ra>
